<compile_context>
chip_gen: v7x
topology: tpu7x:2x2x1
jax: 0.10.0
libtpu: 0.0.40
codegen_flags: <defaults>
</compile_context>

<pallas_src>
import functools

import jax
import jax.numpy as jnp
from jax.experimental import pallas as pl
from jax.experimental.pallas import tpu as pltpu

NEG_SLOPE = 0.01  # torch F.leaky_relu / nn.LeakyReLU default negative_slope


def _leaky_relu(v):
    return jnp.where(v >= 0, v, NEG_SLOPE * v)


def _dense(x_f32, w_ref, b_ref):
    # w_ref is (in, out) bf16; cast the f32 activation to bf16 only at the MXU
    # input, accumulate in f32, bias-add in f32.
    return (
        jnp.dot(x_f32.astype(jnp.bfloat16), w_ref[...],
                preferred_element_type=jnp.float32)
        + b_ref[...]
    )


def _res_block(x, wa_ref, ba_ref, wb_ref, bb_ref):
    h = _leaky_relu(_dense(x, wa_ref, ba_ref))
    return _dense(h, wb_ref, bb_ref)


def gen_net_kernel(
    x_ref,                                   # (TB, 128) f32
    w1_ref, b1_ref,                          # dense1
    r1a_w, r1a_b, r1b_w, r1b_b,              # residual_block1
    r2a_w, r2a_b, r2b_w, r2b_b,              # residual_block2
    w2_ref, b2_ref,                          # dense2
    r3a_w, r3a_b, r3b_w, r3b_b,              # residual_block3
    w3_ref, b3_ref,                          # dense3
    o_ref,                                   # (TB, 2*outsize)
):
    x = x_ref[...].astype(jnp.float32)
    h = _leaky_relu(_dense(x, w1_ref, b1_ref))
    h = h + _res_block(h, r1a_w, r1a_b, r1b_w, r1b_b)
    h = h + _res_block(h, r2a_w, r2a_b, r2b_w, r2b_b)
    h = _leaky_relu(_dense(h, w2_ref, b2_ref))
    h = h + _res_block(h, r3a_w, r3a_b, r3b_w, r3b_b)
    y = _dense(h, w3_ref, b3_ref)
    o_ref[...] = y.astype(o_ref.dtype)


_KPARAM_ORDER = (
    "w1", "b1",
    "rb1_wa", "rb1_ba", "rb1_wb", "rb1_bb",
    "rb2_wa", "rb2_ba", "rb2_wb", "rb2_bb",
    "w2", "b2",
    "rb3_wa", "rb3_ba", "rb3_wb", "rb3_bb",
    "w3", "b3",
)


def _round_up(n, m):
    return ((n + m - 1) // m) * m


def _cdiv(a, b):
    return -(-a // b)


def _vmem_capacity_bytes():
    try:
        return int(pltpu.get_tpu_info().vmem_capacity_bytes)
    except Exception:
        return 64 << 20  # conservative fallback (v7x per-core VMEM)


@functools.partial(jax.jit, static_argnames=("tb", "single_buffer_weights"))
def generative_network(z, kparams, *, tb=1024, single_buffer_weights=True):
    """z: (T, B, in_dim) float32. kparams: prepare_params() output (kernel layout)."""
    T, B, in_dim = z.shape
    hid = kparams["w1"].shape[1]          # hidsize
    mid = kparams["w2"].shape[1]          # outsize
    out_dim = kparams["w3"].shape[1]      # 2 * outsize
    N = T * B
    x = z.reshape(N, in_dim)

    # Adaptive batch tile: cap at 1024 rows (v7x VMEM budget), keep a multiple
    # of 8 sublanes, bound tail padding to <8 rows per tile, and force an even
    # tile count when splitting so the parallel axis balances across 2 TCs.
    tb = max(8, _round_up(min(tb, 1024), 8))
    n_tiles = max(1, _cdiv(N, tb))
    if n_tiles > 1 and n_tiles % 2 == 1:
        n_tiles += 1
    TB = min(tb, _round_up(_cdiv(N, n_tiles), 8))
    n_pad = TB * n_tiles
    if n_pad != N:
        x = jnp.pad(x, ((0, n_pad - N), (0, 0)))

    ordered = [kparams[k] for k in _KPARAM_ORDER]

    # Chip-aware VMEM budget from the actual buffer counts: resident params
    # (single-buffered via Buffered(1)), double-buffered activation tiles,
    # f32 in-kernel intermediates, plus Mosaic internal-scratch slack; clamped
    # to 90% of the physical per-core capacity.
    weight_bufs = 1 if single_buffer_weights else 2
    param_bytes = sum(int(v.size) * v.dtype.itemsize for v in ordered)
    io_bytes = 2 * TB * (in_dim + out_dim) * 4
    interm_bytes = TB * (4 * hid + 4 * mid + 2 * out_dim) * 4
    vmem_limit = min(
        weight_bufs * param_bytes + io_bytes + interm_bytes + (16 << 20),
        int(0.9 * _vmem_capacity_bytes()),
    )

    weight_pipeline_mode = pl.Buffered(1) if single_buffer_weights else None

    def resident(arr):
        idx = (0,) * arr.ndim
        if weight_pipeline_mode is None:
            return pl.BlockSpec(arr.shape, lambda i, _idx=idx: _idx)
        return pl.BlockSpec(arr.shape, lambda i, _idx=idx: _idx,
                            pipeline_mode=weight_pipeline_mode)

    out = pl.pallas_call(
        gen_net_kernel,
        out_shape=jax.ShapeDtypeStruct((n_pad, out_dim), z.dtype),
        grid=(n_tiles,),
        in_specs=[pl.BlockSpec((TB, in_dim), lambda i: (i, 0))]
        + [resident(v) for v in ordered],
        out_specs=pl.BlockSpec((TB, out_dim), lambda i: (i, 0)),
        compiler_params=pltpu.CompilerParams(
            dimension_semantics=("parallel",),
            vmem_limit_bytes=int(vmem_limit),
        ),
    )(x, *ordered)

    return out[:N].reshape(T, B, out_dim)


def make_params(key, in_dim=128, hidsize=256, outsize=512):
    """Torch-layout parameters (Linear weight = (out, in)), torch default init."""
    def linear(k, fan_in, fan_out):
        kw, kb = jax.random.split(k)
        s = 1.0 / jnp.sqrt(fan_in)
        w = jax.random.uniform(kw, (fan_out, fan_in), jnp.float32, -s, s)
        b = jax.random.uniform(kb, (fan_out,), jnp.float32, -s, s)
        return w, b

    keys = jax.random.split(key, 9)
    p = {}
    p["w1"], p["b1"] = linear(keys[0], in_dim, hidsize)
    p["rb1_wa"], p["rb1_ba"] = linear(keys[1], hidsize, hidsize)
    p["rb1_wb"], p["rb1_bb"] = linear(keys[2], hidsize, hidsize)
    p["rb2_wa"], p["rb2_ba"] = linear(keys[3], hidsize, hidsize)
    p["rb2_wb"], p["rb2_bb"] = linear(keys[4], hidsize, hidsize)
    p["w2"], p["b2"] = linear(keys[5], hidsize, outsize)
    p["rb3_wa"], p["rb3_ba"] = linear(keys[6], outsize, outsize)
    p["rb3_wb"], p["rb3_bb"] = linear(keys[7], outsize, outsize)
    p["w3"], p["b3"] = linear(keys[8], outsize, 2 * outsize)
    return p


def prepare_params(torch_params):
    """One-time layout + dtype conversion.

    Weights: (out, in) f32 -> (in, out) bf16 (MXU-native rate, half the
    resident VMEM / weight DMA). Biases: (out,) -> (1, out) f32.
    """
    kp = {}
    for k, v in torch_params.items():
        is_bias = k.startswith("b") or k.endswith("_ba") or k.endswith("_bb")
        if is_bias:
            kp[k] = v.reshape(1, -1).astype(jnp.float32)
        else:
            kp[k] = v.T.astype(jnp.bfloat16)
    return kp


def generative_network_ref(z, tp, matmul_dtype=None):
    """Pure-JAX reference matching the PyTorch forward (torch-layout params).

    With matmul_dtype=jnp.bfloat16 it emulates the kernel's mixed precision
    (bf16 matmul inputs, f32 accumulation / elementwise).
    """
    sh = z.shape
    x = z.reshape(-1, sh[-1]).astype(jnp.float32)
    lrelu = lambda v: jnp.where(v >= 0, v, NEG_SLOPE * v)

    def dense(v, w, b):
        if matmul_dtype is not None:
            v = v.astype(matmul_dtype)
            w = w.astype(matmul_dtype)
        y = jnp.dot(v, w.T, preferred_element_type=jnp.float32)
        return y + b.astype(jnp.float32)

    rb = lambda v, wa, ba, wb, bb: dense(lrelu(dense(v, wa, ba)), wb, bb)

    x = lrelu(dense(x, tp["w1"], tp["b1"]))
    x = x + rb(x, tp["rb1_wa"], tp["rb1_ba"], tp["rb1_wb"], tp["rb1_bb"])
    x = x + rb(x, tp["rb2_wa"], tp["rb2_ba"], tp["rb2_wb"], tp["rb2_bb"])
    x = lrelu(dense(x, tp["w2"], tp["b2"]))
    x = x + rb(x, tp["rb3_wa"], tp["rb3_ba"], tp["rb3_wb"], tp["rb3_bb"])
    x = dense(x, tp["w3"], tp["b3"])
    return x.reshape(sh[0], sh[1], -1)


if __name__ == "__main__":
    # Small shapes consistent with the module: z is (T, B, 128); module
    # defaults hidsize=256, outsize=512 -> output (T, B, 1024).
    T, B, IN_DIM, HIDSIZE, OUTSIZE = 2, 4, 128, 256, 512

    key = jax.random.PRNGKey(0)
    kz, kp = jax.random.split(key)
    z = jax.random.normal(kz, (T, B, IN_DIM), jnp.float32)

    torch_params = make_params(kp, IN_DIM, HIDSIZE, OUTSIZE)
    kparams = prepare_params(torch_params)   # one-time layout/dtype conversion

    try:
        out = jax.block_until_ready(generative_network(z, kparams))
    except Exception:
        # Fallback if this toolchain rejects single-buffered (Buffered(1))
        # resident operands: retry with default double buffering.
        out = jax.block_until_ready(
            generative_network(z, kparams, single_buffer_weights=False))

    assert out.shape == (T, B, 2 * OUTSIZE)

    # 1) Bit-compatible mixed-precision reference (bf16 matmul inputs, f32
    #    accumulation) — tight tolerance verifies kernel structure.
    ref_mixed = generative_network_ref(z, torch_params, matmul_dtype=jnp.bfloat16)
    err_mixed = jnp.max(jnp.abs(out - ref_mixed))
    assert jnp.allclose(out, ref_mixed, atol=5e-3, rtol=5e-3), \
        f"mixed-ref max abs err {err_mixed}"

    # 2) Full-f32 PyTorch-semantics reference — looser tolerance accounts for
    #    bf16 weight/activation rounding at the MXU inputs.
    ref_f32 = generative_network_ref(z, torch_params)
    err_f32 = jnp.max(jnp.abs(out - ref_f32))
    assert jnp.allclose(out, ref_f32, atol=2e-2, rtol=2e-2), \
        f"f32-ref max abs err {err_f32}"

    print("KERNEL_OK")
</pallas_src>

<mosaic_0001>
module attributes {stable_mosaic.version = 11 : i64} {
  func.func @gen_net_kernel(%arg0: i32, %arg1: memref<8x128xf32, #tpu.memory_space<vmem>>, %arg2: memref<128x256xbf16, #tpu.memory_space<vmem>>, %arg3: memref<1x256xf32, #tpu.memory_space<vmem>>, %arg4: memref<256x256xbf16, #tpu.memory_space<vmem>>, %arg5: memref<1x256xf32, #tpu.memory_space<vmem>>, %arg6: memref<256x256xbf16, #tpu.memory_space<vmem>>, %arg7: memref<1x256xf32, #tpu.memory_space<vmem>>, %arg8: memref<256x256xbf16, #tpu.memory_space<vmem>>, %arg9: memref<1x256xf32, #tpu.memory_space<vmem>>, %arg10: memref<256x256xbf16, #tpu.memory_space<vmem>>, %arg11: memref<1x256xf32, #tpu.memory_space<vmem>>, %arg12: memref<256x512xbf16, #tpu.memory_space<vmem>>, %arg13: memref<1x512xf32, #tpu.memory_space<vmem>>, %arg14: memref<512x512xbf16, #tpu.memory_space<vmem>>, %arg15: memref<1x512xf32, #tpu.memory_space<vmem>>, %arg16: memref<512x512xbf16, #tpu.memory_space<vmem>>, %arg17: memref<1x512xf32, #tpu.memory_space<vmem>>, %arg18: memref<512x1024xbf16, #tpu.memory_space<vmem>>, %arg19: memref<1x1024xf32, #tpu.memory_space<vmem>>, %arg20: memref<8x1024xf32, #tpu.memory_space<vmem>>) attributes {dimension_semantics = [#tpu.dimension_semantics<parallel>], iteration_bounds = array<i64: 1>, scalar_prefetch = 0 : i64, scratch_operands = 0 : i64, tpu.core_type = #tpu.core_type<tc>, window_params = [{transform_indices = @transform_0, window_bounds = array<i64: 8, 128>}, {pipeline_mode = #tpu.pipeline_mode<synchronous>, transform_indices = @transform_1, window_bounds = array<i64: 128, 256>}, {pipeline_mode = #tpu.pipeline_mode<synchronous>, transform_indices = @transform_2, window_bounds = array<i64: 1, 256>}, {pipeline_mode = #tpu.pipeline_mode<synchronous>, transform_indices = @transform_3, window_bounds = array<i64: 256, 256>}, {pipeline_mode = #tpu.pipeline_mode<synchronous>, transform_indices = @transform_4, window_bounds = array<i64: 1, 256>}, {pipeline_mode = #tpu.pipeline_mode<synchronous>, transform_indices = @transform_5, window_bounds = array<i64: 256, 256>}, {pipeline_mode = #tpu.pipeline_mode<synchronous>, transform_indices = @transform_6, window_bounds = array<i64: 1, 256>}, {pipeline_mode = #tpu.pipeline_mode<synchronous>, transform_indices = @transform_7, window_bounds = array<i64: 256, 256>}, {pipeline_mode = #tpu.pipeline_mode<synchronous>, transform_indices = @transform_8, window_bounds = array<i64: 1, 256>}, {pipeline_mode = #tpu.pipeline_mode<synchronous>, transform_indices = @transform_9, window_bounds = array<i64: 256, 256>}, {pipeline_mode = #tpu.pipeline_mode<synchronous>, transform_indices = @transform_10, window_bounds = array<i64: 1, 256>}, {pipeline_mode = #tpu.pipeline_mode<synchronous>, transform_indices = @transform_11, window_bounds = array<i64: 256, 512>}, {pipeline_mode = #tpu.pipeline_mode<synchronous>, transform_indices = @transform_12, window_bounds = array<i64: 1, 512>}, {pipeline_mode = #tpu.pipeline_mode<synchronous>, transform_indices = @transform_13, window_bounds = array<i64: 512, 512>}, {pipeline_mode = #tpu.pipeline_mode<synchronous>, transform_indices = @transform_14, window_bounds = array<i64: 1, 512>}, {pipeline_mode = #tpu.pipeline_mode<synchronous>, transform_indices = @transform_15, window_bounds = array<i64: 512, 512>}, {pipeline_mode = #tpu.pipeline_mode<synchronous>, transform_indices = @transform_16, window_bounds = array<i64: 1, 512>}, {pipeline_mode = #tpu.pipeline_mode<synchronous>, transform_indices = @transform_17, window_bounds = array<i64: 512, 1024>}, {pipeline_mode = #tpu.pipeline_mode<synchronous>, transform_indices = @transform_18, window_bounds = array<i64: 1, 1024>}, {transform_indices = @transform_19, window_bounds = array<i64: 8, 1024>}]} {
    %c0 = arith.constant 0 : index
    %c0_0 = arith.constant 0 : index
    %0 = vector.load %arg1[%c0, %c0_0] : memref<8x128xf32, #tpu.memory_space<vmem>>, vector<8x128xf32>
    %1 = arith.truncf %0 : vector<8x128xf32> to vector<8x128xbf16>
    %c0_1 = arith.constant 0 : index
    %c0_2 = arith.constant 0 : index
    %2 = vector.load %arg2[%c0_1, %c0_2] : memref<128x256xbf16, #tpu.memory_space<vmem>>, vector<128x256xbf16>
    %cst = arith.constant dense<0.000000e+00> : vector<8x256xf32>
    %3 = tpu.matmul %1, %2, %cst {dimension_numbers = #tpu.dot_dimension_numbers<[1], [0], [0], [1], [0, 0, 1, 1], [], []>} : vector<8x128xbf16>, vector<128x256xbf16>, vector<8x256xf32> -> vector<8x256xf32>
    %c0_3 = arith.constant 0 : index
    %c0_4 = arith.constant 0 : index
    %4 = vector.load %arg3[%c0_3, %c0_4] : memref<1x256xf32, #tpu.memory_space<vmem>>, vector<1x256xf32>
    %5 = vector.broadcast %4 : vector<1x256xf32> to vector<8x256xf32>
    %6 = arith.addf %3, %5 : vector<8x256xf32>
    %cst_5 = arith.constant 0.000000e+00 : f32
    %7 = vector.broadcast %cst_5 : f32 to vector<8x256xf32>
    %8 = arith.cmpf oge, %6, %7 : vector<8x256xf32>
    %cst_6 = arith.constant 0.00999999977 : f32
    %9 = vector.broadcast %cst_6 : f32 to vector<8x256xf32>
    %10 = arith.mulf %9, %6 : vector<8x256xf32>
    %11 = arith.select %8, %6, %10 : vector<8x256xi1>, vector<8x256xf32>
    %12 = arith.truncf %11 : vector<8x256xf32> to vector<8x256xbf16>
    %c0_7 = arith.constant 0 : index
    %c0_8 = arith.constant 0 : index
    %13 = vector.load %arg4[%c0_7, %c0_8] : memref<256x256xbf16, #tpu.memory_space<vmem>>, vector<256x256xbf16>
    %cst_9 = arith.constant dense<0.000000e+00> : vector<8x256xf32>
    %14 = tpu.matmul %12, %13, %cst_9 {dimension_numbers = #tpu.dot_dimension_numbers<[1], [0], [0], [1], [0, 0, 1, 1], [], []>} : vector<8x256xbf16>, vector<256x256xbf16>, vector<8x256xf32> -> vector<8x256xf32>
    %c0_10 = arith.constant 0 : index
    %c0_11 = arith.constant 0 : index
    %15 = vector.load %arg5[%c0_10, %c0_11] : memref<1x256xf32, #tpu.memory_space<vmem>>, vector<1x256xf32>
    %16 = vector.broadcast %15 : vector<1x256xf32> to vector<8x256xf32>
    %17 = arith.addf %14, %16 : vector<8x256xf32>
    %cst_12 = arith.constant 0.000000e+00 : f32
    %18 = vector.broadcast %cst_12 : f32 to vector<8x256xf32>
    %19 = arith.cmpf oge, %17, %18 : vector<8x256xf32>
    %cst_13 = arith.constant 0.00999999977 : f32
    %20 = vector.broadcast %cst_13 : f32 to vector<8x256xf32>
    %21 = arith.mulf %20, %17 : vector<8x256xf32>
    %22 = arith.select %19, %17, %21 : vector<8x256xi1>, vector<8x256xf32>
    %23 = arith.truncf %22 : vector<8x256xf32> to vector<8x256xbf16>
    %c0_14 = arith.constant 0 : index
    %c0_15 = arith.constant 0 : index
    %24 = vector.load %arg6[%c0_14, %c0_15] : memref<256x256xbf16, #tpu.memory_space<vmem>>, vector<256x256xbf16>
    %cst_16 = arith.constant dense<0.000000e+00> : vector<8x256xf32>
    %25 = tpu.matmul %23, %24, %cst_16 {dimension_numbers = #tpu.dot_dimension_numbers<[1], [0], [0], [1], [0, 0, 1, 1], [], []>} : vector<8x256xbf16>, vector<256x256xbf16>, vector<8x256xf32> -> vector<8x256xf32>
    %c0_17 = arith.constant 0 : index
    %c0_18 = arith.constant 0 : index
    %26 = vector.load %arg7[%c0_17, %c0_18] : memref<1x256xf32, #tpu.memory_space<vmem>>, vector<1x256xf32>
    %27 = vector.broadcast %26 : vector<1x256xf32> to vector<8x256xf32>
    %28 = arith.addf %25, %27 : vector<8x256xf32>
    %29 = arith.addf %11, %28 : vector<8x256xf32>
    %30 = arith.truncf %29 : vector<8x256xf32> to vector<8x256xbf16>
    %c0_19 = arith.constant 0 : index
    %c0_20 = arith.constant 0 : index
    %31 = vector.load %arg8[%c0_19, %c0_20] : memref<256x256xbf16, #tpu.memory_space<vmem>>, vector<256x256xbf16>
    %cst_21 = arith.constant dense<0.000000e+00> : vector<8x256xf32>
    %32 = tpu.matmul %30, %31, %cst_21 {dimension_numbers = #tpu.dot_dimension_numbers<[1], [0], [0], [1], [0, 0, 1, 1], [], []>} : vector<8x256xbf16>, vector<256x256xbf16>, vector<8x256xf32> -> vector<8x256xf32>
    %c0_22 = arith.constant 0 : index
    %c0_23 = arith.constant 0 : index
    %33 = vector.load %arg9[%c0_22, %c0_23] : memref<1x256xf32, #tpu.memory_space<vmem>>, vector<1x256xf32>
    %34 = vector.broadcast %33 : vector<1x256xf32> to vector<8x256xf32>
    %35 = arith.addf %32, %34 : vector<8x256xf32>
    %cst_24 = arith.constant 0.000000e+00 : f32
    %36 = vector.broadcast %cst_24 : f32 to vector<8x256xf32>
    %37 = arith.cmpf oge, %35, %36 : vector<8x256xf32>
    %cst_25 = arith.constant 0.00999999977 : f32
    %38 = vector.broadcast %cst_25 : f32 to vector<8x256xf32>
    %39 = arith.mulf %38, %35 : vector<8x256xf32>
    %40 = arith.select %37, %35, %39 : vector<8x256xi1>, vector<8x256xf32>
    %41 = arith.truncf %40 : vector<8x256xf32> to vector<8x256xbf16>
    %c0_26 = arith.constant 0 : index
    %c0_27 = arith.constant 0 : index
    %42 = vector.load %arg10[%c0_26, %c0_27] : memref<256x256xbf16, #tpu.memory_space<vmem>>, vector<256x256xbf16>
    %cst_28 = arith.constant dense<0.000000e+00> : vector<8x256xf32>
    %43 = tpu.matmul %41, %42, %cst_28 {dimension_numbers = #tpu.dot_dimension_numbers<[1], [0], [0], [1], [0, 0, 1, 1], [], []>} : vector<8x256xbf16>, vector<256x256xbf16>, vector<8x256xf32> -> vector<8x256xf32>
    %c0_29 = arith.constant 0 : index
    %c0_30 = arith.constant 0 : index
    %44 = vector.load %arg11[%c0_29, %c0_30] : memref<1x256xf32, #tpu.memory_space<vmem>>, vector<1x256xf32>
    %45 = vector.broadcast %44 : vector<1x256xf32> to vector<8x256xf32>
    %46 = arith.addf %43, %45 : vector<8x256xf32>
    %47 = arith.addf %29, %46 : vector<8x256xf32>
    %48 = arith.truncf %47 : vector<8x256xf32> to vector<8x256xbf16>
    %c0_31 = arith.constant 0 : index
    %c0_32 = arith.constant 0 : index
    %49 = vector.load %arg12[%c0_31, %c0_32] : memref<256x512xbf16, #tpu.memory_space<vmem>>, vector<256x512xbf16>
    %cst_33 = arith.constant dense<0.000000e+00> : vector<8x512xf32>
    %50 = tpu.matmul %48, %49, %cst_33 {dimension_numbers = #tpu.dot_dimension_numbers<[1], [0], [0], [1], [0, 0, 1, 1], [], []>} : vector<8x256xbf16>, vector<256x512xbf16>, vector<8x512xf32> -> vector<8x512xf32>
    %c0_34 = arith.constant 0 : index
    %c0_35 = arith.constant 0 : index
    %51 = vector.load %arg13[%c0_34, %c0_35] : memref<1x512xf32, #tpu.memory_space<vmem>>, vector<1x512xf32>
    %52 = vector.broadcast %51 : vector<1x512xf32> to vector<8x512xf32>
    %53 = arith.addf %50, %52 : vector<8x512xf32>
    %cst_36 = arith.constant 0.000000e+00 : f32
    %54 = vector.broadcast %cst_36 : f32 to vector<8x512xf32>
    %55 = arith.cmpf oge, %53, %54 : vector<8x512xf32>
    %cst_37 = arith.constant 0.00999999977 : f32
    %56 = vector.broadcast %cst_37 : f32 to vector<8x512xf32>
    %57 = arith.mulf %56, %53 : vector<8x512xf32>
    %58 = arith.select %55, %53, %57 : vector<8x512xi1>, vector<8x512xf32>
    %59 = arith.truncf %58 : vector<8x512xf32> to vector<8x512xbf16>
    %c0_38 = arith.constant 0 : index
    %c0_39 = arith.constant 0 : index
    %60 = vector.load %arg14[%c0_38, %c0_39] : memref<512x512xbf16, #tpu.memory_space<vmem>>, vector<512x512xbf16>
    %cst_40 = arith.constant dense<0.000000e+00> : vector<8x512xf32>
    %61 = tpu.matmul %59, %60, %cst_40 {dimension_numbers = #tpu.dot_dimension_numbers<[1], [0], [0], [1], [0, 0, 1, 1], [], []>} : vector<8x512xbf16>, vector<512x512xbf16>, vector<8x512xf32> -> vector<8x512xf32>
    %c0_41 = arith.constant 0 : index
    %c0_42 = arith.constant 0 : index
    %62 = vector.load %arg15[%c0_41, %c0_42] : memref<1x512xf32, #tpu.memory_space<vmem>>, vector<1x512xf32>
    %63 = vector.broadcast %62 : vector<1x512xf32> to vector<8x512xf32>
    %64 = arith.addf %61, %63 : vector<8x512xf32>
    %cst_43 = arith.constant 0.000000e+00 : f32
    %65 = vector.broadcast %cst_43 : f32 to vector<8x512xf32>
    %66 = arith.cmpf oge, %64, %65 : vector<8x512xf32>
    %cst_44 = arith.constant 0.00999999977 : f32
    %67 = vector.broadcast %cst_44 : f32 to vector<8x512xf32>
    %68 = arith.mulf %67, %64 : vector<8x512xf32>
    %69 = arith.select %66, %64, %68 : vector<8x512xi1>, vector<8x512xf32>
    %70 = arith.truncf %69 : vector<8x512xf32> to vector<8x512xbf16>
    %c0_45 = arith.constant 0 : index
    %c0_46 = arith.constant 0 : index
    %71 = vector.load %arg16[%c0_45, %c0_46] : memref<512x512xbf16, #tpu.memory_space<vmem>>, vector<512x512xbf16>
    %cst_47 = arith.constant dense<0.000000e+00> : vector<8x512xf32>
    %72 = tpu.matmul %70, %71, %cst_47 {dimension_numbers = #tpu.dot_dimension_numbers<[1], [0], [0], [1], [0, 0, 1, 1], [], []>} : vector<8x512xbf16>, vector<512x512xbf16>, vector<8x512xf32> -> vector<8x512xf32>
    %c0_48 = arith.constant 0 : index
    %c0_49 = arith.constant 0 : index
    %73 = vector.load %arg17[%c0_48, %c0_49] : memref<1x512xf32, #tpu.memory_space<vmem>>, vector<1x512xf32>
    %74 = vector.broadcast %73 : vector<1x512xf32> to vector<8x512xf32>
    %75 = arith.addf %72, %74 : vector<8x512xf32>
    %76 = arith.addf %58, %75 : vector<8x512xf32>
    %77 = arith.truncf %76 : vector<8x512xf32> to vector<8x512xbf16>
    %c0_50 = arith.constant 0 : index
    %c0_51 = arith.constant 0 : index
    %78 = vector.load %arg18[%c0_50, %c0_51] : memref<512x1024xbf16, #tpu.memory_space<vmem>>, vector<512x1024xbf16>
    %cst_52 = arith.constant dense<0.000000e+00> : vector<8x1024xf32>
    %79 = tpu.matmul %77, %78, %cst_52 {dimension_numbers = #tpu.dot_dimension_numbers<[1], [0], [0], [1], [0, 0, 1, 1], [], []>} : vector<8x512xbf16>, vector<512x1024xbf16>, vector<8x1024xf32> -> vector<8x1024xf32>
    %c0_53 = arith.constant 0 : index
    %c0_54 = arith.constant 0 : index
    %80 = vector.load %arg19[%c0_53, %c0_54] : memref<1x1024xf32, #tpu.memory_space<vmem>>, vector<1x1024xf32>
    %81 = vector.broadcast %80 : vector<1x1024xf32> to vector<8x1024xf32>
    %82 = arith.addf %79, %81 : vector<8x1024xf32>
    %c0_55 = arith.constant 0 : index
    %c0_56 = arith.constant 0 : index
    %83 = vector.load %arg20[%c0_55, %c0_56] : memref<8x1024xf32, #tpu.memory_space<vmem>>, vector<8x1024xf32>
    tpu.vector_store %arg20[%c0_55, %c0_56], %82 {strides = array<i32>} : memref<8x1024xf32, #tpu.memory_space<vmem>>, vector<8x1024xf32>,
    return
  }
  func.func @transform_0(%arg0: i32) -> (i32, i32) {
    %c0_i32 = arith.constant 0 : i32
    %c0_i32_0 = arith.constant 0 : i32
    return %arg0, %c0_i32 : i32, i32
  }
  func.func @transform_1(%arg0: i32) -> (i32, i32) {
    %c0_i32 = arith.constant 0 : i32
    %c0_i32_0 = arith.constant 0 : i32
    %c0_i32_1 = arith.constant 0 : i32
    return %c0_i32, %c0_i32_0 : i32, i32
  }
  func.func @transform_2(%arg0: i32) -> (i32, i32) {
    %c0_i32 = arith.constant 0 : i32
    %c0_i32_0 = arith.constant 0 : i32
    %c0_i32_1 = arith.constant 0 : i32
    return %c0_i32, %c0_i32_0 : i32, i32
  }
  func.func @transform_3(%arg0: i32) -> (i32, i32) {
    %c0_i32 = arith.constant 0 : i32
    %c0_i32_0 = arith.constant 0 : i32
    %c0_i32_1 = arith.constant 0 : i32
    return %c0_i32, %c0_i32_0 : i32, i32
  }
  func.func @transform_4(%arg0: i32) -> (i32, i32) {
    %c0_i32 = arith.constant 0 : i32
    %c0_i32_0 = arith.constant 0 : i32
    %c0_i32_1 = arith.constant 0 : i32
    return %c0_i32, %c0_i32_0 : i32, i32
  }
  func.func @transform_5(%arg0: i32) -> (i32, i32) {
    %c0_i32 = arith.constant 0 : i32
    %c0_i32_0 = arith.constant 0 : i32
    %c0_i32_1 = arith.constant 0 : i32
    return %c0_i32, %c0_i32_0 : i32, i32
  }
  func.func @transform_6(%arg0: i32) -> (i32, i32) {
    %c0_i32 = arith.constant 0 : i32
    %c0_i32_0 = arith.constant 0 : i32
    %c0_i32_1 = arith.constant 0 : i32
    return %c0_i32, %c0_i32_0 : i32, i32
  }
  func.func @transform_7(%arg0: i32) -> (i32, i32) {
    %c0_i32 = arith.constant 0 : i32
    %c0_i32_0 = arith.constant 0 : i32
    %c0_i32_1 = arith.constant 0 : i32
    return %c0_i32, %c0_i32_0 : i32, i32
  }
  func.func @transform_8(%arg0: i32) -> (i32, i32) {
    %c0_i32 = arith.constant 0 : i32
    %c0_i32_0 = arith.constant 0 : i32
    %c0_i32_1 = arith.constant 0 : i32
    return %c0_i32, %c0_i32_0 : i32, i32
  }
  func.func @transform_9(%arg0: i32) -> (i32, i32) {
    %c0_i32 = arith.constant 0 : i32
    %c0_i32_0 = arith.constant 0 : i32
    %c0_i32_1 = arith.constant 0 : i32
    return %c0_i32, %c0_i32_0 : i32, i32
  }
  func.func @transform_10(%arg0: i32) -> (i32, i32) {
    %c0_i32 = arith.constant 0 : i32
    %c0_i32_0 = arith.constant 0 : i32
    %c0_i32_1 = arith.constant 0 : i32
    return %c0_i32, %c0_i32_0 : i32, i32
  }
  func.func @transform_11(%arg0: i32) -> (i32, i32) {
    %c0_i32 = arith.constant 0 : i32
    %c0_i32_0 = arith.constant 0 : i32
    %c0_i32_1 = arith.constant 0 : i32
    return %c0_i32, %c0_i32_0 : i32, i32
  }
  func.func @transform_12(%arg0: i32) -> (i32, i32) {
    %c0_i32 = arith.constant 0 : i32
    %c0_i32_0 = arith.constant 0 : i32
    %c0_i32_1 = arith.constant 0 : i32
    return %c0_i32, %c0_i32_0 : i32, i32
  }
  func.func @transform_13(%arg0: i32) -> (i32, i32) {
    %c0_i32 = arith.constant 0 : i32
    %c0_i32_0 = arith.constant 0 : i32
    %c0_i32_1 = arith.constant 0 : i32
    return %c0_i32, %c0_i32_0 : i32, i32
  }
  func.func @transform_14(%arg0: i32) -> (i32, i32) {
    %c0_i32 = arith.constant 0 : i32
    %c0_i32_0 = arith.constant 0 : i32
    %c0_i32_1 = arith.constant 0 : i32
    return %c0_i32, %c0_i32_0 : i32, i32
  }
  func.func @transform_15(%arg0: i32) -> (i32, i32) {
    %c0_i32 = arith.constant 0 : i32
    %c0_i32_0 = arith.constant 0 : i32
    %c0_i32_1 = arith.constant 0 : i32
    return %c0_i32, %c0_i32_0 : i32, i32
  }
  func.func @transform_16(%arg0: i32) -> (i32, i32) {
    %c0_i32 = arith.constant 0 : i32
    %c0_i32_0 = arith.constant 0 : i32
    %c0_i32_1 = arith.constant 0 : i32
    return %c0_i32, %c0_i32_0 : i32, i32
  }
  func.func @transform_17(%arg0: i32) -> (i32, i32) {
    %c0_i32 = arith.constant 0 : i32
    %c0_i32_0 = arith.constant 0 : i32
    %c0_i32_1 = arith.constant 0 : i32
    return %c0_i32, %c0_i32_0 : i32, i32
  }
  func.func @transform_18(%arg0: i32) -> (i32, i32) {
    %c0_i32 = arith.constant 0 : i32
    %c0_i32_0 = arith.constant 0 : i32
    %c0_i32_1 = arith.constant 0 : i32
    return %c0_i32, %c0_i32_0 : i32, i32
  }
  func.func @transform_19(%arg0: i32) -> (i32, i32) {
    %c0_i32 = arith.constant 0 : i32
    %c0_i32_0 = arith.constant 0 : i32
    return %arg0, %c0_i32 : i32, i32
  }
}

module attributes {stable_mosaic.version = 11 : i64} {
  func.func @gen_net_kernel(%arg0: i32, %arg1: memref<8x128xf32, #tpu.memory_space<vmem>>, %arg2: memref<128x256xbf16, #tpu.memory_space<vmem>>, %arg3: memref<1x256xf32, #tpu.memory_space<vmem>>, %arg4: memref<256x256xbf16, #tpu.memory_space<vmem>>, %arg5: memref<1x256xf32, #tpu.memory_space<vmem>>, %arg6: memref<256x256xbf16, #tpu.memory_space<vmem>>, %arg7: memref<1x256xf32, #tpu.memory_space<vmem>>, %arg8: memref<256x256xbf16, #tpu.memory_space<vmem>>, %arg9: memref<1x256xf32, #tpu.memory_space<vmem>>, %arg10: memref<256x256xbf16, #tpu.memory_space<vmem>>, %arg11: memref<1x256xf32, #tpu.memory_space<vmem>>, %arg12: memref<256x512xbf16, #tpu.memory_space<vmem>>, %arg13: memref<1x512xf32, #tpu.memory_space<vmem>>, %arg14: memref<512x512xbf16, #tpu.memory_space<vmem>>, %arg15: memref<1x512xf32, #tpu.memory_space<vmem>>, %arg16: memref<512x512xbf16, #tpu.memory_space<vmem>>, %arg17: memref<1x512xf32, #tpu.memory_space<vmem>>, %arg18: memref<512x1024xbf16, #tpu.memory_space<vmem>>, %arg19: memref<1x1024xf32, #tpu.memory_space<vmem>>, %arg20: memref<8x1024xf32, #tpu.memory_space<vmem>>) attributes {dimension_semantics = [#tpu.dimension_semantics<parallel>], iteration_bounds = array<i64: 1>, scalar_prefetch = 0 : i64, scratch_operands = 0 : i64, tpu.core_type = #tpu.core_type<tc>, window_params = [{transform_indices = @transform_0, window_bounds = array<i64: 8, 128>}, {pipeline_mode = #tpu.pipeline_mode<synchronous>, transform_indices = @transform_1, window_bounds = array<i64: 128, 256>}, {pipeline_mode = #tpu.pipeline_mode<synchronous>, transform_indices = @transform_2, window_bounds = array<i64: 1, 256>}, {pipeline_mode = #tpu.pipeline_mode<synchronous>, transform_indices = @transform_3, window_bounds = array<i64: 256, 256>}, {pipeline_mode = #tpu.pipeline_mode<synchronous>, transform_indices = @transform_4, window_bounds = array<i64: 1, 256>}, {pipeline_mode = #tpu.pipeline_mode<synchronous>, transform_indices = @transform_5, window_bounds = array<i64: 256, 256>}, {pipeline_mode = #tpu.pipeline_mode<synchronous>, transform_indices = @transform_6, window_bounds = array<i64: 1, 256>}, {pipeline_mode = #tpu.pipeline_mode<synchronous>, transform_indices = @transform_7, window_bounds = array<i64: 256, 256>}, {pipeline_mode = #tpu.pipeline_mode<synchronous>, transform_indices = @transform_8, window_bounds = array<i64: 1, 256>}, {pipeline_mode = #tpu.pipeline_mode<synchronous>, transform_indices = @transform_9, window_bounds = array<i64: 256, 256>}, {pipeline_mode = #tpu.pipeline_mode<synchronous>, transform_indices = @transform_10, window_bounds = array<i64: 1, 256>}, {pipeline_mode = #tpu.pipeline_mode<synchronous>, transform_indices = @transform_11, window_bounds = array<i64: 256, 512>}, {pipeline_mode = #tpu.pipeline_mode<synchronous>, transform_indices = @transform_12, window_bounds = array<i64: 1, 512>}, {pipeline_mode = #tpu.pipeline_mode<synchronous>, transform_indices = @transform_13, window_bounds = array<i64: 512, 512>}, {pipeline_mode = #tpu.pipeline_mode<synchronous>, transform_indices = @transform_14, window_bounds = array<i64: 1, 512>}, {pipeline_mode = #tpu.pipeline_mode<synchronous>, transform_indices = @transform_15, window_bounds = array<i64: 512, 512>}, {pipeline_mode = #tpu.pipeline_mode<synchronous>, transform_indices = @transform_16, window_bounds = array<i64: 1, 512>}, {pipeline_mode = #tpu.pipeline_mode<synchronous>, transform_indices = @transform_17, window_bounds = array<i64: 512, 1024>}, {pipeline_mode = #tpu.pipeline_mode<synchronous>, transform_indices = @transform_18, window_bounds = array<i64: 1, 1024>}, {transform_indices = @transform_19, window_bounds = array<i64: 8, 1024>}]} {
    %c0 = arith.constant 0 : index
    %c0_0 = arith.constant 0 : index
    %0 = vector.load %arg1[%c0, %c0_0] : memref<8x128xf32, #tpu.memory_space<vmem>>, vector<8x128xf32>
    %1 = arith.truncf %0 : vector<8x128xf32> to vector<8x128xbf16>
    %c0_1 = arith.constant 0 : index
    %c0_2 = arith.constant 0 : index
    %2 = vector.load %arg2[%c0_1, %c0_2] : memref<128x256xbf16, #tpu.memory_space<vmem>>, vector<128x256xbf16>
    %cst = arith.constant dense<0.000000e+00> : vector<8x256xf32>
    %3 = tpu.matmul %1, %2, %cst {dimension_numbers = #tpu.dot_dimension_numbers<[1], [0], [0], [1], [0, 0, 1, 1], [], []>} : vector<8x128xbf16>, vector<128x256xbf16>, vector<8x256xf32> -> vector<8x256xf32>
    %c0_3 = arith.constant 0 : index
    %c0_4 = arith.constant 0 : index
    %4 = vector.load %arg3[%c0_3, %c0_4] : memref<1x256xf32, #tpu.memory_space<vmem>>, vector<1x256xf32>
    %5 = vector.broadcast %4 : vector<1x256xf32> to vector<8x256xf32>
    %6 = arith.addf %3, %5 : vector<8x256xf32>
    %cst_5 = arith.constant 0.000000e+00 : f32
    %7 = vector.broadcast %cst_5 : f32 to vector<8x256xf32>
    %8 = arith.cmpf oge, %6, %7 : vector<8x256xf32>
    %cst_6 = arith.constant 0.00999999977 : f32
    %9 = vector.broadcast %cst_6 : f32 to vector<8x256xf32>
    %10 = arith.mulf %9, %6 : vector<8x256xf32>
    %11 = arith.select %8, %6, %10 : vector<8x256xi1>, vector<8x256xf32>
    %12 = arith.truncf %11 : vector<8x256xf32> to vector<8x256xbf16>
    %c0_7 = arith.constant 0 : index
    %c0_8 = arith.constant 0 : index
    %13 = vector.load %arg4[%c0_7, %c0_8] : memref<256x256xbf16, #tpu.memory_space<vmem>>, vector<256x256xbf16>
    %cst_9 = arith.constant dense<0.000000e+00> : vector<8x256xf32>
    %14 = tpu.matmul %12, %13, %cst_9 {dimension_numbers = #tpu.dot_dimension_numbers<[1], [0], [0], [1], [0, 0, 1, 1], [], []>} : vector<8x256xbf16>, vector<256x256xbf16>, vector<8x256xf32> -> vector<8x256xf32>
    %c0_10 = arith.constant 0 : index
    %c0_11 = arith.constant 0 : index
    %15 = vector.load %arg5[%c0_10, %c0_11] : memref<1x256xf32, #tpu.memory_space<vmem>>, vector<1x256xf32>
    %16 = vector.broadcast %15 : vector<1x256xf32> to vector<8x256xf32>
    %17 = arith.addf %14, %16 : vector<8x256xf32>
    %cst_12 = arith.constant 0.000000e+00 : f32
    %18 = vector.broadcast %cst_12 : f32 to vector<8x256xf32>
    %19 = arith.cmpf oge, %17, %18 : vector<8x256xf32>
    %cst_13 = arith.constant 0.00999999977 : f32
    %20 = vector.broadcast %cst_13 : f32 to vector<8x256xf32>
    %21 = arith.mulf %20, %17 : vector<8x256xf32>
    %22 = arith.select %19, %17, %21 : vector<8x256xi1>, vector<8x256xf32>
    %23 = arith.truncf %22 : vector<8x256xf32> to vector<8x256xbf16>
    %c0_14 = arith.constant 0 : index
    %c0_15 = arith.constant 0 : index
    %24 = vector.load %arg6[%c0_14, %c0_15] : memref<256x256xbf16, #tpu.memory_space<vmem>>, vector<256x256xbf16>
    %cst_16 = arith.constant dense<0.000000e+00> : vector<8x256xf32>
    %25 = tpu.matmul %23, %24, %cst_16 {dimension_numbers = #tpu.dot_dimension_numbers<[1], [0], [0], [1], [0, 0, 1, 1], [], []>} : vector<8x256xbf16>, vector<256x256xbf16>, vector<8x256xf32> -> vector<8x256xf32>
    %c0_17 = arith.constant 0 : index
    %c0_18 = arith.constant 0 : index
    %26 = vector.load %arg7[%c0_17, %c0_18] : memref<1x256xf32, #tpu.memory_space<vmem>>, vector<1x256xf32>
    %27 = vector.broadcast %26 : vector<1x256xf32> to vector<8x256xf32>
    %28 = arith.addf %25, %27 : vector<8x256xf32>
    %29 = arith.addf %11, %28 : vector<8x256xf32>
    %30 = arith.truncf %29 : vector<8x256xf32> to vector<8x256xbf16>
    %c0_19 = arith.constant 0 : index
    %c0_20 = arith.constant 0 : index
    %31 = vector.load %arg8[%c0_19, %c0_20] : memref<256x256xbf16, #tpu.memory_space<vmem>>, vector<256x256xbf16>
    %cst_21 = arith.constant dense<0.000000e+00> : vector<8x256xf32>
    %32 = tpu.matmul %30, %31, %cst_21 {dimension_numbers = #tpu.dot_dimension_numbers<[1], [0], [0], [1], [0, 0, 1, 1], [], []>} : vector<8x256xbf16>, vector<256x256xbf16>, vector<8x256xf32> -> vector<8x256xf32>
    %c0_22 = arith.constant 0 : index
    %c0_23 = arith.constant 0 : index
    %33 = vector.load %arg9[%c0_22, %c0_23] : memref<1x256xf32, #tpu.memory_space<vmem>>, vector<1x256xf32>
    %34 = vector.broadcast %33 : vector<1x256xf32> to vector<8x256xf32>
    %35 = arith.addf %32, %34 : vector<8x256xf32>
    %cst_24 = arith.constant 0.000000e+00 : f32
    %36 = vector.broadcast %cst_24 : f32 to vector<8x256xf32>
    %37 = arith.cmpf oge, %35, %36 : vector<8x256xf32>
    %cst_25 = arith.constant 0.00999999977 : f32
    %38 = vector.broadcast %cst_25 : f32 to vector<8x256xf32>
    %39 = arith.mulf %38, %35 : vector<8x256xf32>
    %40 = arith.select %37, %35, %39 : vector<8x256xi1>, vector<8x256xf32>
    %41 = arith.truncf %40 : vector<8x256xf32> to vector<8x256xbf16>
    %c0_26 = arith.constant 0 : index
    %c0_27 = arith.constant 0 : index
    %42 = vector.load %arg10[%c0_26, %c0_27] : memref<256x256xbf16, #tpu.memory_space<vmem>>, vector<256x256xbf16>
    %cst_28 = arith.constant dense<0.000000e+00> : vector<8x256xf32>
    %43 = tpu.matmul %41, %42, %cst_28 {dimension_numbers = #tpu.dot_dimension_numbers<[1], [0], [0], [1], [0, 0, 1, 1], [], []>} : vector<8x256xbf16>, vector<256x256xbf16>, vector<8x256xf32> -> vector<8x256xf32>
    %c0_29 = arith.constant 0 : index
    %c0_30 = arith.constant 0 : index
    %44 = vector.load %arg11[%c0_29, %c0_30] : memref<1x256xf32, #tpu.memory_space<vmem>>, vector<1x256xf32>
    %45 = vector.broadcast %44 : vector<1x256xf32> to vector<8x256xf32>
    %46 = arith.addf %43, %45 : vector<8x256xf32>
    %47 = arith.addf %29, %46 : vector<8x256xf32>
    %48 = arith.truncf %47 : vector<8x256xf32> to vector<8x256xbf16>
    %c0_31 = arith.constant 0 : index
    %c0_32 = arith.constant 0 : index
    %49 = vector.load %arg12[%c0_31, %c0_32] : memref<256x512xbf16, #tpu.memory_space<vmem>>, vector<256x512xbf16>
    %cst_33 = arith.constant dense<0.000000e+00> : vector<8x512xf32>
    %50 = tpu.matmul %48, %49, %cst_33 {dimension_numbers = #tpu.dot_dimension_numbers<[1], [0], [0], [1], [0, 0, 1, 1], [], []>} : vector<8x256xbf16>, vector<256x512xbf16>, vector<8x512xf32> -> vector<8x512xf32>
    %c0_34 = arith.constant 0 : index
    %c0_35 = arith.constant 0 : index
    %51 = vector.load %arg13[%c0_34, %c0_35] : memref<1x512xf32, #tpu.memory_space<vmem>>, vector<1x512xf32>
    %52 = vector.broadcast %51 : vector<1x512xf32> to vector<8x512xf32>
    %53 = arith.addf %50, %52 : vector<8x512xf32>
    %cst_36 = arith.constant 0.000000e+00 : f32
    %54 = vector.broadcast %cst_36 : f32 to vector<8x512xf32>
    %55 = arith.cmpf oge, %53, %54 : vector<8x512xf32>
    %cst_37 = arith.constant 0.00999999977 : f32
    %56 = vector.broadcast %cst_37 : f32 to vector<8x512xf32>
    %57 = arith.mulf %56, %53 : vector<8x512xf32>
    %58 = arith.select %55, %53, %57 : vector<8x512xi1>, vector<8x512xf32>
    %59 = arith.truncf %58 : vector<8x512xf32> to vector<8x512xbf16>
    %c0_38 = arith.constant 0 : index
    %c0_39 = arith.constant 0 : index
    %60 = vector.load %arg14[%c0_38, %c0_39] : memref<512x512xbf16, #tpu.memory_space<vmem>>, vector<512x512xbf16>
    %cst_40 = arith.constant dense<0.000000e+00> : vector<8x512xf32>
    %61 = tpu.matmul %59, %60, %cst_40 {dimension_numbers = #tpu.dot_dimension_numbers<[1], [0], [0], [1], [0, 0, 1, 1], [], []>} : vector<8x512xbf16>, vector<512x512xbf16>, vector<8x512xf32> -> vector<8x512xf32>
    %c0_41 = arith.constant 0 : index
    %c0_42 = arith.constant 0 : index
    %62 = vector.load %arg15[%c0_41, %c0_42] : memref<1x512xf32, #tpu.memory_space<vmem>>, vector<1x512xf32>
    %63 = vector.broadcast %62 : vector<1x512xf32> to vector<8x512xf32>
    %64 = arith.addf %61, %63 : vector<8x512xf32>
    %cst_43 = arith.constant 0.000000e+00 : f32
    %65 = vector.broadcast %cst_43 : f32 to vector<8x512xf32>
    %66 = arith.cmpf oge, %64, %65 : vector<8x512xf32>
    %cst_44 = arith.constant 0.00999999977 : f32
    %67 = vector.broadcast %cst_44 : f32 to vector<8x512xf32>
    %68 = arith.mulf %67, %64 : vector<8x512xf32>
    %69 = arith.select %66, %64, %68 : vector<8x512xi1>, vector<8x512xf32>
    %70 = arith.truncf %69 : vector<8x512xf32> to vector<8x512xbf16>
    %c0_45 = arith.constant 0 : index
    %c0_46 = arith.constant 0 : index
    %71 = vector.load %arg16[%c0_45, %c0_46] : memref<512x512xbf16, #tpu.memory_space<vmem>>, vector<512x512xbf16>
    %cst_47 = arith.constant dense<0.000000e+00> : vector<8x512xf32>
    %72 = tpu.matmul %70, %71, %cst_47 {dimension_numbers = #tpu.dot_dimension_numbers<[1], [0], [0], [1], [0, 0, 1, 1], [], []>} : vector<8x512xbf16>, vector<512x512xbf16>, vector<8x512xf32> -> vector<8x512xf32>
    %c0_48 = arith.constant 0 : index
    %c0_49 = arith.constant 0 : index
    %73 = vector.load %arg17[%c0_48, %c0_49] : memref<1x512xf32, #tpu.memory_space<vmem>>, vector<1x512xf32>
    %74 = vector.broadcast %73 : vector<1x512xf32> to vector<8x512xf32>
    %75 = arith.addf %72, %74 : vector<8x512xf32>
    %76 = arith.addf %58, %75 : vector<8x512xf32>
    %77 = arith.truncf %76 : vector<8x512xf32> to vector<8x512xbf16>
    %c0_50 = arith.constant 0 : index
    %c0_51 = arith.constant 0 : index
    %78 = vector.load %arg18[%c0_50, %c0_51] : memref<512x1024xbf16, #tpu.memory_space<vmem>>, vector<512x1024xbf16>
    %cst_52 = arith.constant dense<0.000000e+00> : vector<8x1024xf32>
    %79 = tpu.matmul %77, %78, %cst_52 {dimension_numbers = #tpu.dot_dimension_numbers<[1], [0], [0], [1], [0, 0, 1, 1], [], []>} : vector<8x512xbf16>, vector<512x1024xbf16>, vector<8x1024xf32> -> vector<8x1024xf32>
    %c0_53 = arith.constant 0 : index
    %c0_54 = arith.constant 0 : index
    %80 = vector.load %arg19[%c0_53, %c0_54] : memref<1x1024xf32, #tpu.memory_space<vmem>>, vector<1x1024xf32>
    %81 = vector.broadcast %80 : vector<1x1024xf32> to vector<8x1024xf32>
    %82 = arith.addf %79, %81 : vector<8x1024xf32>
    %c0_55 = arith.constant 0 : index
    %c0_56 = arith.constant 0 : index
    %83 = vector.load %arg20[%c0_55, %c0_56] : memref<8x1024xf32, #tpu.memory_space<vmem>>, vector<8x1024xf32>
    tpu.vector_store %arg20[%c0_55, %c0_56], %82 {strides = array<i32>} : memref<8x1024xf32, #tpu.memory_space<vmem>>, vector<8x1024xf32>,
    return
  }
  func.func @transform_0(%arg0: i32) -> (i32, i32) {
    %c0_i32 = arith.constant 0 : i32
    %c0_i32_0 = arith.constant 0 : i32
    return %arg0, %c0_i32 : i32, i32
  }
  func.func @transform_1(%arg0: i32) -> (i32, i32) {
    %c0_i32 = arith.constant 0 : i32
    %c0_i32_0 = arith.constant 0 : i32
    %c0_i32_1 = arith.constant 0 : i32
    return %c0_i32, %c0_i32_0 : i32, i32
  }
  func.func @transform_2(%arg0: i32) -> (i32, i32) {
    %c0_i32 = arith.constant 0 : i32
    %c0_i32_0 = arith.constant 0 : i32
    %c0_i32_1 = arith.constant 0 : i32
    return %c0_i32, %c0_i32_0 : i32, i32
  }
  func.func @transform_3(%arg0: i32) -> (i32, i32) {
    %c0_i32 = arith.constant 0 : i32
    %c0_i32_0 = arith.constant 0 : i32
    %c0_i32_1 = arith.constant 0 : i32
    return %c0_i32, %c0_i32_0 : i32, i32
  }
  func.func @transform_4(%arg0: i32) -> (i32, i32) {
    %c0_i32 = arith.constant 0 : i32
    %c0_i32_0 = arith.constant 0 : i32
    %c0_i32_1 = arith.constant 0 : i32
    return %c0_i32, %c0_i32_0 : i32, i32
  }
  func.func @transform_5(%arg0: i32) -> (i32, i32) {
    %c0_i32 = arith.constant 0 : i32
    %c0_i32_0 = arith.constant 0 : i32
    %c0_i32_1 = arith.constant 0 : i32
    return %c0_i32, %c0_i32_0 : i32, i32
  }
  func.func @transform_6(%arg0: i32) -> (i32, i32) {
    %c0_i32 = arith.constant 0 : i32
    %c0_i32_0 = arith.constant 0 : i32
    %c0_i32_1 = arith.constant 0 : i32
    return %c0_i32, %c0_i32_0 : i32, i32
  }
  func.func @transform_7(%arg0: i32) -> (i32, i32) {
    %c0_i32 = arith.constant 0 : i32
    %c0_i32_0 = arith.constant 0 : i32
    %c0_i32_1 = arith.constant 0 : i32
    return %c0_i32, %c0_i32_0 : i32, i32
  }
  func.func @transform_8(%arg0: i32) -> (i32, i32) {
    %c0_i32 = arith.constant 0 : i32
    %c0_i32_0 = arith.constant 0 : i32
    %c0_i32_1 = arith.constant 0 : i32
    return %c0_i32, %c0_i32_0 : i32, i32
  }
  func.func @transform_9(%arg0: i32) -> (i32, i32) {
    %c0_i32 = arith.constant 0 : i32
    %c0_i32_0 = arith.constant 0 : i32
    %c0_i32_1 = arith.constant 0 : i32
    return %c0_i32, %c0_i32_0 : i32, i32
  }
  func.func @transform_10(%arg0: i32) -> (i32, i32) {
    %c0_i32 = arith.constant 0 : i32
    %c0_i32_0 = arith.constant 0 : i32
    %c0_i32_1 = arith.constant 0 : i32
    return %c0_i32, %c0_i32_0 : i32, i32
  }
  func.func @transform_11(%arg0: i32) -> (i32, i32) {
    %c0_i32 = arith.constant 0 : i32
    %c0_i32_0 = arith.constant 0 : i32
    %c0_i32_1 = arith.constant 0 : i32
    return %c0_i32, %c0_i32_0 : i32, i32
  }
  func.func @transform_12(%arg0: i32) -> (i32, i32) {
    %c0_i32 = arith.constant 0 : i32
    %c0_i32_0 = arith.constant 0 : i32
    %c0_i32_1 = arith.constant 0 : i32
    return %c0_i32, %c0_i32_0 : i32, i32
  }
  func.func @transform_13(%arg0: i32) -> (i32, i32) {
    %c0_i32 = arith.constant 0 : i32
    %c0_i32_0 = arith.constant 0 : i32
    %c0_i32_1 = arith.constant 0 : i32
    return %c0_i32, %c0_i32_0 : i32, i32
  }
  func.func @transform_14(%arg0: i32) -> (i32, i32) {
    %c0_i32 = arith.constant 0 : i32
    %c0_i32_0 = arith.constant 0 : i32
    %c0_i32_1 = arith.constant 0 : i32
    return %c0_i32, %c0_i32_0 : i32, i32
  }
  func.func @transform_15(%arg0: i32) -> (i32, i32) {
    %c0_i32 = arith.constant 0 : i32
    %c0_i32_0 = arith.constant 0 : i32
    %c0_i32_1 = arith.constant 0 : i32
    return %c0_i32, %c0_i32_0 : i32, i32
  }
  func.func @transform_16(%arg0: i32) -> (i32, i32) {
    %c0_i32 = arith.constant 0 : i32
    %c0_i32_0 = arith.constant 0 : i32
    %c0_i32_1 = arith.constant 0 : i32
    return %c0_i32, %c0_i32_0 : i32, i32
  }
  func.func @transform_17(%arg0: i32) -> (i32, i32) {
    %c0_i32 = arith.constant 0 : i32
    %c0_i32_0 = arith.constant 0 : i32
    %c0_i32_1 = arith.constant 0 : i32
    return %c0_i32, %c0_i32_0 : i32, i32
  }
  func.func @transform_18(%arg0: i32) -> (i32, i32) {
    %c0_i32 = arith.constant 0 : i32
    %c0_i32_0 = arith.constant 0 : i32
    %c0_i32_1 = arith.constant 0 : i32
    return %c0_i32, %c0_i32_0 : i32, i32
  }
  func.func @transform_19(%arg0: i32) -> (i32, i32) {
    %c0_i32 = arith.constant 0 : i32
    %c0_i32_0 = arith.constant 0 : i32
    return %arg0, %c0_i32 : i32, i32
  }
}

</mosaic_0001>

<bundles_post_ra>
// kernel: generative_network.1
= control target key start
LH: loop header
LB: loop body
LE: loop exit
PB: predicated region body
PF: predicated region fallthrough
CT: control target
= control target key end

     0   :  { %s7999_s0 = inlined_call_operand.hbm [shape: f32[8,128], index: 0, kind: input, shape index: {}]   ;;  %s8000_s1 = inlined_call_operand.hbm [shape: bf16[128,256], index: 1, kind: input, shape index: {}]   ;;  %s8001_s2 = inlined_call_operand.vmem [shape: f32[1,256], index: 2, kind: input, shape index: {}]   ;;  %s8002_s3 = inlined_call_operand.hbm [shape: bf16[256,256], index: 3, kind: input, shape index: {}]   ;;  %s8003_s4 = inlined_call_operand.hbm [shape: f32[1,256], index: 4, kind: input, shape index: {}]   ;;  %s8004_s5 = inlined_call_operand.hbm [shape: bf16[256,256], index: 5, kind: input, shape index: {}]   ;;  %s8005_s6 = inlined_call_operand.hbm [shape: f32[1,256], index: 6, kind: input, shape index: {}]   ;;  %s8006_s7 = inlined_call_operand.hbm [shape: bf16[256,256], index: 7, kind: input, shape index: {}]   ;;  %s8007_s8 = inlined_call_operand.vmem [shape: f32[1,256], index: 8, kind: input, shape index: {}]   ;;  %s8008_s9 = inlined_call_operand.hbm [shape: bf16[256,256], index: 9, kind: input, shape index: {}]   ;;  %s8009_s10 = inlined_call_operand.vmem [shape: f32[1,256], index: 10, kind: input, shape index: {}]   ;;  %s8010_s11 = inlined_call_operand.hbm [shape: bf16[256,512], index: 11, kind: input, shape index: {}]   ;;  %s8011_s12 = inlined_call_operand.vmem [shape: f32[1,512], index: 12, kind: input, shape index: {}]   ;;  %s8012_s13 = inlined_call_operand.hbm [shape: bf16[512,512], index: 13, kind: input, shape index: {}]   ;;  %s8013_s14 = inlined_call_operand.vmem [shape: f32[1,512], index: 14, kind: input, shape index: {}]   ;;  %s8014_s15 = inlined_call_operand.hbm [shape: bf16[512,512], index: 15, kind: input, shape index: {}]   ;;  %s8015_s16 = inlined_call_operand.vmem [shape: f32[1,512], index: 16, kind: input, shape index: {}]   ;;  %s8016_s17 = inlined_call_operand.hbm [shape: bf16[512,1024], index: 17, kind: input, shape index: {}]   ;;  %s8017_s18 = inlined_call_operand.vmem [shape: f32[1,1024], index: 18, kind: input, shape index: {}]   ;;  %s8018_s19 = inlined_call_operand.vmem [shape: f32[8,1024], index: 19, kind: output, shape index: {}]  }
   0x1   :  { %8023 = sst [smem:[#allocation28_spill]] %s7999_s0 }
   0x2   :  { %8024 = sst [smem:[#allocation29_spill]] %s8000_s1 }
   0x3   :  { %8025 = sst [smem:[#allocation30_spill]] %s8001_s2 }
   0x4   :  { %8026 = sst [smem:[#allocation31_spill]] %s8002_s3 }
   0x5   :  { %8027 = sst [smem:[#allocation32_spill]] %s8017_s18 }
   0x6   :  { %8028 = sst [smem:[#allocation33_spill]] %s8018_s19 }
   0x7   :  { %24 = vsyncpa [#allocation3], 0 }
   0x8   :  { %25 = vsyncpa [#allocation5], 0 }
   0x9   :  { %26 = vsyncpa [#allocation8], 0 }
   0xa   :  { %27 = vsyncpa [#allocation11], 0 }
   0xb   :  { %28 = vsyncpa [#allocation14], 0 }
   0xc   :  { %29 = vsyncpa [#allocation17], 0 }
   0xd   :  { %30 = vsyncpa [#allocation20], 0  ;;  %s7493_s0 = smov [#allocation4]   ;;  %s8029_s1 = sld [smem:[#allocation29_spill]] }
   0xe   :  { %s46_s30 = sshll.u32 %s7493_s0, 4  ;;  %s47_s30 = int_to_ptr.vmem [resolvable:$true] %s46_s30 }
  0x13   :  { %s7215_s22 = scalar_lea.hbm %s8029_s1, 2048 }
  0x14   :  { %p7216_p0 = scmp.ne.s32.totalorder %s8029_s1, %s7215_s22  ;;  %p7219_p1 = scmp.lt.u32.totalorder %s7215_s22, %s8029_s1 }
  0x16   :  { %p7221_p2 = pnand %p7219_p1, %p7216_p0 }
  0x18   :  { %7224 = shalt.err (!%p7221_p2)
}
  0x19   :  { %s7225_s3 = scalar_lea.vmem %s47_s30, 2048  ;;  %p7230_p4 = scmp.lt.s32.totalorder %s47_s30, %s47_s30 }
  0x1a   :  { %p7226_p3 = scmp.ne.s32.totalorder %s47_s30, %s7225_s3  ;;  %p7231_p5 = scmp.lt.s32.totalorder %s7225_s3, %s7225_s3 }
  0x1c   :  { %p7232_p6 = por %p7231_p5, %p7230_p4 }
  0x1e   :  { %p7233_p7 = pnand %p7232_p6, %p7226_p3 }
  0x20   :  { %7236 = shalt.err (!%p7233_p7)
}
  0x21   :  { %s7494_s26 = smov 128   ;;  %s7495_s27 = smov 8  }
  0x22   :  { %52 = dma.hbm_to_vmem [thread:$0]  %s8029_s1, 2048, %s47_s30, [#allocation5], %s7494_s26, %s7494_s26, %s7495_s27  }
  0x23   :  { %s7496_s0 = smov [#allocation7]   ;;  %s7497_s21 = smov [#allocation10]  }
  0x24   :  { %s73_s20 = sshll.u32 %s7496_s0, 4  ;;  %s95_s22 = sshll.u32 %s7497_s21, 4  ;;  %s74_s20 = int_to_ptr.vmem [resolvable:$true] %s73_s20  ;;  %s96_s22 = int_to_ptr.vmem [resolvable:$true] %s95_s22 }
  0x25   :  { %s7237_s24 = scalar_lea.hbm %s8003_s4, 32 }
  0x26   :  { %p7238_p8 = scmp.ne.s32.totalorder %s8003_s4, %s7237_s24  ;;  %p7241_p9 = scmp.lt.u32.totalorder %s7237_s24, %s8003_s4 }
  0x28   :  { %p7243_p10 = pnand %p7241_p9, %p7238_p8 }
  0x2a   :  { %7246 = shalt.err (!%p7243_p10)
}
  0x2b   :  { %s7247_s30 = scalar_lea.vmem %s74_s20, 32  ;;  %p7252_p12 = scmp.lt.s32.totalorder %s74_s20, %s74_s20 }
  0x2c   :  { %p7248_p11 = scmp.ne.s32.totalorder %s74_s20, %s7247_s30  ;;  %p7253_p13 = scmp.lt.s32.totalorder %s7247_s30, %s7247_s30 }
  0x2e   :  { %p7254_p0 = por %p7253_p13, %p7252_p12 }
  0x30   :  { %p7255_p1 = pnand %p7254_p0, %p7248_p11 }
  0x32   :  { %7258 = shalt.err (!%p7255_p1)
}
  0x33   :  { %76 = dma.hbm_to_vmem [thread:$0]  %s8003_s4, 32, %s74_s20, [#allocation8]  }
  0x34   :  { %s7259_s21 = scalar_lea.hbm %s8005_s6, 32 }
  0x35   :  { %p7260_p2 = scmp.ne.s32.totalorder %s8005_s6, %s7259_s21  ;;  %p7263_p3 = scmp.lt.u32.totalorder %s7259_s21, %s8005_s6 }
  0x37   :  { %p7265_p4 = pnand %p7263_p3, %p7260_p2 }
  0x39   :  { %7268 = shalt.err (!%p7265_p4)
}
  0x3a   :  { %s7269_s24 = scalar_lea.vmem %s96_s22, 32  ;;  %p7274_p6 = scmp.lt.s32.totalorder %s96_s22, %s96_s22 }
  0x3b   :  { %p7270_p5 = scmp.ne.s32.totalorder %s96_s22, %s7269_s24  ;;  %p7275_p7 = scmp.lt.s32.totalorder %s7269_s24, %s7269_s24 }
  0x3d   :  { %p7276_p8 = por %p7275_p7, %p7274_p6 }
  0x3f   :  { %p7277_p9 = pnand %p7276_p8, %p7270_p5 }
  0x41   :  { %7280 = shalt.err (!%p7277_p9)
}
  0x42   :  { %98 = dma.hbm_to_vmem [thread:$0]  %s8005_s6, 32, %s96_s22, [#allocation11]  }
  0x43   :  { %s7498_s25 = smov [#allocation13]   ;;  %s7281_s28 = scalar_lea.hbm %s8008_s9, 4096 }
  0x44   :  { %s118_s3 = sshll.u32 %s7498_s25, 4  ;;  %p7282_p10 = scmp.ne.s32.totalorder %s8008_s9, %s7281_s28  ;;  %s119_s3 = int_to_ptr.vmem [resolvable:$true] %s118_s3 }
  0x45   :  { %p7285_p11 = scmp.lt.u32.totalorder %s7281_s28, %s8008_s9 }
  0x47   :  { %p7287_p12 = pnand %p7285_p11, %p7282_p10 }
  0x49   :  { %7290 = shalt.err (!%p7287_p12)
}
  0x4a   :  { %s7291_s19 = scalar_lea.vmem %s119_s3, 4096  ;;  %p7296_p0 = scmp.lt.s32.totalorder %s119_s3, %s119_s3 }
  0x4b   :  { %p7292_p13 = scmp.ne.s32.totalorder %s119_s3, %s7291_s19  ;;  %p7297_p1 = scmp.lt.s32.totalorder %s7291_s19, %s7291_s19 }
  0x4d   :  { %p7298_p2 = por %p7297_p1, %p7296_p0 }
  0x4f   :  { %p7299_p3 = pnand %p7298_p2, %p7292_p13 }
  0x51   :  { %7302 = shalt.err (!%p7299_p3)
}
  0x52   :  { %124 = dma.hbm_to_vmem [thread:$0]  %s8008_s9, 4096, %s119_s3, [#allocation14], %s7494_s26, %s7494_s26, %s7495_s27  }
  0x53   :  { %s7499_s2 = smov [#allocation16]   ;;  %s7500_s24 = smov [#allocation2]  }
  0x54   :  { %s146_s23 = sshll.u32 %s7499_s2, 4  ;;  %s37_s4 = sshll.u32 %s7500_s24, 4  ;;  %s147_s23 = int_to_ptr.vmem [resolvable:$true] %s146_s23  ;;  %s38_s4 = int_to_ptr.vmem [resolvable:$true] %s37_s4 }
  0x55   :  { %s7303_s30 = scalar_lea.hbm %s8012_s13, 16384 }
  0x56   :  { %p7304_p4 = scmp.ne.s32.totalorder %s8012_s13, %s7303_s30  ;;  %p7307_p5 = scmp.lt.u32.totalorder %s7303_s30, %s8012_s13 }
  0x58   :  { %p7309_p6 = pnand %p7307_p5, %p7304_p4 }
  0x5a   :  { %7312 = shalt.err (!%p7309_p6)
}
  0x5b   :  { %s7313_s9 = scalar_lea.vmem %s147_s23, 16384  ;;  %p7318_p8 = scmp.lt.s32.totalorder %s147_s23, %s147_s23 }
  0x5c   :  { %p7314_p7 = scmp.ne.s32.totalorder %s147_s23, %s7313_s9  ;;  %p7319_p9 = scmp.lt.s32.totalorder %s7313_s9, %s7313_s9 }
  0x5e   :  { %p7320_p10 = por %p7319_p9, %p7318_p8 }
  0x60   :  { %p7321_p11 = pnand %p7320_p10, %p7314_p7 }
  0x62   :  { %7324 = shalt.err (!%p7321_p11)
}
  0x63   :  { %s7501_s3 = smov 256   ;;  %s7502_s21 = smov 16  }
  0x64   :  { %152 = dma.hbm_to_vmem [thread:$0]  %s8012_s13, 16384, %s147_s23, [#allocation17], %s7501_s3, %s7501_s3, %s7502_s21  }
  0x65   :  { %s8030_s2 = sld [smem:[#allocation28_spill]] }
  0x6b   :  { %s7325_s24 = scalar_lea.hbm %s8030_s2, 128 }
  0x6c   :  { %p7326_p12 = scmp.ne.s32.totalorder %s8030_s2, %s7325_s24  ;;  %p7329_p13 = scmp.lt.u32.totalorder %s7325_s24, %s8030_s2 }
  0x6e   :  { %p7331_p0 = pnand %p7329_p13, %p7326_p12 }
  0x70   :  { %7334 = shalt.err (!%p7331_p0)
}
  0x71   :  { %s7335_s28 = scalar_lea.vmem %s38_s4, 128  ;;  %p7340_p2 = scmp.lt.s32.totalorder %s38_s4, %s38_s4 }
  0x72   :  { %p7336_p1 = scmp.ne.s32.totalorder %s38_s4, %s7335_s28  ;;  %p7341_p3 = scmp.lt.s32.totalorder %s7335_s28, %s7335_s28 }
  0x74   :  { %p7342_p4 = por %p7341_p3, %p7340_p2 }
  0x76   :  { %p7343_p5 = pnand %p7342_p4, %p7336_p1 }
  0x78   :  { %7346 = shalt.err (!%p7343_p5)
}
  0x79   :  { %40 = dma.hbm_to_vmem [thread:$0]  %s8030_s2, 128, %s38_s4, [#allocation3]  }
  0x7a   :  { %s7503_s29 = smov [#allocation6]   ;;  %s7504_s9 = smov [#allocation9]  }
  0x7b   :  { %s60_s0 = sshll.u32 %s7503_s29, 4  ;;  %s82_s18 = sshll.u32 %s7504_s9, 4  ;;  %s61_s0 = int_to_ptr.vmem [resolvable:$true] %s60_s0  ;;  %s7693_s18 = int_to_ptr.vmem [resolvable:$true] %s82_s18 }
  0x7c   :  { %s8031_s22 = sld [smem:[#allocation31_spill]] }
  0x82   :  { %s7347_s24 = scalar_lea.hbm %s8031_s22, 4096 }
  0x83   :  { %p7348_p6 = scmp.ne.s32.totalorder %s8031_s22, %s7347_s24  ;;  %p7351_p7 = scmp.lt.u32.totalorder %s7347_s24, %s8031_s22 }
  0x85   :  { %p7353_p8 = pnand %p7351_p7, %p7348_p6 }
  0x87   :  { %7356 = shalt.err (!%p7353_p8)
}
  0x88   :  { %s7357_s4 = scalar_lea.vmem %s61_s0, 4096  ;;  %p7362_p10 = scmp.lt.s32.totalorder %s61_s0, %s61_s0 }
  0x89   :  { %p7358_p9 = scmp.ne.s32.totalorder %s61_s0, %s7357_s4  ;;  %p7363_p11 = scmp.lt.s32.totalorder %s7357_s4, %s7357_s4 }
  0x8b   :  { %p7364_p12 = por %p7363_p11, %p7362_p10 }
  0x8d   :  { %p7365_p13 = pnand %p7364_p12, %p7358_p9 }
  0x8f   :  { %7368 = shalt.err (!%p7365_p13)
}
  0x90   :  { %66 = dma.hbm_to_vmem [thread:$0]  %s8031_s22, 4096, %s61_s0, [#allocation5], %s7494_s26, %s7494_s26, %s7495_s27  }
  0x91   :  { %s7369_s29 = scalar_lea.hbm %s8004_s5, 4096 }
  0x92   :  { %p7370_p0 = scmp.ne.s32.totalorder %s8004_s5, %s7369_s29  ;;  %p7373_p1 = scmp.lt.u32.totalorder %s7369_s29, %s8004_s5 }
  0x94   :  { %p7375_p2 = pnand %p7373_p1, %p7370_p0 }
  0x96   :  { %7378 = shalt.err (!%p7375_p2)
}
  0x97   :  { %s7379_s20 = scalar_lea.vmem %s7693_s18, 4096  ;;  %p7384_p4 = scmp.lt.s32.totalorder %s7693_s18, %s7693_s18 }
  0x98   :  { %p7380_p3 = scmp.ne.s32.totalorder %s7693_s18, %s7379_s20  ;;  %p7385_p5 = scmp.lt.s32.totalorder %s7379_s20, %s7379_s20 }
  0x9a   :  { %p7386_p6 = por %p7385_p5, %p7384_p4 }
  0x9c   :  { %p7387_p7 = pnand %p7386_p6, %p7380_p3 }
  0x9e   :  { %7390 = shalt.err (!%p7387_p7)
}
  0x9f   :  { %88 = dma.hbm_to_vmem [thread:$0]  %s8004_s5, 4096, %s7693_s18, [#allocation8], %s7494_s26, %s7494_s26, %s7495_s27  }
  0xa0   :  { %s7505_s25 = smov [#allocation12]   ;;  %s7506_s1 = smov [#allocation15]  }
  0xa1   :  { %s104_s30 = sshll.u32 %s7505_s25, 4  ;;  %s132_s4 = sshll.u32 %s7506_s1, 4  ;;  %s105_s30 = int_to_ptr.vmem [resolvable:$true] %s104_s30  ;;  %s7730_s4 = int_to_ptr.vmem [resolvable:$true] %s132_s4 }
  0xa2   :  { %s7391_s13 = scalar_lea.hbm %s8006_s7, 4096 }
  0xa3   :  { %p7392_p8 = scmp.ne.s32.totalorder %s8006_s7, %s7391_s13  ;;  %p7395_p9 = scmp.lt.u32.totalorder %s7391_s13, %s8006_s7 }
  0xa5   :  { %p7397_p10 = pnand %p7395_p9, %p7392_p8 }
  0xa7   :  { %7400 = shalt.err (!%p7397_p10)
}
  0xa8   :  { %s7401_s5 = scalar_lea.vmem %s105_s30, 4096  ;;  %p7406_p12 = scmp.lt.s32.totalorder %s105_s30, %s105_s30 }
  0xa9   :  { %p7402_p11 = scmp.ne.s32.totalorder %s105_s30, %s7401_s5  ;;  %p7407_p13 = scmp.lt.s32.totalorder %s7401_s5, %s7401_s5 }
  0xab   :  { %p7408_p0 = por %p7407_p13, %p7406_p12 }
  0xad   :  { %p7409_p1 = pnand %p7408_p0, %p7402_p11 }
  0xaf   :  { %7412 = shalt.err (!%p7409_p1)
}
  0xb0   :  { %110 = dma.hbm_to_vmem [thread:$0]  %s8006_s7, 4096, %s105_s30, [#allocation11], %s7494_s26, %s7494_s26, %s7495_s27  }
  0xb1   :  { %s7413_s0 = scalar_lea.hbm %s8010_s11, 8192 }
  0xb2   :  { %p7414_p2 = scmp.ne.s32.totalorder %s8010_s11, %s7413_s0  ;;  %p7417_p3 = scmp.lt.u32.totalorder %s7413_s0, %s8010_s11 }
  0xb4   :  { %p7419_p4 = pnand %p7417_p3, %p7414_p2 }
  0xb6   :  { %7422 = shalt.err (!%p7419_p4)
}
  0xb7   :  { %s7423_s28 = scalar_lea.vmem %s7730_s4, 8192  ;;  %p7428_p6 = scmp.lt.s32.totalorder %s7730_s4, %s7730_s4 }
  0xb8   :  { %p7424_p5 = scmp.ne.s32.totalorder %s7730_s4, %s7423_s28  ;;  %p7429_p7 = scmp.lt.s32.totalorder %s7423_s28, %s7423_s28 }
  0xba   :  { %p7430_p8 = por %p7429_p7, %p7428_p6 }
  0xbc   :  { %p7431_p9 = pnand %p7430_p8, %p7424_p5 }
  0xbe   :  { %7434 = shalt.err (!%p7431_p9)
}
  0xbf   :  { %138 = dma.hbm_to_vmem [thread:$0]  %s8010_s11, 8192, %s7730_s4, [#allocation14], %s7501_s3, %s7501_s3, %s7502_s21  }
  0xc0   :  { %s7507_s27 = smov [#allocation18]   ;;  %s7508_s13 = smov [#allocation19]  }
  0xc1   :  { %s160_s30 = sshll.u32 %s7507_s27, 4  ;;  %s174_s23 = sshll.u32 %s7508_s13, 4  ;;  %s161_s30 = int_to_ptr.vmem [resolvable:$true] %s160_s30  ;;  %s7767_s23 = int_to_ptr.vmem [resolvable:$true] %s174_s23 }
  0xc2   :  { %s7435_s19 = scalar_lea.hbm %s8014_s15, 16384 }
  0xc3   :  { %p7436_p10 = scmp.ne.s32.totalorder %s8014_s15, %s7435_s19  ;;  %p7439_p11 = scmp.lt.u32.totalorder %s7435_s19, %s8014_s15 }
  0xc5   :  { %p7441_p12 = pnand %p7439_p11, %p7436_p10 }
  0xc7   :  { %7444 = shalt.err (!%p7441_p12)
}
  0xc8   :  { %s7445_s11 = scalar_lea.vmem %s161_s30, 16384  ;;  %p7450_p0 = scmp.lt.s32.totalorder %s161_s30, %s161_s30 }
  0xc9   :  { %p7446_p13 = scmp.ne.s32.totalorder %s161_s30, %s7445_s11  ;;  %p7451_p1 = scmp.lt.s32.totalorder %s7445_s11, %s7445_s11 }
  0xcb   :  { %p7452_p2 = por %p7451_p1, %p7450_p0 }
  0xcd   :  { %p7453_p3 = pnand %p7452_p2, %p7446_p13 }
  0xcf   :  { %7456 = shalt.err (!%p7453_p3)
}
  0xd0   :  { %166 = dma.hbm_to_vmem [thread:$0]  %s8014_s15, 16384, %s161_s30, [#allocation17], %s7501_s3, %s7501_s3, %s7502_s21  }
  0xd1   :  { %s7457_s25 = scalar_lea.hbm %s8016_s17, 32768 }
  0xd2   :  { %p7458_p4 = scmp.ne.s32.totalorder %s8016_s17, %s7457_s25  ;;  %p7461_p5 = scmp.lt.u32.totalorder %s7457_s25, %s8016_s17 }
  0xd4   :  { %p7463_p6 = pnand %p7461_p5, %p7458_p4 }
  0xd6   :  { %7466 = shalt.err (!%p7463_p6)
}
  0xd7   :  { %s7467_s26 = scalar_lea.vmem %s7767_s23, 32768  ;;  %p7472_p8 = scmp.lt.s32.totalorder %s7767_s23, %s7767_s23 }
  0xd8   :  { %p7468_p7 = scmp.ne.s32.totalorder %s7767_s23, %s7467_s26  ;;  %p7473_p9 = scmp.lt.s32.totalorder %s7467_s26, %s7467_s26 }
  0xda   :  { %p7474_p10 = por %p7473_p9, %p7472_p8 }
  0xdc   :  { %p7475_p11 = pnand %p7474_p10, %p7468_p7 }
  0xde   :  { %7478 = shalt.err (!%p7475_p11)
}
  0xdf   :  { %s7509_s15 = smov 512   ;;  %s7510_s3 = smov 32  }
  0xe0   :  { %180 = dma.hbm_to_vmem [thread:$0]  %s8016_s17, 32768, %s7767_s23, [#allocation20], %s7509_s15, %s7509_s15, %s7510_s3  }
  0xe1   :  { %7479 = dma.done.wait [#allocation3], 128  }
  0xe2   :  { %7480 = vsyncadd [#allocation3], 4294967168 }
  0xe3   :  { %7481 = dma.done.wait [#allocation5], 6144  }
  0xe4   :  { %7482 = vsyncadd [#allocation5], 4294961152 }
  0xe5   :  { %7483 = dma.done.wait [#allocation8], 4128  }
  0xe6   :  { %7484 = vsyncadd [#allocation8], 4294963168 }
  0xe7   :  { %7485 = dma.done.wait [#allocation11], 4128  }
  0xe8   :  { %7486 = vsyncadd [#allocation11], 4294963168 }
  0xe9   :  { %7487 = dma.done.wait [#allocation14], 12288  }
  0xea   :  { %7488 = vsyncadd [#allocation14], 4294955008 }
  0xeb   :  { %7489 = dma.done.wait [#allocation17], 32768  }
  0xec   :  { %7490 = vsyncadd [#allocation17], 4294934528 }
  0xed   :  { %7491 = dma.done.wait [#allocation20], 32768  }
  0xee   :  { %7492 = vsyncadd [#allocation20], 4294934528  ;;  %v7511_v0 = vmov 0   ;;  %v6519_v1 = vld [vmem:[#allocation4 + $0x4] ss:$8 sps:$4 sm:$0xff]   ;;  %v220_v26 = vld [vmem:[#allocation2] sm:$0xff] }
  0xef   :  { %362 = vmatprep.mubr.bf16.mxu0 %v7511_v0  ;;  %v6521_v2 = vld [vmem:[#allocation4] ss:$8 sps:$4 sm:$0xff]   ;;  %330 = vmatprep.subr.bf16.mxu0 %v6519_v1  ;;  %v6522_v3 = vld [vmem:[#allocation4 + $0x14] ss:$8 sps:$4 sm:$0xff]   ;;  %v6524_v4 = vld [vmem:[#allocation4 + $0x10] ss:$8 sps:$4 sm:$0xff]   ;;  %v221_v31 = vpack.c.bf16 %v220_v26, %v220_v26 }
  0xf0   :  { %331 = vmatpush1.bf16.msra.mxu0 %v6521_v2  ;;  %v6525_v5 = vld [vmem:[#allocation4 + $0x24] ss:$8 sps:$4 sm:$0xff]   ;;  %v6527_v6 = vld [vmem:[#allocation4 + $0x20] ss:$8 sps:$4 sm:$0xff]   ;;  %v6528_v7 = vld [vmem:[#allocation4 + $0x34] ss:$8 sps:$4 sm:$0xff]  }
  0xf1   :  { %332 = vmatprep.subr.bf16.mxu0 %v6522_v3  ;;  %v6530_v8 = vld [vmem:[#allocation4 + $0x30] ss:$8 sps:$4 sm:$0xff]   ;;  %v6531_v9 = vld [vmem:[#allocation4 + $0x44] ss:$8 sps:$4 sm:$0xff]   ;;  %v6545_v11 = vld [vmem:[#allocation6] ss:$8 sps:$4 sm:$0xff]  }
  0xf2   :  { %v6543_v10 = vld [vmem:[#allocation6 + $0x4] ss:$8 sps:$4 sm:$0xff]   ;;  %v6546_v12 = vld [vmem:[#allocation6 + $0x14] ss:$8 sps:$4 sm:$0xff]   ;;  %v6533_v13 = vld [vmem:[#allocation4 + $0x40] ss:$8 sps:$4 sm:$0xff]  }
  0xf3   :  { %583 = vmatprep.subr.bf16.mxu1 %v6543_v10  ;;  %v6548_v14 = vld [vmem:[#allocation6 + $0x10] ss:$8 sps:$4 sm:$0xff]   ;;  %v6549_v15 = vld [vmem:[#allocation6 + $0x24] ss:$8 sps:$4 sm:$0xff]   ;;  %v6534_v16 = vld [vmem:[#allocation4 + $0x54] ss:$8 sps:$4 sm:$0xff]  }
  0xf4   :  { %333 = vmatpush1.bf16.msra.mxu0 %v6524_v4  ;;  %584 = vmatpush1.bf16.msra.mxu1 %v6545_v11  ;;  %v6536_v17 = vld [vmem:[#allocation4 + $0x50] ss:$8 sps:$4 sm:$0xff]   ;;  %v6551_v18 = vld [vmem:[#allocation6 + $0x20] ss:$8 sps:$4 sm:$0xff]   ;;  %v6552_v19 = vld [vmem:[#allocation6 + $0x34] ss:$8 sps:$4 sm:$0xff]  }
  0xf5   :  { %334 = vmatprep.subr.bf16.mxu0 %v6525_v5  ;;  %585 = vmatprep.subr.bf16.mxu1 %v6546_v12  ;;  %v6537_v20 = vld [vmem:[#allocation4 + $0x64] ss:$8 sps:$4 sm:$0xff]   ;;  %v6539_v21 = vld [vmem:[#allocation4 + $0x60] ss:$8 sps:$4 sm:$0xff]   ;;  %v6554_v22 = vld [vmem:[#allocation6 + $0x30] ss:$8 sps:$4 sm:$0xff]  }
  0xf6   :  { %v6555_v23 = vld [vmem:[#allocation6 + $0x44] ss:$8 sps:$4 sm:$0xff]   ;;  %v6540_v24 = vld [vmem:[#allocation4 + $0x74] ss:$8 sps:$4 sm:$0xff]   ;;  %v6542_v25 = vld [vmem:[#allocation4 + $0x70] ss:$8 sps:$4 sm:$0xff]  }
  0xf7   :  { %v6557_v27 = vld [vmem:[#allocation6 + $0x40] ss:$8 sps:$4 sm:$0xff]   ;;  %v6558_v28 = vld [vmem:[#allocation6 + $0x54] ss:$8 sps:$4 sm:$0xff]   ;;  %v6560_v29 = vld [vmem:[#allocation6 + $0x50] ss:$8 sps:$4 sm:$0xff]  }
  0xf8   :  { %335 = vmatpush1.bf16.msra.mxu0 %v6527_v6  ;;  %586 = vmatpush1.bf16.msra.mxu1 %v6548_v14  ;;  %v6561_v30 = vld [vmem:[#allocation6 + $0x64] ss:$8 sps:$4 sm:$0xff]   ;;  %v6563_v32 = vld [vmem:[#allocation6 + $0x60] ss:$8 sps:$4 sm:$0xff]   ;;  %v6564_v33 = vld [vmem:[#allocation6 + $0x74] ss:$8 sps:$4 sm:$0xff]  }
  0xf9   :  { %336 = vmatprep.subr.bf16.mxu0 %v6528_v7  ;;  %587 = vmatprep.subr.bf16.mxu1 %v6549_v15  ;;  %v6566_v34 = vld [vmem:[#allocation6 + $0x70] ss:$8 sps:$4 sm:$0xff]   ;;  %v6567_v35 = vld [vmem:[#allocation6 + $0x84] ss:$8 sps:$4 sm:$0xff]   ;;  %v6569_v36 = vld [vmem:[#allocation6 + $0x80] ss:$8 sps:$4 sm:$0xff]   ;;  %v240_v15 = vlaneseq }
  0xfa   :  { %v6570_v37 = vld [vmem:[#allocation6 + $0x94] ss:$8 sps:$4 sm:$0xff]   ;;  %v6572_v38 = vld [vmem:[#allocation6 + $0x90] ss:$8 sps:$4 sm:$0xff]   ;;  %v6573_v39 = vld [vmem:[#allocation6 + $0xa4] ss:$8 sps:$4 sm:$0xff]  }
  0xfb   :  { %v6575_v40 = vld [vmem:[#allocation6 + $0xa0] ss:$8 sps:$4 sm:$0xff]   ;;  %v6576_v41 = vld [vmem:[#allocation6 + $0xb4] ss:$8 sps:$4 sm:$0xff]   ;;  %v6578_v42 = vld [vmem:[#allocation6 + $0xb0] ss:$8 sps:$4 sm:$0xff]  }
  0xfc   :  { %337 = vmatpush1.bf16.msra.mxu0 %v6530_v8  ;;  %588 = vmatpush1.bf16.msra.mxu1 %v6551_v18  ;;  %v6579_v43 = vld [vmem:[#allocation6 + $0xc4] ss:$8 sps:$4 sm:$0xff]   ;;  %v6581_v44 = vld [vmem:[#allocation6 + $0xc0] ss:$8 sps:$4 sm:$0xff]   ;;  %v6582_v45 = vld [vmem:[#allocation6 + $0xd4] ss:$8 sps:$4 sm:$0xff]  }
  0xfd   :  { %338 = vmatprep.subr.bf16.mxu0 %v6531_v9  ;;  %589 = vmatprep.subr.bf16.mxu1 %v6552_v19  ;;  %v6584_v46 = vld [vmem:[#allocation6 + $0xd0] ss:$8 sps:$4 sm:$0xff]   ;;  %v6585_v47 = vld [vmem:[#allocation6 + $0xe4] ss:$8 sps:$4 sm:$0xff]   ;;  %v6587_v48 = vld [vmem:[#allocation6 + $0xe0] ss:$8 sps:$4 sm:$0xff]  }
  0xfe   :  { %v6588_v49 = vld [vmem:[#allocation6 + $0xf4] ss:$8 sps:$4 sm:$0xff]   ;;  %v6590_v50 = vld [vmem:[#allocation6 + $0xf0] ss:$8 sps:$4 sm:$0xff]   ;;  %v6591_v51 = vld [vmem:[#allocation9] ss:$8 sps:$4 sm:$0xff]  }
  0xff   :  { %v6593_v52 = vld [vmem:[#allocation9 + $0x4] ss:$8 sps:$4 sm:$0xff]   ;;  %v6596_v53 = vld [vmem:[#allocation9 + $0x14] ss:$8 sps:$4 sm:$0xff]   ;;  %v6594_v54 = vld [vmem:[#allocation9 + $0x10] ss:$8 sps:$4 sm:$0xff]  }
 0x100   :  { %339 = vmatpush1.bf16.msra.mxu0 %v6533_v13  ;;  %590 = vmatpush1.bf16.msra.mxu1 %v6554_v22  ;;  %v6599_v55 = vld [vmem:[#allocation9 + $0x24] ss:$8 sps:$4 sm:$0xff]   ;;  %v6597_v56 = vld [vmem:[#allocation9 + $0x20] ss:$8 sps:$4 sm:$0xff]   ;;  %v6602_v57 = vld [vmem:[#allocation9 + $0x34] ss:$8 sps:$4 sm:$0xff]  }
 0x101   :  { %340 = vmatprep.subr.bf16.mxu0 %v6534_v16  ;;  %591 = vmatprep.subr.bf16.mxu1 %v6555_v23  ;;  %v6600_v58 = vld [vmem:[#allocation9 + $0x30] ss:$8 sps:$4 sm:$0xff]   ;;  %v6605_v59 = vld [vmem:[#allocation9 + $0x44] ss:$8 sps:$4 sm:$0xff]   ;;  %v6603_v60 = vld [vmem:[#allocation9 + $0x40] ss:$8 sps:$4 sm:$0xff]  }
 0x102   :  { %v6608_v61 = vld [vmem:[#allocation9 + $0x54] ss:$8 sps:$4 sm:$0xff]   ;;  %v6606_v62 = vld [vmem:[#allocation9 + $0x50] ss:$8 sps:$4 sm:$0xff]   ;;  %v6611_v63 = vld [vmem:[#allocation9 + $0x64] ss:$8 sps:$4 sm:$0xff]  }
 0x103   :  { %v6609_v0 = vld [vmem:[#allocation9 + $0x60] ss:$8 sps:$4 sm:$0xff]   ;;  %v6614_v1 = vld [vmem:[#allocation9 + $0x74] ss:$8 sps:$4 sm:$0xff]   ;;  %v6612_v2 = vld [vmem:[#allocation9 + $0x70] ss:$8 sps:$4 sm:$0xff]  }
 0x104   :  { %341 = vmatpush1.bf16.msra.mxu0 %v6536_v17  ;;  %592 = vmatpush1.bf16.msra.mxu1 %v6557_v27  ;;  %v6617_v3 = vld [vmem:[#allocation9 + $0x84] ss:$8 sps:$4 sm:$0xff]   ;;  %v6615_v4 = vld [vmem:[#allocation9 + $0x80] ss:$8 sps:$4 sm:$0xff]   ;;  %v6620_v5 = vld [vmem:[#allocation9 + $0x94] ss:$8 sps:$4 sm:$0xff]  }
 0x105   :  { %342 = vmatprep.subr.bf16.mxu0 %v6537_v20  ;;  %593 = vmatprep.subr.bf16.mxu1 %v6558_v28  ;;  %v6618_v6 = vld [vmem:[#allocation9 + $0x90] ss:$8 sps:$4 sm:$0xff]   ;;  %v6623_v7 = vld [vmem:[#allocation9 + $0xa4] ss:$8 sps:$4 sm:$0xff]   ;;  %v6621_v8 = vld [vmem:[#allocation9 + $0xa0] ss:$8 sps:$4 sm:$0xff]  }
 0x106   :  { %v6626_v9 = vld [vmem:[#allocation9 + $0xb4] ss:$8 sps:$4 sm:$0xff]   ;;  %v6624_v10 = vld [vmem:[#allocation9 + $0xb0] ss:$8 sps:$4 sm:$0xff]   ;;  %v6629_v11 = vld [vmem:[#allocation9 + $0xc4] ss:$8 sps:$4 sm:$0xff]  }
 0x107   :  { %v6627_v12 = vld [vmem:[#allocation9 + $0xc0] ss:$8 sps:$4 sm:$0xff]   ;;  %v6632_v13 = vld [vmem:[#allocation9 + $0xd4] ss:$8 sps:$4 sm:$0xff]   ;;  %v6630_v14 = vld [vmem:[#allocation9 + $0xd0] ss:$8 sps:$4 sm:$0xff]  }
 0x108   :  { %343 = vmatpush1.bf16.msra.mxu0 %v6539_v21  ;;  %594 = vmatpush1.bf16.msra.mxu1 %v6560_v29  ;;  %v7801_v16 = vshrl.u32 %v240_v15, 7  ;;  %s8032_s13 = sld [smem:[#allocation30_spill]]  ;;  %s8033_s24 = sld [smem:[#allocation32_spill]] }
 0x109   :  { %344 = vmatprep.subr.bf16.mxu0 %v6540_v24  ;;  %595 = vmatprep.subr.bf16.mxu1 %v6561_v30  ;;  %s8034_s20 = sld [smem:[#allocation33_spill]] }
 0x10a   :  { %v7804_v17 = vsub.s32 0, %v7801_v16  ;;  %v7810_v19 = vsub.s32 1, %v7801_v16 }
 0x10c   :  { %345 = vmatpush1.bf16.msra.mxu0 %v6542_v25  ;;  %596 = vmatpush1.bf16.msra.mxu1 %v6563_v32 }
 0x10d   :  { %597 = vmatprep.subr.bf16.mxu1 %v6564_v33  ;;  %836 = vmatprep.subr.bf16.mxu0 %v6593_v52  ;;  %v6662_v52 = vld [vmem:[#allocation12 + $0x74] ss:$8 sps:$4 sm:$0xff]  }
 0x10e   :  { %v238_v18 = vld [vmem:[%s8032_s13] sm:$0x3] }
 0x10f   :  { %363 = vmatmul.mubr.bf16.vlgmr.msra.gmra.mrb[0].mxu0 %v221_v31  ;;  %v243_v20 = vrot.slane %v238_v18, %v7804_v17  ;;  %v247_v21 = vrot.slane %v238_v18, %v7810_v19 }
 0x110   :  { %598 = vmatpush1.bf16.msra.mxu1 %v6566_v34  ;;  %837 = vmatpush1.bf16.msra.mxu0 %v6591_v51  ;;  %v6635_v34 = vld [vmem:[#allocation9 + $0xe4] ss:$8 sps:$4 sm:$0xff]  }
 0x111   :  { %599 = vmatprep.subr.bf16.mxu1 %v6567_v35  ;;  %838 = vmatprep.subr.bf16.mxu0 %v6596_v53  ;;  %v6633_v35 = vld [vmem:[#allocation9 + $0xe0] ss:$8 sps:$4 sm:$0xff]   ;;  %v6660_v53 = vld [vmem:[#allocation12 + $0x70] ss:$8 sps:$4 sm:$0xff]  }
 0x112   :  { %v6657_v51 = vld [vmem:[#allocation12 + $0x60] ss:$8 sps:$4 sm:$0xff]  }
 0x114   :  { %600 = vmatpush1.bf16.msra.mxu1 %v6569_v36  ;;  %839 = vmatpush1.bf16.msra.mxu0 %v6594_v54  ;;  %v6638_v36 = vld [vmem:[#allocation9 + $0xf4] ss:$8 sps:$4 sm:$0xff]   ;;  %v6665_v54 = vld [vmem:[#allocation12 + $0x84] ss:$8 sps:$4 sm:$0xff]  }
 0x115   :  { %601 = vmatprep.subr.bf16.mxu1 %v6570_v37  ;;  %840 = vmatprep.subr.bf16.mxu0 %v6599_v55  ;;  %v6636_v37 = vld [vmem:[#allocation9 + $0xf0] ss:$8 sps:$4 sm:$0xff]   ;;  %v6663_v55 = vld [vmem:[#allocation12 + $0x80] ss:$8 sps:$4 sm:$0xff]  }
 0x118   :  { %602 = vmatpush1.bf16.msra.mxu1 %v6572_v38  ;;  %841 = vmatpush1.bf16.msra.mxu0 %v6597_v56  ;;  %v6639_v38 = vld [vmem:[#allocation12] ss:$8 sps:$4 sm:$0xff]   ;;  %v6668_v56 = vld [vmem:[#allocation12 + $0x94] ss:$8 sps:$4 sm:$0xff]  }
 0x119   :  { %603 = vmatprep.subr.bf16.mxu1 %v6573_v39  ;;  %842 = vmatprep.subr.bf16.mxu0 %v6602_v57  ;;  %v6641_v39 = vld [vmem:[#allocation12 + $0x4] ss:$8 sps:$4 sm:$0xff]   ;;  %v6666_v57 = vld [vmem:[#allocation12 + $0x90] ss:$8 sps:$4 sm:$0xff]  }
 0x11c   :  { %604 = vmatpush1.bf16.msra.mxu1 %v6575_v40  ;;  %843 = vmatpush1.bf16.msra.mxu0 %v6600_v58  ;;  %v6644_v40 = vld [vmem:[#allocation12 + $0x14] ss:$8 sps:$4 sm:$0xff]   ;;  %v6671_v58 = vld [vmem:[#allocation12 + $0xa4] ss:$8 sps:$4 sm:$0xff]  }
 0x11d   :  { %605 = vmatprep.subr.bf16.mxu1 %v6576_v41  ;;  %844 = vmatprep.subr.bf16.mxu0 %v6605_v59  ;;  %v6642_v41 = vld [vmem:[#allocation12 + $0x10] ss:$8 sps:$4 sm:$0xff]   ;;  %v6669_v59 = vld [vmem:[#allocation12 + $0xa0] ss:$8 sps:$4 sm:$0xff]  }
 0x120   :  { %606 = vmatpush1.bf16.msra.mxu1 %v6578_v42  ;;  %845 = vmatpush1.bf16.msra.mxu0 %v6603_v60  ;;  %v6647_v42 = vld [vmem:[#allocation12 + $0x24] ss:$8 sps:$4 sm:$0xff]   ;;  %v6674_v60 = vld [vmem:[#allocation12 + $0xb4] ss:$8 sps:$4 sm:$0xff]  }
 0x121   :  { %607 = vmatprep.subr.bf16.mxu1 %v6579_v43  ;;  %846 = vmatprep.subr.bf16.mxu0 %v6608_v61  ;;  %v6645_v43 = vld [vmem:[#allocation12 + $0x20] ss:$8 sps:$4 sm:$0xff]   ;;  %v6672_v61 = vld [vmem:[#allocation12 + $0xb0] ss:$8 sps:$4 sm:$0xff]  }
 0x124   :  { %608 = vmatpush1.bf16.msra.mxu1 %v6581_v44  ;;  %847 = vmatpush1.bf16.msra.mxu0 %v6606_v62  ;;  %v6650_v44 = vld [vmem:[#allocation12 + $0x34] ss:$8 sps:$4 sm:$0xff]   ;;  %v6677_v62 = vld [vmem:[#allocation12 + $0xc4] ss:$8 sps:$4 sm:$0xff]  }
 0x125   :  { %609 = vmatprep.subr.bf16.mxu1 %v6582_v45  ;;  %848 = vmatprep.subr.bf16.mxu0 %v6611_v63  ;;  %v6648_v45 = vld [vmem:[#allocation12 + $0x30] ss:$8 sps:$4 sm:$0xff]   ;;  %v6675_v63 = vld [vmem:[#allocation12 + $0xc0] ss:$8 sps:$4 sm:$0xff]  }
 0x128   :  { %610 = vmatpush1.bf16.msra.mxu1 %v6584_v46  ;;  %849 = vmatpush1.bf16.msra.mxu0 %v6609_v0  ;;  %v6653_v46 = vld [vmem:[#allocation12 + $0x44] ss:$8 sps:$4 sm:$0xff]   ;;  %v6680_v0 = vld [vmem:[#allocation12 + $0xd4] ss:$8 sps:$4 sm:$0xff]  }
 0x129   :  { %611 = vmatprep.subr.bf16.mxu1 %v6585_v47  ;;  %850 = vmatprep.subr.bf16.mxu0 %v6614_v1  ;;  %v6651_v47 = vld [vmem:[#allocation12 + $0x40] ss:$8 sps:$4 sm:$0xff]   ;;  %v6678_v1 = vld [vmem:[#allocation12 + $0xd0] ss:$8 sps:$4 sm:$0xff]  }
 0x12c   :  { %612 = vmatpush1.bf16.msra.mxu1 %v6587_v48  ;;  %851 = vmatpush1.bf16.msra.mxu0 %v6612_v2  ;;  %v6656_v48 = vld [vmem:[#allocation12 + $0x54] ss:$8 sps:$4 sm:$0xff]  }
 0x12d   :  { %613 = vmatprep.subr.bf16.mxu1 %v6588_v49  ;;  %852 = vmatprep.subr.bf16.mxu0 %v6617_v3  ;;  %v6654_v49 = vld [vmem:[#allocation12 + $0x50] ss:$8 sps:$4 sm:$0xff]   ;;  %v411_v2 = vld [vmem:[#allocation7] sm:$0x3] }
 0x12e   :  { %v416_v3 = vrot.slane %v411_v2, %v7804_v17 }
 0x130   :  { %614 = vmatpush1.bf16.msra.mxu1 %v6590_v50  ;;  %853 = vmatpush1.bf16.msra.mxu0 %v6615_v4  ;;  %v6659_v50 = vld [vmem:[#allocation12 + $0x64] ss:$8 sps:$4 sm:$0xff]   ;;  %v420_v4 = vrot.slane %v411_v2, %v7810_v19 }
 0x131   :  { %854 = vmatprep.subr.bf16.mxu0 %v6620_v5  ;;  %1085 = vmatprep.subr.bf16.mxu1 %v6641_v39  ;;  %v6705_v39 = vld [vmem:[#allocation13 + $0x60] ss:$8 sps:$4 sm:$0xff]  }
 0x134   :  { %855 = vmatpush1.bf16.msra.mxu0 %v6618_v6 }
 0x135   :  { %856 = vmatprep.subr.bf16.mxu0 %v6623_v7 }
 0x138   :  { %857 = vmatpush1.bf16.msra.mxu0 %v6621_v8 }
 0x139   :  { %858 = vmatprep.subr.bf16.mxu0 %v6626_v9 }
 0x13c   :  { %859 = vmatpush1.bf16.msra.mxu0 %v6624_v10 }
 0x13d   :  { %860 = vmatprep.subr.bf16.mxu0 %v6629_v11 }
 0x140   :  { %861 = vmatpush1.bf16.msra.mxu0 %v6627_v12 }
 0x141   :  { %862 = vmatprep.subr.bf16.mxu0 %v6632_v13 }
 0x144   :  { %863 = vmatpush1.bf16.msra.mxu0 %v6630_v14 }
 0x145   :  { %864 = vmatprep.subr.bf16.mxu0 %v6635_v34  ;;  %v6701_v34 = vld [vmem:[#allocation13 + $0x44] ss:$8 sps:$4 sm:$0xff]  }
 0x148   :  { %865 = vmatpush1.bf16.msra.mxu0 %v6633_v35  ;;  %v6699_v35 = vld [vmem:[#allocation13 + $0x40] ss:$8 sps:$4 sm:$0xff]  }
 0x149   :  { %866 = vmatprep.subr.bf16.mxu0 %v6638_v36  ;;  %v6704_v36 = vld [vmem:[#allocation13 + $0x54] ss:$8 sps:$4 sm:$0xff]  }
 0x14c   :  { %867 = vmatpush1.bf16.msra.mxu0 %v6636_v37  ;;  %v6702_v37 = vld [vmem:[#allocation13 + $0x50] ss:$8 sps:$4 sm:$0xff]  }
 0x1e2   :  { %v364_v22 = vpop.f32.mrb[0].mxu0 }
 0x1e3   :  { %v365_v23 = vadd.f32 %v364_v22, %v243_v20  ;;  %v366_v24 = vpop.f32.mrb[1].mxu0  ;;  %v6683_v20 = vld [vmem:[#allocation12 + $0xe4] ss:$8 sps:$4 sm:$0xff]   ;;  %v6686_v22 = vld [vmem:[#allocation12 + $0xf4] ss:$8 sps:$4 sm:$0xff]  }
 0x1e4   :  { %v367_v25 = vadd.f32 %v366_v24, %v247_v21  ;;  %v368_v26 = vpop.f32.mrb[2].mxu0  ;;  %v6681_v21 = vld [vmem:[#allocation12 + $0xe0] ss:$8 sps:$4 sm:$0xff]  }
 0x1e5   :  { %vm371_vm0 = vcmp.ge.f32.partialorder %v365_v23, 0.0  ;;  %v373_v27 = vmul.f32 0.01, %v365_v23  ;;  %v369_v28 = vpop.f32.mrb[3].mxu0  ;;  %v6687_v24 = vld [vmem:[#allocation13] ss:$8 sps:$4 sm:$0xff]  }
 0x1e6   :  { %v374_v29 = vmul.f32 0.01, %v367_v25  ;;  %vm372_vm1 = vcmp.ge.f32.partialorder %v367_v25, 0.0  ;;  %v6692_v26 = vld [vmem:[#allocation13 + $0x14] ss:$8 sps:$4 sm:$0xff]  }
 0x1e7   :  { %v7814_v30 = vsel %vm371_vm0, %v365_v23, %v373_v27  ;;  %v6684_v23 = vld [vmem:[#allocation12 + $0xf0] ss:$8 sps:$4 sm:$0xff]   ;;  %v6695_v28 = vld [vmem:[#allocation13 + $0x24] ss:$8 sps:$4 sm:$0xff]  }
 0x1e8   :  { %v7816_v31 = vsel %vm372_vm1, %v367_v25, %v374_v29  ;;  %v377_v33 = vpack.c.bf16 %v7814_v30, %v7814_v30  ;;  %v6689_v25 = vld [vmem:[#allocation13 + $0x4] ss:$8 sps:$4 sm:$0xff]   ;;  %v6690_v27 = vld [vmem:[#allocation13 + $0x10] ss:$8 sps:$4 sm:$0xff]   ;;  %v6693_v29 = vld [vmem:[#allocation13 + $0x20] ss:$8 sps:$4 sm:$0xff]  }
 0x1e9   :  { %v378_v32 = vpack.c.bf16 %v7816_v31, %v7816_v31  ;;  %1338 = vmatprep.subr.bf16.mxu0 %v6689_v25  ;;  %v6785_v25 = vld [vmem:[#allocation15 + $0x104] ss:$16 sps:$4 sm:$0xff]  }
 0x1eb   :  { %615 = vmatprep.mubr.bf16.mxu1 %v378_v32  ;;  %v6698_v32 = vld [vmem:[#allocation13 + $0x34] ss:$8 sps:$4 sm:$0xff]  }
 0x1ec   :  { %616 = vmatmul.mubr.bf16.vlgmr.msra.gmra.mrb[0].mxu1 %v377_v33  ;;  %v6696_v33 = vld [vmem:[#allocation13 + $0x30] ss:$8 sps:$4 sm:$0xff]  }
 0x1ed   :  { %1086 = vmatpush1.bf16.msra.mxu1 %v6639_v38  ;;  %v6707_v38 = vld [vmem:[#allocation13 + $0x64] ss:$8 sps:$4 sm:$0xff]  }
 0x1ee   :  { %1087 = vmatprep.subr.bf16.mxu1 %v6644_v40  ;;  %v6710_v40 = vld [vmem:[#allocation13 + $0x74] ss:$8 sps:$4 sm:$0xff]  }
 0x1f1   :  { %1088 = vmatpush1.bf16.msra.mxu1 %v6642_v41  ;;  %v6708_v41 = vld [vmem:[#allocation13 + $0x70] ss:$8 sps:$4 sm:$0xff]  }
 0x1f2   :  { %1089 = vmatprep.subr.bf16.mxu1 %v6647_v42  ;;  %v6713_v42 = vld [vmem:[#allocation13 + $0x84] ss:$8 sps:$4 sm:$0xff]  }
 0x1f5   :  { %1090 = vmatpush1.bf16.msra.mxu1 %v6645_v43  ;;  %v6711_v43 = vld [vmem:[#allocation13 + $0x80] ss:$8 sps:$4 sm:$0xff]  }
 0x1f6   :  { %1091 = vmatprep.subr.bf16.mxu1 %v6650_v44  ;;  %v6716_v44 = vld [vmem:[#allocation13 + $0x94] ss:$8 sps:$4 sm:$0xff]  }
 0x1f9   :  { %1092 = vmatpush1.bf16.msra.mxu1 %v6648_v45  ;;  %v6714_v45 = vld [vmem:[#allocation13 + $0x90] ss:$8 sps:$4 sm:$0xff]  }
 0x1fa   :  { %1093 = vmatprep.subr.bf16.mxu1 %v6653_v46  ;;  %v6719_v46 = vld [vmem:[#allocation13 + $0xa4] ss:$8 sps:$4 sm:$0xff]  }
 0x1fd   :  { %1094 = vmatpush1.bf16.msra.mxu1 %v6651_v47  ;;  %v6717_v47 = vld [vmem:[#allocation13 + $0xa0] ss:$8 sps:$4 sm:$0xff]  }
 0x1fe   :  { %1095 = vmatprep.subr.bf16.mxu1 %v6656_v48  ;;  %v6722_v48 = vld [vmem:[#allocation13 + $0xb4] ss:$8 sps:$4 sm:$0xff]  }
 0x201   :  { %1096 = vmatpush1.bf16.msra.mxu1 %v6654_v49  ;;  %v6720_v49 = vld [vmem:[#allocation13 + $0xb0] ss:$8 sps:$4 sm:$0xff]  }
 0x202   :  { %1097 = vmatprep.subr.bf16.mxu1 %v6659_v50  ;;  %v6725_v50 = vld [vmem:[#allocation13 + $0xc4] ss:$8 sps:$4 sm:$0xff]  }
 0x205   :  { %1098 = vmatpush1.bf16.msra.mxu1 %v6657_v51  ;;  %v6723_v51 = vld [vmem:[#allocation13 + $0xc0] ss:$8 sps:$4 sm:$0xff]  }
 0x206   :  { %1099 = vmatprep.subr.bf16.mxu1 %v6662_v52  ;;  %v6728_v52 = vld [vmem:[#allocation13 + $0xd4] ss:$8 sps:$4 sm:$0xff]  }
 0x209   :  { %1100 = vmatpush1.bf16.msra.mxu1 %v6660_v53  ;;  %v6726_v53 = vld [vmem:[#allocation13 + $0xd0] ss:$8 sps:$4 sm:$0xff]  }
 0x20a   :  { %1101 = vmatprep.subr.bf16.mxu1 %v6665_v54  ;;  %v664_v54 = vld [vmem:[#allocation10] sm:$0x3] }
 0x20d   :  { %1102 = vmatpush1.bf16.msra.mxu1 %v6663_v55  ;;  %v669_v55 = vrot.slane %v664_v54, %v7804_v17 }
 0x20e   :  { %1103 = vmatprep.subr.bf16.mxu1 %v6668_v56  ;;  %v673_v56 = vrot.slane %v664_v54, %v7810_v19 }
 0x211   :  { %1104 = vmatpush1.bf16.msra.mxu1 %v6666_v57 }
 0x212   :  { %1105 = vmatprep.subr.bf16.mxu1 %v6671_v58 }
 0x215   :  { %1106 = vmatpush1.bf16.msra.mxu1 %v6669_v59 }
 0x216   :  { %1107 = vmatprep.subr.bf16.mxu1 %v6674_v60 }
 0x219   :  { %1108 = vmatpush1.bf16.msra.mxu1 %v6672_v61 }
 0x21a   :  { %1109 = vmatprep.subr.bf16.mxu1 %v6677_v62 }
 0x21d   :  { %1110 = vmatpush1.bf16.msra.mxu1 %v6675_v63 }
 0x21e   :  { %1111 = vmatprep.subr.bf16.mxu1 %v6680_v0 }
 0x221   :  { %1112 = vmatpush1.bf16.msra.mxu1 %v6678_v1 }
 0x222   :  { %1113 = vmatprep.subr.bf16.mxu1 %v6683_v20  ;;  %v6765_v20 = vld [vmem:[#allocation15 + $0xa0] ss:$16 sps:$4 sm:$0xff]  }
 0x225   :  { %1114 = vmatpush1.bf16.msra.mxu1 %v6681_v21  ;;  %v6773_v21 = vld [vmem:[#allocation15 + $0xc4] ss:$16 sps:$4 sm:$0xff]  }
 0x226   :  { %1115 = vmatprep.subr.bf16.mxu1 %v6686_v22  ;;  %v6771_v22 = vld [vmem:[#allocation15 + $0xc0] ss:$16 sps:$4 sm:$0xff]  }
 0x229   :  { %1116 = vmatpush1.bf16.msra.mxu1 %v6684_v23  ;;  %v6779_v23 = vld [vmem:[#allocation15 + $0xe4] ss:$16 sps:$4 sm:$0xff]  }
 0x2bf   :  { %v617_v5 = vpop.f32.mrb[0].mxu1 }
 0x2c0   :  { %v618_v6 = vadd.f32 %v617_v5, %v416_v3  ;;  %v619_v7 = vpop.f32.mrb[1].mxu1  ;;  %v6731_v3 = vld [vmem:[#allocation13 + $0xe4] ss:$8 sps:$4 sm:$0xff]   ;;  %v6734_v5 = vld [vmem:[#allocation13 + $0xf4] ss:$8 sps:$4 sm:$0xff]  }
 0x2c1   :  { %v620_v8 = vadd.f32 %v619_v7, %v420_v4  ;;  %v621_v9 = vpop.f32.mrb[2].mxu1  ;;  %v6729_v4 = vld [vmem:[#allocation13 + $0xe0] ss:$8 sps:$4 sm:$0xff]   ;;  %v6737_v7 = vld [vmem:[#allocation15 + $0x4] ss:$16 sps:$4 sm:$0xff]  }
 0x2c2   :  { %vm624_vm2 = vcmp.ge.f32.partialorder %v618_v6, 0.0  ;;  %v626_v10 = vmul.f32 0.01, %v618_v6  ;;  %v622_v11 = vpop.f32.mrb[3].mxu1  ;;  %1789 = vmatprep.subr.bf16.mxu1 %v6737_v7  ;;  %v6741_v9 = vld [vmem:[#allocation15 + $0x20] ss:$16 sps:$4 sm:$0xff]  }
 0x2c3   :  { %vm625_vm3 = vcmp.ge.f32.partialorder %v620_v8, 0.0  ;;  %v627_v12 = vmul.f32 0.01, %v620_v8  ;;  %v6747_v11 = vld [vmem:[#allocation15 + $0x40] ss:$16 sps:$4 sm:$0xff]  }
 0x2c4   :  { %v628_v13 = vsel %vm624_vm2, %v618_v6, %v626_v10  ;;  %v6732_v6 = vld [vmem:[#allocation13 + $0xf0] ss:$8 sps:$4 sm:$0xff]   ;;  %v6749_v10 = vld [vmem:[#allocation15 + $0x44] ss:$16 sps:$4 sm:$0xff]  }
 0x2c5   :  { %v629_v14 = vsel %vm625_vm3, %v620_v8, %v627_v12  ;;  %v630_v18 = vpack.c.bf16 %v628_v13, %v628_v13  ;;  %v6743_v8 = vld [vmem:[#allocation15 + $0x24] ss:$16 sps:$4 sm:$0xff]   ;;  %v6753_v13 = vld [vmem:[#allocation15 + $0x60] ss:$16 sps:$4 sm:$0xff]   ;;  %v6786_v7 = vld [vmem:[#allocation15 + $0x108] ss:$16 sps:$4 sm:$0xff]  }
 0x2c6   :  { %v631_v15 = vpack.c.bf16 %v629_v14, %v629_v14  ;;  %v6755_v12 = vld [vmem:[#allocation15 + $0x64] ss:$16 sps:$4 sm:$0xff]  }
 0x2c7   :  { %v6761_v14 = vld [vmem:[#allocation15 + $0x84] ss:$16 sps:$4 sm:$0xff]  }
 0x2c8   :  { %868 = vmatprep.mubr.bf16.mxu0 %v631_v15  ;;  %v6759_v15 = vld [vmem:[#allocation15 + $0x80] ss:$16 sps:$4 sm:$0xff]  }
 0x2c9   :  { %869 = vmatmul.mubr.bf16.vlgmr.msra.gmra.mrb[4].mxu0 %v630_v18  ;;  %v6767_v18 = vld [vmem:[#allocation15 + $0xa4] ss:$16 sps:$4 sm:$0xff]  }
 0x2ca   :  { %1339 = vmatpush1.bf16.msra.mxu0 %v6687_v24  ;;  %v6777_v24 = vld [vmem:[#allocation15 + $0xe0] ss:$16 sps:$4 sm:$0xff]  }
 0x2cb   :  { %1340 = vmatprep.subr.bf16.mxu0 %v6692_v26  ;;  %v6783_v26 = vld [vmem:[#allocation15 + $0x100] ss:$16 sps:$4 sm:$0xff]  }
 0x2ce   :  { %1341 = vmatpush1.bf16.msra.mxu0 %v6690_v27  ;;  %v6791_v27 = vld [vmem:[#allocation15 + $0x124] ss:$16 sps:$4 sm:$0xff]  }
 0x2cf   :  { %1342 = vmatprep.subr.bf16.mxu0 %v6695_v28  ;;  %v6789_v28 = vld [vmem:[#allocation15 + $0x120] ss:$16 sps:$4 sm:$0xff]  }
 0x2d2   :  { %1343 = vmatpush1.bf16.msra.mxu0 %v6693_v29  ;;  %v6797_v29 = vld [vmem:[#allocation15 + $0x144] ss:$16 sps:$4 sm:$0xff]  }
 0x2d3   :  { %1344 = vmatprep.subr.bf16.mxu0 %v6698_v32  ;;  %v6795_v32 = vld [vmem:[#allocation15 + $0x140] ss:$16 sps:$4 sm:$0xff]  }
 0x2d6   :  { %1345 = vmatpush1.bf16.msra.mxu0 %v6696_v33  ;;  %v6803_v33 = vld [vmem:[#allocation15 + $0x164] ss:$16 sps:$4 sm:$0xff]  }
 0x2d7   :  { %1346 = vmatprep.subr.bf16.mxu0 %v6701_v34  ;;  %v6801_v34 = vld [vmem:[#allocation15 + $0x160] ss:$16 sps:$4 sm:$0xff]  }
 0x2da   :  { %1347 = vmatpush1.bf16.msra.mxu0 %v6699_v35  ;;  %v6809_v35 = vld [vmem:[#allocation15 + $0x184] ss:$16 sps:$4 sm:$0xff]  }
 0x2db   :  { %1348 = vmatprep.subr.bf16.mxu0 %v6704_v36  ;;  %v6807_v36 = vld [vmem:[#allocation15 + $0x180] ss:$16 sps:$4 sm:$0xff]  }
 0x2de   :  { %1349 = vmatpush1.bf16.msra.mxu0 %v6702_v37  ;;  %v6815_v37 = vld [vmem:[#allocation15 + $0x1a4] ss:$16 sps:$4 sm:$0xff]  }
 0x2df   :  { %1350 = vmatprep.subr.bf16.mxu0 %v6707_v38  ;;  %v6813_v38 = vld [vmem:[#allocation15 + $0x1a0] ss:$16 sps:$4 sm:$0xff]  }
 0x2e2   :  { %1351 = vmatpush1.bf16.msra.mxu0 %v6705_v39  ;;  %v913_v39 = vld [vmem:[%s8007_s8] sm:$0x3] }
 0x2e3   :  { %1352 = vmatprep.subr.bf16.mxu0 %v6710_v40  ;;  %v918_v40 = vrot.slane %v913_v39, %v7804_v17 }
 0x2e6   :  { %1353 = vmatpush1.bf16.msra.mxu0 %v6708_v41  ;;  %v922_v41 = vrot.slane %v913_v39, %v7810_v19 }
 0x2e7   :  { %1354 = vmatprep.subr.bf16.mxu0 %v6713_v42 }
 0x2ea   :  { %1355 = vmatpush1.bf16.msra.mxu0 %v6711_v43 }
 0x2eb   :  { %1356 = vmatprep.subr.bf16.mxu0 %v6716_v44 }
 0x2ee   :  { %1357 = vmatpush1.bf16.msra.mxu0 %v6714_v45 }
 0x2ef   :  { %1358 = vmatprep.subr.bf16.mxu0 %v6719_v46 }
 0x2f2   :  { %1359 = vmatpush1.bf16.msra.mxu0 %v6717_v47 }
 0x2f3   :  { %1360 = vmatprep.subr.bf16.mxu0 %v6722_v48 }
 0x2f6   :  { %1361 = vmatpush1.bf16.msra.mxu0 %v6720_v49 }
 0x2f7   :  { %1362 = vmatprep.subr.bf16.mxu0 %v6725_v50 }
 0x2fa   :  { %1363 = vmatpush1.bf16.msra.mxu0 %v6723_v51 }
 0x2fb   :  { %1364 = vmatprep.subr.bf16.mxu0 %v6728_v52 }
 0x2fe   :  { %1365 = vmatpush1.bf16.msra.mxu0 %v6726_v53  ;;  %v6738_v53 = vld [vmem:[#allocation15 + $0x8] ss:$16 sps:$4 sm:$0xff]  }
 0x2ff   :  { %1366 = vmatprep.subr.bf16.mxu0 %v6731_v3  ;;  %v6776_v3 = vld [vmem:[#allocation15 + $0xcc] ss:$16 sps:$4 sm:$0xff]  }
 0x302   :  { %1367 = vmatpush1.bf16.msra.mxu0 %v6729_v4  ;;  %v6774_v4 = vld [vmem:[#allocation15 + $0xc8] ss:$16 sps:$4 sm:$0xff]  }
 0x303   :  { %1368 = vmatprep.subr.bf16.mxu0 %v6734_v5  ;;  %v6782_v5 = vld [vmem:[#allocation15 + $0xec] ss:$16 sps:$4 sm:$0xff]  }
 0x306   :  { %1369 = vmatpush1.bf16.msra.mxu0 %v6732_v6  ;;  %v6780_v6 = vld [vmem:[#allocation15 + $0xe8] ss:$16 sps:$4 sm:$0xff]  }
 0x39c   :  { %v870_v57 = vpop.f32.mrb[4].mxu0 }
 0x39d   :  { %v871_v58 = vadd.f32 %v870_v57, %v669_v55  ;;  %v872_v59 = vpop.f32.mrb[5].mxu0  ;;  %v6746_v55 = vld [vmem:[#allocation15 + $0x2c] ss:$16 sps:$4 sm:$0xff]  }
 0x39e   :  { %v873_v60 = vadd.f32 %v872_v59, %v673_v56  ;;  %v874_v61 = vpop.f32.mrb[6].mxu0  ;;  %v6744_v56 = vld [vmem:[#allocation15 + $0x28] ss:$16 sps:$4 sm:$0xff]   ;;  %v6752_v57 = vld [vmem:[#allocation15 + $0x4c] ss:$16 sps:$4 sm:$0xff]  }
 0x39f   :  { %v7827_v62 = vadd.f32 %v871_v58, %v7814_v30  ;;  %v875_v63 = vpop.f32.mrb[7].mxu0  ;;  %v6735_v30 = vld [vmem:[#allocation15] ss:$16 sps:$4 sm:$0xff]   ;;  %v6750_v58 = vld [vmem:[#allocation15 + $0x48] ss:$16 sps:$4 sm:$0xff]  }
 0x3a0   :  { %v7830_v0 = vadd.f32 %v873_v60, %v7816_v31  ;;  %v6740_v31 = vld [vmem:[#allocation15 + $0xc] ss:$16 sps:$4 sm:$0xff]   ;;  %v6756_v60 = vld [vmem:[#allocation15 + $0x68] ss:$16 sps:$4 sm:$0xff]  }
 0x3a1   :  { %v879_v2 = vpack.c.bf16 %v7827_v62, %v7827_v62  ;;  %1830 = vmatprep.subr.bf16.mxu0 %v6740_v31  ;;  %v6758_v59 = vld [vmem:[#allocation15 + $0x6c] ss:$16 sps:$4 sm:$0xff]   ;;  %v6762_v63 = vld [vmem:[#allocation15 + $0x88] ss:$16 sps:$4 sm:$0xff]  }
 0x3a2   :  { %v880_v1 = vpack.c.bf16 %v7830_v0, %v7830_v0  ;;  %v6764_v61 = vld [vmem:[#allocation15 + $0x8c] ss:$16 sps:$4 sm:$0xff]  }
 0x3a3   :  { %v6794_v31 = vld [vmem:[#allocation15 + $0x12c] ss:$16 sps:$4 sm:$0xff]  }
 0x3a4   :  { %1117 = vmatprep.mubr.bf16.mxu1 %v880_v1  ;;  %v6770_v1 = vld [vmem:[#allocation15 + $0xac] ss:$16 sps:$4 sm:$0xff]  }
 0x3a5   :  { %1118 = vmatmul.mubr.bf16.vlgmr.msra.gmra.mrb[4].mxu1 %v879_v2  ;;  %v6768_v2 = vld [vmem:[#allocation15 + $0xa8] ss:$16 sps:$4 sm:$0xff]  }
 0x3a6   :  { %1790 = vmatpush1.bf16.msra.mxu1 %v6735_v30  ;;  %v6788_v30 = vld [vmem:[#allocation15 + $0x10c] ss:$16 sps:$4 sm:$0xff]  }
 0x3a7   :  { %1791 = vmatprep.subr.bf16.mxu1 %v6743_v8  ;;  %v6792_v8 = vld [vmem:[#allocation15 + $0x128] ss:$16 sps:$4 sm:$0xff]  }
 0x3aa   :  { %1792 = vmatpush1.bf16.msra.mxu1 %v6741_v9  ;;  %v6800_v9 = vld [vmem:[#allocation15 + $0x14c] ss:$16 sps:$4 sm:$0xff]  }
 0x3ab   :  { %1793 = vmatprep.subr.bf16.mxu1 %v6749_v10  ;;  %v6798_v10 = vld [vmem:[#allocation15 + $0x148] ss:$16 sps:$4 sm:$0xff]  }
 0x3ae   :  { %1794 = vmatpush1.bf16.msra.mxu1 %v6747_v11  ;;  %v6806_v11 = vld [vmem:[#allocation15 + $0x16c] ss:$16 sps:$4 sm:$0xff]  }
 0x3af   :  { %1795 = vmatprep.subr.bf16.mxu1 %v6755_v12  ;;  %v6804_v12 = vld [vmem:[#allocation15 + $0x168] ss:$16 sps:$4 sm:$0xff]  }
 0x3b2   :  { %1796 = vmatpush1.bf16.msra.mxu1 %v6753_v13  ;;  %v6812_v13 = vld [vmem:[#allocation15 + $0x18c] ss:$16 sps:$4 sm:$0xff]  }
 0x3b3   :  { %1797 = vmatprep.subr.bf16.mxu1 %v6761_v14  ;;  %v6810_v14 = vld [vmem:[#allocation15 + $0x188] ss:$16 sps:$4 sm:$0xff]  }
 0x3b6   :  { %1798 = vmatpush1.bf16.msra.mxu1 %v6759_v15  ;;  %v6818_v15 = vld [vmem:[#allocation15 + $0x1ac] ss:$16 sps:$4 sm:$0xff]  }
 0x3b7   :  { %1799 = vmatprep.subr.bf16.mxu1 %v6767_v18  ;;  %v6816_v18 = vld [vmem:[#allocation15 + $0x1a8] ss:$16 sps:$4 sm:$0xff]  }
 0x3ba   :  { %1800 = vmatpush1.bf16.msra.mxu1 %v6765_v20  ;;  %v6821_v20 = vld [vmem:[#allocation15 + $0x1c4] ss:$16 sps:$4 sm:$0xff]  }
 0x3bb   :  { %1801 = vmatprep.subr.bf16.mxu1 %v6773_v21  ;;  %v6824_v21 = vld [vmem:[#allocation15 + $0x1cc] ss:$16 sps:$4 sm:$0xff]  }
 0x3be   :  { %1802 = vmatpush1.bf16.msra.mxu1 %v6771_v22  ;;  %v6819_v22 = vld [vmem:[#allocation15 + $0x1c0] ss:$16 sps:$4 sm:$0xff]  }
 0x3bf   :  { %1803 = vmatprep.subr.bf16.mxu1 %v6779_v23  ;;  %v6822_v23 = vld [vmem:[#allocation15 + $0x1c8] ss:$16 sps:$4 sm:$0xff]  }
 0x3c2   :  { %1804 = vmatpush1.bf16.msra.mxu1 %v6777_v24  ;;  %v6827_v24 = vld [vmem:[#allocation15 + $0x1e4] ss:$16 sps:$4 sm:$0xff]  }
 0x3c3   :  { %1805 = vmatprep.subr.bf16.mxu1 %v6785_v25  ;;  %v6830_v25 = vld [vmem:[#allocation15 + $0x1ec] ss:$16 sps:$4 sm:$0xff]  }
 0x3c6   :  { %1806 = vmatpush1.bf16.msra.mxu1 %v6783_v26  ;;  %v6825_v26 = vld [vmem:[#allocation15 + $0x1e0] ss:$16 sps:$4 sm:$0xff]  }
 0x3c7   :  { %1807 = vmatprep.subr.bf16.mxu1 %v6791_v27  ;;  %v6828_v27 = vld [vmem:[#allocation15 + $0x1e8] ss:$16 sps:$4 sm:$0xff]  }
 0x3ca   :  { %1808 = vmatpush1.bf16.msra.mxu1 %v6789_v28  ;;  %v6833_v28 = vld [vmem:[#allocation16 + $0x4] ss:$16 sps:$4 sm:$0xff]  }
 0x3cb   :  { %1809 = vmatprep.subr.bf16.mxu1 %v6797_v29  ;;  %v6836_v29 = vld [vmem:[#allocation16 + $0xc] ss:$16 sps:$4 sm:$0xff]  }
 0x3ce   :  { %1810 = vmatpush1.bf16.msra.mxu1 %v6795_v32  ;;  %v1166_v32 = vld [vmem:[%s8009_s10] sm:$0x3] }
 0x3cf   :  { %1811 = vmatprep.subr.bf16.mxu1 %v6803_v33  ;;  %v1171_v33 = vrot.slane %v1166_v32, %v7804_v17 }
 0x3d2   :  { %1812 = vmatpush1.bf16.msra.mxu1 %v6801_v34  ;;  %v1175_v34 = vrot.slane %v1166_v32, %v7810_v19  ;;  %v6903_v32 = vld [vmem:[#allocation16 + $0x180] ss:$16 sps:$4 sm:$0xff]  }
 0x3d3   :  { %1813 = vmatprep.subr.bf16.mxu1 %v6809_v35 }
 0x3d6   :  { %1814 = vmatpush1.bf16.msra.mxu1 %v6807_v36 }
 0x3d7   :  { %1815 = vmatprep.subr.bf16.mxu1 %v6815_v37 }
 0x3da   :  { %1816 = vmatpush1.bf16.msra.mxu1 %v6813_v38 }
 0x3db   :  { %1817 = vmatprep.subr.bf16.mxu1 %v6821_v20  ;;  %v6893_v20 = vld [vmem:[#allocation16 + $0x144] ss:$16 sps:$4 sm:$0xff]  }
 0x3de   :  { %1818 = vmatpush1.bf16.msra.mxu1 %v6819_v22  ;;  %v6891_v22 = vld [vmem:[#allocation16 + $0x140] ss:$16 sps:$4 sm:$0xff]  }
 0x3df   :  { %1819 = vmatprep.subr.bf16.mxu1 %v6827_v24  ;;  %v6899_v24 = vld [vmem:[#allocation16 + $0x164] ss:$16 sps:$4 sm:$0xff]  }
 0x3e2   :  { %1820 = vmatpush1.bf16.msra.mxu1 %v6825_v26  ;;  %v6897_v26 = vld [vmem:[#allocation16 + $0x160] ss:$16 sps:$4 sm:$0xff]  }
 0x3e3   :  { %2677 = vmatprep.subr.bf16.mxu1 %v6833_v28  ;;  %v6905_v28 = vld [vmem:[#allocation16 + $0x184] ss:$16 sps:$4 sm:$0xff]  }
 0x478   :  { %v1119_v42 = vpop.f32.mrb[4].mxu1 }
 0x479   :  { %v1120_v43 = vadd.f32 %v1119_v42, %v918_v40  ;;  %v1121_v44 = vpop.f32.mrb[5].mxu1 }
 0x47a   :  { %v1122_v45 = vadd.f32 %v1121_v44, %v922_v41  ;;  %v1123_v46 = vpop.f32.mrb[6].mxu1  ;;  %v6831_v44 = vld [vmem:[#allocation16] ss:$16 sps:$4 sm:$0xff]  }
 0x47b   :  { %vm1126_vm4 = vcmp.ge.f32.partialorder %v1120_v43, 0.0  ;;  %v1128_v47 = vmul.f32 0.01, %v1120_v43  ;;  %v1124_v48 = vpop.f32.mrb[7].mxu1 }
 0x47c   :  { %vm1127_vm5 = vcmp.ge.f32.partialorder %v1122_v45, 0.0  ;;  %v1129_v49 = vmul.f32 0.01, %v1122_v45  ;;  %v6842_v48 = vld [vmem:[#allocation16 + $0x2c] ss:$16 sps:$4 sm:$0xff]  }
 0x47d   :  { %v1130_v50 = vsel %vm1126_vm4, %v1120_v43, %v1128_v47  ;;  %v6839_v47 = vld [vmem:[#allocation16 + $0x24] ss:$16 sps:$4 sm:$0xff]  }
 0x47e   :  { %v1131_v51 = vsel %vm1127_vm5, %v1122_v45, %v1129_v49  ;;  %v1132_v54 = vpack.c.bf16 %v1130_v50, %v1130_v50  ;;  %v6834_v45 = vld [vmem:[#allocation16 + $0x8] ss:$16 sps:$4 sm:$0xff]   ;;  %v6837_v49 = vld [vmem:[#allocation16 + $0x20] ss:$16 sps:$4 sm:$0xff]  }
 0x47f   :  { %v1133_v52 = vpack.c.bf16 %v1131_v51, %v1131_v51  ;;  %v6840_v50 = vld [vmem:[#allocation16 + $0x28] ss:$16 sps:$4 sm:$0xff]   ;;  %v6848_v51 = vld [vmem:[#allocation16 + $0x4c] ss:$16 sps:$4 sm:$0xff]  }
 0x481   :  { %1370 = vmatprep.mubr.bf16.mxu0 %v1133_v52  ;;  %v6846_v52 = vld [vmem:[#allocation16 + $0x48] ss:$16 sps:$4 sm:$0xff]  }
 0x482   :  { %1371 = vmatmul.mubr.bf16.vlgmr.msra.gmra.mrb[8].mxu0 %v1132_v54  ;;  %v6854_v54 = vld [vmem:[#allocation16 + $0x6c] ss:$16 sps:$4 sm:$0xff]  }
 0x483   :  { %1831 = vmatpush1.bf16.msra.mxu0 %v6738_v53  ;;  %v6851_v53 = vld [vmem:[#allocation16 + $0x64] ss:$16 sps:$4 sm:$0xff]  }
 0x484   :  { %1832 = vmatprep.subr.bf16.mxu0 %v6746_v55  ;;  %v6849_v55 = vld [vmem:[#allocation16 + $0x60] ss:$16 sps:$4 sm:$0xff]  }
 0x487   :  { %1833 = vmatpush1.bf16.msra.mxu0 %v6744_v56  ;;  %v6852_v56 = vld [vmem:[#allocation16 + $0x68] ss:$16 sps:$4 sm:$0xff]  }
 0x488   :  { %1834 = vmatprep.subr.bf16.mxu0 %v6752_v57  ;;  %v6857_v57 = vld [vmem:[#allocation16 + $0x84] ss:$16 sps:$4 sm:$0xff]  }
 0x48b   :  { %1835 = vmatpush1.bf16.msra.mxu0 %v6750_v58  ;;  %v6860_v58 = vld [vmem:[#allocation16 + $0x8c] ss:$16 sps:$4 sm:$0xff]  }
 0x48c   :  { %1836 = vmatprep.subr.bf16.mxu0 %v6758_v59  ;;  %v6855_v59 = vld [vmem:[#allocation16 + $0x80] ss:$16 sps:$4 sm:$0xff]  }
 0x48f   :  { %1837 = vmatpush1.bf16.msra.mxu0 %v6756_v60  ;;  %v6858_v60 = vld [vmem:[#allocation16 + $0x88] ss:$16 sps:$4 sm:$0xff]  }
 0x490   :  { %1838 = vmatprep.subr.bf16.mxu0 %v6764_v61  ;;  %v6863_v61 = vld [vmem:[#allocation16 + $0xa4] ss:$16 sps:$4 sm:$0xff]  }
 0x493   :  { %1839 = vmatpush1.bf16.msra.mxu0 %v6762_v63  ;;  %v6866_v63 = vld [vmem:[#allocation16 + $0xac] ss:$16 sps:$4 sm:$0xff]  }
 0x494   :  { %1840 = vmatprep.subr.bf16.mxu0 %v6770_v1  ;;  %v6861_v1 = vld [vmem:[#allocation16 + $0xa0] ss:$16 sps:$4 sm:$0xff]  }
 0x497   :  { %1841 = vmatpush1.bf16.msra.mxu0 %v6768_v2  ;;  %v6864_v2 = vld [vmem:[#allocation16 + $0xa8] ss:$16 sps:$4 sm:$0xff]  }
 0x498   :  { %1842 = vmatprep.subr.bf16.mxu0 %v6776_v3  ;;  %v6869_v3 = vld [vmem:[#allocation16 + $0xc4] ss:$16 sps:$4 sm:$0xff]  }
 0x49b   :  { %1843 = vmatpush1.bf16.msra.mxu0 %v6774_v4  ;;  %v6872_v4 = vld [vmem:[#allocation16 + $0xcc] ss:$16 sps:$4 sm:$0xff]  }
 0x49c   :  { %1844 = vmatprep.subr.bf16.mxu0 %v6782_v5  ;;  %v6867_v5 = vld [vmem:[#allocation16 + $0xc0] ss:$16 sps:$4 sm:$0xff]  }
 0x49f   :  { %1845 = vmatpush1.bf16.msra.mxu0 %v6780_v6  ;;  %v6870_v6 = vld [vmem:[#allocation16 + $0xc8] ss:$16 sps:$4 sm:$0xff]  }
 0x4a0   :  { %1846 = vmatprep.subr.bf16.mxu0 %v6788_v30  ;;  %v6875_v30 = vld [vmem:[#allocation16 + $0xe4] ss:$16 sps:$4 sm:$0xff]  }
 0x4a3   :  { %1847 = vmatpush1.bf16.msra.mxu0 %v6786_v7  ;;  %v6878_v7 = vld [vmem:[#allocation16 + $0xec] ss:$16 sps:$4 sm:$0xff]  }
 0x4a4   :  { %1848 = vmatprep.subr.bf16.mxu0 %v6794_v31  ;;  %v6873_v31 = vld [vmem:[#allocation16 + $0xe0] ss:$16 sps:$4 sm:$0xff]  }
 0x4a7   :  { %1849 = vmatpush1.bf16.msra.mxu0 %v6792_v8  ;;  %v6876_v8 = vld [vmem:[#allocation16 + $0xe8] ss:$16 sps:$4 sm:$0xff]  }
 0x4a8   :  { %1850 = vmatprep.subr.bf16.mxu0 %v6800_v9  ;;  %v6881_v9 = vld [vmem:[#allocation16 + $0x104] ss:$16 sps:$4 sm:$0xff]  }
 0x4ab   :  { %1851 = vmatpush1.bf16.msra.mxu0 %v6798_v10  ;;  %v6884_v10 = vld [vmem:[#allocation16 + $0x10c] ss:$16 sps:$4 sm:$0xff]  }
 0x4ac   :  { %1852 = vmatprep.subr.bf16.mxu0 %v6806_v11  ;;  %v6879_v11 = vld [vmem:[#allocation16 + $0x100] ss:$16 sps:$4 sm:$0xff]  }
 0x4af   :  { %1853 = vmatpush1.bf16.msra.mxu0 %v6804_v12  ;;  %v6882_v12 = vld [vmem:[#allocation16 + $0x108] ss:$16 sps:$4 sm:$0xff]  }
 0x4b0   :  { %1854 = vmatprep.subr.bf16.mxu0 %v6812_v13  ;;  %v6887_v13 = vld [vmem:[#allocation16 + $0x124] ss:$16 sps:$4 sm:$0xff]  }
 0x4b3   :  { %1855 = vmatpush1.bf16.msra.mxu0 %v6810_v14  ;;  %v6890_v14 = vld [vmem:[#allocation16 + $0x12c] ss:$16 sps:$4 sm:$0xff]  }
 0x4b4   :  { %1856 = vmatprep.subr.bf16.mxu0 %v6818_v15  ;;  %v6885_v15 = vld [vmem:[#allocation16 + $0x120] ss:$16 sps:$4 sm:$0xff]  }
 0x4b7   :  { %1857 = vmatpush1.bf16.msra.mxu0 %v6816_v18  ;;  %v6888_v18 = vld [vmem:[#allocation16 + $0x128] ss:$16 sps:$4 sm:$0xff]  }
 0x4b8   :  { %1858 = vmatprep.subr.bf16.mxu0 %v6824_v21  ;;  %v6896_v21 = vld [vmem:[#allocation16 + $0x14c] ss:$16 sps:$4 sm:$0xff]  }
 0x4bb   :  { %1859 = vmatpush1.bf16.msra.mxu0 %v6822_v23  ;;  %v6894_v23 = vld [vmem:[#allocation16 + $0x148] ss:$16 sps:$4 sm:$0xff]  }
 0x4bc   :  { %1860 = vmatprep.subr.bf16.mxu0 %v6830_v25  ;;  %v6902_v25 = vld [vmem:[#allocation16 + $0x16c] ss:$16 sps:$4 sm:$0xff]  }
 0x4bf   :  { %1861 = vmatpush1.bf16.msra.mxu0 %v6828_v27  ;;  %v6900_v27 = vld [vmem:[#allocation16 + $0x168] ss:$16 sps:$4 sm:$0xff]  }
 0x4c0   :  { %2759 = vmatprep.subr.bf16.mxu0 %v6836_v29  ;;  %v6908_v29 = vld [vmem:[#allocation16 + $0x18c] ss:$16 sps:$4 sm:$0xff]  }
 0x555   :  { %v1372_v35 = vpop.f32.mrb[8].mxu0 }
 0x556   :  { %v1373_v36 = vadd.f32 %v1372_v35, %v1171_v33  ;;  %v1374_v37 = vpop.f32.mrb[9].mxu0  ;;  %v6906_v33 = vld [vmem:[#allocation16 + $0x188] ss:$16 sps:$4 sm:$0xff]   ;;  %v6914_v35 = vld [vmem:[#allocation16 + $0x1ac] ss:$16 sps:$4 sm:$0xff]  }
 0x557   :  { %v1375_v38 = vadd.f32 %v1374_v37, %v1175_v34  ;;  %v1376_v39 = vpop.f32.mrb[10].mxu0  ;;  %v6911_v34 = vld [vmem:[#allocation16 + $0x1a4] ss:$16 sps:$4 sm:$0xff]   ;;  %v6912_v37 = vld [vmem:[#allocation16 + $0x1a8] ss:$16 sps:$4 sm:$0xff]  }
 0x558   :  { %v1379_v40 = vadd.f32 %v1373_v36, %v7827_v62  ;;  %v1377_v41 = vpop.f32.mrb[11].mxu0  ;;  %v6845_v62 = vld [vmem:[#allocation16 + $0x44] ss:$16 sps:$4 sm:$0xff]   ;;  %v6909_v36 = vld [vmem:[#allocation16 + $0x1a0] ss:$16 sps:$4 sm:$0xff]  }
 0x559   :  { %v1380_v42 = vadd.f32 %v1375_v38, %v7830_v0  ;;  %v6843_v0 = vld [vmem:[#allocation16 + $0x40] ss:$16 sps:$4 sm:$0xff]   ;;  %v6917_v38 = vld [vmem:[#allocation16 + $0x1c4] ss:$16 sps:$4 sm:$0xff]   ;;  %v6920_v39 = vld [vmem:[#allocation16 + $0x1cc] ss:$16 sps:$4 sm:$0xff]  }
 0x55a   :  { %v1381_v46 = vpack.c.bf16 %v1379_v40, %v1379_v40  ;;  %v6915_v40 = vld [vmem:[#allocation16 + $0x1c0] ss:$16 sps:$4 sm:$0xff]   ;;  %v6918_v41 = vld [vmem:[#allocation16 + $0x1c8] ss:$16 sps:$4 sm:$0xff]  }
 0x55b   :  { %v1382_v43 = vpack.c.bf16 %v1380_v42, %v1380_v42  ;;  %v6923_v42 = vld [vmem:[#allocation16 + $0x1e4] ss:$16 sps:$4 sm:$0xff]  }
 0x55d   :  { %1821 = vmatprep.mubr.bf16.mxu1 %v1382_v43  ;;  %1862 = vmatprep.mubr.bf16.mxu0 %v1382_v43  ;;  %v6926_v43 = vld [vmem:[#allocation16 + $0x1ec] ss:$16 sps:$4 sm:$0xff]  }
 0x55e   :  { %1822 = vmatmul.mubr.bf16.vlgmr.msra.gmra.mrb[8].mxu1 %v1381_v46  ;;  %1863 = vmatmul.mubr.bf16.vlgmr.msra.gmra.mrb[12].mxu0 %v1381_v46  ;;  %v6929_v46 = vld [vmem:[#allocation16 + $0x204] ss:$16 sps:$4 sm:$0xff]  }
 0x55f   :  { %2678 = vmatpush1.bf16.msra.mxu1 %v6831_v44  ;;  %2760 = vmatpush1.bf16.msra.mxu0 %v6834_v45  ;;  %v6921_v44 = vld [vmem:[#allocation16 + $0x1e0] ss:$16 sps:$4 sm:$0xff]   ;;  %v6924_v45 = vld [vmem:[#allocation16 + $0x1e8] ss:$16 sps:$4 sm:$0xff]  }
 0x560   :  { %2679 = vmatprep.subr.bf16.mxu1 %v6839_v47  ;;  %2761 = vmatprep.subr.bf16.mxu0 %v6842_v48  ;;  %v6932_v47 = vld [vmem:[#allocation16 + $0x20c] ss:$16 sps:$4 sm:$0xff]   ;;  %v7851_v48 = vld [vmem:[%s8011_s12] sm:$0xf] }
 0x563   :  { %2680 = vmatpush1.bf16.msra.mxu1 %v6837_v49  ;;  %2762 = vmatpush1.bf16.msra.mxu0 %v6840_v50  ;;  %v7854_v49 = vsub.s32 3, %v7801_v16  ;;  %v1452_v50 = vrot.slane %v7851_v48, %v7804_v17 }
 0x564   :  { %2681 = vmatprep.subr.bf16.mxu1 %v6845_v62  ;;  %2763 = vmatprep.subr.bf16.mxu0 %v6848_v51  ;;  %v1456_v62 = vrot.slane %v7851_v48, %v7810_v19 }
 0x565   :  { %v1464_v51 = vrot.slane %v7851_v48, %v7854_v49 }
 0x567   :  { %2682 = vmatpush1.bf16.msra.mxu1 %v6843_v0  ;;  %2764 = vmatpush1.bf16.msra.mxu0 %v6846_v52 }
 0x568   :  { %2683 = vmatprep.subr.bf16.mxu1 %v6851_v53  ;;  %2765 = vmatprep.subr.bf16.mxu0 %v6854_v54 }
 0x56b   :  { %2684 = vmatpush1.bf16.msra.mxu1 %v6849_v55  ;;  %2766 = vmatpush1.bf16.msra.mxu0 %v6852_v56 }
 0x56c   :  { %2685 = vmatprep.subr.bf16.mxu1 %v6857_v57  ;;  %2767 = vmatprep.subr.bf16.mxu0 %v6860_v58 }
 0x56f   :  { %2686 = vmatpush1.bf16.msra.mxu1 %v6855_v59  ;;  %2768 = vmatpush1.bf16.msra.mxu0 %v6858_v60 }
 0x570   :  { %2687 = vmatprep.subr.bf16.mxu1 %v6863_v61  ;;  %2769 = vmatprep.subr.bf16.mxu0 %v6866_v63 }
 0x573   :  { %2688 = vmatpush1.bf16.msra.mxu1 %v6861_v1  ;;  %2770 = vmatpush1.bf16.msra.mxu0 %v6864_v2 }
 0x574   :  { %2689 = vmatprep.subr.bf16.mxu1 %v6869_v3  ;;  %2771 = vmatprep.subr.bf16.mxu0 %v6872_v4 }
 0x577   :  { %2690 = vmatpush1.bf16.msra.mxu1 %v6867_v5  ;;  %2772 = vmatpush1.bf16.msra.mxu0 %v6870_v6  ;;  %v6927_v6 = vld [vmem:[#allocation16 + $0x200] ss:$16 sps:$4 sm:$0xff]  }
 0x578   :  { %2691 = vmatprep.subr.bf16.mxu1 %v6875_v30  ;;  %2773 = vmatprep.subr.bf16.mxu0 %v6878_v7  ;;  %v6930_v30 = vld [vmem:[#allocation16 + $0x208] ss:$16 sps:$4 sm:$0xff]  }
 0x57b   :  { %2692 = vmatpush1.bf16.msra.mxu1 %v6873_v31  ;;  %2774 = vmatpush1.bf16.msra.mxu0 %v6876_v8  ;;  %v6935_v8 = vld [vmem:[#allocation16 + $0x224] ss:$16 sps:$4 sm:$0xff]  }
 0x57c   :  { %2693 = vmatprep.subr.bf16.mxu1 %v6881_v9  ;;  %2775 = vmatprep.subr.bf16.mxu0 %v6884_v10  ;;  %v6938_v9 = vld [vmem:[#allocation16 + $0x22c] ss:$16 sps:$4 sm:$0xff]  }
 0x57f   :  { %2694 = vmatpush1.bf16.msra.mxu1 %v6879_v11  ;;  %2776 = vmatpush1.bf16.msra.mxu0 %v6882_v12  ;;  %v6933_v11 = vld [vmem:[#allocation16 + $0x220] ss:$16 sps:$4 sm:$0xff]   ;;  %v6936_v12 = vld [vmem:[#allocation16 + $0x228] ss:$16 sps:$4 sm:$0xff]  }
 0x580   :  { %2695 = vmatprep.subr.bf16.mxu1 %v6887_v13  ;;  %2777 = vmatprep.subr.bf16.mxu0 %v6890_v14  ;;  %v6941_v13 = vld [vmem:[#allocation16 + $0x244] ss:$16 sps:$4 sm:$0xff]   ;;  %v6944_v14 = vld [vmem:[#allocation16 + $0x24c] ss:$16 sps:$4 sm:$0xff]  }
 0x583   :  { %2696 = vmatpush1.bf16.msra.mxu1 %v6885_v15  ;;  %2778 = vmatpush1.bf16.msra.mxu0 %v6888_v18  ;;  %v6939_v15 = vld [vmem:[#allocation16 + $0x240] ss:$16 sps:$4 sm:$0xff]   ;;  %v6942_v18 = vld [vmem:[#allocation16 + $0x248] ss:$16 sps:$4 sm:$0xff]  }
 0x584   :  { %2697 = vmatprep.subr.bf16.mxu1 %v6893_v20  ;;  %2779 = vmatprep.subr.bf16.mxu0 %v6896_v21  ;;  %v6947_v20 = vld [vmem:[#allocation16 + $0x264] ss:$16 sps:$4 sm:$0xff]   ;;  %v6950_v21 = vld [vmem:[#allocation16 + $0x26c] ss:$16 sps:$4 sm:$0xff]  }
 0x587   :  { %2698 = vmatpush1.bf16.msra.mxu1 %v6891_v22  ;;  %2780 = vmatpush1.bf16.msra.mxu0 %v6894_v23  ;;  %v6945_v22 = vld [vmem:[#allocation16 + $0x260] ss:$16 sps:$4 sm:$0xff]   ;;  %v6948_v23 = vld [vmem:[#allocation16 + $0x268] ss:$16 sps:$4 sm:$0xff]  }
 0x588   :  { %2699 = vmatprep.subr.bf16.mxu1 %v6899_v24  ;;  %2781 = vmatprep.subr.bf16.mxu0 %v6902_v25  ;;  %v6953_v24 = vld [vmem:[#allocation16 + $0x284] ss:$16 sps:$4 sm:$0xff]   ;;  %v6956_v25 = vld [vmem:[#allocation16 + $0x28c] ss:$16 sps:$4 sm:$0xff]  }
 0x58b   :  { %2700 = vmatpush1.bf16.msra.mxu1 %v6897_v26  ;;  %2782 = vmatpush1.bf16.msra.mxu0 %v6900_v27  ;;  %v6951_v26 = vld [vmem:[#allocation16 + $0x280] ss:$16 sps:$4 sm:$0xff]   ;;  %v6954_v27 = vld [vmem:[#allocation16 + $0x288] ss:$16 sps:$4 sm:$0xff]  }
 0x58c   :  { %2701 = vmatprep.subr.bf16.mxu1 %v6905_v28  ;;  %2783 = vmatprep.subr.bf16.mxu0 %v6908_v29  ;;  %v6959_v28 = vld [vmem:[#allocation16 + $0x2a4] ss:$16 sps:$4 sm:$0xff]   ;;  %v6962_v29 = vld [vmem:[#allocation16 + $0x2ac] ss:$16 sps:$4 sm:$0xff]  }
 0x58f   :  { %2702 = vmatpush1.bf16.msra.mxu1 %v6903_v32  ;;  %2784 = vmatpush1.bf16.msra.mxu0 %v6906_v33  ;;  %v6957_v32 = vld [vmem:[#allocation16 + $0x2a0] ss:$16 sps:$4 sm:$0xff]   ;;  %v6960_v33 = vld [vmem:[#allocation16 + $0x2a8] ss:$16 sps:$4 sm:$0xff]  }
 0x590   :  { %2703 = vmatprep.subr.bf16.mxu1 %v6911_v34  ;;  %2785 = vmatprep.subr.bf16.mxu0 %v6914_v35  ;;  %v6965_v34 = vld [vmem:[#allocation16 + $0x2c4] ss:$16 sps:$4 sm:$0xff]   ;;  %v6968_v35 = vld [vmem:[#allocation16 + $0x2cc] ss:$16 sps:$4 sm:$0xff]  }
 0x593   :  { %2704 = vmatpush1.bf16.msra.mxu1 %v6909_v36  ;;  %2786 = vmatpush1.bf16.msra.mxu0 %v6912_v37  ;;  %v6963_v36 = vld [vmem:[#allocation16 + $0x2c0] ss:$16 sps:$4 sm:$0xff]   ;;  %v6966_v37 = vld [vmem:[#allocation16 + $0x2c8] ss:$16 sps:$4 sm:$0xff]  }
 0x594   :  { %2705 = vmatprep.subr.bf16.mxu1 %v6917_v38  ;;  %2787 = vmatprep.subr.bf16.mxu0 %v6920_v39  ;;  %v6971_v38 = vld [vmem:[#allocation16 + $0x2e4] ss:$16 sps:$4 sm:$0xff]   ;;  %v6974_v39 = vld [vmem:[#allocation16 + $0x2ec] ss:$16 sps:$4 sm:$0xff]  }
 0x597   :  { %2706 = vmatpush1.bf16.msra.mxu1 %v6915_v40  ;;  %2788 = vmatpush1.bf16.msra.mxu0 %v6918_v41  ;;  %v6969_v40 = vld [vmem:[#allocation16 + $0x2e0] ss:$16 sps:$4 sm:$0xff]   ;;  %v6972_v41 = vld [vmem:[#allocation16 + $0x2e8] ss:$16 sps:$4 sm:$0xff]  }
 0x598   :  { %2707 = vmatprep.subr.bf16.mxu1 %v6923_v42  ;;  %2789 = vmatprep.subr.bf16.mxu0 %v6926_v43  ;;  %v6977_v42 = vld [vmem:[#allocation16 + $0x304] ss:$16 sps:$4 sm:$0xff]   ;;  %v6980_v43 = vld [vmem:[#allocation16 + $0x30c] ss:$16 sps:$4 sm:$0xff]  }
 0x59b   :  { %2708 = vmatpush1.bf16.msra.mxu1 %v6921_v44  ;;  %2790 = vmatpush1.bf16.msra.mxu0 %v6924_v45  ;;  %v6975_v44 = vld [vmem:[#allocation16 + $0x300] ss:$16 sps:$4 sm:$0xff]   ;;  %v6978_v45 = vld [vmem:[#allocation16 + $0x308] ss:$16 sps:$4 sm:$0xff]  }
 0x59c   :  { %2718 = vmatprep.subr.bf16.mxu1 %v6929_v46  ;;  %2800 = vmatprep.subr.bf16.mxu0 %v6932_v47  ;;  %v6983_v46 = vld [vmem:[#allocation16 + $0x324] ss:$16 sps:$4 sm:$0xff]   ;;  %v6986_v47 = vld [vmem:[#allocation16 + $0x32c] ss:$16 sps:$4 sm:$0xff]  }
 0x631   :  { %v1823_v0 = vpop.f32.mrb[8].mxu1  ;;  %v7862_v52 = vpop.f32.mrb[12].mxu0 }
 0x632   :  { %v1824_v53 = vadd.f32 %v1823_v0, %v1452_v50  ;;  %v1825_v54 = vpop.f32.mrb[9].mxu1  ;;  %v1866_v55 = vpop.f32.mrb[13].mxu0  ;;  %v6981_v50 = vld [vmem:[#allocation16 + $0x320] ss:$16 sps:$4 sm:$0xff]   ;;  %v6992_v0 = vld [vmem:[#allocation16 + $0x34c] ss:$16 sps:$4 sm:$0xff]  }
 0x633   :  { %v1826_v56 = vadd.f32 %v1825_v54, %v1456_v62  ;;  %v1867_v57 = vadd.f32 %v1866_v55, %v1464_v51  ;;  %v1827_v58 = vpop.f32.mrb[10].mxu1  ;;  %v1868_v59 = vpop.f32.mrb[14].mxu0  ;;  %v6984_v62 = vld [vmem:[#allocation16 + $0x328] ss:$16 sps:$4 sm:$0xff]   ;;  %v6989_v51 = vld [vmem:[#allocation16 + $0x344] ss:$16 sps:$4 sm:$0xff]  }
 0x634   :  { %vm1871_vm6 = vcmp.ge.f32.partialorder %v1824_v53, 0.0  ;;  %v1875_v60 = vmul.f32 0.01, %v1824_v53  ;;  %v1828_v2 = vpop.f32.mrb[11].mxu1  ;;  %v1869_v3 = vpop.f32.mrb[15].mxu0 }
 0x635   :  { %vm1872_vm7 = vcmp.ge.f32.partialorder %v1826_v56, 0.0  ;;  %v1876_v61 = vmul.f32 0.01, %v1826_v56  ;;  %vm1874_vm8 = vcmp.ge.f32.partialorder %v1867_v57, 0.0  ;;  %v1878_v63 = vmul.f32 0.01, %v1867_v57 }
 0x636   :  { %v7864_v1 = vsel %vm1871_vm6, %v1824_v53, %v1875_v60  ;;  %v6987_v53 = vld [vmem:[#allocation16 + $0x340] ss:$16 sps:$4 sm:$0xff]   ;;  %v6990_v54 = vld [vmem:[#allocation16 + $0x348] ss:$16 sps:$4 sm:$0xff]   ;;  %v6995_v55 = vld [vmem:[#allocation16 + $0x364] ss:$16 sps:$4 sm:$0xff]  }
 0x637   :  { %v7866_v4 = vsel %vm1872_vm7, %v1826_v56, %v1876_v61  ;;  %v7870_v7 = vsel %vm1874_vm8, %v1867_v57, %v1878_v63  ;;  %v1883_v31 = vpack.c.bf16 %v7864_v1, %v7864_v1  ;;  %v6998_v56 = vld [vmem:[#allocation16 + $0x36c] ss:$16 sps:$4 sm:$0xff]   ;;  %v6993_v57 = vld [vmem:[#allocation16 + $0x360] ss:$16 sps:$4 sm:$0xff]   ;;  %v6996_v58 = vld [vmem:[#allocation16 + $0x368] ss:$16 sps:$4 sm:$0xff]  }
 0x638   :  { %v1884_v5 = vpack.c.bf16 %v7866_v4, %v7866_v4  ;;  %v1886_v10 = vpack.c.bf16 %v7870_v7, %v7870_v7  ;;  %v7001_v59 = vld [vmem:[#allocation16 + $0x384] ss:$16 sps:$4 sm:$0xff]   ;;  %v7004_v60 = vld [vmem:[#allocation16 + $0x38c] ss:$16 sps:$4 sm:$0xff]   ;;  %v7877_v61 = vsub.s32 2, %v7801_v16 }
 0x639   :  { %v6999_v63 = vld [vmem:[#allocation16 + $0x380] ss:$16 sps:$4 sm:$0xff]   ;;  %v7002_v2 = vld [vmem:[#allocation16 + $0x388] ss:$16 sps:$4 sm:$0xff]   ;;  %v7007_v3 = vld [vmem:[#allocation16 + $0x3a4] ss:$16 sps:$4 sm:$0xff]  }
 0x63a   :  { %2709 = vmatprep.mubr.bf16.mxu1 %v1884_v5  ;;  %2791 = vmatprep.mubr.bf16.mxu0 %v1884_v5  ;;  %v7010_v5 = vld [vmem:[#allocation16 + $0x3ac] ss:$16 sps:$4 sm:$0xff]  }
 0x63b   :  { %2710 = vmatmul.mubr.bf16.vlgmr.msra.gmra.mrb[12].mxu1 %v1883_v31  ;;  %2792 = vmatmul.mubr.bf16.vlgmr.msra.gmra.mrb[16].mxu0 %v1883_v31  ;;  %v7008_v31 = vld [vmem:[#allocation16 + $0x3a8] ss:$16 sps:$4 sm:$0xff]  }
 0x63c   :  { %2719 = vmatpush1.bf16.msra.mxu1 %v6927_v6  ;;  %2801 = vmatpush1.bf16.msra.mxu0 %v6930_v30  ;;  %v1460_v6 = vrot.slane %v7851_v48, %v7877_v61  ;;  %v7005_v30 = vld [vmem:[#allocation16 + $0x3a0] ss:$16 sps:$4 sm:$0xff]  }
 0x63d   :  { %2750 = vmatprep.mubr.bf16.mxu1 %v1886_v10  ;;  %2832 = vmatprep.mubr.bf16.mxu0 %v1886_v10  ;;  %v7017_v48 = vld [vmem:[#allocation16 + $0x3e0] ss:$16 sps:$4 sm:$0xff]  }
 0x63e   :  { %2720 = vmatprep.subr.bf16.mxu1 %v6935_v8  ;;  %2802 = vmatprep.subr.bf16.mxu0 %v6938_v9  ;;  %v7013_v8 = vld [vmem:[#allocation16 + $0x3c4] ss:$16 sps:$4 sm:$0xff]   ;;  %v7016_v9 = vld [vmem:[#allocation16 + $0x3cc] ss:$16 sps:$4 sm:$0xff]   ;;  %v1865_v10 = vadd.f32 %v7862_v52, %v1460_v6  ;;  %v7023_v52 = vld [vmem:[#allocation18] ss:$16 sps:$4 sm:$0xff]  }
 0x63f   :  { %v7088_v6 = vld [vmem:[#allocation18 + $0x344] ss:$16 sps:$4 sm:$0xff]  }
 0x640   :  { %2721 = vmatpush1.bf16.msra.mxu1 %v6933_v11  ;;  %2803 = vmatpush1.bf16.msra.mxu0 %v6936_v12  ;;  %v7011_v11 = vld [vmem:[#allocation16 + $0x3c0] ss:$16 sps:$4 sm:$0xff]   ;;  %v7014_v12 = vld [vmem:[#allocation16 + $0x3c8] ss:$16 sps:$4 sm:$0xff]   ;;  %vm1873_vm9 = vcmp.ge.f32.partialorder %v1865_v10, 0.0 }
 0x641   :  { %2722 = vmatprep.subr.bf16.mxu1 %v6941_v13  ;;  %2804 = vmatprep.subr.bf16.mxu0 %v6944_v14  ;;  %v7019_v13 = vld [vmem:[#allocation16 + $0x3e4] ss:$16 sps:$4 sm:$0xff]   ;;  %v7022_v14 = vld [vmem:[#allocation16 + $0x3ec] ss:$16 sps:$4 sm:$0xff]  }
 0x644   :  { %2723 = vmatpush1.bf16.msra.mxu1 %v6939_v15  ;;  %2805 = vmatpush1.bf16.msra.mxu0 %v6942_v18  ;;  %v1877_v15 = vmul.f32 0.01, %v1865_v10  ;;  %v7020_v18 = vld [vmem:[#allocation16 + $0x3e8] ss:$16 sps:$4 sm:$0xff]  }
 0x645   :  { %2724 = vmatprep.subr.bf16.mxu1 %v6947_v20  ;;  %2806 = vmatprep.subr.bf16.mxu0 %v6950_v21  ;;  %v7025_v20 = vld [vmem:[#allocation18 + $0x4] ss:$16 sps:$4 sm:$0xff]  }
 0x646   :  { %v7028_v21 = vld [vmem:[#allocation18 + $0x204] ss:$16 sps:$4 sm:$0xff]  }
 0x648   :  { %2725 = vmatpush1.bf16.msra.mxu1 %v6945_v22  ;;  %2807 = vmatpush1.bf16.msra.mxu0 %v6948_v23  ;;  %v7882_v22 = vsel %vm1873_vm9, %v1865_v10, %v1877_v15  ;;  %v7026_v23 = vld [vmem:[#allocation18 + $0x200] ss:$16 sps:$4 sm:$0xff]  }
 0x649   :  { %2726 = vmatprep.subr.bf16.mxu1 %v6953_v24  ;;  %2808 = vmatprep.subr.bf16.mxu0 %v6956_v25  ;;  %v1885_v24 = vpack.c.bf16 %v7882_v22, %v7882_v22  ;;  %v7031_v25 = vld [vmem:[#allocation18 + $0x24] ss:$16 sps:$4 sm:$0xff]   ;;  %v7089_v10 = vld [vmem:[#allocation18 + $0x160] ss:$16 sps:$4 sm:$0xff]  }
 0x64a   :  { %v7098_v15 = vld [vmem:[#allocation18 + $0x380] ss:$16 sps:$4 sm:$0xff]  }
 0x64c   :  { %2727 = vmatpush1.bf16.msra.mxu1 %v6951_v26  ;;  %2809 = vmatpush1.bf16.msra.mxu0 %v6954_v27  ;;  %v7034_v26 = vld [vmem:[#allocation18 + $0x224] ss:$16 sps:$4 sm:$0xff]   ;;  %v7029_v27 = vld [vmem:[#allocation18 + $0x20] ss:$16 sps:$4 sm:$0xff]  }
 0x64d   :  { %2728 = vmatprep.subr.bf16.mxu1 %v6959_v28  ;;  %2810 = vmatprep.subr.bf16.mxu0 %v6962_v29  ;;  %v7032_v28 = vld [vmem:[#allocation18 + $0x220] ss:$16 sps:$4 sm:$0xff]   ;;  %v7037_v29 = vld [vmem:[#allocation18 + $0x44] ss:$16 sps:$4 sm:$0xff]  }
 0x650   :  { %2729 = vmatpush1.bf16.msra.mxu1 %v6957_v32  ;;  %2811 = vmatpush1.bf16.msra.mxu0 %v6960_v33  ;;  %v7040_v32 = vld [vmem:[#allocation18 + $0x244] ss:$16 sps:$4 sm:$0xff]   ;;  %v7035_v33 = vld [vmem:[#allocation18 + $0x40] ss:$16 sps:$4 sm:$0xff]  }
 0x651   :  { %2730 = vmatprep.subr.bf16.mxu1 %v6965_v34  ;;  %2812 = vmatprep.subr.bf16.mxu0 %v6968_v35  ;;  %v7038_v34 = vld [vmem:[#allocation18 + $0x240] ss:$16 sps:$4 sm:$0xff]   ;;  %v7043_v35 = vld [vmem:[#allocation18 + $0x64] ss:$16 sps:$4 sm:$0xff]  }
 0x654   :  { %2731 = vmatpush1.bf16.msra.mxu1 %v6963_v36  ;;  %2813 = vmatpush1.bf16.msra.mxu0 %v6966_v37  ;;  %v7046_v36 = vld [vmem:[#allocation18 + $0x264] ss:$16 sps:$4 sm:$0xff]   ;;  %v7041_v37 = vld [vmem:[#allocation18 + $0x60] ss:$16 sps:$4 sm:$0xff]  }
 0x655   :  { %2732 = vmatprep.subr.bf16.mxu1 %v6971_v38  ;;  %2814 = vmatprep.subr.bf16.mxu0 %v6974_v39  ;;  %v7044_v38 = vld [vmem:[#allocation18 + $0x260] ss:$16 sps:$4 sm:$0xff]   ;;  %v7049_v39 = vld [vmem:[#allocation18 + $0x84] ss:$16 sps:$4 sm:$0xff]  }
 0x658   :  { %2733 = vmatpush1.bf16.msra.mxu1 %v6969_v40  ;;  %2815 = vmatpush1.bf16.msra.mxu0 %v6972_v41  ;;  %v7052_v40 = vld [vmem:[#allocation18 + $0x284] ss:$16 sps:$4 sm:$0xff]   ;;  %v7047_v41 = vld [vmem:[#allocation18 + $0x80] ss:$16 sps:$4 sm:$0xff]  }
 0x659   :  { %2734 = vmatprep.subr.bf16.mxu1 %v6977_v42  ;;  %2816 = vmatprep.subr.bf16.mxu0 %v6980_v43  ;;  %v7050_v42 = vld [vmem:[#allocation18 + $0x280] ss:$16 sps:$4 sm:$0xff]   ;;  %v7055_v43 = vld [vmem:[#allocation18 + $0xa4] ss:$16 sps:$4 sm:$0xff]  }
 0x65c   :  { %2735 = vmatpush1.bf16.msra.mxu1 %v6975_v44  ;;  %2817 = vmatpush1.bf16.msra.mxu0 %v6978_v45  ;;  %v7058_v44 = vld [vmem:[#allocation18 + $0x2a4] ss:$16 sps:$4 sm:$0xff]   ;;  %v7053_v45 = vld [vmem:[#allocation18 + $0xa0] ss:$16 sps:$4 sm:$0xff]  }
 0x65d   :  { %2736 = vmatprep.subr.bf16.mxu1 %v6983_v46  ;;  %2818 = vmatprep.subr.bf16.mxu0 %v6986_v47  ;;  %v7056_v46 = vld [vmem:[#allocation18 + $0x2a0] ss:$16 sps:$4 sm:$0xff]   ;;  %v7061_v47 = vld [vmem:[#allocation18 + $0xc4] ss:$16 sps:$4 sm:$0xff]  }
 0x660   :  { %2737 = vmatpush1.bf16.msra.mxu1 %v6981_v50  ;;  %2819 = vmatpush1.bf16.msra.mxu0 %v6984_v62  ;;  %v7064_v50 = vld [vmem:[#allocation18 + $0x2c4] ss:$16 sps:$4 sm:$0xff]   ;;  %v7059_v62 = vld [vmem:[#allocation18 + $0xc0] ss:$16 sps:$4 sm:$0xff]  }
 0x661   :  { %2738 = vmatprep.subr.bf16.mxu1 %v6989_v51  ;;  %2820 = vmatprep.subr.bf16.mxu0 %v6992_v0  ;;  %v7062_v51 = vld [vmem:[#allocation18 + $0x2c0] ss:$16 sps:$4 sm:$0xff]   ;;  %v7067_v0 = vld [vmem:[#allocation18 + $0xe4] ss:$16 sps:$4 sm:$0xff]  }
 0x664   :  { %2739 = vmatpush1.bf16.msra.mxu1 %v6987_v53  ;;  %2821 = vmatpush1.bf16.msra.mxu0 %v6990_v54  ;;  %v7070_v53 = vld [vmem:[#allocation18 + $0x2e4] ss:$16 sps:$4 sm:$0xff]   ;;  %v7065_v54 = vld [vmem:[#allocation18 + $0xe0] ss:$16 sps:$4 sm:$0xff]  }
 0x665   :  { %2740 = vmatprep.subr.bf16.mxu1 %v6995_v55  ;;  %2822 = vmatprep.subr.bf16.mxu0 %v6998_v56  ;;  %v7068_v55 = vld [vmem:[#allocation18 + $0x2e0] ss:$16 sps:$4 sm:$0xff]   ;;  %v7073_v56 = vld [vmem:[#allocation18 + $0x104] ss:$16 sps:$4 sm:$0xff]  }
 0x668   :  { %2741 = vmatpush1.bf16.msra.mxu1 %v6993_v57  ;;  %2823 = vmatpush1.bf16.msra.mxu0 %v6996_v58  ;;  %v7076_v57 = vld [vmem:[#allocation18 + $0x304] ss:$16 sps:$4 sm:$0xff]   ;;  %v7071_v58 = vld [vmem:[#allocation18 + $0x100] ss:$16 sps:$4 sm:$0xff]  }
 0x669   :  { %2742 = vmatprep.subr.bf16.mxu1 %v7001_v59  ;;  %2824 = vmatprep.subr.bf16.mxu0 %v7004_v60  ;;  %v7074_v59 = vld [vmem:[#allocation18 + $0x300] ss:$16 sps:$4 sm:$0xff]   ;;  %v7079_v60 = vld [vmem:[#allocation18 + $0x124] ss:$16 sps:$4 sm:$0xff]  }
 0x66c   :  { %2743 = vmatpush1.bf16.msra.mxu1 %v6999_v63  ;;  %2825 = vmatpush1.bf16.msra.mxu0 %v7002_v2  ;;  %v7082_v63 = vld [vmem:[#allocation18 + $0x324] ss:$16 sps:$4 sm:$0xff]   ;;  %v7077_v2 = vld [vmem:[#allocation18 + $0x120] ss:$16 sps:$4 sm:$0xff]  }
 0x66d   :  { %2744 = vmatprep.subr.bf16.mxu1 %v7007_v3  ;;  %2826 = vmatprep.subr.bf16.mxu0 %v7010_v5  ;;  %v7080_v3 = vld [vmem:[#allocation18 + $0x320] ss:$16 sps:$4 sm:$0xff]   ;;  %v7085_v5 = vld [vmem:[#allocation18 + $0x144] ss:$16 sps:$4 sm:$0xff]  }
 0x670   :  { %2745 = vmatpush1.bf16.msra.mxu1 %v7005_v30  ;;  %2827 = vmatpush1.bf16.msra.mxu0 %v7008_v31  ;;  %v7083_v30 = vld [vmem:[#allocation18 + $0x140] ss:$16 sps:$4 sm:$0xff]  }
 0x671   :  { %2746 = vmatprep.subr.bf16.mxu1 %v7013_v8  ;;  %2828 = vmatprep.subr.bf16.mxu0 %v7016_v9  ;;  %v7086_v31 = vld [vmem:[#allocation18 + $0x340] ss:$16 sps:$4 sm:$0xff]   ;;  %v7091_v8 = vld [vmem:[#allocation18 + $0x164] ss:$16 sps:$4 sm:$0xff]  }
 0x672   :  { %v7094_v9 = vld [vmem:[#allocation18 + $0x364] ss:$16 sps:$4 sm:$0xff]  }
 0x674   :  { %2747 = vmatpush1.bf16.msra.mxu1 %v7011_v11  ;;  %2829 = vmatpush1.bf16.msra.mxu0 %v7014_v12  ;;  %v7092_v11 = vld [vmem:[#allocation18 + $0x360] ss:$16 sps:$4 sm:$0xff]   ;;  %v7097_v12 = vld [vmem:[#allocation18 + $0x184] ss:$16 sps:$4 sm:$0xff]  }
 0x675   :  { %2748 = vmatprep.subr.bf16.mxu1 %v7019_v13  ;;  %2830 = vmatprep.subr.bf16.mxu0 %v7022_v14  ;;  %v7100_v13 = vld [vmem:[#allocation18 + $0x384] ss:$16 sps:$4 sm:$0xff]   ;;  %v7095_v14 = vld [vmem:[#allocation18 + $0x180] ss:$16 sps:$4 sm:$0xff]  }
 0x678   :  { %2749 = vmatpush1.bf16.msra.mxu1 %v7017_v48  ;;  %2831 = vmatpush1.bf16.msra.mxu0 %v7020_v18  ;;  %v7103_v48 = vld [vmem:[#allocation18 + $0x1a4] ss:$16 sps:$4 sm:$0xff]  }
 0x679   :  { %3647 = vmatprep.subr.bf16.mxu1 %v7025_v20  ;;  %3688 = vmatprep.subr.bf16.mxu0 %v7028_v21  ;;  %v7106_v18 = vld [vmem:[#allocation18 + $0x3a4] ss:$16 sps:$4 sm:$0xff]   ;;  %v7101_v20 = vld [vmem:[#allocation18 + $0x1a0] ss:$16 sps:$4 sm:$0xff]  }
 0x67a   :  { %v7104_v21 = vld [vmem:[#allocation18 + $0x3a0] ss:$16 sps:$4 sm:$0xff]  }
 0x67b   :  { %2751 = vmatmul.mubr.bf16.vlgmr.msra.gmra.mrb[12].mxu1 %v1885_v24  ;;  %2833 = vmatmul.mubr.bf16.vlgmr.msra.gmra.mrb[16].mxu0 %v1885_v24  ;;  %v7107_v24 = vld [vmem:[#allocation18 + $0x1c0] ss:$16 sps:$4 sm:$0xff]  }
 0x67c   :  { %3648 = vmatpush1.bf16.msra.mxu1 %v7023_v52  ;;  %3689 = vmatpush1.bf16.msra.mxu0 %v7026_v23  ;;  %v7109_v52 = vld [vmem:[#allocation18 + $0x1c4] ss:$16 sps:$4 sm:$0xff]  }
 0x67d   :  { %3649 = vmatprep.subr.bf16.mxu1 %v7031_v25  ;;  %3690 = vmatprep.subr.bf16.mxu0 %v7034_v26  ;;  %v7112_v23 = vld [vmem:[#allocation18 + $0x3c4] ss:$16 sps:$4 sm:$0xff]   ;;  %v7110_v25 = vld [vmem:[#allocation18 + $0x3c0] ss:$16 sps:$4 sm:$0xff]  }
 0x67e   :  { %v7115_v26 = vld [vmem:[#allocation18 + $0x1e4] ss:$16 sps:$4 sm:$0xff]  }
 0x680   :  { %3650 = vmatpush1.bf16.msra.mxu1 %v7029_v27  ;;  %3691 = vmatpush1.bf16.msra.mxu0 %v7032_v28  ;;  %v7118_v27 = vld [vmem:[#allocation18 + $0x3e4] ss:$16 sps:$4 sm:$0xff]   ;;  %v7113_v28 = vld [vmem:[#allocation18 + $0x1e0] ss:$16 sps:$4 sm:$0xff]  }
 0x681   :  { %3651 = vmatprep.subr.bf16.mxu1 %v7037_v29  ;;  %3692 = vmatprep.subr.bf16.mxu0 %v7040_v32  ;;  %v7116_v29 = vld [vmem:[#allocation18 + $0x3e0] ss:$16 sps:$4 sm:$0xff]   ;;  %v7121_v32 = vld [vmem:[#allocation18 + $0xc] ss:$16 sps:$4 sm:$0xff]  }
 0x684   :  { %3652 = vmatpush1.bf16.msra.mxu1 %v7035_v33  ;;  %3693 = vmatpush1.bf16.msra.mxu0 %v7038_v34  ;;  %v7124_v33 = vld [vmem:[#allocation18 + $0x20c] ss:$16 sps:$4 sm:$0xff]   ;;  %v2015_v34 = vld [vmem:[%s8013_s14] sm:$0xf] }
 0x685   :  { %3653 = vmatprep.subr.bf16.mxu1 %v7043_v35  ;;  %3694 = vmatprep.subr.bf16.mxu0 %v7046_v36  ;;  %v2020_v35 = vrot.slane %v2015_v34, %v7804_v17  ;;  %v2028_v36 = vrot.slane %v2015_v34, %v7877_v61 }
 0x688   :  { %3654 = vmatpush1.bf16.msra.mxu1 %v7041_v37  ;;  %3695 = vmatpush1.bf16.msra.mxu0 %v7044_v38  ;;  %v2024_v37 = vrot.slane %v2015_v34, %v7810_v19  ;;  %v2032_v38 = vrot.slane %v2015_v34, %v7854_v49  ;;  %v7163_v34 = vld [vmem:[#allocation18 + $0xec] ss:$16 sps:$4 sm:$0xff]  }
 0x689   :  { %3655 = vmatprep.subr.bf16.mxu1 %v7049_v39  ;;  %3696 = vmatprep.subr.bf16.mxu0 %v7052_v40 }
 0x68c   :  { %3656 = vmatpush1.bf16.msra.mxu1 %v7047_v41  ;;  %3697 = vmatpush1.bf16.msra.mxu0 %v7050_v42 }
 0x68d   :  { %3657 = vmatprep.subr.bf16.mxu1 %v7055_v43  ;;  %3698 = vmatprep.subr.bf16.mxu0 %v7058_v44 }
 0x690   :  { %3658 = vmatpush1.bf16.msra.mxu1 %v7053_v45  ;;  %3699 = vmatpush1.bf16.msra.mxu0 %v7056_v46 }
 0x691   :  { %3659 = vmatprep.subr.bf16.mxu1 %v7061_v47  ;;  %3700 = vmatprep.subr.bf16.mxu0 %v7064_v50 }
 0x694   :  { %3660 = vmatpush1.bf16.msra.mxu1 %v7059_v62  ;;  %3701 = vmatpush1.bf16.msra.mxu0 %v7062_v51 }
 0x695   :  { %3661 = vmatprep.subr.bf16.mxu1 %v7067_v0  ;;  %3702 = vmatprep.subr.bf16.mxu0 %v7070_v53 }
 0x698   :  { %3662 = vmatpush1.bf16.msra.mxu1 %v7065_v54  ;;  %3703 = vmatpush1.bf16.msra.mxu0 %v7068_v55 }
 0x699   :  { %3663 = vmatprep.subr.bf16.mxu1 %v7073_v56  ;;  %3704 = vmatprep.subr.bf16.mxu0 %v7076_v57 }
 0x69c   :  { %3664 = vmatpush1.bf16.msra.mxu1 %v7071_v58  ;;  %3705 = vmatpush1.bf16.msra.mxu0 %v7074_v59 }
 0x69d   :  { %3665 = vmatprep.subr.bf16.mxu1 %v7079_v60  ;;  %3706 = vmatprep.subr.bf16.mxu0 %v7082_v63 }
 0x6a0   :  { %3666 = vmatpush1.bf16.msra.mxu1 %v7077_v2  ;;  %3707 = vmatpush1.bf16.msra.mxu0 %v7080_v3  ;;  %v7119_v2 = vld [vmem:[#allocation18 + $0x8] ss:$16 sps:$4 sm:$0xff]  }
 0x6a1   :  { %3667 = vmatprep.subr.bf16.mxu1 %v7085_v5  ;;  %3708 = vmatprep.subr.bf16.mxu0 %v7088_v6  ;;  %v7122_v3 = vld [vmem:[#allocation18 + $0x208] ss:$16 sps:$4 sm:$0xff]  }
 0x6a4   :  { %3668 = vmatpush1.bf16.msra.mxu1 %v7083_v30  ;;  %3709 = vmatpush1.bf16.msra.mxu0 %v7086_v31  ;;  %v7127_v30 = vld [vmem:[#allocation18 + $0x2c] ss:$16 sps:$4 sm:$0xff]  }
 0x6a5   :  { %3669 = vmatprep.subr.bf16.mxu1 %v7091_v8  ;;  %3710 = vmatprep.subr.bf16.mxu0 %v7094_v9  ;;  %v7130_v31 = vld [vmem:[#allocation18 + $0x22c] ss:$16 sps:$4 sm:$0xff]   ;;  %v7125_v8 = vld [vmem:[#allocation18 + $0x28] ss:$16 sps:$4 sm:$0xff]  }
 0x6a6   :  { %v7128_v9 = vld [vmem:[#allocation18 + $0x228] ss:$16 sps:$4 sm:$0xff]  }
 0x6a8   :  { %3670 = vmatpush1.bf16.msra.mxu1 %v7089_v10  ;;  %3711 = vmatpush1.bf16.msra.mxu0 %v7092_v11  ;;  %v7133_v10 = vld [vmem:[#allocation18 + $0x4c] ss:$16 sps:$4 sm:$0xff]  }
 0x6a9   :  { %3671 = vmatprep.subr.bf16.mxu1 %v7097_v12  ;;  %3712 = vmatprep.subr.bf16.mxu0 %v7100_v13  ;;  %v7136_v11 = vld [vmem:[#allocation18 + $0x24c] ss:$16 sps:$4 sm:$0xff]   ;;  %v7131_v12 = vld [vmem:[#allocation18 + $0x48] ss:$16 sps:$4 sm:$0xff]  }
 0x6aa   :  { %v7134_v13 = vld [vmem:[#allocation18 + $0x248] ss:$16 sps:$4 sm:$0xff]  }
 0x6ac   :  { %3672 = vmatpush1.bf16.msra.mxu1 %v7095_v14  ;;  %3713 = vmatpush1.bf16.msra.mxu0 %v7098_v15  ;;  %v7139_v14 = vld [vmem:[#allocation18 + $0x6c] ss:$16 sps:$4 sm:$0xff]  }
 0x6ad   :  { %3673 = vmatprep.subr.bf16.mxu1 %v7103_v48  ;;  %3714 = vmatprep.subr.bf16.mxu0 %v7106_v18  ;;  %v7142_v15 = vld [vmem:[#allocation18 + $0x26c] ss:$16 sps:$4 sm:$0xff]   ;;  %v7137_v48 = vld [vmem:[#allocation18 + $0x68] ss:$16 sps:$4 sm:$0xff]  }
 0x6ae   :  { %v7140_v18 = vld [vmem:[#allocation18 + $0x268] ss:$16 sps:$4 sm:$0xff]  }
 0x6b0   :  { %3674 = vmatpush1.bf16.msra.mxu1 %v7101_v20  ;;  %3715 = vmatpush1.bf16.msra.mxu0 %v7104_v21  ;;  %v7145_v20 = vld [vmem:[#allocation18 + $0x8c] ss:$16 sps:$4 sm:$0xff]  }
 0x6b1   :  { %3675 = vmatprep.subr.bf16.mxu1 %v7109_v52  ;;  %3716 = vmatprep.subr.bf16.mxu0 %v7112_v23  ;;  %v7148_v21 = vld [vmem:[#allocation18 + $0x28c] ss:$16 sps:$4 sm:$0xff]   ;;  %v7143_v52 = vld [vmem:[#allocation18 + $0x88] ss:$16 sps:$4 sm:$0xff]  }
 0x6b2   :  { %v7146_v23 = vld [vmem:[#allocation18 + $0x288] ss:$16 sps:$4 sm:$0xff]  }
 0x6b4   :  { %3676 = vmatpush1.bf16.msra.mxu1 %v7107_v24  ;;  %3717 = vmatpush1.bf16.msra.mxu0 %v7110_v25  ;;  %v7151_v24 = vld [vmem:[#allocation18 + $0xac] ss:$16 sps:$4 sm:$0xff]  }
 0x6b5   :  { %3677 = vmatprep.subr.bf16.mxu1 %v7115_v26  ;;  %3718 = vmatprep.subr.bf16.mxu0 %v7118_v27  ;;  %v7154_v25 = vld [vmem:[#allocation18 + $0x2ac] ss:$16 sps:$4 sm:$0xff]   ;;  %v7149_v26 = vld [vmem:[#allocation18 + $0xa8] ss:$16 sps:$4 sm:$0xff]  }
 0x6b6   :  { %v7152_v27 = vld [vmem:[#allocation18 + $0x2a8] ss:$16 sps:$4 sm:$0xff]  }
 0x6b8   :  { %3678 = vmatpush1.bf16.msra.mxu1 %v7113_v28  ;;  %3719 = vmatpush1.bf16.msra.mxu0 %v7116_v29  ;;  %v7157_v28 = vld [vmem:[#allocation18 + $0xcc] ss:$16 sps:$4 sm:$0xff]  }
 0x6b9   :  { %3729 = vmatprep.subr.bf16.mxu1 %v7121_v32  ;;  %3770 = vmatprep.subr.bf16.mxu0 %v7124_v33  ;;  %v7160_v29 = vld [vmem:[#allocation18 + $0x2cc] ss:$16 sps:$4 sm:$0xff]   ;;  %v7155_v32 = vld [vmem:[#allocation18 + $0xc8] ss:$16 sps:$4 sm:$0xff]  }
 0x6ba   :  { %v7158_v33 = vld [vmem:[#allocation18 + $0x2c8] ss:$16 sps:$4 sm:$0xff]  }
 0x74e   :  { %v2752_v39 = vpop.f32.mrb[12].mxu1  ;;  %v2834_v40 = vpop.f32.mrb[16].mxu0 }
 0x74f   :  { %v6464_v41 = vadd.f32 %v2752_v39, %v2020_v35  ;;  %v6466_v42 = vadd.f32 %v2834_v40, %v2028_v36  ;;  %v2754_v43 = vpop.f32.mrb[13].mxu1  ;;  %v2836_v44 = vpop.f32.mrb[17].mxu0  ;;  %v7166_v35 = vld [vmem:[#allocation18 + $0x2ec] ss:$16 sps:$4 sm:$0xff]   ;;  %v7161_v36 = vld [vmem:[#allocation18 + $0xe8] ss:$16 sps:$4 sm:$0xff]  }
 0x750   :  { %v6465_v45 = vadd.f32 %v2754_v43, %v2024_v37  ;;  %v6467_v46 = vadd.f32 %v2836_v44, %v2032_v38  ;;  %v2756_v47 = vpop.f32.mrb[14].mxu1  ;;  %v2838_v50 = vpop.f32.mrb[18].mxu0  ;;  %v7164_v37 = vld [vmem:[#allocation18 + $0x2e8] ss:$16 sps:$4 sm:$0xff]   ;;  %v7169_v38 = vld [vmem:[#allocation18 + $0x10c] ss:$16 sps:$4 sm:$0xff]  }
 0x751   :  { %vm2841_vm10 = vcmp.ge.f32.partialorder %v6464_v41, 0.0  ;;  %v2845_v62 = vmul.f32 0.01, %v6464_v41  ;;  %vm2843_vm11 = vcmp.ge.f32.partialorder %v6466_v42, 0.0  ;;  %v2847_v51 = vmul.f32 0.01, %v6466_v42 }
 0x752   :  { %vm2842_vm12 = vcmp.ge.f32.partialorder %v6465_v45, 0.0  ;;  %v2846_v0 = vmul.f32 0.01, %v6465_v45  ;;  %vm2844_vm13 = vcmp.ge.f32.partialorder %v6467_v46, 0.0  ;;  %v2848_v53 = vmul.f32 0.01, %v6467_v46 }
 0x753   :  { %v2849_v54 = vsel %vm2841_vm10, %v6464_v41, %v2845_v62  ;;  %v2851_v55 = vsel %vm2843_vm11, %v6466_v42, %v2847_v51  ;;  %v2757_v56 = vpop.f32.mrb[15].mxu1  ;;  %v2839_v57 = vpop.f32.mrb[19].mxu0  ;;  %v7172_v39 = vld [vmem:[#allocation18 + $0x30c] ss:$16 sps:$4 sm:$0xff]   ;;  %v7167_v40 = vld [vmem:[#allocation18 + $0x108] ss:$16 sps:$4 sm:$0xff]  }
 0x754   :  { %v2850_v58 = vsel %vm2842_vm12, %v6465_v45, %v2846_v0  ;;  %v2852_v59 = vsel %vm2844_vm13, %v6467_v46, %v2848_v53  ;;  %v7893_v5 = vpack.c.bf16 %v2849_v54, %v2849_v54  ;;  %v7895_v6 = vpack.c.bf16 %v2851_v55, %v2851_v55  ;;  %v7170_v41 = vld [vmem:[#allocation18 + $0x308] ss:$16 sps:$4 sm:$0xff]   ;;  %v7175_v42 = vld [vmem:[#allocation18 + $0x12c] ss:$16 sps:$4 sm:$0xff]  }
 0x755   :  { %v2854_v60 = vpack.c.bf16 %v2850_v58, %v2850_v58  ;;  %v2856_v63 = vpack.c.bf16 %v2852_v59, %v2852_v59  ;;  %v7178_v43 = vld [vmem:[#allocation18 + $0x32c] ss:$16 sps:$4 sm:$0xff]   ;;  %v7173_v44 = vld [vmem:[#allocation18 + $0x128] ss:$16 sps:$4 sm:$0xff]  }
 0x756   :  { %v7176_v45 = vld [vmem:[#allocation18 + $0x328] ss:$16 sps:$4 sm:$0xff]   ;;  %v7181_v46 = vld [vmem:[#allocation18 + $0x14c] ss:$16 sps:$4 sm:$0xff]  }
 0x757   :  { %3679 = vmatprep.mubr.bf16.mxu1 %v2854_v60  ;;  %3720 = vmatprep.mubr.bf16.mxu0 %v2856_v63  ;;  %v7184_v47 = vld [vmem:[#allocation18 + $0x34c] ss:$16 sps:$4 sm:$0xff]   ;;  %v7179_v50 = vld [vmem:[#allocation18 + $0x148] ss:$16 sps:$4 sm:$0xff]  }
 0x758   :  { %3680 = vmatmul.mubr.bf16.vlgmr.msra.gmra.mrb[16].mxu1 %v7893_v5  ;;  %3721 = vmatmul.mubr.bf16.vlgmr.msra.gmra.mrb[20].mxu0 %v7895_v6  ;;  %v7182_v62 = vld [vmem:[#allocation18 + $0x348] ss:$16 sps:$4 sm:$0xff]   ;;  %v7187_v51 = vld [vmem:[#allocation18 + $0x16c] ss:$16 sps:$4 sm:$0xff]  }
 0x759   :  { %3730 = vmatpush1.bf16.msra.mxu1 %v7119_v2  ;;  %3771 = vmatpush1.bf16.msra.mxu0 %v7122_v3  ;;  %v7190_v0 = vld [vmem:[#allocation18 + $0x36c] ss:$16 sps:$4 sm:$0xff]   ;;  %v7185_v53 = vld [vmem:[#allocation18 + $0x168] ss:$16 sps:$4 sm:$0xff]  }
 0x75a   :  { %3761 = vmatprep.mubr.bf16.mxu1 %v2854_v60  ;;  %3802 = vmatprep.mubr.bf16.mxu0 %v2856_v63  ;;  %v7188_v54 = vld [vmem:[#allocation18 + $0x368] ss:$16 sps:$4 sm:$0xff]   ;;  %v7193_v55 = vld [vmem:[#allocation18 + $0x18c] ss:$16 sps:$4 sm:$0xff]  }
 0x75b   :  { %3731 = vmatprep.subr.bf16.mxu1 %v7127_v30  ;;  %3772 = vmatprep.subr.bf16.mxu0 %v7130_v31  ;;  %v7196_v56 = vld [vmem:[#allocation18 + $0x38c] ss:$16 sps:$4 sm:$0xff]   ;;  %v7191_v57 = vld [vmem:[#allocation18 + $0x188] ss:$16 sps:$4 sm:$0xff]  }
 0x75c   :  { %v7194_v58 = vld [vmem:[#allocation18 + $0x388] ss:$16 sps:$4 sm:$0xff]   ;;  %v7199_v59 = vld [vmem:[#allocation18 + $0x1ac] ss:$16 sps:$4 sm:$0xff]  }
 0x75d   :  { %3732 = vmatpush1.bf16.msra.mxu1 %v7125_v8  ;;  %3773 = vmatpush1.bf16.msra.mxu0 %v7128_v9  ;;  %v7202_v60 = vld [vmem:[#allocation18 + $0x3ac] ss:$16 sps:$4 sm:$0xff]   ;;  %v7197_v63 = vld [vmem:[#allocation18 + $0x1a8] ss:$16 sps:$4 sm:$0xff]  }
 0x75e   :  { %3733 = vmatprep.subr.bf16.mxu1 %v7133_v10  ;;  %3774 = vmatprep.subr.bf16.mxu0 %v7136_v11  ;;  %v7200_v2 = vld [vmem:[#allocation18 + $0x3a8] ss:$16 sps:$4 sm:$0xff]   ;;  %v7205_v3 = vld [vmem:[#allocation18 + $0x1cc] ss:$16 sps:$4 sm:$0xff]   ;;  %v3819_v11 = vld [vmem:[#allocation19] sm:$0xff] }
 0x75f   :  { %v7208_v30 = vld [vmem:[#allocation18 + $0x3cc] ss:$16 sps:$4 sm:$0xff]   ;;  %v7203_v31 = vld [vmem:[#allocation18 + $0x1c8] ss:$16 sps:$4 sm:$0xff]  }
 0x760   :  { %v7206_v8 = vld [vmem:[#allocation18 + $0x3c8] ss:$16 sps:$4 sm:$0xff]   ;;  %v7211_v9 = vld [vmem:[#allocation18 + $0x1ec] ss:$16 sps:$4 sm:$0xff]  }
 0x761   :  { %3734 = vmatpush1.bf16.msra.mxu1 %v7131_v12  ;;  %3775 = vmatpush1.bf16.msra.mxu0 %v7134_v13  ;;  %v7214_v10 = vld [vmem:[#allocation18 + $0x3ec] ss:$16 sps:$4 sm:$0xff]   ;;  %v3823_v12 = vld [vmem:[#allocation19 + $0x20] sm:$0xff] }
 0x762   :  { %3735 = vmatprep.subr.bf16.mxu1 %v7139_v14  ;;  %3776 = vmatprep.subr.bf16.mxu0 %v7142_v15  ;;  %v3820_v13 = vld [vmem:[#allocation19 + $0x8] sm:$0xff] }
 0x763   :  { %v3824_v14 = vld [vmem:[#allocation19 + $0x28] sm:$0xff] }
 0x764   :  { %v7209_v15 = vld [vmem:[#allocation18 + $0x1e8] ss:$16 sps:$4 sm:$0xff]  }
 0x765   :  { %3736 = vmatpush1.bf16.msra.mxu1 %v7137_v48  ;;  %3777 = vmatpush1.bf16.msra.mxu0 %v7140_v18  ;;  %v7212_v48 = vld [vmem:[#allocation18 + $0x3e8] ss:$16 sps:$4 sm:$0xff]   ;;  %v6209_v18 = vcombine.high %v3819_v11, %v3823_v12 }
 0x766   :  { %3737 = vmatprep.subr.bf16.mxu1 %v7145_v20  ;;  %3778 = vmatprep.subr.bf16.mxu0 %v7148_v21  ;;  %v6211_v20 = vcombine.high %v3820_v13, %v3824_v14  ;;  %v3827_v21 = vld [vmem:[#allocation19 + $0x40] sm:$0xff] }
 0x769   :  { %3738 = vmatpush1.bf16.msra.mxu1 %v7143_v52  ;;  %3779 = vmatpush1.bf16.msra.mxu0 %v7146_v23  ;;  %v3831_v52 = vld [vmem:[#allocation19 + $0x60] sm:$0xff]  ;;  %v3828_v23 = vld [vmem:[#allocation19 + $0x48] sm:$0xff] }
 0x76a   :  { %3739 = vmatprep.subr.bf16.mxu1 %v7151_v24  ;;  %3780 = vmatprep.subr.bf16.mxu0 %v7154_v25  ;;  %v3832_v24 = vld [vmem:[#allocation19 + $0x68] sm:$0xff]  ;;  %v6208_v25 = vcombine.low %v3819_v11, %v3823_v12  ;;  %v3875_v12 = vld [vmem:[#allocation19 + $0x1c0] sm:$0xff] }
 0x76d   :  { %3740 = vmatpush1.bf16.msra.mxu1 %v7149_v26  ;;  %3781 = vmatpush1.bf16.msra.mxu0 %v7152_v27  ;;  %v6210_v26 = vcombine.low %v3820_v13, %v3824_v14  ;;  %v6217_v27 = vcombine.high %v3827_v21, %v3831_v52  ;;  %v3879_v13 = vld [vmem:[#allocation19 + $0x1e0] sm:$0xff]  ;;  %v3876_v14 = vld [vmem:[#allocation19 + $0x1c8] sm:$0xff] }
 0x76e   :  { %3741 = vmatprep.subr.bf16.mxu1 %v7157_v28  ;;  %3782 = vmatprep.subr.bf16.mxu0 %v7160_v29  ;;  %v6219_v28 = vcombine.high %v3828_v23, %v3832_v24  ;;  %v3835_v29 = vld [vmem:[#allocation19 + $0x80] sm:$0xff] }
 0x771   :  { %3742 = vmatpush1.bf16.msra.mxu1 %v7155_v32  ;;  %3783 = vmatpush1.bf16.msra.mxu0 %v7158_v33  ;;  %v3839_v32 = vld [vmem:[#allocation19 + $0xa0] sm:$0xff]  ;;  %v3836_v33 = vld [vmem:[#allocation19 + $0x88] sm:$0xff] }
 0x772   :  { %3743 = vmatprep.subr.bf16.mxu1 %v7163_v34  ;;  %3784 = vmatprep.subr.bf16.mxu0 %v7166_v35  ;;  %v3840_v34 = vld [vmem:[#allocation19 + $0xa8] sm:$0xff]  ;;  %v6216_v35 = vcombine.low %v3827_v21, %v3831_v52  ;;  %v3883_v52 = vld [vmem:[#allocation19 + $0x200] sm:$0xff] }
 0x775   :  { %3744 = vmatpush1.bf16.msra.mxu1 %v7161_v36  ;;  %3785 = vmatpush1.bf16.msra.mxu0 %v7164_v37  ;;  %v6218_v36 = vcombine.low %v3828_v23, %v3832_v24  ;;  %v6225_v37 = vcombine.high %v3835_v29, %v3839_v32  ;;  %v3887_v23 = vld [vmem:[#allocation19 + $0x220] sm:$0xff]  ;;  %v3884_v24 = vld [vmem:[#allocation19 + $0x208] sm:$0xff] }
 0x776   :  { %3745 = vmatprep.subr.bf16.mxu1 %v7169_v38  ;;  %3786 = vmatprep.subr.bf16.mxu0 %v7172_v39  ;;  %v6227_v38 = vcombine.high %v3836_v33, %v3840_v34  ;;  %v3843_v39 = vld [vmem:[#allocation19 + $0xc0] sm:$0xff] }
 0x779   :  { %3746 = vmatpush1.bf16.msra.mxu1 %v7167_v40  ;;  %3787 = vmatpush1.bf16.msra.mxu0 %v7170_v41  ;;  %v3847_v40 = vld [vmem:[#allocation19 + $0xe0] sm:$0xff]  ;;  %v3844_v41 = vld [vmem:[#allocation19 + $0xc8] sm:$0xff] }
 0x77a   :  { %3747 = vmatprep.subr.bf16.mxu1 %v7175_v42  ;;  %3788 = vmatprep.subr.bf16.mxu0 %v7178_v43  ;;  %v3848_v42 = vld [vmem:[#allocation19 + $0xe8] sm:$0xff]  ;;  %v6224_v43 = vcombine.low %v3835_v29, %v3839_v32  ;;  %v3891_v32 = vld [vmem:[#allocation19 + $0x240] sm:$0xff] }
 0x77d   :  { %3748 = vmatpush1.bf16.msra.mxu1 %v7173_v44  ;;  %3789 = vmatpush1.bf16.msra.mxu0 %v7176_v45  ;;  %v6226_v44 = vcombine.low %v3836_v33, %v3840_v34  ;;  %v3851_v45 = vld [vmem:[#allocation19 + $0x100] sm:$0xff]  ;;  %v3892_v34 = vld [vmem:[#allocation19 + $0x248] sm:$0xff] }
 0x77e   :  { %3749 = vmatprep.subr.bf16.mxu1 %v7181_v46  ;;  %3790 = vmatprep.subr.bf16.mxu0 %v7184_v47  ;;  %v3855_v46 = vld [vmem:[#allocation19 + $0x120] sm:$0xff]  ;;  %v3852_v47 = vld [vmem:[#allocation19 + $0x108] sm:$0xff] }
 0x77f   :  { %v3895_v33 = vld [vmem:[#allocation19 + $0x260] sm:$0xff] }
 0x781   :  { %3750 = vmatpush1.bf16.msra.mxu1 %v7179_v50  ;;  %3791 = vmatpush1.bf16.msra.mxu0 %v7182_v62  ;;  %v3856_v50 = vld [vmem:[#allocation19 + $0x128] sm:$0xff]  ;;  %v6232_v62 = vcombine.low %v3843_v39, %v3847_v40 }
 0x782   :  { %3751 = vmatprep.subr.bf16.mxu1 %v7187_v51  ;;  %3792 = vmatprep.subr.bf16.mxu0 %v7190_v0  ;;  %v6234_v51 = vcombine.low %v3844_v41, %v3848_v42  ;;  %v6241_v0 = vcombine.high %v3851_v45, %v3855_v46 }
 0x785   :  { %3752 = vmatpush1.bf16.msra.mxu1 %v7185_v53  ;;  %3793 = vmatpush1.bf16.msra.mxu0 %v7188_v54  ;;  %v6243_v53 = vcombine.high %v3852_v47, %v3856_v50  ;;  %v3859_v54 = vld [vmem:[#allocation19 + $0x140] sm:$0xff] }
 0x786   :  { %3753 = vmatprep.subr.bf16.mxu1 %v7193_v55  ;;  %3794 = vmatprep.subr.bf16.mxu0 %v7196_v56  ;;  %v3863_v55 = vld [vmem:[#allocation19 + $0x160] sm:$0xff]  ;;  %v3860_v56 = vld [vmem:[#allocation19 + $0x148] sm:$0xff] }
 0x789   :  { %3754 = vmatpush1.bf16.msra.mxu1 %v7191_v57  ;;  %3795 = vmatpush1.bf16.msra.mxu0 %v7194_v58  ;;  %v3864_v57 = vld [vmem:[#allocation19 + $0x168] sm:$0xff]  ;;  %v6240_v58 = vcombine.low %v3851_v45, %v3855_v46  ;;  %v3903_v45 = vld [vmem:[#allocation19 + $0x2a0] sm:$0xff] }
 0x78a   :  { %3755 = vmatprep.subr.bf16.mxu1 %v7199_v59  ;;  %3796 = vmatprep.subr.bf16.mxu0 %v7202_v60  ;;  %v6242_v59 = vcombine.low %v3852_v47, %v3856_v50  ;;  %v6249_v60 = vcombine.high %v3859_v54, %v3863_v55  ;;  %v3900_v46 = vld [vmem:[#allocation19 + $0x288] sm:$0xff]  ;;  %v6280_v50 = vcombine.low %v3891_v32, %v3895_v33 }
 0x78b   :  { %v3904_v47 = vld [vmem:[#allocation19 + $0x2a8] sm:$0xff] }
 0x78d   :  { %3756 = vmatpush1.bf16.msra.mxu1 %v7197_v63  ;;  %3797 = vmatpush1.bf16.msra.mxu0 %v7200_v2  ;;  %v6251_v63 = vcombine.high %v3860_v56, %v3864_v57  ;;  %v3867_v2 = vld [vmem:[#allocation19 + $0x180] sm:$0xff] }
 0x78e   :  { %3757 = vmatprep.subr.bf16.mxu1 %v7205_v3  ;;  %3798 = vmatprep.subr.bf16.mxu0 %v7208_v30  ;;  %v3871_v3 = vld [vmem:[#allocation19 + $0x1a0] sm:$0xff]  ;;  %v3868_v30 = vld [vmem:[#allocation19 + $0x188] sm:$0xff] }
 0x791   :  { %3758 = vmatpush1.bf16.msra.mxu1 %v7203_v31  ;;  %3799 = vmatpush1.bf16.msra.mxu0 %v7206_v8  ;;  %v3872_v31 = vld [vmem:[#allocation19 + $0x1a8] sm:$0xff]  ;;  %v6248_v8 = vcombine.low %v3859_v54, %v3863_v55  ;;  %v3911_v54 = vld [vmem:[#allocation19 + $0x2e0] sm:$0xff] }
 0x792   :  { %3759 = vmatprep.subr.bf16.mxu1 %v7211_v9  ;;  %3800 = vmatprep.subr.bf16.mxu0 %v7214_v10  ;;  %v6250_v9 = vcombine.low %v3860_v56, %v3864_v57  ;;  %v6257_v10 = vcombine.high %v3867_v2, %v3871_v3  ;;  %v6259_v11 = vcombine.high %v3868_v30, %v3872_v31  ;;  %v3908_v55 = vld [vmem:[#allocation19 + $0x2c8] sm:$0xff] }
 0x793   :  { %v3912_v56 = vld [vmem:[#allocation19 + $0x2e8] sm:$0xff] }
 0x795   :  { %3760 = vmatpush1.bf16.msra.mxu1 %v7209_v15  ;;  %3801 = vmatpush1.bf16.msra.mxu0 %v7212_v48  ;;  %v3880_v15 = vld [vmem:[#allocation19 + $0x1e8] sm:$0xff]  ;;  %v6256_v48 = vcombine.low %v3867_v2, %v3871_v3  ;;  %v3919_v2 = vld [vmem:[#allocation19 + $0x320] sm:$0xff] }
 0x796   :  { %5397 = vmatprep.subr.bf16.mxu1 %v6209_v18  ;;  %5479 = vmatprep.subr.bf16.mxu0 %v6211_v20  ;;  %v6258_v18 = vcombine.low %v3868_v30, %v3872_v31  ;;  %v6265_v20 = vcombine.high %v3875_v12, %v3879_v13  ;;  %v6267_v21 = vcombine.high %v3876_v14, %v3880_v15  ;;  %v3916_v3 = vld [vmem:[#allocation19 + $0x308] sm:$0xff] }
 0x797   :  { %v3920_v30 = vld [vmem:[#allocation19 + $0x328] sm:$0xff] }
 0x798   :  { %3762 = vmatmul.mubr.bf16.vlgmr.msra.gmra.mrb[20].mxu1 %v7893_v5  ;;  %3803 = vmatmul.mubr.bf16.vlgmr.msra.gmra.mrb[24].mxu0 %v7895_v6  ;;  %v6233_v5 = vcombine.high %v3843_v39, %v3847_v40  ;;  %v6235_v6 = vcombine.high %v3844_v41, %v3848_v42  ;;  %v6272_v39 = vcombine.low %v3883_v52, %v3887_v23  ;;  %v7909_v42 = vld [vmem:[#allocation19 + $0x428] sm:$0xff] }
 0x799   :  { %5398 = vmatpush1.bf16.msra.mxu1 %v6208_v25  ;;  %5480 = vmatpush1.bf16.msra.mxu0 %v6210_v26  ;;  %v3888_v25 = vld [vmem:[#allocation19 + $0x228] sm:$0xff]  ;;  %v6264_v26 = vcombine.low %v3875_v12, %v3879_v13  ;;  %v3927_v12 = vld [vmem:[#allocation19 + $0x360] sm:$0xff] }
 0x79a   :  { %5399 = vmatprep.subr.bf16.mxu1 %v6217_v27  ;;  %5481 = vmatprep.subr.bf16.mxu0 %v6219_v28  ;;  %v6266_v27 = vcombine.low %v3876_v14, %v3880_v15  ;;  %v6273_v28 = vcombine.high %v3883_v52, %v3887_v23  ;;  %v6275_v29 = vcombine.high %v3884_v24, %v3888_v25  ;;  %v3924_v13 = vld [vmem:[#allocation19 + $0x348] sm:$0xff]  ;;  %v3935_v52 = vld [vmem:[#allocation19 + $0x3a0] sm:$0xff] }
 0x79b   :  { %v6274_v40 = vcombine.low %v3884_v24, %v3888_v25  ;;  %v3928_v14 = vld [vmem:[#allocation19 + $0x368] sm:$0xff] }
 0x79c   :  { %v3932_v23 = vld [vmem:[#allocation19 + $0x388] sm:$0xff] }
 0x79d   :  { %5400 = vmatpush1.bf16.msra.mxu1 %v6216_v35  ;;  %5482 = vmatpush1.bf16.msra.mxu0 %v6218_v36  ;;  %v3896_v35 = vld [vmem:[#allocation19 + $0x268] sm:$0xff]  ;;  %v7901_v36 = vld [vmem:[#allocation19 + $0x400] sm:$0xff] }
 0x79e   :  { %5401 = vmatprep.subr.bf16.mxu1 %v6225_v37  ;;  %5483 = vmatprep.subr.bf16.mxu0 %v6227_v38  ;;  %v7903_v37 = vld [vmem:[#allocation19 + $0x420] sm:$0xff]  ;;  %v7905_v38 = vld [vmem:[#allocation19 + $0x408] sm:$0xff] }
 0x79f   :  { %v6336_v41 = vcombine.low %v7901_v36, %v7903_v37  ;;  %v3936_v24 = vld [vmem:[#allocation19 + $0x3a8] sm:$0xff] }
 0x7a1   :  { %5402 = vmatpush1.bf16.msra.mxu1 %v6224_v43  ;;  %5484 = vmatpush1.bf16.msra.mxu0 %v6226_v44  ;;  %v6281_v43 = vcombine.high %v3891_v32, %v3895_v33  ;;  %v6283_v44 = vcombine.high %v3892_v34, %v3896_v35  ;;  %v3943_v32 = vld [vmem:[#allocation19 + $0x3e0] sm:$0xff]  ;;  %v3940_v33 = vld [vmem:[#allocation19 + $0x3c8] sm:$0xff] }
 0x7a2   :  { %5403 = vmatprep.subr.bf16.mxu1 %v6233_v5  ;;  %5485 = vmatprep.subr.bf16.mxu0 %v6235_v6  ;;  %v3899_v5 = vld [vmem:[#allocation19 + $0x280] sm:$0xff]  ;;  %v6338_v6 = vcombine.low %v7905_v38, %v7909_v42 }
 0x7a3   :  { %v6288_v57 = vcombine.low %v3899_v5, %v3903_v45 }
 0x7a5   :  { %5404 = vmatpush1.bf16.msra.mxu1 %v6232_v62  ;;  %5486 = vmatpush1.bf16.msra.mxu0 %v6234_v51  ;;  %v6282_v62 = vcombine.low %v3892_v34, %v3896_v35  ;;  %v6289_v51 = vcombine.high %v3899_v5, %v3903_v45  ;;  %v3944_v34 = vld [vmem:[#allocation19 + $0x3e8] sm:$0xff]  ;;  %v6337_v45 = vcombine.high %v7901_v36, %v7903_v37 }
 0x7a6   :  { %5405 = vmatprep.subr.bf16.mxu1 %v6241_v0  ;;  %5487 = vmatprep.subr.bf16.mxu0 %v6243_v53  ;;  %v6291_v0 = vcombine.high %v3900_v46, %v3904_v47  ;;  %v3907_v53 = vld [vmem:[#allocation19 + $0x2c0] sm:$0xff]  ;;  %v6330_v5 = vcombine.low %v3940_v33, %v3944_v34 }
 0x7a7   :  { %v6296_v31 = vcombine.low %v3907_v53, %v3911_v54 }
 0x7a9   :  { %5406 = vmatpush1.bf16.msra.mxu1 %v6240_v58  ;;  %5488 = vmatpush1.bf16.msra.mxu0 %v6242_v59  ;;  %v6290_v58 = vcombine.low %v3900_v46, %v3904_v47  ;;  %v6297_v59 = vcombine.high %v3907_v53, %v3911_v54  ;;  %v6339_v46 = vcombine.high %v7905_v38, %v7909_v42  ;;  %v7920_v47 = vld [vmem:[%s8015_s16] sm:$0xf]  ;;  %v3979_v38 = vld [vmem:[#allocation19 + $0x500] sm:$0xff]  ;;  %v3980_v42 = vld [vmem:[#allocation19 + $0x508] sm:$0xff] }
 0x7aa   :  { %5407 = vmatprep.subr.bf16.mxu1 %v6249_v60  ;;  %5489 = vmatprep.subr.bf16.mxu0 %v6251_v63  ;;  %v6299_v60 = vcombine.high %v3908_v55, %v3912_v56  ;;  %v3915_v63 = vld [vmem:[#allocation19 + $0x300] sm:$0xff] }
 0x7ab   :  { %v6304_v15 = vcombine.low %v3915_v63, %v3919_v2 }
 0x7ad   :  { %5408 = vmatpush1.bf16.msra.mxu1 %v6248_v8  ;;  %5490 = vmatpush1.bf16.msra.mxu0 %v6250_v9  ;;  %v6298_v8 = vcombine.low %v3908_v55, %v3912_v56  ;;  %v6305_v9 = vcombine.high %v3915_v63, %v3919_v2 }
 0x7ae   :  { %5409 = vmatprep.subr.bf16.mxu1 %v6257_v10  ;;  %5491 = vmatprep.subr.bf16.mxu0 %v6259_v11  ;;  %v6307_v10 = vcombine.high %v3916_v3, %v3920_v30  ;;  %v3923_v11 = vld [vmem:[#allocation19 + $0x340] sm:$0xff] }
 0x7af   :  { %v6312_v25 = vcombine.low %v3923_v11, %v3927_v12 }
 0x7b1   :  { %5410 = vmatpush1.bf16.msra.mxu1 %v6256_v48  ;;  %5492 = vmatpush1.bf16.msra.mxu0 %v6258_v18  ;;  %v6306_v48 = vcombine.low %v3916_v3, %v3920_v30  ;;  %v6313_v18 = vcombine.high %v3923_v11, %v3927_v12  ;;  %v3955_v30 = vld [vmem:[#allocation19 + $0x440] sm:$0xff] }
 0x7b2   :  { %5411 = vmatprep.subr.bf16.mxu1 %v6265_v20  ;;  %5493 = vmatprep.subr.bf16.mxu0 %v6267_v21  ;;  %v6315_v20 = vcombine.high %v3924_v13, %v3928_v14  ;;  %v3931_v21 = vld [vmem:[#allocation19 + $0x380] sm:$0xff] }
 0x7b3   :  { %v6320_v35 = vcombine.low %v3931_v21, %v3935_v52 }
 0x7b5   :  { %5412 = vmatpush1.bf16.msra.mxu1 %v6264_v26  ;;  %5494 = vmatpush1.bf16.msra.mxu0 %v6266_v27  ;;  %v6314_v26 = vcombine.low %v3924_v13, %v3928_v14  ;;  %v6321_v27 = vcombine.high %v3931_v21, %v3935_v52 }
 0x7b6   :  { %5413 = vmatprep.subr.bf16.mxu1 %v6273_v28  ;;  %5495 = vmatprep.subr.bf16.mxu0 %v6275_v29  ;;  %v6323_v28 = vcombine.high %v3932_v23, %v3936_v24  ;;  %v3939_v29 = vld [vmem:[#allocation19 + $0x3c0] sm:$0xff] }
 0x7b9   :  { %5414 = vmatpush1.bf16.msra.mxu1 %v6272_v39  ;;  %5496 = vmatpush1.bf16.msra.mxu0 %v6274_v40  ;;  %v6322_v39 = vcombine.low %v3932_v23, %v3936_v24  ;;  %v6329_v40 = vcombine.high %v3939_v29, %v3943_v32  ;;  %v3971_v23 = vld [vmem:[#allocation19 + $0x4c0] sm:$0xff] }
 0x7ba   :  { %5415 = vmatprep.subr.bf16.mxu1 %v6281_v43  ;;  %5497 = vmatprep.subr.bf16.mxu0 %v6283_v44  ;;  %v6331_v43 = vcombine.high %v3940_v33, %v3944_v34  ;;  %v6328_v44 = vcombine.low %v3939_v29, %v3943_v32  ;;  %v3975_v24 = vld [vmem:[#allocation19 + $0x4e0] sm:$0xff] }
 0x7bb   :  { %v6361_v36 = vcombine.high %v3971_v23, %v3975_v24  ;;  %v6360_v29 = vcombine.low %v3971_v23, %v3975_v24 }
 0x7bd   :  { %5416 = vmatpush1.bf16.msra.mxu1 %v6280_v50  ;;  %5498 = vmatpush1.bf16.msra.mxu0 %v6282_v62  ;;  %v2990_v50 = vrot.slane %v7920_v47, %v7804_v17  ;;  %v2994_v62 = vrot.slane %v7920_v47, %v7810_v19 }
 0x7be   :  { %5417 = vmatprep.subr.bf16.mxu1 %v6289_v51  ;;  %5499 = vmatprep.subr.bf16.mxu0 %v6291_v0 }
 0x7c1   :  { %5418 = vmatpush1.bf16.msra.mxu1 %v6288_v57  ;;  %5500 = vmatpush1.bf16.msra.mxu0 %v6290_v58 }
 0x7c2   :  { %5419 = vmatprep.subr.bf16.mxu1 %v6297_v59  ;;  %5501 = vmatprep.subr.bf16.mxu0 %v6299_v60 }
 0x7c5   :  { %5420 = vmatpush1.bf16.msra.mxu1 %v6296_v31  ;;  %5502 = vmatpush1.bf16.msra.mxu0 %v6298_v8  ;;  %v3959_v8 = vld [vmem:[#allocation19 + $0x460] sm:$0xff] }
 0x7c6   :  { %5421 = vmatprep.subr.bf16.mxu1 %v6305_v9  ;;  %5503 = vmatprep.subr.bf16.mxu0 %v6307_v10  ;;  %v3956_v9 = vld [vmem:[#allocation19 + $0x448] sm:$0xff]  ;;  %v6345_v13 = vcombine.high %v3955_v30, %v3959_v8 }
 0x7c7   :  { %v3960_v10 = vld [vmem:[#allocation19 + $0x468] sm:$0xff] }
 0x7c8   :  { %v6347_v14 = vcombine.high %v3956_v9, %v3960_v10 }
 0x7c9   :  { %5422 = vmatpush1.bf16.msra.mxu1 %v6304_v15  ;;  %5504 = vmatpush1.bf16.msra.mxu0 %v6306_v48  ;;  %v3963_v15 = vld [vmem:[#allocation19 + $0x480] sm:$0xff] }
 0x7ca   :  { %5423 = vmatprep.subr.bf16.mxu1 %v6313_v18  ;;  %5505 = vmatprep.subr.bf16.mxu0 %v6315_v20  ;;  %v3967_v48 = vld [vmem:[#allocation19 + $0x4a0] sm:$0xff]  ;;  %v3964_v18 = vld [vmem:[#allocation19 + $0x488] sm:$0xff]  ;;  %v6346_v20 = vcombine.low %v3956_v9, %v3960_v10 }
 0x7cb   :  { %v6353_v21 = vcombine.high %v3963_v15, %v3967_v48  ;;  %v4012_v9 = vld [vmem:[#allocation19 + $0x608] sm:$0xff] }
 0x7cc   :  { %v4016_v10 = vld [vmem:[#allocation19 + $0x628] sm:$0xff] }
 0x7cd   :  { %5424 = vmatpush1.bf16.msra.mxu1 %v6312_v25  ;;  %5506 = vmatpush1.bf16.msra.mxu0 %v6314_v26  ;;  %v3972_v25 = vld [vmem:[#allocation19 + $0x4c8] sm:$0xff] }
 0x7ce   :  { %5425 = vmatprep.subr.bf16.mxu1 %v6321_v27  ;;  %5507 = vmatprep.subr.bf16.mxu0 %v6323_v28  ;;  %v3976_v26 = vld [vmem:[#allocation19 + $0x4e8] sm:$0xff]  ;;  %v6352_v27 = vcombine.low %v3963_v15, %v3967_v48  ;;  %v6403_v48 = vcombine.high %v4012_v9, %v4016_v10 }
 0x7cf   :  { %v6363_v37 = vcombine.high %v3972_v25, %v3976_v26  ;;  %v6362_v32 = vcombine.low %v3972_v25, %v3976_v26  ;;  %v4027_v25 = vld [vmem:[#allocation19 + $0x680] sm:$0xff] }
 0x7d0   :  { %v4031_v26 = vld [vmem:[#allocation19 + $0x6a0] sm:$0xff] }
 0x7d1   :  { %5426 = vmatpush1.bf16.msra.mxu1 %v6320_v35  ;;  %5508 = vmatpush1.bf16.msra.mxu0 %v6322_v39  ;;  %v3987_v35 = vld [vmem:[#allocation19 + $0x540] sm:$0xff] }
 0x7d2   :  { %5427 = vmatprep.subr.bf16.mxu1 %v6329_v40  ;;  %5509 = vmatprep.subr.bf16.mxu0 %v6331_v43  ;;  %v3991_v39 = vld [vmem:[#allocation19 + $0x560] sm:$0xff]  ;;  %v3988_v40 = vld [vmem:[#allocation19 + $0x548] sm:$0xff] }
 0x7d3   :  { %v3992_v43 = vld [vmem:[#allocation19 + $0x568] sm:$0xff] }
 0x7d5   :  { %5428 = vmatpush1.bf16.msra.mxu1 %v6328_v44  ;;  %5510 = vmatpush1.bf16.msra.mxu0 %v6330_v5 }
 0x7d6   :  { %5438 = vmatprep.subr.bf16.mxu1 %v6337_v45  ;;  %5520 = vmatprep.subr.bf16.mxu0 %v6339_v46  ;;  %v6377_v45 = vcombine.high %v3987_v35, %v3991_v39  ;;  %v6379_v46 = vcombine.high %v3988_v40, %v3992_v43 }
 0x82b   :  { %v3681_v51 = vpop.f32.mrb[16].mxu1  ;;  %v3722_v0 = vpop.f32.mrb[20].mxu0 }
 0x82c   :  { %v3682_v53 = vadd.f32 %v3681_v51, %v2990_v50  ;;  %v3683_v54 = vpop.f32.mrb[17].mxu1  ;;  %v3724_v55 = vpop.f32.mrb[21].mxu0  ;;  %v3995_v50 = vld [vmem:[#allocation19 + $0x580] sm:$0xff]  ;;  %v3996_v51 = vld [vmem:[#allocation19 + $0x588] sm:$0xff] }
 0x82d   :  { %v3684_v56 = vadd.f32 %v3683_v54, %v2994_v62  ;;  %v3685_v57 = vpop.f32.mrb[18].mxu1  ;;  %v3726_v58 = vpop.f32.mrb[22].mxu0  ;;  %v3999_v62 = vld [vmem:[#allocation19 + $0x5a0] sm:$0xff]  ;;  %v6378_v54 = vcombine.low %v3988_v40, %v3992_v43 }
 0x82e   :  { %v3723_v59 = vadd.f32 %v3722_v0, %v3682_v53  ;;  %v3686_v60 = vpop.f32.mrb[19].mxu1  ;;  %v3727_v63 = vpop.f32.mrb[23].mxu0  ;;  %v4000_v0 = vld [vmem:[#allocation19 + $0x5a8] sm:$0xff]  ;;  %v6376_v53 = vcombine.low %v3987_v35, %v3991_v39  ;;  %v4003_v57 = vld [vmem:[#allocation19 + $0x5c0] sm:$0xff] }
 0x82f   :  { %v3725_v2 = vadd.f32 %v3724_v55, %v3684_v56  ;;  %v6385_v55 = vcombine.high %v3995_v50, %v3999_v62  ;;  %v6387_v56 = vcombine.high %v3996_v51, %v4000_v0  ;;  %v4007_v58 = vld [vmem:[#allocation19 + $0x5e0] sm:$0xff]  ;;  %v4008_v60 = vld [vmem:[#allocation19 + $0x5e8] sm:$0xff]  ;;  %v6384_v63 = vcombine.low %v3995_v50, %v3999_v62 }
 0x830   :  { %v3811_v3 = vadd.f32 %v3723_v59, %v7864_v1  ;;  %v3968_v1 = vld [vmem:[#allocation19 + $0x4a8] sm:$0xff]  ;;  %v4043_v40 = vld [vmem:[#allocation19 + $0x700] sm:$0xff] }
 0x831   :  { %v3812_v31 = vadd.f32 %v3725_v2, %v7866_v4  ;;  %v6344_v4 = vcombine.low %v3955_v30, %v3959_v8  ;;  %v6355_v52 = vcombine.high %v3964_v18, %v3968_v1  ;;  %v6354_v28 = vcombine.low %v3964_v18, %v3968_v1  ;;  %v4004_v59 = vld [vmem:[#allocation19 + $0x5c8] sm:$0xff]  ;;  %v4015_v8 = vld [vmem:[#allocation19 + $0x620] sm:$0xff] }
 0x832   :  { %v7930_v12 = vpack.c.bf16 %v3811_v3, %v3811_v3  ;;  %v6386_v2 = vcombine.low %v3996_v51, %v4000_v0  ;;  %v6393_v3 = vcombine.high %v4003_v57, %v4007_v58  ;;  %v6395_v30 = vcombine.high %v4004_v59, %v4008_v60  ;;  %v4019_v18 = vld [vmem:[#allocation19 + $0x640] sm:$0xff] }
 0x833   :  { %v7928_v11 = vpack.c.bf16 %v3812_v31, %v3812_v31  ;;  %v4011_v31 = vld [vmem:[#allocation19 + $0x600] sm:$0xff] }
 0x834   :  { %v6401_v15 = vcombine.high %v4011_v31, %v4015_v8  ;;  %v4023_v1 = vld [vmem:[#allocation19 + $0x660] sm:$0xff] }
 0x835   :  { %5429 = vmatprep.mubr.bf16.mxu1 %v7928_v11  ;;  %5511 = vmatprep.mubr.bf16.mxu0 %v7928_v11  ;;  %v6409_v23 = vcombine.high %v4019_v18, %v4023_v1  ;;  %v4047_v43 = vld [vmem:[#allocation19 + $0x720] sm:$0xff] }
 0x836   :  { %5430 = vmatmul.mubr.bf16.vlgmr.msra.gmra.mrb[24].mxu1 %v7930_v12  ;;  %5512 = vmatmul.mubr.bf16.vlgmr.msra.gmra.mrb[28].mxu0 %v7930_v12  ;;  %v6433_v50 = vcombine.high %v4043_v40, %v4047_v43  ;;  %v4051_v51 = vld [vmem:[#allocation19 + $0x740] sm:$0xff] }
 0x837   :  { %5439 = vmatpush1.bf16.msra.mxu1 %v6336_v41  ;;  %5521 = vmatpush1.bf16.msra.mxu0 %v6338_v6  ;;  %v3983_v41 = vld [vmem:[#allocation19 + $0x520] sm:$0xff]  ;;  %v3984_v6 = vld [vmem:[#allocation19 + $0x528] sm:$0xff] }
 0x838   :  { %5440 = vmatprep.subr.bf16.mxu1 %v6345_v13  ;;  %5522 = vmatprep.subr.bf16.mxu0 %v6347_v14  ;;  %v6369_v33 = vcombine.high %v3979_v38, %v3983_v41  ;;  %v6371_v34 = vcombine.high %v3980_v42, %v3984_v6  ;;  %v6368_v44 = vcombine.low %v3979_v38, %v3983_v41  ;;  %v4055_v0 = vld [vmem:[#allocation19 + $0x760] sm:$0xff] }
 0x839   :  { %v6370_v5 = vcombine.low %v3980_v42, %v3984_v6  ;;  %v6392_v13 = vcombine.low %v4003_v57, %v4007_v58  ;;  %v6394_v14 = vcombine.low %v4004_v59, %v4008_v60  ;;  %v6417_v38 = vcombine.high %v4027_v25, %v4031_v26  ;;  %v4035_v42 = vld [vmem:[#allocation19 + $0x6c0] sm:$0xff] }
 0x83a   :  { %v4039_v6 = vld [vmem:[#allocation19 + $0x6e0] sm:$0xff]  ;;  %v6441_v57 = vcombine.high %v4051_v51, %v4055_v0 }
 0x83b   :  { %5441 = vmatpush1.bf16.msra.mxu1 %v6344_v4  ;;  %5523 = vmatpush1.bf16.msra.mxu0 %v6346_v20  ;;  %v4020_v4 = vld [vmem:[#allocation19 + $0x648] sm:$0xff]  ;;  %v6425_v35 = vcombine.high %v4035_v42, %v4039_v6  ;;  %v4059_v59 = vld [vmem:[#allocation19 + $0x780] sm:$0xff] }
 0x83c   :  { %5442 = vmatprep.subr.bf16.mxu1 %v6353_v21  ;;  %5524 = vmatprep.subr.bf16.mxu0 %v6355_v52  ;;  %v4024_v20 = vld [vmem:[#allocation19 + $0x668] sm:$0xff]  ;;  %v6400_v21 = vcombine.low %v4011_v31, %v4015_v8  ;;  %v6402_v52 = vcombine.low %v4012_v9, %v4016_v10  ;;  %v4063_v60 = vld [vmem:[#allocation19 + $0x7a0] sm:$0xff]  ;;  %v2998_v31 = vrot.slane %v7920_v47, %v7877_v61 }
 0x83d   :  { %v6411_v24 = vcombine.high %v4020_v4, %v4024_v20  ;;  %v6449_v8 = vcombine.high %v4059_v59, %v4063_v60  ;;  %v4067_v10 = vld [vmem:[#allocation19 + $0x7c0] sm:$0xff] }
 0x83f   :  { %5443 = vmatpush1.bf16.msra.mxu1 %v6352_v27  ;;  %5525 = vmatpush1.bf16.msra.mxu0 %v6354_v28  ;;  %v4028_v27 = vld [vmem:[#allocation19 + $0x688] sm:$0xff] }
 0x840   :  { %5444 = vmatprep.subr.bf16.mxu1 %v6361_v36  ;;  %5526 = vmatprep.subr.bf16.mxu0 %v6363_v37  ;;  %v4032_v28 = vld [vmem:[#allocation19 + $0x6a8] sm:$0xff]  ;;  %v6408_v36 = vcombine.low %v4019_v18, %v4023_v1  ;;  %v6410_v37 = vcombine.low %v4020_v4, %v4024_v20  ;;  %v6448_v4 = vcombine.low %v4059_v59, %v4063_v60  ;;  %v3845_v60 = vld [vmem:[#allocation19 + $0xd0] sm:$0xff] }
 0x841   :  { %v6419_v41 = vcombine.high %v4028_v27, %v4032_v28 }
 0x843   :  { %5445 = vmatpush1.bf16.msra.mxu1 %v6360_v29  ;;  %5527 = vmatpush1.bf16.msra.mxu0 %v6362_v32  ;;  %v4036_v29 = vld [vmem:[#allocation19 + $0x6c8] sm:$0xff] }
 0x844   :  { %5446 = vmatprep.subr.bf16.mxu1 %v6369_v33  ;;  %5528 = vmatprep.subr.bf16.mxu0 %v6371_v34  ;;  %v4040_v32 = vld [vmem:[#allocation19 + $0x6e8] sm:$0xff]  ;;  %v6416_v33 = vcombine.low %v4027_v25, %v4031_v26  ;;  %v6418_v34 = vcombine.low %v4028_v27, %v4032_v28  ;;  %v3821_v26 = vld [vmem:[#allocation19 + $0x10] sm:$0xff] }
 0x845   :  { %v6427_v39 = vcombine.high %v4036_v29, %v4040_v32 }
 0x847   :  { %5447 = vmatpush1.bf16.msra.mxu1 %v6368_v44  ;;  %5529 = vmatpush1.bf16.msra.mxu0 %v6370_v5  ;;  %v4044_v44 = vld [vmem:[#allocation19 + $0x708] sm:$0xff] }
 0x848   :  { %5448 = vmatprep.subr.bf16.mxu1 %v6377_v45  ;;  %5530 = vmatprep.subr.bf16.mxu0 %v6379_v46  ;;  %v4048_v5 = vld [vmem:[#allocation19 + $0x728] sm:$0xff]  ;;  %v6424_v45 = vcombine.low %v4035_v42, %v4039_v6  ;;  %v6426_v46 = vcombine.low %v4036_v29, %v4040_v32 }
 0x849   :  { %v6435_v62 = vcombine.high %v4044_v44, %v4048_v5 }
 0x84b   :  { %5449 = vmatpush1.bf16.msra.mxu1 %v6376_v53  ;;  %5531 = vmatpush1.bf16.msra.mxu0 %v6378_v54  ;;  %v4052_v53 = vld [vmem:[#allocation19 + $0x748] sm:$0xff] }
 0x84c   :  { %5450 = vmatprep.subr.bf16.mxu1 %v6385_v55  ;;  %5532 = vmatprep.subr.bf16.mxu0 %v6387_v56  ;;  %v4056_v54 = vld [vmem:[#allocation19 + $0x768] sm:$0xff]  ;;  %v6432_v55 = vcombine.low %v4043_v40, %v4047_v43  ;;  %v6434_v56 = vcombine.low %v4044_v44, %v4048_v5  ;;  %v3829_v43 = vld [vmem:[#allocation19 + $0x50] sm:$0xff]  ;;  %v3830_v5 = vld [vmem:[#allocation19 + $0x58] sm:$0xff] }
 0x84d   :  { %v6443_v58 = vcombine.high %v4052_v53, %v4056_v54  ;;  %v3833_v44 = vld [vmem:[#allocation19 + $0x70] sm:$0xff] }
 0x84f   :  { %5451 = vmatpush1.bf16.msra.mxu1 %v6384_v63  ;;  %5533 = vmatpush1.bf16.msra.mxu0 %v6386_v2  ;;  %v4060_v63 = vld [vmem:[#allocation19 + $0x788] sm:$0xff] }
 0x850   :  { %5452 = vmatprep.subr.bf16.mxu1 %v6393_v3  ;;  %5534 = vmatprep.subr.bf16.mxu0 %v6395_v30  ;;  %v4064_v2 = vld [vmem:[#allocation19 + $0x7a8] sm:$0xff]  ;;  %v6440_v3 = vcombine.low %v4051_v51, %v4055_v0  ;;  %v6442_v30 = vcombine.low %v4052_v53, %v4056_v54  ;;  %v3837_v0 = vld [vmem:[#allocation19 + $0x90] sm:$0xff]  ;;  %v3838_v54 = vld [vmem:[#allocation19 + $0x98] sm:$0xff] }
 0x851   :  { %v6451_v9 = vcombine.high %v4060_v63, %v4064_v2  ;;  %v6450_v20 = vcombine.low %v4060_v63, %v4064_v2  ;;  %v3841_v53 = vld [vmem:[#allocation19 + $0xb0] sm:$0xff]  ;;  %v3846_v2 = vld [vmem:[#allocation19 + $0xd8] sm:$0xff] }
 0x852   :  { %v3849_v63 = vld [vmem:[#allocation19 + $0xf0] sm:$0xff] }
 0x853   :  { %5453 = vmatpush1.bf16.msra.mxu1 %v6392_v13  ;;  %5535 = vmatpush1.bf16.msra.mxu0 %v6394_v14  ;;  %v3002_v13 = vrot.slane %v7920_v47, %v7854_v49  ;;  %v4071_v14 = vld [vmem:[#allocation19 + $0x7e0] sm:$0xff] }
 0x854   :  { %5454 = vmatprep.subr.bf16.mxu1 %v6401_v15  ;;  %5536 = vmatprep.subr.bf16.mxu0 %v6403_v48  ;;  %v4068_v15 = vld [vmem:[#allocation19 + $0x7c8] sm:$0xff]  ;;  %v6456_v32 = vcombine.low %v4067_v10, %v4071_v14 }
 0x855   :  { %v4072_v48 = vld [vmem:[#allocation19 + $0x7e8] sm:$0xff] }
 0x856   :  { %v6459_v25 = vcombine.high %v4068_v15, %v4072_v48 }
 0x857   :  { %5455 = vmatpush1.bf16.msra.mxu1 %v6400_v21  ;;  %5537 = vmatpush1.bf16.msra.mxu0 %v6402_v52 }
 0x858   :  { %5456 = vmatprep.subr.bf16.mxu1 %v6409_v23  ;;  %5538 = vmatprep.subr.bf16.mxu0 %v6411_v24  ;;  %v6457_v24 = vcombine.high %v4067_v10, %v4071_v14  ;;  %v3853_v10 = vld [vmem:[#allocation19 + $0x110] sm:$0xff]  ;;  %v3858_v14 = vld [vmem:[#allocation19 + $0x138] sm:$0xff] }
 0x85b   :  { %5457 = vmatpush1.bf16.msra.mxu1 %v6408_v36  ;;  %5539 = vmatpush1.bf16.msra.mxu0 %v6410_v37  ;;  %v3825_v36 = vld [vmem:[#allocation19 + $0x30] sm:$0xff]  ;;  %v3822_v37 = vld [vmem:[#allocation19 + $0x18] sm:$0xff] }
 0x85c   :  { %5458 = vmatprep.subr.bf16.mxu1 %v6417_v38  ;;  %5540 = vmatprep.subr.bf16.mxu0 %v6419_v41  ;;  %v3826_v38 = vld [vmem:[#allocation19 + $0x38] sm:$0xff] }
 0x85d   :  { %v6214_v51 = vcombine.low %v3822_v37, %v3826_v38 }
 0x85f   :  { %5459 = vmatpush1.bf16.msra.mxu1 %v6416_v33  ;;  %5541 = vmatpush1.bf16.msra.mxu0 %v6418_v34  ;;  %v6458_v33 = vcombine.low %v4068_v15, %v4072_v48  ;;  %v6236_v15 = vcombine.low %v3845_v60, %v3849_v63 }
 0x860   :  { %5460 = vmatprep.subr.bf16.mxu1 %v6425_v35  ;;  %5542 = vmatprep.subr.bf16.mxu0 %v6427_v39  ;;  %v6213_v35 = vcombine.high %v3821_v26, %v3825_v36  ;;  %v6215_v39 = vcombine.high %v3822_v37, %v3826_v38 }
 0x863   :  { %5461 = vmatpush1.bf16.msra.mxu1 %v6424_v45  ;;  %5543 = vmatpush1.bf16.msra.mxu0 %v6426_v46  ;;  %v3834_v45 = vld [vmem:[#allocation19 + $0x78] sm:$0xff] }
 0x864   :  { %5462 = vmatprep.subr.bf16.mxu1 %v6433_v50  ;;  %5544 = vmatprep.subr.bf16.mxu0 %v6435_v62  ;;  %v6212_v50 = vcombine.low %v3821_v26, %v3825_v36  ;;  %v3874_v36 = vld [vmem:[#allocation19 + $0x1b8] sm:$0xff] }
 0x867   :  { %5463 = vmatpush1.bf16.msra.mxu1 %v6432_v55  ;;  %5545 = vmatpush1.bf16.msra.mxu0 %v6434_v56  ;;  %v3842_v55 = vld [vmem:[#allocation19 + $0xb8] sm:$0xff]  ;;  %v6220_v56 = vcombine.low %v3829_v43, %v3833_v44 }
 0x868   :  { %5464 = vmatprep.subr.bf16.mxu1 %v6441_v57  ;;  %5546 = vmatprep.subr.bf16.mxu0 %v6443_v58  ;;  %v6222_v57 = vcombine.low %v3830_v5, %v3834_v45  ;;  %v6229_v58 = vcombine.high %v3837_v0, %v3841_v53  ;;  %v6231_v59 = vcombine.high %v3838_v54, %v3842_v55 }
 0x86b   :  { %v3763_v18 = vpop.f32.mrb[20].mxu1  ;;  %v3804_v1 = vpop.f32.mrb[24].mxu0  ;;  %5465 = vmatpush1.bf16.msra.mxu1 %v6440_v3  ;;  %5547 = vmatpush1.bf16.msra.mxu0 %v6442_v30  ;;  %v3850_v3 = vld [vmem:[#allocation19 + $0xf8] sm:$0xff]  ;;  %v6228_v30 = vcombine.low %v3837_v0, %v3841_v53  ;;  %v3893_v0 = vld [vmem:[#allocation19 + $0x250] sm:$0xff] }
 0x86c   :  { %v3764_v21 = vadd.f32 %v3763_v18, %v2998_v31  ;;  %v3765_v52 = vpop.f32.mrb[21].mxu1  ;;  %v3806_v23 = vpop.f32.mrb[25].mxu0  ;;  %5466 = vmatprep.subr.bf16.mxu1 %v6449_v8  ;;  %5548 = vmatprep.subr.bf16.mxu0 %v6451_v9  ;;  %v6230_v31 = vcombine.low %v3838_v54, %v3842_v55  ;;  %v6237_v8 = vcombine.high %v3845_v60, %v3849_v63  ;;  %v3897_v53 = vld [vmem:[#allocation19 + $0x270] sm:$0xff]  ;;  %v3894_v54 = vld [vmem:[#allocation19 + $0x258] sm:$0xff] }
 0x86d   :  { %v3766_v27 = vadd.f32 %v3765_v52, %v3002_v13  ;;  %v3767_v28 = vpop.f32.mrb[22].mxu1  ;;  %v3808_v47 = vpop.f32.mrb[26].mxu0  ;;  %v6239_v9 = vcombine.high %v3846_v2, %v3850_v3  ;;  %v3857_v13 = vld [vmem:[#allocation19 + $0x130] sm:$0xff]  ;;  %v6238_v48 = vcombine.low %v3846_v2, %v3850_v3  ;;  %v3866_v52 = vld [vmem:[#allocation19 + $0x178] sm:$0xff] }
 0x86e   :  { %v3805_v41 = vadd.f32 %v3804_v1, %v3764_v21  ;;  %v3768_v42 = vpop.f32.mrb[23].mxu1  ;;  %v3809_v6 = vpop.f32.mrb[27].mxu0  ;;  %v6245_v18 = vcombine.high %v3853_v10, %v3857_v13  ;;  %v3862_v21 = vld [vmem:[#allocation19 + $0x158] sm:$0xff]  ;;  %v3873_v28 = vld [vmem:[#allocation19 + $0x1b0] sm:$0xff] }
 0x86f   :  { %v3807_v29 = vadd.f32 %v3806_v23, %v3766_v27  ;;  %5467 = vmatpush1.bf16.msra.mxu1 %v6448_v4  ;;  %5549 = vmatpush1.bf16.msra.mxu0 %v6450_v20  ;;  %v3861_v4 = vld [vmem:[#allocation19 + $0x150] sm:$0xff]  ;;  %v6244_v23 = vcombine.low %v3853_v10, %v3857_v13  ;;  %v6255_v26 = vcombine.high %v3862_v21, %v3866_v52  ;;  %v3870_v47 = vld [vmem:[#allocation19 + $0x198] sm:$0xff] }
 0x870   :  { %v3813_v34 = vadd.f32 %v3805_v41, %v7882_v22  ;;  %5468 = vmatprep.subr.bf16.mxu1 %v6457_v24  ;;  %5550 = vmatprep.subr.bf16.mxu0 %v6459_v25  ;;  %v6221_v22 = vcombine.high %v3829_v43, %v3833_v44  ;;  %v3865_v20 = vld [vmem:[#allocation19 + $0x170] sm:$0xff]  ;;  %v6254_v38 = vcombine.low %v3862_v21, %v3866_v52  ;;  %v3898_v55 = vld [vmem:[#allocation19 + $0x278] sm:$0xff] }
 0x871   :  { %v3814_v40 = vadd.f32 %v3807_v29, %v7870_v7  ;;  %v6223_v7 = vcombine.high %v3830_v5, %v3834_v45  ;;  %v6253_v25 = vcombine.high %v3861_v4, %v3865_v20  ;;  %v3869_v27 = vld [vmem:[#allocation19 + $0x190] sm:$0xff]  ;;  %v6252_v37 = vcombine.low %v3861_v4, %v3865_v20  ;;  %v3886_v5 = vld [vmem:[#allocation19 + $0x218] sm:$0xff] }
 0x872   :  { %v7950_v62 = vpack.c.bf16 %v3813_v34, %v3813_v34  ;;  %v6261_v41 = vcombine.high %v3869_v27, %v3873_v28  ;;  %v6263_v42 = vcombine.high %v3870_v47, %v3874_v36  ;;  %v3877_v6 = vld [vmem:[#allocation19 + $0x1d0] sm:$0xff]  ;;  %v6260_v34 = vcombine.low %v3869_v27, %v3873_v28  ;;  %v3890_v45 = vld [vmem:[#allocation19 + $0x238] sm:$0xff] }
 0x873   :  { %v7948_v46 = vpack.c.bf16 %v3814_v40, %v3814_v40  ;;  %5469 = vmatpush1.bf16.msra.mxu1 %v6456_v32  ;;  %5551 = vmatpush1.bf16.msra.mxu0 %v6458_v33  ;;  %v3881_v29 = vld [vmem:[#allocation19 + $0x1f0] sm:$0xff]  ;;  %v3878_v32 = vld [vmem:[#allocation19 + $0x1d8] sm:$0xff] }
 0x874   :  { %5561 = vmatprep.subr.bf16.mxu1 %v6213_v35  ;;  %5643 = vmatprep.subr.bf16.mxu0 %v6215_v39  ;;  %v3882_v33 = vld [vmem:[#allocation19 + $0x1f8] sm:$0xff]  ;;  %v6262_v35 = vcombine.low %v3870_v47, %v3874_v36  ;;  %v6269_v39 = vcombine.high %v3877_v6, %v3881_v29  ;;  %v3885_v43 = vld [vmem:[#allocation19 + $0x210] sm:$0xff] }
 0x875   :  { %5470 = vmatprep.mubr.bf16.mxu1 %v7948_v46  ;;  %5552 = vmatprep.mubr.bf16.mxu0 %v7948_v46  ;;  %v6271_v40 = vcombine.high %v3878_v32, %v3882_v33  ;;  %v3889_v44 = vld [vmem:[#allocation19 + $0x230] sm:$0xff]  ;;  %v3902_v2 = vld [vmem:[#allocation19 + $0x298] sm:$0xff] }
 0x876   :  { %5471 = vmatmul.mubr.bf16.vlgmr.msra.gmra.mrb[24].mxu1 %v7950_v62  ;;  %5553 = vmatmul.mubr.bf16.vlgmr.msra.gmra.mrb[28].mxu0 %v7950_v62  ;;  %v3901_v60 = vld [vmem:[#allocation19 + $0x290] sm:$0xff]  ;;  %v3906_v3 = vld [vmem:[#allocation19 + $0x2b8] sm:$0xff] }
 0x877   :  { %5562 = vmatpush1.bf16.msra.mxu1 %v6212_v50  ;;  %5593 = vmatprep.mubr.bf16.mxu1 %v7928_v11  ;;  %v6268_v50 = vcombine.low %v3877_v6, %v3881_v29  ;;  %v3905_v63 = vld [vmem:[#allocation19 + $0x2b0] sm:$0xff]  ;;  %v3918_v21 = vld [vmem:[#allocation19 + $0x318] sm:$0xff] }
 0x878   :  { %5644 = vmatpush1.bf16.msra.mxu0 %v6214_v51  ;;  %5675 = vmatprep.mubr.bf16.mxu0 %v7928_v11  ;;  %v3854_v11 = vld [vmem:[#allocation19 + $0x118] sm:$0xff]  ;;  %v6270_v51 = vcombine.low %v3878_v32, %v3882_v33  ;;  %v3909_v10 = vld [vmem:[#allocation19 + $0x2d0] sm:$0xff] }
 0x879   :  { %5563 = vmatprep.subr.bf16.mxu1 %v6221_v22  ;;  %5645 = vmatprep.subr.bf16.mxu0 %v6223_v7  ;;  %v6247_v1 = vcombine.high %v3854_v11, %v3858_v14  ;;  %v6246_v24 = vcombine.low %v3854_v11, %v3858_v14  ;;  %v6277_v22 = vcombine.high %v3885_v43, %v3889_v44  ;;  %v3913_v13 = vld [vmem:[#allocation19 + $0x2f0] sm:$0xff]  ;;  %v3910_v11 = vld [vmem:[#allocation19 + $0x2d8] sm:$0xff] }
 0x87a   :  { %v6279_v7 = vcombine.high %v3886_v5, %v3890_v45  ;;  %v3914_v14 = vld [vmem:[#allocation19 + $0x2f8] sm:$0xff]  ;;  %v3917_v4 = vld [vmem:[#allocation19 + $0x310] sm:$0xff] }
 0x87b   :  { %5564 = vmatpush1.bf16.msra.mxu1 %v6220_v56  ;;  %v6276_v56 = vcombine.low %v3885_v43, %v3889_v44  ;;  %v3921_v20 = vld [vmem:[#allocation19 + $0x330] sm:$0xff]  ;;  %v3922_v52 = vld [vmem:[#allocation19 + $0x338] sm:$0xff] }
 0x87c   :  { %5646 = vmatpush1.bf16.msra.mxu0 %v6222_v57  ;;  %5565 = vmatprep.subr.bf16.mxu1 %v6229_v58  ;;  %v6278_v57 = vcombine.low %v3886_v5, %v3890_v45  ;;  %v6285_v58 = vcombine.high %v3893_v0, %v3897_v53  ;;  %v3925_v27 = vld [vmem:[#allocation19 + $0x350] sm:$0xff]  ;;  %v3926_v47 = vld [vmem:[#allocation19 + $0x358] sm:$0xff] }
 0x87d   :  { %5647 = vmatprep.subr.bf16.mxu0 %v6231_v59  ;;  %v6287_v59 = vcombine.high %v3894_v54, %v3898_v55  ;;  %v3929_v28 = vld [vmem:[#allocation19 + $0x370] sm:$0xff]  ;;  %v3930_v36 = vld [vmem:[#allocation19 + $0x378] sm:$0xff] }
 0x87e   :  { %v3933_v6 = vld [vmem:[#allocation19 + $0x390] sm:$0xff]  ;;  %v3934_v32 = vld [vmem:[#allocation19 + $0x398] sm:$0xff] }
 0x87f   :  { %5566 = vmatpush1.bf16.msra.mxu1 %v6228_v30  ;;  %v6284_v30 = vcombine.low %v3893_v0, %v3897_v53  ;;  %v3937_v29 = vld [vmem:[#allocation19 + $0x3b0] sm:$0xff]  ;;  %v3938_v33 = vld [vmem:[#allocation19 + $0x3b8] sm:$0xff] }
 0x880   :  { %5648 = vmatpush1.bf16.msra.mxu0 %v6230_v31  ;;  %5567 = vmatprep.subr.bf16.mxu1 %v6237_v8  ;;  %v6286_v31 = vcombine.low %v3894_v54, %v3898_v55  ;;  %v6293_v8 = vcombine.high %v3901_v60, %v3905_v63  ;;  %v3941_v43 = vld [vmem:[#allocation19 + $0x3d0] sm:$0xff]  ;;  %v3942_v5 = vld [vmem:[#allocation19 + $0x3d8] sm:$0xff] }
 0x881   :  { %5649 = vmatprep.subr.bf16.mxu0 %v6239_v9  ;;  %v6295_v9 = vcombine.high %v3902_v2, %v3906_v3  ;;  %v3945_v44 = vld [vmem:[#allocation19 + $0x3f0] sm:$0xff]  ;;  %v3946_v45 = vld [vmem:[#allocation19 + $0x3f8] sm:$0xff] }
 0x882   :  { %v3949_v0 = vld [vmem:[#allocation19 + $0x410] sm:$0xff]  ;;  %v3950_v54 = vld [vmem:[#allocation19 + $0x418] sm:$0xff] }
 0x883   :  { %5568 = vmatpush1.bf16.msra.mxu1 %v6236_v15  ;;  %v6292_v15 = vcombine.low %v3901_v60, %v3905_v63  ;;  %v3953_v53 = vld [vmem:[#allocation19 + $0x430] sm:$0xff]  ;;  %v3954_v55 = vld [vmem:[#allocation19 + $0x438] sm:$0xff] }
 0x884   :  { %5650 = vmatpush1.bf16.msra.mxu0 %v6238_v48  ;;  %5569 = vmatprep.subr.bf16.mxu1 %v6245_v18  ;;  %v6294_v48 = vcombine.low %v3902_v2, %v3906_v3  ;;  %v6301_v18 = vcombine.high %v3909_v10, %v3913_v13  ;;  %v3957_v60 = vld [vmem:[#allocation19 + $0x450] sm:$0xff]  ;;  %v6340_v2 = vcombine.low %v3949_v0, %v3953_v53  ;;  %v3958_v3 = vld [vmem:[#allocation19 + $0x458] sm:$0xff] }
 0x885   :  { %5651 = vmatprep.subr.bf16.mxu0 %v6247_v1  ;;  %v6303_v1 = vcombine.high %v3910_v11, %v3914_v14  ;;  %v3961_v63 = vld [vmem:[#allocation19 + $0x470] sm:$0xff] }
 0x887   :  { %5570 = vmatpush1.bf16.msra.mxu1 %v6244_v23  ;;  %v6300_v23 = vcombine.low %v3909_v10, %v3913_v13  ;;  %v3969_v10 = vld [vmem:[#allocation19 + $0x4b0] sm:$0xff] }
 0x888   :  { %5652 = vmatpush1.bf16.msra.mxu0 %v6246_v24  ;;  %5571 = vmatprep.subr.bf16.mxu1 %v6253_v25  ;;  %v6302_v24 = vcombine.low %v3910_v11, %v3914_v14  ;;  %v6309_v25 = vcombine.high %v3917_v4, %v3921_v20  ;;  %v3966_v11 = vld [vmem:[#allocation19 + $0x498] sm:$0xff] }
 0x889   :  { %5653 = vmatprep.subr.bf16.mxu0 %v6255_v26  ;;  %v6311_v26 = vcombine.high %v3918_v21, %v3922_v52  ;;  %v3970_v14 = vld [vmem:[#allocation19 + $0x4b8] sm:$0xff] }
 0x88b   :  { %5572 = vmatpush1.bf16.msra.mxu1 %v6252_v37  ;;  %v6308_v37 = vcombine.low %v3917_v4, %v3921_v20  ;;  %v3973_v4 = vld [vmem:[#allocation19 + $0x4d0] sm:$0xff] }
 0x88c   :  { %5654 = vmatpush1.bf16.msra.mxu0 %v6254_v38  ;;  %5573 = vmatprep.subr.bf16.mxu1 %v6261_v41  ;;  %v6310_v38 = vcombine.low %v3918_v21, %v3922_v52  ;;  %v6317_v41 = vcombine.high %v3925_v27, %v3929_v28  ;;  %v3977_v20 = vld [vmem:[#allocation19 + $0x4f0] sm:$0xff]  ;;  %v3974_v21 = vld [vmem:[#allocation19 + $0x4d8] sm:$0xff] }
 0x88d   :  { %5655 = vmatprep.subr.bf16.mxu0 %v6263_v42  ;;  %v6319_v42 = vcombine.high %v3926_v47, %v3930_v36  ;;  %v3978_v52 = vld [vmem:[#allocation19 + $0x4f8] sm:$0xff] }
 0x88f   :  { %5574 = vmatpush1.bf16.msra.mxu1 %v6260_v34  ;;  %v6316_v34 = vcombine.low %v3925_v27, %v3929_v28  ;;  %v3985_v27 = vld [vmem:[#allocation19 + $0x530] sm:$0xff]  ;;  %v3982_v28 = vld [vmem:[#allocation19 + $0x518] sm:$0xff] }
 0x890   :  { %5656 = vmatpush1.bf16.msra.mxu0 %v6262_v35  ;;  %5575 = vmatprep.subr.bf16.mxu1 %v6269_v39  ;;  %v6318_v35 = vcombine.low %v3926_v47, %v3930_v36  ;;  %v6325_v39 = vcombine.high %v3933_v6, %v3937_v29  ;;  %v3986_v47 = vld [vmem:[#allocation19 + $0x538] sm:$0xff]  ;;  %v6366_v36 = vcombine.low %v3974_v21, %v3978_v52 }
 0x891   :  { %5657 = vmatprep.subr.bf16.mxu0 %v6271_v40  ;;  %v6327_v40 = vcombine.high %v3934_v32, %v3938_v33 }
 0x893   :  { %5576 = vmatpush1.bf16.msra.mxu1 %v6268_v50  ;;  %v6324_v50 = vcombine.low %v3933_v6, %v3937_v29  ;;  %v3990_v6 = vld [vmem:[#allocation19 + $0x558] sm:$0xff] }
 0x894   :  { %5658 = vmatpush1.bf16.msra.mxu0 %v6270_v51  ;;  %5577 = vmatprep.subr.bf16.mxu1 %v6277_v22  ;;  %v6326_v51 = vcombine.low %v3934_v32, %v3938_v33  ;;  %v6333_v22 = vcombine.high %v3941_v43, %v3945_v44  ;;  %v3994_v29 = vld [vmem:[#allocation19 + $0x578] sm:$0xff]  ;;  %v6374_v33 = vcombine.low %v3982_v28, %v3986_v47 }
 0x895   :  { %5659 = vmatprep.subr.bf16.mxu0 %v6279_v7  ;;  %v6335_v7 = vcombine.high %v3942_v5, %v3946_v45 }
 0x897   :  { %5578 = vmatpush1.bf16.msra.mxu1 %v6276_v56  ;;  %v6332_v56 = vcombine.low %v3941_v43, %v3945_v44  ;;  %v3998_v43 = vld [vmem:[#allocation19 + $0x598] sm:$0xff] }
 0x898   :  { %5660 = vmatpush1.bf16.msra.mxu0 %v6278_v57  ;;  %5579 = vmatprep.subr.bf16.mxu1 %v6285_v58  ;;  %v6334_v57 = vcombine.low %v3942_v5, %v3946_v45  ;;  %v6341_v58 = vcombine.high %v3949_v0, %v3953_v53  ;;  %v4002_v44 = vld [vmem:[#allocation19 + $0x5b8] sm:$0xff]  ;;  %v6382_v45 = vcombine.low %v3990_v6, %v3994_v29 }
 0x899   :  { %5661 = vmatprep.subr.bf16.mxu0 %v6287_v59  ;;  %v6343_v59 = vcombine.high %v3950_v54, %v3954_v55  ;;  %v4006_v0 = vld [vmem:[#allocation19 + $0x5d8] sm:$0xff] }
 0x89a   :  { %v4010_v53 = vld [vmem:[#allocation19 + $0x5f8] sm:$0xff] }
 0x89b   :  { %5580 = vmatpush1.bf16.msra.mxu1 %v6284_v30  ;;  %v3962_v30 = vld [vmem:[#allocation19 + $0x478] sm:$0xff] }
 0x89c   :  { %5662 = vmatpush1.bf16.msra.mxu0 %v6286_v31  ;;  %5581 = vmatprep.subr.bf16.mxu1 %v6293_v8  ;;  %v6342_v31 = vcombine.low %v3950_v54, %v3954_v55  ;;  %v6349_v8 = vcombine.high %v3957_v60, %v3961_v63  ;;  %v6351_v13 = vcombine.high %v3958_v3, %v3962_v30 }
 0x89d   :  { %5663 = vmatprep.subr.bf16.mxu0 %v6295_v9  ;;  %v3965_v9 = vld [vmem:[#allocation19 + $0x490] sm:$0xff]  ;;  %v6390_v55 = vcombine.low %v3998_v43, %v4002_v44 }
 0x89f   :  { %5582 = vmatpush1.bf16.msra.mxu1 %v6292_v15  ;;  %v6348_v15 = vcombine.low %v3957_v60, %v3961_v63  ;;  %v4014_v60 = vld [vmem:[#allocation19 + $0x618] sm:$0xff] }
 0x8a0   :  { %5664 = vmatpush1.bf16.msra.mxu0 %v6294_v48  ;;  %5583 = vmatprep.subr.bf16.mxu1 %v6301_v18  ;;  %v6350_v48 = vcombine.low %v3958_v3, %v3962_v30  ;;  %v6357_v18 = vcombine.high %v3965_v9, %v3969_v10  ;;  %v4018_v63 = vld [vmem:[#allocation19 + $0x638] sm:$0xff]  ;;  %v6398_v3 = vcombine.low %v4006_v0, %v4010_v53 }
 0x8a1   :  { %5665 = vmatprep.subr.bf16.mxu0 %v6303_v1  ;;  %v6359_v1 = vcombine.high %v3966_v11, %v3970_v14 }
 0x8a3   :  { %5584 = vmatpush1.bf16.msra.mxu1 %v6300_v23  ;;  %v6356_v23 = vcombine.low %v3965_v9, %v3969_v10  ;;  %v4025_v9 = vld [vmem:[#allocation19 + $0x670] sm:$0xff]  ;;  %v4022_v10 = vld [vmem:[#allocation19 + $0x658] sm:$0xff] }
 0x8a4   :  { %5666 = vmatpush1.bf16.msra.mxu0 %v6302_v24  ;;  %5585 = vmatprep.subr.bf16.mxu1 %v6309_v25  ;;  %v6365_v24 = vcombine.high %v3973_v4, %v3977_v20  ;;  %v6367_v25 = vcombine.high %v3974_v21, %v3978_v52 }
 0x8a5   :  { %5667 = vmatprep.subr.bf16.mxu0 %v6311_v26  ;;  %v3981_v26 = vld [vmem:[#allocation19 + $0x510] sm:$0xff] }
 0x8a6   :  { %v6372_v32 = vcombine.low %v3981_v26, %v3985_v27 }
 0x8a7   :  { %5586 = vmatpush1.bf16.msra.mxu1 %v6308_v37  ;;  %v6373_v37 = vcombine.high %v3981_v26, %v3985_v27  ;;  %v4038_v26 = vld [vmem:[#allocation19 + $0x6d8] sm:$0xff] }
 0x8a8   :  { %5668 = vmatpush1.bf16.msra.mxu0 %v6310_v38  ;;  %5587 = vmatprep.subr.bf16.mxu1 %v6317_v41  ;;  %v6375_v38 = vcombine.high %v3982_v28, %v3986_v47  ;;  %v3989_v41 = vld [vmem:[#allocation19 + $0x550] sm:$0xff]  ;;  %v4042_v27 = vld [vmem:[#allocation19 + $0x6f8] sm:$0xff] }
 0x8a9   :  { %5669 = vmatprep.subr.bf16.mxu0 %v6319_v42  ;;  %v3993_v42 = vld [vmem:[#allocation19 + $0x570] sm:$0xff] }
 0x8aa   :  { %v6380_v5 = vcombine.low %v3989_v41, %v3993_v42 }
 0x8ab   :  { %5588 = vmatpush1.bf16.msra.mxu1 %v6316_v34  ;;  %v6381_v34 = vcombine.high %v3989_v41, %v3993_v42  ;;  %v4046_v41 = vld [vmem:[#allocation19 + $0x718] sm:$0xff] }
 0x8ac   :  { %5670 = vmatpush1.bf16.msra.mxu0 %v6318_v35  ;;  %5589 = vmatprep.subr.bf16.mxu1 %v6325_v39  ;;  %v6383_v35 = vcombine.high %v3990_v6, %v3994_v29  ;;  %v3997_v39 = vld [vmem:[#allocation19 + $0x590] sm:$0xff]  ;;  %v4050_v42 = vld [vmem:[#allocation19 + $0x738] sm:$0xff]  ;;  %v6430_v29 = vcombine.low %v4038_v26, %v4042_v27 }
 0x8ad   :  { %5671 = vmatprep.subr.bf16.mxu0 %v6327_v40  ;;  %v4001_v40 = vld [vmem:[#allocation19 + $0x5b0] sm:$0xff] }
 0x8ae   :  { %v6388_v54 = vcombine.low %v3997_v39, %v4001_v40 }
 0x8af   :  { %5590 = vmatpush1.bf16.msra.mxu1 %v6324_v50  ;;  %v6389_v50 = vcombine.high %v3997_v39, %v4001_v40  ;;  %v4054_v39 = vld [vmem:[#allocation19 + $0x758] sm:$0xff] }
 0x8b0   :  { %5672 = vmatpush1.bf16.msra.mxu0 %v6326_v51  ;;  %5591 = vmatprep.subr.bf16.mxu1 %v6333_v22  ;;  %v6391_v51 = vcombine.high %v3998_v43, %v4002_v44  ;;  %v4005_v22 = vld [vmem:[#allocation19 + $0x5d0] sm:$0xff]  ;;  %v4058_v40 = vld [vmem:[#allocation19 + $0x778] sm:$0xff]  ;;  %v6438_v44 = vcombine.low %v4046_v41, %v4050_v42 }
 0x8b1   :  { %5673 = vmatprep.subr.bf16.mxu0 %v6335_v7  ;;  %v4009_v7 = vld [vmem:[#allocation19 + $0x5f0] sm:$0xff] }
 0x8b3   :  { %5592 = vmatpush1.bf16.msra.mxu1 %v6332_v56  ;;  %v6397_v56 = vcombine.high %v4005_v22, %v4009_v7 }
 0x8b4   :  { %5674 = vmatpush1.bf16.msra.mxu0 %v6334_v57  ;;  %5602 = vmatprep.subr.bf16.mxu1 %v6341_v58  ;;  %v6399_v57 = vcombine.high %v4006_v0, %v4010_v53  ;;  %v4013_v58 = vld [vmem:[#allocation19 + $0x610] sm:$0xff]  ;;  %v6446_v53 = vcombine.low %v4054_v39, %v4058_v40 }
 0x8b5   :  { %5684 = vmatprep.subr.bf16.mxu0 %v6343_v59  ;;  %v4017_v59 = vld [vmem:[#allocation19 + $0x630] sm:$0xff] }
 0x8b6   :  { %5594 = vmatmul.mubr.bf16.vlgmr.msra.gmra.mrb[28].mxu1 %v7930_v12  ;;  %v6405_v30 = vcombine.high %v4013_v58, %v4017_v59 }
 0x8b7   :  { %5676 = vmatmul.mubr.bf16.vlgmr.msra.gmra.mrb[32].mxu0 %v7930_v12  ;;  %5603 = vmatpush1.bf16.msra.mxu1 %v6340_v2  ;;  %v6358_v12 = vcombine.low %v3966_v11, %v3970_v14  ;;  %v6396_v2 = vcombine.low %v4005_v22, %v4009_v7  ;;  %v6404_v11 = vcombine.low %v4013_v58, %v4017_v59  ;;  %v4062_v22 = vld [vmem:[#allocation19 + $0x798] sm:$0xff] }
 0x8b8   :  { %5634 = vmatprep.mubr.bf16.mxu1 %v7948_v46  ;;  %5685 = vmatpush1.bf16.msra.mxu0 %v6342_v31  ;;  %v6407_v31 = vcombine.high %v4014_v60, %v4018_v63  ;;  %v6406_v14 = vcombine.low %v4014_v60, %v4018_v63  ;;  %v4066_v7 = vld [vmem:[#allocation19 + $0x7b8] sm:$0xff] }
 0x8b9   :  { %5716 = vmatprep.mubr.bf16.mxu0 %v7948_v46  ;;  %5604 = vmatprep.subr.bf16.mxu1 %v6349_v8  ;;  %v6364_v46 = vcombine.low %v3973_v4, %v3977_v20  ;;  %v4021_v8 = vld [vmem:[#allocation19 + $0x650] sm:$0xff]  ;;  %v4030_v4 = vld [vmem:[#allocation19 + $0x698] sm:$0xff]  ;;  %v6454_v63 = vcombine.low %v4062_v22, %v4066_v7 }
 0x8ba   :  { %5686 = vmatprep.subr.bf16.mxu0 %v6351_v13  ;;  %v4026_v13 = vld [vmem:[#allocation19 + $0x678] sm:$0xff]  ;;  %v6412_v21 = vcombine.low %v4021_v8, %v4025_v9 }
 0x8bb   :  { %5605 = vmatpush1.bf16.msra.mxu1 %v6348_v15  ;;  %v6413_v15 = vcombine.high %v4021_v8, %v4025_v9  ;;  %v4034_v20 = vld [vmem:[#allocation19 + $0x6b8] sm:$0xff]  ;;  %v6414_v52 = vcombine.low %v4022_v10, %v4026_v13 }
 0x8bc   :  { %5687 = vmatpush1.bf16.msra.mxu0 %v6350_v48  ;;  %5606 = vmatprep.subr.bf16.mxu1 %v6357_v18  ;;  %v6415_v48 = vcombine.high %v4022_v10, %v4026_v13  ;;  %v4029_v18 = vld [vmem:[#allocation19 + $0x690] sm:$0xff]  ;;  %v6422_v47 = vcombine.low %v4030_v4, %v4034_v20  ;;  %v4070_v58 = vld [vmem:[#allocation19 + $0x7d8] sm:$0xff] }
 0x8bd   :  { %5688 = vmatprep.subr.bf16.mxu0 %v6359_v1  ;;  %v4033_v1 = vld [vmem:[#allocation19 + $0x6b0] sm:$0xff]  ;;  %v4074_v59 = vld [vmem:[#allocation19 + $0x7f8] sm:$0xff] }
 0x8be   :  { %v6420_v28 = vcombine.low %v4029_v18, %v4033_v1  ;;  %v4075_v8 = vld [vmem:[%s8033_s24] sm:$0xff] }
 0x8bf   :  { %5607 = vmatpush1.bf16.msra.mxu1 %v6356_v23  ;;  %v6421_v23 = vcombine.high %v4029_v18, %v4033_v1  ;;  %v4080_v9 = vrot.slane %v4075_v8, %v7804_v17  ;;  %v4088_v10 = vrot.slane %v4075_v8, %v7877_v61  ;;  %v4084_v13 = vrot.slane %v4075_v8, %v7810_v19 }
 0x8c0   :  { %5689 = vmatpush1.bf16.msra.mxu0 %v6358_v12  ;;  %5608 = vmatprep.subr.bf16.mxu1 %v6365_v24  ;;  %v6423_v12 = vcombine.high %v4030_v4, %v4034_v20  ;;  %v4037_v24 = vld [vmem:[#allocation19 + $0x6d0] sm:$0xff]  ;;  %v4103_v61 = vsub.s32 6, %v7801_v16 }
 0x8c1   :  { %5690 = vmatprep.subr.bf16.mxu0 %v6367_v25  ;;  %v4041_v25 = vld [vmem:[#allocation19 + $0x6f0] sm:$0xff] }
 0x8c2   :  { %v6428_v6 = vcombine.low %v4037_v24, %v4041_v25 }
 0x8c3   :  { %5609 = vmatpush1.bf16.msra.mxu1 %v6364_v46  ;;  %v6429_v46 = vcombine.high %v4037_v24, %v4041_v25  ;;  %v4104_v25 = vrot.slane %v4075_v8, %v4103_v61 }
 0x8c4   :  { %5691 = vmatpush1.bf16.msra.mxu0 %v6366_v36  ;;  %5610 = vmatprep.subr.bf16.mxu1 %v6373_v37  ;;  %v6431_v36 = vcombine.high %v4038_v26, %v4042_v27  ;;  %v4045_v37 = vld [vmem:[#allocation19 + $0x710] sm:$0xff] }
 0x8c5   :  { %5692 = vmatprep.subr.bf16.mxu0 %v6375_v38  ;;  %v4049_v38 = vld [vmem:[#allocation19 + $0x730] sm:$0xff] }
 0x8c6   :  { %v6436_v43 = vcombine.low %v4045_v37, %v4049_v38 }
 0x8c7   :  { %5611 = vmatpush1.bf16.msra.mxu1 %v6372_v32  ;;  %v6437_v32 = vcombine.high %v4045_v37, %v4049_v38 }
 0x8c8   :  { %5693 = vmatpush1.bf16.msra.mxu0 %v6374_v33  ;;  %5612 = vmatprep.subr.bf16.mxu1 %v6381_v34  ;;  %v6439_v33 = vcombine.high %v4046_v41, %v4050_v42  ;;  %v4053_v34 = vld [vmem:[#allocation19 + $0x750] sm:$0xff] }
 0x8c9   :  { %5694 = vmatprep.subr.bf16.mxu0 %v6383_v35  ;;  %v4057_v35 = vld [vmem:[#allocation19 + $0x770] sm:$0xff] }
 0x8ca   :  { %v6444_v0 = vcombine.low %v4053_v34, %v4057_v35 }
 0x8cb   :  { %5613 = vmatpush1.bf16.msra.mxu1 %v6380_v5  ;;  %v6445_v5 = vcombine.high %v4053_v34, %v4057_v35 }
 0x8cc   :  { %5695 = vmatpush1.bf16.msra.mxu0 %v6382_v45  ;;  %5614 = vmatprep.subr.bf16.mxu1 %v6389_v50  ;;  %v6447_v45 = vcombine.high %v4054_v39, %v4058_v40  ;;  %v4061_v50 = vld [vmem:[#allocation19 + $0x790] sm:$0xff] }
 0x8cd   :  { %5696 = vmatprep.subr.bf16.mxu0 %v6391_v51  ;;  %v4065_v51 = vld [vmem:[#allocation19 + $0x7b0] sm:$0xff] }
 0x8ce   :  { %v6452_v60 = vcombine.low %v4061_v50, %v4065_v51 }
 0x8cf   :  { %5615 = vmatpush1.bf16.msra.mxu1 %v6388_v54  ;;  %v6453_v54 = vcombine.high %v4061_v50, %v4065_v51 }
 0x8d0   :  { %5697 = vmatpush1.bf16.msra.mxu0 %v6390_v55  ;;  %5616 = vmatprep.subr.bf16.mxu1 %v6397_v56  ;;  %v6455_v55 = vcombine.high %v4062_v22, %v4066_v7  ;;  %v4069_v56 = vld [vmem:[#allocation19 + $0x7d0] sm:$0xff] }
 0x8d1   :  { %5698 = vmatprep.subr.bf16.mxu0 %v6399_v57  ;;  %v4073_v57 = vld [vmem:[#allocation19 + $0x7f0] sm:$0xff] }
 0x8d3   :  { %5617 = vmatpush1.bf16.msra.mxu1 %v6396_v2  ;;  %v6461_v2 = vcombine.high %v4069_v56, %v4073_v57 }
 0x8d4   :  { %5699 = vmatpush1.bf16.msra.mxu0 %v6398_v3  ;;  %5618 = vmatprep.subr.bf16.mxu1 %v6405_v30  ;;  %v6463_v3 = vcombine.high %v4070_v58, %v4074_v59  ;;  %v6460_v30 = vcombine.low %v4069_v56, %v4073_v57 }
 0x8d5   :  { %5700 = vmatprep.subr.bf16.mxu0 %v6407_v31  ;;  %v6462_v31 = vcombine.low %v4070_v58, %v4074_v59 }
 0x8d7   :  { %5619 = vmatpush1.bf16.msra.mxu1 %v6404_v11  ;;  %v4092_v11 = vrot.slane %v4075_v8, %v7854_v49  ;;  %v4095_v49 = vsub.s32 4, %v7801_v16 }
 0x8d8   :  { %5701 = vmatpush1.bf16.msra.mxu0 %v6406_v14  ;;  %5620 = vmatprep.subr.bf16.mxu1 %v6413_v15 }
 0x8d9   :  { %5702 = vmatprep.subr.bf16.mxu0 %v6415_v48  ;;  %v4096_v24 = vrot.slane %v4075_v8, %v4095_v49 }
 0x8db   :  { %5621 = vmatpush1.bf16.msra.mxu1 %v6412_v21 }
 0x8dc   :  { %5703 = vmatpush1.bf16.msra.mxu0 %v6414_v52  ;;  %5622 = vmatprep.subr.bf16.mxu1 %v6421_v23  ;;  %v4099_v23 = vsub.s32 5, %v7801_v16 }
 0x8dd   :  { %5704 = vmatprep.subr.bf16.mxu0 %v6423_v12  ;;  %v4107_v12 = vsub.s32 7, %v7801_v16 }
 0x8de   :  { %v4100_v26 = vrot.slane %v4075_v8, %v4099_v23 }
 0x8df   :  { %5623 = vmatpush1.bf16.msra.mxu1 %v6420_v28  ;;  %v4108_v27 = vrot.slane %v4075_v8, %v4107_v12 }
 0x8e0   :  { %5705 = vmatpush1.bf16.msra.mxu0 %v6422_v47  ;;  %5624 = vmatprep.subr.bf16.mxu1 %v6429_v46 }
 0x8e1   :  { %5706 = vmatprep.subr.bf16.mxu0 %v6431_v36 }
 0x8e3   :  { %5625 = vmatpush1.bf16.msra.mxu1 %v6428_v6 }
 0x8e4   :  { %5707 = vmatpush1.bf16.msra.mxu0 %v6430_v29  ;;  %5626 = vmatprep.subr.bf16.mxu1 %v6437_v32 }
 0x8e5   :  { %5708 = vmatprep.subr.bf16.mxu0 %v6439_v33 }
 0x8e7   :  { %5627 = vmatpush1.bf16.msra.mxu1 %v6436_v43 }
 0x8e8   :  { %5709 = vmatpush1.bf16.msra.mxu0 %v6438_v44  ;;  %5628 = vmatprep.subr.bf16.mxu1 %v6445_v5 }
 0x8e9   :  { %5710 = vmatprep.subr.bf16.mxu0 %v6447_v45 }
 0x8eb   :  { %5629 = vmatpush1.bf16.msra.mxu1 %v6444_v0 }
 0x8ec   :  { %5711 = vmatpush1.bf16.msra.mxu0 %v6446_v53  ;;  %5630 = vmatprep.subr.bf16.mxu1 %v6453_v54 }
 0x8ed   :  { %5712 = vmatprep.subr.bf16.mxu0 %v6455_v55 }
 0x8ef   :  { %5631 = vmatpush1.bf16.msra.mxu1 %v6452_v60 }
 0x8f0   :  { %5713 = vmatpush1.bf16.msra.mxu0 %v6454_v63  ;;  %5632 = vmatprep.subr.bf16.mxu1 %v6461_v2 }
 0x8f1   :  { %5714 = vmatprep.subr.bf16.mxu0 %v6463_v3 }
 0x8f3   :  { %5633 = vmatpush1.bf16.msra.mxu1 %v6460_v30 }
 0x8f4   :  { %5715 = vmatpush1.bf16.msra.mxu0 %v6462_v31 }
 0x8f6   :  { %5635 = vmatmul.mubr.bf16.vlgmr.msra.gmra.mrb[28].mxu1 %v7950_v62 }
 0x8f7   :  { %5717 = vmatmul.mubr.bf16.vlgmr.msra.gmra.mrb[32].mxu0 %v7950_v62 }
 0x949   :  { %v5472_v14 = vpop.f32.mrb[24].mxu1  ;;  %v5554_v15 = vpop.f32.mrb[28].mxu0 }
 0x94a   :  { %v6468_v48 = vadd.f32 %v5472_v14, %v4080_v9  ;;  %v6470_v18 = vadd.f32 %v5554_v15, %v4088_v10  ;;  %v5474_v1 = vpop.f32.mrb[25].mxu1  ;;  %v5556_v4 = vpop.f32.mrb[29].mxu0 }
 0x94b   :  { %v6469_v20 = vadd.f32 %v5474_v1, %v4084_v13  ;;  %v6471_v62 = vadd.f32 %v5556_v4, %v4092_v11  ;;  %v5476_v21 = vpop.f32.mrb[26].mxu1  ;;  %v5558_v52 = vpop.f32.mrb[30].mxu0 }
 0x94c   :  { %5725 = vst [vmem:[%s8034_s20] sm:$0xff] %v6468_v48  ;;  %5727 = vst [vmem:[%s8034_s20 + $0x10] sm:$0xff] %v6470_v18  ;;  %v5477_v17 = vpop.f32.mrb[27].mxu1  ;;  %v5559_v19 = vpop.f32.mrb[31].mxu0 }
 0x94d   :  { %5726 = vst [vmem:[%s8034_s20 + $0x8] sm:$0xff] %v6469_v20  ;;  %5728 = vst [vmem:[%s8034_s20 + $0x18] sm:$0xff] %v6471_v62 }
 0x9c9   :  { %v5636_v28 = vpop.f32.mrb[28].mxu1 }
 0x9ca   :  { %v6472_v47 = vadd.f32 %v5636_v28, %v4096_v24  ;;  %v5718_v46 = vpop.f32.mrb[32].mxu0  ;;  %v5638_v36 = vpop.f32.mrb[29].mxu1 }
 0x9cb   :  { %v6474_v37 = vadd.f32 %v5718_v46, %v4104_v25  ;;  %v6473_v38 = vadd.f32 %v5638_v36, %v4100_v26  ;;  %v5720_v41 = vpop.f32.mrb[33].mxu0  ;;  %v5640_v42 = vpop.f32.mrb[30].mxu1 }
 0x9cc   :  { %5729 = vst [vmem:[%s8034_s20 + $0x20] sm:$0xff] %v6472_v47  ;;  %v6475_v6 = vadd.f32 %v5720_v41, %v4108_v27  ;;  %v5722_v29 = vpop.f32.mrb[34].mxu0  ;;  %v5641_v32 = vpop.f32.mrb[31].mxu1 }
 0x9cd   :  { %5731 = vst [vmem:[%s8034_s20 + $0x30] sm:$0xff] %v6474_v37  ;;  %5730 = vst [vmem:[%s8034_s20 + $0x28] sm:$0xff] %v6473_v38  ;;  %v5723_v16 = vpop.f32.mrb[35].mxu0 }
 0x9ce   :  { %5732 = vst [vmem:[%s8034_s20 + $0x38] sm:$0xff] %v6475_v6 }
 0x9cf   :  { %5737 = vsyncpa [#allocation3], 1 }
 0x9d0   :  { %5738 = vsyncpa [#allocation5], 1 }
 0x9d1   :  { %5739 = vsyncpa [#allocation8], 1 }
 0x9d2   :  { %5740 = vsyncpa [#allocation11], 1 }
 0x9d3   :  { %5741 = vsyncpa [#allocation14], 1 }
 0x9d4   :  { %5742 = vsyncpa [#allocation17], 1 }
 0x9d5   :  { %5743 = vsyncpa [#allocation20], 1 }

// kernel: generative_network.1
= control target key start
LH: loop header
LB: loop body
LE: loop exit
PB: predicated region body
PF: predicated region fallthrough
CT: control target
= control target key end

     0   :  { %s7999_s0 = inlined_call_operand.hbm [shape: f32[8,128], index: 0, kind: input, shape index: {}]   ;;  %s8000_s1 = inlined_call_operand.hbm [shape: bf16[128,256], index: 1, kind: input, shape index: {}]   ;;  %s8001_s2 = inlined_call_operand.vmem [shape: f32[1,256], index: 2, kind: input, shape index: {}]   ;;  %s8002_s3 = inlined_call_operand.hbm [shape: bf16[256,256], index: 3, kind: input, shape index: {}]   ;;  %s8003_s4 = inlined_call_operand.hbm [shape: f32[1,256], index: 4, kind: input, shape index: {}]   ;;  %s8004_s5 = inlined_call_operand.hbm [shape: bf16[256,256], index: 5, kind: input, shape index: {}]   ;;  %s8005_s6 = inlined_call_operand.hbm [shape: f32[1,256], index: 6, kind: input, shape index: {}]   ;;  %s8006_s7 = inlined_call_operand.hbm [shape: bf16[256,256], index: 7, kind: input, shape index: {}]   ;;  %s8007_s8 = inlined_call_operand.vmem [shape: f32[1,256], index: 8, kind: input, shape index: {}]   ;;  %s8008_s9 = inlined_call_operand.hbm [shape: bf16[256,256], index: 9, kind: input, shape index: {}]   ;;  %s8009_s10 = inlined_call_operand.vmem [shape: f32[1,256], index: 10, kind: input, shape index: {}]   ;;  %s8010_s11 = inlined_call_operand.hbm [shape: bf16[256,512], index: 11, kind: input, shape index: {}]   ;;  %s8011_s12 = inlined_call_operand.vmem [shape: f32[1,512], index: 12, kind: input, shape index: {}]   ;;  %s8012_s13 = inlined_call_operand.hbm [shape: bf16[512,512], index: 13, kind: input, shape index: {}]   ;;  %s8013_s14 = inlined_call_operand.vmem [shape: f32[1,512], index: 14, kind: input, shape index: {}]   ;;  %s8014_s15 = inlined_call_operand.hbm [shape: bf16[512,512], index: 15, kind: input, shape index: {}]   ;;  %s8015_s16 = inlined_call_operand.vmem [shape: f32[1,512], index: 16, kind: input, shape index: {}]   ;;  %s8016_s17 = inlined_call_operand.hbm [shape: bf16[512,1024], index: 17, kind: input, shape index: {}]   ;;  %s8017_s18 = inlined_call_operand.vmem [shape: f32[1,1024], index: 18, kind: input, shape index: {}]   ;;  %s8018_s19 = inlined_call_operand.vmem [shape: f32[8,1024], index: 19, kind: output, shape index: {}]  }
   0x1   :  { %8023 = sst [smem:[#allocation28_spill]] %s7999_s0 }
   0x2   :  { %8024 = sst [smem:[#allocation29_spill]] %s8000_s1 }
   0x3   :  { %8025 = sst [smem:[#allocation30_spill]] %s8001_s2 }
   0x4   :  { %8026 = sst [smem:[#allocation31_spill]] %s8002_s3 }
   0x5   :  { %8027 = sst [smem:[#allocation32_spill]] %s8017_s18 }
   0x6   :  { %8028 = sst [smem:[#allocation33_spill]] %s8018_s19 }
   0x7   :  { %24 = vsyncpa [#allocation3], 0 }
   0x8   :  { %25 = vsyncpa [#allocation5], 0 }
   0x9   :  { %26 = vsyncpa [#allocation8], 0 }
   0xa   :  { %27 = vsyncpa [#allocation11], 0 }
   0xb   :  { %28 = vsyncpa [#allocation14], 0 }
   0xc   :  { %29 = vsyncpa [#allocation17], 0 }
   0xd   :  { %30 = vsyncpa [#allocation20], 0  ;;  %s7493_s0 = smov [#allocation4]   ;;  %s8029_s1 = sld [smem:[#allocation29_spill]] }
   0xe   :  { %s46_s30 = sshll.u32 %s7493_s0, 4  ;;  %s47_s30 = int_to_ptr.vmem [resolvable:$true] %s46_s30 }
  0x13   :  { %s7215_s22 = scalar_lea.hbm %s8029_s1, 2048 }
  0x14   :  { %p7216_p0 = scmp.ne.s32.totalorder %s8029_s1, %s7215_s22  ;;  %p7219_p1 = scmp.lt.u32.totalorder %s7215_s22, %s8029_s1 }
  0x16   :  { %p7221_p2 = pnand %p7219_p1, %p7216_p0 }
  0x18   :  { %7224 = shalt.err (!%p7221_p2)
}
  0x19   :  { %s7225_s3 = scalar_lea.vmem %s47_s30, 2048  ;;  %p7230_p4 = scmp.lt.s32.totalorder %s47_s30, %s47_s30 }
  0x1a   :  { %p7226_p3 = scmp.ne.s32.totalorder %s47_s30, %s7225_s3  ;;  %p7231_p5 = scmp.lt.s32.totalorder %s7225_s3, %s7225_s3 }
  0x1c   :  { %p7232_p6 = por %p7231_p5, %p7230_p4 }
  0x1e   :  { %p7233_p7 = pnand %p7232_p6, %p7226_p3 }
  0x20   :  { %7236 = shalt.err (!%p7233_p7)
}
  0x21   :  { %s7494_s26 = smov 128   ;;  %s7495_s27 = smov 8  }
  0x22   :  { %52 = dma.hbm_to_vmem [thread:$0]  %s8029_s1, 2048, %s47_s30, [#allocation5], %s7494_s26, %s7494_s26, %s7495_s27  }
  0x23   :  { %s7496_s0 = smov [#allocation7]   ;;  %s7497_s21 = smov [#allocation10]  }
  0x24   :  { %s73_s20 = sshll.u32 %s7496_s0, 4  ;;  %s95_s22 = sshll.u32 %s7497_s21, 4  ;;  %s74_s20 = int_to_ptr.vmem [resolvable:$true] %s73_s20  ;;  %s96_s22 = int_to_ptr.vmem [resolvable:$true] %s95_s22 }
  0x25   :  { %s7237_s24 = scalar_lea.hbm %s8003_s4, 32 }
  0x26   :  { %p7238_p8 = scmp.ne.s32.totalorder %s8003_s4, %s7237_s24  ;;  %p7241_p9 = scmp.lt.u32.totalorder %s7237_s24, %s8003_s4 }
  0x28   :  { %p7243_p10 = pnand %p7241_p9, %p7238_p8 }
  0x2a   :  { %7246 = shalt.err (!%p7243_p10)
}
  0x2b   :  { %s7247_s30 = scalar_lea.vmem %s74_s20, 32  ;;  %p7252_p12 = scmp.lt.s32.totalorder %s74_s20, %s74_s20 }
  0x2c   :  { %p7248_p11 = scmp.ne.s32.totalorder %s74_s20, %s7247_s30  ;;  %p7253_p13 = scmp.lt.s32.totalorder %s7247_s30, %s7247_s30 }
  0x2e   :  { %p7254_p0 = por %p7253_p13, %p7252_p12 }
  0x30   :  { %p7255_p1 = pnand %p7254_p0, %p7248_p11 }
  0x32   :  { %7258 = shalt.err (!%p7255_p1)
}
  0x33   :  { %76 = dma.hbm_to_vmem [thread:$0]  %s8003_s4, 32, %s74_s20, [#allocation8]  }
  0x34   :  { %s7259_s21 = scalar_lea.hbm %s8005_s6, 32 }
  0x35   :  { %p7260_p2 = scmp.ne.s32.totalorder %s8005_s6, %s7259_s21  ;;  %p7263_p3 = scmp.lt.u32.totalorder %s7259_s21, %s8005_s6 }
  0x37   :  { %p7265_p4 = pnand %p7263_p3, %p7260_p2 }
  0x39   :  { %7268 = shalt.err (!%p7265_p4)
}
  0x3a   :  { %s7269_s24 = scalar_lea.vmem %s96_s22, 32  ;;  %p7274_p6 = scmp.lt.s32.totalorder %s96_s22, %s96_s22 }
  0x3b   :  { %p7270_p5 = scmp.ne.s32.totalorder %s96_s22, %s7269_s24  ;;  %p7275_p7 = scmp.lt.s32.totalorder %s7269_s24, %s7269_s24 }
  0x3d   :  { %p7276_p8 = por %p7275_p7, %p7274_p6 }
  0x3f   :  { %p7277_p9 = pnand %p7276_p8, %p7270_p5 }
  0x41   :  { %7280 = shalt.err (!%p7277_p9)
}
  0x42   :  { %98 = dma.hbm_to_vmem [thread:$0]  %s8005_s6, 32, %s96_s22, [#allocation11]  }
  0x43   :  { %s7498_s25 = smov [#allocation13]   ;;  %s7281_s28 = scalar_lea.hbm %s8008_s9, 4096 }
  0x44   :  { %s118_s3 = sshll.u32 %s7498_s25, 4  ;;  %p7282_p10 = scmp.ne.s32.totalorder %s8008_s9, %s7281_s28  ;;  %s119_s3 = int_to_ptr.vmem [resolvable:$true] %s118_s3 }
  0x45   :  { %p7285_p11 = scmp.lt.u32.totalorder %s7281_s28, %s8008_s9 }
  0x47   :  { %p7287_p12 = pnand %p7285_p11, %p7282_p10 }
  0x49   :  { %7290 = shalt.err (!%p7287_p12)
}
  0x4a   :  { %s7291_s19 = scalar_lea.vmem %s119_s3, 4096  ;;  %p7296_p0 = scmp.lt.s32.totalorder %s119_s3, %s119_s3 }
  0x4b   :  { %p7292_p13 = scmp.ne.s32.totalorder %s119_s3, %s7291_s19  ;;  %p7297_p1 = scmp.lt.s32.totalorder %s7291_s19, %s7291_s19 }
  0x4d   :  { %p7298_p2 = por %p7297_p1, %p7296_p0 }
  0x4f   :  { %p7299_p3 = pnand %p7298_p2, %p7292_p13 }
  0x51   :  { %7302 = shalt.err (!%p7299_p3)
}
  0x52   :  { %124 = dma.hbm_to_vmem [thread:$0]  %s8008_s9, 4096, %s119_s3, [#allocation14], %s7494_s26, %s7494_s26, %s7495_s27  }
  0x53   :  { %s7499_s2 = smov [#allocation16]   ;;  %s7500_s24 = smov [#allocation2]  }
  0x54   :  { %s146_s23 = sshll.u32 %s7499_s2, 4  ;;  %s37_s4 = sshll.u32 %s7500_s24, 4  ;;  %s147_s23 = int_to_ptr.vmem [resolvable:$true] %s146_s23  ;;  %s38_s4 = int_to_ptr.vmem [resolvable:$true] %s37_s4 }
  0x55   :  { %s7303_s30 = scalar_lea.hbm %s8012_s13, 16384 }
  0x56   :  { %p7304_p4 = scmp.ne.s32.totalorder %s8012_s13, %s7303_s30  ;;  %p7307_p5 = scmp.lt.u32.totalorder %s7303_s30, %s8012_s13 }
  0x58   :  { %p7309_p6 = pnand %p7307_p5, %p7304_p4 }
  0x5a   :  { %7312 = shalt.err (!%p7309_p6)
}
  0x5b   :  { %s7313_s9 = scalar_lea.vmem %s147_s23, 16384  ;;  %p7318_p8 = scmp.lt.s32.totalorder %s147_s23, %s147_s23 }
  0x5c   :  { %p7314_p7 = scmp.ne.s32.totalorder %s147_s23, %s7313_s9  ;;  %p7319_p9 = scmp.lt.s32.totalorder %s7313_s9, %s7313_s9 }
  0x5e   :  { %p7320_p10 = por %p7319_p9, %p7318_p8 }
  0x60   :  { %p7321_p11 = pnand %p7320_p10, %p7314_p7 }
  0x62   :  { %7324 = shalt.err (!%p7321_p11)
}
  0x63   :  { %s7501_s3 = smov 256   ;;  %s7502_s21 = smov 16  }
  0x64   :  { %152 = dma.hbm_to_vmem [thread:$0]  %s8012_s13, 16384, %s147_s23, [#allocation17], %s7501_s3, %s7501_s3, %s7502_s21  }
  0x65   :  { %s8030_s2 = sld [smem:[#allocation28_spill]] }
  0x6b   :  { %s7325_s24 = scalar_lea.hbm %s8030_s2, 128 }
  0x6c   :  { %p7326_p12 = scmp.ne.s32.totalorder %s8030_s2, %s7325_s24  ;;  %p7329_p13 = scmp.lt.u32.totalorder %s7325_s24, %s8030_s2 }
  0x6e   :  { %p7331_p0 = pnand %p7329_p13, %p7326_p12 }
  0x70   :  { %7334 = shalt.err (!%p7331_p0)
}
  0x71   :  { %s7335_s28 = scalar_lea.vmem %s38_s4, 128  ;;  %p7340_p2 = scmp.lt.s32.totalorder %s38_s4, %s38_s4 }
  0x72   :  { %p7336_p1 = scmp.ne.s32.totalorder %s38_s4, %s7335_s28  ;;  %p7341_p3 = scmp.lt.s32.totalorder %s7335_s28, %s7335_s28 }
  0x74   :  { %p7342_p4 = por %p7341_p3, %p7340_p2 }
  0x76   :  { %p7343_p5 = pnand %p7342_p4, %p7336_p1 }
  0x78   :  { %7346 = shalt.err (!%p7343_p5)
}
  0x79   :  { %40 = dma.hbm_to_vmem [thread:$0]  %s8030_s2, 128, %s38_s4, [#allocation3]  }
  0x7a   :  { %s7503_s29 = smov [#allocation6]   ;;  %s7504_s9 = smov [#allocation9]  }
  0x7b   :  { %s60_s0 = sshll.u32 %s7503_s29, 4  ;;  %s82_s18 = sshll.u32 %s7504_s9, 4  ;;  %s61_s0 = int_to_ptr.vmem [resolvable:$true] %s60_s0  ;;  %s7693_s18 = int_to_ptr.vmem [resolvable:$true] %s82_s18 }
  0x7c   :  { %s8031_s22 = sld [smem:[#allocation31_spill]] }
  0x82   :  { %s7347_s24 = scalar_lea.hbm %s8031_s22, 4096 }
  0x83   :  { %p7348_p6 = scmp.ne.s32.totalorder %s8031_s22, %s7347_s24  ;;  %p7351_p7 = scmp.lt.u32.totalorder %s7347_s24, %s8031_s22 }
  0x85   :  { %p7353_p8 = pnand %p7351_p7, %p7348_p6 }
  0x87   :  { %7356 = shalt.err (!%p7353_p8)
}
  0x88   :  { %s7357_s4 = scalar_lea.vmem %s61_s0, 4096  ;;  %p7362_p10 = scmp.lt.s32.totalorder %s61_s0, %s61_s0 }
  0x89   :  { %p7358_p9 = scmp.ne.s32.totalorder %s61_s0, %s7357_s4  ;;  %p7363_p11 = scmp.lt.s32.totalorder %s7357_s4, %s7357_s4 }
  0x8b   :  { %p7364_p12 = por %p7363_p11, %p7362_p10 }
  0x8d   :  { %p7365_p13 = pnand %p7364_p12, %p7358_p9 }
  0x8f   :  { %7368 = shalt.err (!%p7365_p13)
}
  0x90   :  { %66 = dma.hbm_to_vmem [thread:$0]  %s8031_s22, 4096, %s61_s0, [#allocation5], %s7494_s26, %s7494_s26, %s7495_s27  }
  0x91   :  { %s7369_s29 = scalar_lea.hbm %s8004_s5, 4096 }
  0x92   :  { %p7370_p0 = scmp.ne.s32.totalorder %s8004_s5, %s7369_s29  ;;  %p7373_p1 = scmp.lt.u32.totalorder %s7369_s29, %s8004_s5 }
  0x94   :  { %p7375_p2 = pnand %p7373_p1, %p7370_p0 }
  0x96   :  { %7378 = shalt.err (!%p7375_p2)
}
  0x97   :  { %s7379_s20 = scalar_lea.vmem %s7693_s18, 4096  ;;  %p7384_p4 = scmp.lt.s32.totalorder %s7693_s18, %s7693_s18 }
  0x98   :  { %p7380_p3 = scmp.ne.s32.totalorder %s7693_s18, %s7379_s20  ;;  %p7385_p5 = scmp.lt.s32.totalorder %s7379_s20, %s7379_s20 }
  0x9a   :  { %p7386_p6 = por %p7385_p5, %p7384_p4 }
  0x9c   :  { %p7387_p7 = pnand %p7386_p6, %p7380_p3 }
  0x9e   :  { %7390 = shalt.err (!%p7387_p7)
}
  0x9f   :  { %88 = dma.hbm_to_vmem [thread:$0]  %s8004_s5, 4096, %s7693_s18, [#allocation8], %s7494_s26, %s7494_s26, %s7495_s27  }
  0xa0   :  { %s7505_s25 = smov [#allocation12]   ;;  %s7506_s1 = smov [#allocation15]  }
  0xa1   :  { %s104_s30 = sshll.u32 %s7505_s25, 4  ;;  %s132_s4 = sshll.u32 %s7506_s1, 4  ;;  %s105_s30 = int_to_ptr.vmem [resolvable:$true] %s104_s30  ;;  %s7730_s4 = int_to_ptr.vmem [resolvable:$true] %s132_s4 }
  0xa2   :  { %s7391_s13 = scalar_lea.hbm %s8006_s7, 4096 }
  0xa3   :  { %p7392_p8 = scmp.ne.s32.totalorder %s8006_s7, %s7391_s13  ;;  %p7395_p9 = scmp.lt.u32.totalorder %s7391_s13, %s8006_s7 }
  0xa5   :  { %p7397_p10 = pnand %p7395_p9, %p7392_p8 }
  0xa7   :  { %7400 = shalt.err (!%p7397_p10)
}
  0xa8   :  { %s7401_s5 = scalar_lea.vmem %s105_s30, 4096  ;;  %p7406_p12 = scmp.lt.s32.totalorder %s105_s30, %s105_s30 }
  0xa9   :  { %p7402_p11 = scmp.ne.s32.totalorder %s105_s30, %s7401_s5  ;;  %p7407_p13 = scmp.lt.s32.totalorder %s7401_s5, %s7401_s5 }
  0xab   :  { %p7408_p0 = por %p7407_p13, %p7406_p12 }
  0xad   :  { %p7409_p1 = pnand %p7408_p0, %p7402_p11 }
  0xaf   :  { %7412 = shalt.err (!%p7409_p1)
}
  0xb0   :  { %110 = dma.hbm_to_vmem [thread:$0]  %s8006_s7, 4096, %s105_s30, [#allocation11], %s7494_s26, %s7494_s26, %s7495_s27  }
  0xb1   :  { %s7413_s0 = scalar_lea.hbm %s8010_s11, 8192 }
  0xb2   :  { %p7414_p2 = scmp.ne.s32.totalorder %s8010_s11, %s7413_s0  ;;  %p7417_p3 = scmp.lt.u32.totalorder %s7413_s0, %s8010_s11 }
  0xb4   :  { %p7419_p4 = pnand %p7417_p3, %p7414_p2 }
  0xb6   :  { %7422 = shalt.err (!%p7419_p4)
}
  0xb7   :  { %s7423_s28 = scalar_lea.vmem %s7730_s4, 8192  ;;  %p7428_p6 = scmp.lt.s32.totalorder %s7730_s4, %s7730_s4 }
  0xb8   :  { %p7424_p5 = scmp.ne.s32.totalorder %s7730_s4, %s7423_s28  ;;  %p7429_p7 = scmp.lt.s32.totalorder %s7423_s28, %s7423_s28 }
  0xba   :  { %p7430_p8 = por %p7429_p7, %p7428_p6 }
  0xbc   :  { %p7431_p9 = pnand %p7430_p8, %p7424_p5 }
  0xbe   :  { %7434 = shalt.err (!%p7431_p9)
}
  0xbf   :  { %138 = dma.hbm_to_vmem [thread:$0]  %s8010_s11, 8192, %s7730_s4, [#allocation14], %s7501_s3, %s7501_s3, %s7502_s21  }
  0xc0   :  { %s7507_s27 = smov [#allocation18]   ;;  %s7508_s13 = smov [#allocation19]  }
  0xc1   :  { %s160_s30 = sshll.u32 %s7507_s27, 4  ;;  %s174_s23 = sshll.u32 %s7508_s13, 4  ;;  %s161_s30 = int_to_ptr.vmem [resolvable:$true] %s160_s30  ;;  %s7767_s23 = int_to_ptr.vmem [resolvable:$true] %s174_s23 }
  0xc2   :  { %s7435_s19 = scalar_lea.hbm %s8014_s15, 16384 }
  0xc3   :  { %p7436_p10 = scmp.ne.s32.totalorder %s8014_s15, %s7435_s19  ;;  %p7439_p11 = scmp.lt.u32.totalorder %s7435_s19, %s8014_s15 }
  0xc5   :  { %p7441_p12 = pnand %p7439_p11, %p7436_p10 }
  0xc7   :  { %7444 = shalt.err (!%p7441_p12)
}
  0xc8   :  { %s7445_s11 = scalar_lea.vmem %s161_s30, 16384  ;;  %p7450_p0 = scmp.lt.s32.totalorder %s161_s30, %s161_s30 }
  0xc9   :  { %p7446_p13 = scmp.ne.s32.totalorder %s161_s30, %s7445_s11  ;;  %p7451_p1 = scmp.lt.s32.totalorder %s7445_s11, %s7445_s11 }
  0xcb   :  { %p7452_p2 = por %p7451_p1, %p7450_p0 }
  0xcd   :  { %p7453_p3 = pnand %p7452_p2, %p7446_p13 }
  0xcf   :  { %7456 = shalt.err (!%p7453_p3)
}
  0xd0   :  { %166 = dma.hbm_to_vmem [thread:$0]  %s8014_s15, 16384, %s161_s30, [#allocation17], %s7501_s3, %s7501_s3, %s7502_s21  }
  0xd1   :  { %s7457_s25 = scalar_lea.hbm %s8016_s17, 32768 }
  0xd2   :  { %p7458_p4 = scmp.ne.s32.totalorder %s8016_s17, %s7457_s25  ;;  %p7461_p5 = scmp.lt.u32.totalorder %s7457_s25, %s8016_s17 }
  0xd4   :  { %p7463_p6 = pnand %p7461_p5, %p7458_p4 }
  0xd6   :  { %7466 = shalt.err (!%p7463_p6)
}
  0xd7   :  { %s7467_s26 = scalar_lea.vmem %s7767_s23, 32768  ;;  %p7472_p8 = scmp.lt.s32.totalorder %s7767_s23, %s7767_s23 }
  0xd8   :  { %p7468_p7 = scmp.ne.s32.totalorder %s7767_s23, %s7467_s26  ;;  %p7473_p9 = scmp.lt.s32.totalorder %s7467_s26, %s7467_s26 }
  0xda   :  { %p7474_p10 = por %p7473_p9, %p7472_p8 }
  0xdc   :  { %p7475_p11 = pnand %p7474_p10, %p7468_p7 }
  0xde   :  { %7478 = shalt.err (!%p7475_p11)
}
  0xdf   :  { %s7509_s15 = smov 512   ;;  %s7510_s3 = smov 32  }
  0xe0   :  { %180 = dma.hbm_to_vmem [thread:$0]  %s8016_s17, 32768, %s7767_s23, [#allocation20], %s7509_s15, %s7509_s15, %s7510_s3  }
  0xe1   :  { %7479 = dma.done.wait [#allocation3], 128  }
  0xe2   :  { %7480 = vsyncadd [#allocation3], 4294967168 }
  0xe3   :  { %7481 = dma.done.wait [#allocation5], 6144  }
  0xe4   :  { %7482 = vsyncadd [#allocation5], 4294961152 }
  0xe5   :  { %7483 = dma.done.wait [#allocation8], 4128  }
  0xe6   :  { %7484 = vsyncadd [#allocation8], 4294963168 }
  0xe7   :  { %7485 = dma.done.wait [#allocation11], 4128  }
  0xe8   :  { %7486 = vsyncadd [#allocation11], 4294963168 }
  0xe9   :  { %7487 = dma.done.wait [#allocation14], 12288  }
  0xea   :  { %7488 = vsyncadd [#allocation14], 4294955008 }
  0xeb   :  { %7489 = dma.done.wait [#allocation17], 32768  }
  0xec   :  { %7490 = vsyncadd [#allocation17], 4294934528 }
  0xed   :  { %7491 = dma.done.wait [#allocation20], 32768  }
  0xee   :  { %7492 = vsyncadd [#allocation20], 4294934528  ;;  %v7511_v0 = vmov 0   ;;  %v6519_v1 = vld [vmem:[#allocation4 + $0x4] ss:$8 sps:$4 sm:$0xff]   ;;  %v220_v26 = vld [vmem:[#allocation2] sm:$0xff] }
  0xef   :  { %362 = vmatprep.mubr.bf16.mxu0 %v7511_v0  ;;  %v6521_v2 = vld [vmem:[#allocation4] ss:$8 sps:$4 sm:$0xff]   ;;  %330 = vmatprep.subr.bf16.mxu0 %v6519_v1  ;;  %v6522_v3 = vld [vmem:[#allocation4 + $0x14] ss:$8 sps:$4 sm:$0xff]   ;;  %v6524_v4 = vld [vmem:[#allocation4 + $0x10] ss:$8 sps:$4 sm:$0xff]   ;;  %v221_v31 = vpack.c.bf16 %v220_v26, %v220_v26 }
  0xf0   :  { %331 = vmatpush1.bf16.msra.mxu0 %v6521_v2  ;;  %v6525_v5 = vld [vmem:[#allocation4 + $0x24] ss:$8 sps:$4 sm:$0xff]   ;;  %v6527_v6 = vld [vmem:[#allocation4 + $0x20] ss:$8 sps:$4 sm:$0xff]   ;;  %v6528_v7 = vld [vmem:[#allocation4 + $0x34] ss:$8 sps:$4 sm:$0xff]  }
  0xf1   :  { %332 = vmatprep.subr.bf16.mxu0 %v6522_v3  ;;  %v6530_v8 = vld [vmem:[#allocation4 + $0x30] ss:$8 sps:$4 sm:$0xff]   ;;  %v6531_v9 = vld [vmem:[#allocation4 + $0x44] ss:$8 sps:$4 sm:$0xff]   ;;  %v6545_v11 = vld [vmem:[#allocation6] ss:$8 sps:$4 sm:$0xff]  }
  0xf2   :  { %v6543_v10 = vld [vmem:[#allocation6 + $0x4] ss:$8 sps:$4 sm:$0xff]   ;;  %v6546_v12 = vld [vmem:[#allocation6 + $0x14] ss:$8 sps:$4 sm:$0xff]   ;;  %v6533_v13 = vld [vmem:[#allocation4 + $0x40] ss:$8 sps:$4 sm:$0xff]  }
  0xf3   :  { %583 = vmatprep.subr.bf16.mxu1 %v6543_v10  ;;  %v6548_v14 = vld [vmem:[#allocation6 + $0x10] ss:$8 sps:$4 sm:$0xff]   ;;  %v6549_v15 = vld [vmem:[#allocation6 + $0x24] ss:$8 sps:$4 sm:$0xff]   ;;  %v6534_v16 = vld [vmem:[#allocation4 + $0x54] ss:$8 sps:$4 sm:$0xff]  }
  0xf4   :  { %333 = vmatpush1.bf16.msra.mxu0 %v6524_v4  ;;  %584 = vmatpush1.bf16.msra.mxu1 %v6545_v11  ;;  %v6536_v17 = vld [vmem:[#allocation4 + $0x50] ss:$8 sps:$4 sm:$0xff]   ;;  %v6551_v18 = vld [vmem:[#allocation6 + $0x20] ss:$8 sps:$4 sm:$0xff]   ;;  %v6552_v19 = vld [vmem:[#allocation6 + $0x34] ss:$8 sps:$4 sm:$0xff]  }
  0xf5   :  { %334 = vmatprep.subr.bf16.mxu0 %v6525_v5  ;;  %585 = vmatprep.subr.bf16.mxu1 %v6546_v12  ;;  %v6537_v20 = vld [vmem:[#allocation4 + $0x64] ss:$8 sps:$4 sm:$0xff]   ;;  %v6539_v21 = vld [vmem:[#allocation4 + $0x60] ss:$8 sps:$4 sm:$0xff]   ;;  %v6554_v22 = vld [vmem:[#allocation6 + $0x30] ss:$8 sps:$4 sm:$0xff]  }
  0xf6   :  { %v6555_v23 = vld [vmem:[#allocation6 + $0x44] ss:$8 sps:$4 sm:$0xff]   ;;  %v6540_v24 = vld [vmem:[#allocation4 + $0x74] ss:$8 sps:$4 sm:$0xff]   ;;  %v6542_v25 = vld [vmem:[#allocation4 + $0x70] ss:$8 sps:$4 sm:$0xff]  }
  0xf7   :  { %v6557_v27 = vld [vmem:[#allocation6 + $0x40] ss:$8 sps:$4 sm:$0xff]   ;;  %v6558_v28 = vld [vmem:[#allocation6 + $0x54] ss:$8 sps:$4 sm:$0xff]   ;;  %v6560_v29 = vld [vmem:[#allocation6 + $0x50] ss:$8 sps:$4 sm:$0xff]  }
  0xf8   :  { %335 = vmatpush1.bf16.msra.mxu0 %v6527_v6  ;;  %586 = vmatpush1.bf16.msra.mxu1 %v6548_v14  ;;  %v6561_v30 = vld [vmem:[#allocation6 + $0x64] ss:$8 sps:$4 sm:$0xff]   ;;  %v6563_v32 = vld [vmem:[#allocation6 + $0x60] ss:$8 sps:$4 sm:$0xff]   ;;  %v6564_v33 = vld [vmem:[#allocation6 + $0x74] ss:$8 sps:$4 sm:$0xff]  }
  0xf9   :  { %336 = vmatprep.subr.bf16.mxu0 %v6528_v7  ;;  %587 = vmatprep.subr.bf16.mxu1 %v6549_v15  ;;  %v6566_v34 = vld [vmem:[#allocation6 + $0x70] ss:$8 sps:$4 sm:$0xff]   ;;  %v6567_v35 = vld [vmem:[#allocation6 + $0x84] ss:$8 sps:$4 sm:$0xff]   ;;  %v6569_v36 = vld [vmem:[#allocation6 + $0x80] ss:$8 sps:$4 sm:$0xff]   ;;  %v240_v15 = vlaneseq }
  0xfa   :  { %v6570_v37 = vld [vmem:[#allocation6 + $0x94] ss:$8 sps:$4 sm:$0xff]   ;;  %v6572_v38 = vld [vmem:[#allocation6 + $0x90] ss:$8 sps:$4 sm:$0xff]   ;;  %v6573_v39 = vld [vmem:[#allocation6 + $0xa4] ss:$8 sps:$4 sm:$0xff]  }
  0xfb   :  { %v6575_v40 = vld [vmem:[#allocation6 + $0xa0] ss:$8 sps:$4 sm:$0xff]   ;;  %v6576_v41 = vld [vmem:[#allocation6 + $0xb4] ss:$8 sps:$4 sm:$0xff]   ;;  %v6578_v42 = vld [vmem:[#allocation6 + $0xb0] ss:$8 sps:$4 sm:$0xff]  }
  0xfc   :  { %337 = vmatpush1.bf16.msra.mxu0 %v6530_v8  ;;  %588 = vmatpush1.bf16.msra.mxu1 %v6551_v18  ;;  %v6579_v43 = vld [vmem:[#allocation6 + $0xc4] ss:$8 sps:$4 sm:$0xff]   ;;  %v6581_v44 = vld [vmem:[#allocation6 + $0xc0] ss:$8 sps:$4 sm:$0xff]   ;;  %v6582_v45 = vld [vmem:[#allocation6 + $0xd4] ss:$8 sps:$4 sm:$0xff]  }
  0xfd   :  { %338 = vmatprep.subr.bf16.mxu0 %v6531_v9  ;;  %589 = vmatprep.subr.bf16.mxu1 %v6552_v19  ;;  %v6584_v46 = vld [vmem:[#allocation6 + $0xd0] ss:$8 sps:$4 sm:$0xff]   ;;  %v6585_v47 = vld [vmem:[#allocation6 + $0xe4] ss:$8 sps:$4 sm:$0xff]   ;;  %v6587_v48 = vld [vmem:[#allocation6 + $0xe0] ss:$8 sps:$4 sm:$0xff]  }
  0xfe   :  { %v6588_v49 = vld [vmem:[#allocation6 + $0xf4] ss:$8 sps:$4 sm:$0xff]   ;;  %v6590_v50 = vld [vmem:[#allocation6 + $0xf0] ss:$8 sps:$4 sm:$0xff]   ;;  %v6591_v51 = vld [vmem:[#allocation9] ss:$8 sps:$4 sm:$0xff]  }
  0xff   :  { %v6593_v52 = vld [vmem:[#allocation9 + $0x4] ss:$8 sps:$4 sm:$0xff]   ;;  %v6596_v53 = vld [vmem:[#allocation9 + $0x14] ss:$8 sps:$4 sm:$0xff]   ;;  %v6594_v54 = vld [vmem:[#allocation9 + $0x10] ss:$8 sps:$4 sm:$0xff]  }
 0x100   :  { %339 = vmatpush1.bf16.msra.mxu0 %v6533_v13  ;;  %590 = vmatpush1.bf16.msra.mxu1 %v6554_v22  ;;  %v6599_v55 = vld [vmem:[#allocation9 + $0x24] ss:$8 sps:$4 sm:$0xff]   ;;  %v6597_v56 = vld [vmem:[#allocation9 + $0x20] ss:$8 sps:$4 sm:$0xff]   ;;  %v6602_v57 = vld [vmem:[#allocation9 + $0x34] ss:$8 sps:$4 sm:$0xff]  }
 0x101   :  { %340 = vmatprep.subr.bf16.mxu0 %v6534_v16  ;;  %591 = vmatprep.subr.bf16.mxu1 %v6555_v23  ;;  %v6600_v58 = vld [vmem:[#allocation9 + $0x30] ss:$8 sps:$4 sm:$0xff]   ;;  %v6605_v59 = vld [vmem:[#allocation9 + $0x44] ss:$8 sps:$4 sm:$0xff]   ;;  %v6603_v60 = vld [vmem:[#allocation9 + $0x40] ss:$8 sps:$4 sm:$0xff]  }
 0x102   :  { %v6608_v61 = vld [vmem:[#allocation9 + $0x54] ss:$8 sps:$4 sm:$0xff]   ;;  %v6606_v62 = vld [vmem:[#allocation9 + $0x50] ss:$8 sps:$4 sm:$0xff]   ;;  %v6611_v63 = vld [vmem:[#allocation9 + $0x64] ss:$8 sps:$4 sm:$0xff]  }
 0x103   :  { %v6609_v0 = vld [vmem:[#allocation9 + $0x60] ss:$8 sps:$4 sm:$0xff]   ;;  %v6614_v1 = vld [vmem:[#allocation9 + $0x74] ss:$8 sps:$4 sm:$0xff]   ;;  %v6612_v2 = vld [vmem:[#allocation9 + $0x70] ss:$8 sps:$4 sm:$0xff]  }
 0x104   :  { %341 = vmatpush1.bf16.msra.mxu0 %v6536_v17  ;;  %592 = vmatpush1.bf16.msra.mxu1 %v6557_v27  ;;  %v6617_v3 = vld [vmem:[#allocation9 + $0x84] ss:$8 sps:$4 sm:$0xff]   ;;  %v6615_v4 = vld [vmem:[#allocation9 + $0x80] ss:$8 sps:$4 sm:$0xff]   ;;  %v6620_v5 = vld [vmem:[#allocation9 + $0x94] ss:$8 sps:$4 sm:$0xff]  }
 0x105   :  { %342 = vmatprep.subr.bf16.mxu0 %v6537_v20  ;;  %593 = vmatprep.subr.bf16.mxu1 %v6558_v28  ;;  %v6618_v6 = vld [vmem:[#allocation9 + $0x90] ss:$8 sps:$4 sm:$0xff]   ;;  %v6623_v7 = vld [vmem:[#allocation9 + $0xa4] ss:$8 sps:$4 sm:$0xff]   ;;  %v6621_v8 = vld [vmem:[#allocation9 + $0xa0] ss:$8 sps:$4 sm:$0xff]  }
 0x106   :  { %v6626_v9 = vld [vmem:[#allocation9 + $0xb4] ss:$8 sps:$4 sm:$0xff]   ;;  %v6624_v10 = vld [vmem:[#allocation9 + $0xb0] ss:$8 sps:$4 sm:$0xff]   ;;  %v6629_v11 = vld [vmem:[#allocation9 + $0xc4] ss:$8 sps:$4 sm:$0xff]  }
 0x107   :  { %v6627_v12 = vld [vmem:[#allocation9 + $0xc0] ss:$8 sps:$4 sm:$0xff]   ;;  %v6632_v13 = vld [vmem:[#allocation9 + $0xd4] ss:$8 sps:$4 sm:$0xff]   ;;  %v6630_v14 = vld [vmem:[#allocation9 + $0xd0] ss:$8 sps:$4 sm:$0xff]  }
 0x108   :  { %343 = vmatpush1.bf16.msra.mxu0 %v6539_v21  ;;  %594 = vmatpush1.bf16.msra.mxu1 %v6560_v29  ;;  %v7801_v16 = vshrl.u32 %v240_v15, 7  ;;  %s8032_s13 = sld [smem:[#allocation30_spill]]  ;;  %s8033_s24 = sld [smem:[#allocation32_spill]] }
 0x109   :  { %344 = vmatprep.subr.bf16.mxu0 %v6540_v24  ;;  %595 = vmatprep.subr.bf16.mxu1 %v6561_v30  ;;  %s8034_s20 = sld [smem:[#allocation33_spill]] }
 0x10a   :  { %v7804_v17 = vsub.s32 0, %v7801_v16  ;;  %v7810_v19 = vsub.s32 1, %v7801_v16 }
 0x10c   :  { %345 = vmatpush1.bf16.msra.mxu0 %v6542_v25  ;;  %596 = vmatpush1.bf16.msra.mxu1 %v6563_v32 }
 0x10d   :  { %597 = vmatprep.subr.bf16.mxu1 %v6564_v33  ;;  %836 = vmatprep.subr.bf16.mxu0 %v6593_v52  ;;  %v6662_v52 = vld [vmem:[#allocation12 + $0x74] ss:$8 sps:$4 sm:$0xff]  }
 0x10e   :  { %v238_v18 = vld [vmem:[%s8032_s13] sm:$0x3] }
 0x10f   :  { %363 = vmatmul.mubr.bf16.vlgmr.msra.gmra.mrb[0].mxu0 %v221_v31  ;;  %v243_v20 = vrot.slane %v238_v18, %v7804_v17  ;;  %v247_v21 = vrot.slane %v238_v18, %v7810_v19 }
 0x110   :  { %598 = vmatpush1.bf16.msra.mxu1 %v6566_v34  ;;  %837 = vmatpush1.bf16.msra.mxu0 %v6591_v51  ;;  %v6635_v34 = vld [vmem:[#allocation9 + $0xe4] ss:$8 sps:$4 sm:$0xff]  }
 0x111   :  { %599 = vmatprep.subr.bf16.mxu1 %v6567_v35  ;;  %838 = vmatprep.subr.bf16.mxu0 %v6596_v53  ;;  %v6633_v35 = vld [vmem:[#allocation9 + $0xe0] ss:$8 sps:$4 sm:$0xff]   ;;  %v6660_v53 = vld [vmem:[#allocation12 + $0x70] ss:$8 sps:$4 sm:$0xff]  }
 0x112   :  { %v6657_v51 = vld [vmem:[#allocation12 + $0x60] ss:$8 sps:$4 sm:$0xff]  }
 0x114   :  { %600 = vmatpush1.bf16.msra.mxu1 %v6569_v36  ;;  %839 = vmatpush1.bf16.msra.mxu0 %v6594_v54  ;;  %v6638_v36 = vld [vmem:[#allocation9 + $0xf4] ss:$8 sps:$4 sm:$0xff]   ;;  %v6665_v54 = vld [vmem:[#allocation12 + $0x84] ss:$8 sps:$4 sm:$0xff]  }
 0x115   :  { %601 = vmatprep.subr.bf16.mxu1 %v6570_v37  ;;  %840 = vmatprep.subr.bf16.mxu0 %v6599_v55  ;;  %v6636_v37 = vld [vmem:[#allocation9 + $0xf0] ss:$8 sps:$4 sm:$0xff]   ;;  %v6663_v55 = vld [vmem:[#allocation12 + $0x80] ss:$8 sps:$4 sm:$0xff]  }
 0x118   :  { %602 = vmatpush1.bf16.msra.mxu1 %v6572_v38  ;;  %841 = vmatpush1.bf16.msra.mxu0 %v6597_v56  ;;  %v6639_v38 = vld [vmem:[#allocation12] ss:$8 sps:$4 sm:$0xff]   ;;  %v6668_v56 = vld [vmem:[#allocation12 + $0x94] ss:$8 sps:$4 sm:$0xff]  }
 0x119   :  { %603 = vmatprep.subr.bf16.mxu1 %v6573_v39  ;;  %842 = vmatprep.subr.bf16.mxu0 %v6602_v57  ;;  %v6641_v39 = vld [vmem:[#allocation12 + $0x4] ss:$8 sps:$4 sm:$0xff]   ;;  %v6666_v57 = vld [vmem:[#allocation12 + $0x90] ss:$8 sps:$4 sm:$0xff]  }
 0x11c   :  { %604 = vmatpush1.bf16.msra.mxu1 %v6575_v40  ;;  %843 = vmatpush1.bf16.msra.mxu0 %v6600_v58  ;;  %v6644_v40 = vld [vmem:[#allocation12 + $0x14] ss:$8 sps:$4 sm:$0xff]   ;;  %v6671_v58 = vld [vmem:[#allocation12 + $0xa4] ss:$8 sps:$4 sm:$0xff]  }
 0x11d   :  { %605 = vmatprep.subr.bf16.mxu1 %v6576_v41  ;;  %844 = vmatprep.subr.bf16.mxu0 %v6605_v59  ;;  %v6642_v41 = vld [vmem:[#allocation12 + $0x10] ss:$8 sps:$4 sm:$0xff]   ;;  %v6669_v59 = vld [vmem:[#allocation12 + $0xa0] ss:$8 sps:$4 sm:$0xff]  }
 0x120   :  { %606 = vmatpush1.bf16.msra.mxu1 %v6578_v42  ;;  %845 = vmatpush1.bf16.msra.mxu0 %v6603_v60  ;;  %v6647_v42 = vld [vmem:[#allocation12 + $0x24] ss:$8 sps:$4 sm:$0xff]   ;;  %v6674_v60 = vld [vmem:[#allocation12 + $0xb4] ss:$8 sps:$4 sm:$0xff]  }
 0x121   :  { %607 = vmatprep.subr.bf16.mxu1 %v6579_v43  ;;  %846 = vmatprep.subr.bf16.mxu0 %v6608_v61  ;;  %v6645_v43 = vld [vmem:[#allocation12 + $0x20] ss:$8 sps:$4 sm:$0xff]   ;;  %v6672_v61 = vld [vmem:[#allocation12 + $0xb0] ss:$8 sps:$4 sm:$0xff]  }
 0x124   :  { %608 = vmatpush1.bf16.msra.mxu1 %v6581_v44  ;;  %847 = vmatpush1.bf16.msra.mxu0 %v6606_v62  ;;  %v6650_v44 = vld [vmem:[#allocation12 + $0x34] ss:$8 sps:$4 sm:$0xff]   ;;  %v6677_v62 = vld [vmem:[#allocation12 + $0xc4] ss:$8 sps:$4 sm:$0xff]  }
 0x125   :  { %609 = vmatprep.subr.bf16.mxu1 %v6582_v45  ;;  %848 = vmatprep.subr.bf16.mxu0 %v6611_v63  ;;  %v6648_v45 = vld [vmem:[#allocation12 + $0x30] ss:$8 sps:$4 sm:$0xff]   ;;  %v6675_v63 = vld [vmem:[#allocation12 + $0xc0] ss:$8 sps:$4 sm:$0xff]  }
 0x128   :  { %610 = vmatpush1.bf16.msra.mxu1 %v6584_v46  ;;  %849 = vmatpush1.bf16.msra.mxu0 %v6609_v0  ;;  %v6653_v46 = vld [vmem:[#allocation12 + $0x44] ss:$8 sps:$4 sm:$0xff]   ;;  %v6680_v0 = vld [vmem:[#allocation12 + $0xd4] ss:$8 sps:$4 sm:$0xff]  }
 0x129   :  { %611 = vmatprep.subr.bf16.mxu1 %v6585_v47  ;;  %850 = vmatprep.subr.bf16.mxu0 %v6614_v1  ;;  %v6651_v47 = vld [vmem:[#allocation12 + $0x40] ss:$8 sps:$4 sm:$0xff]   ;;  %v6678_v1 = vld [vmem:[#allocation12 + $0xd0] ss:$8 sps:$4 sm:$0xff]  }
 0x12c   :  { %612 = vmatpush1.bf16.msra.mxu1 %v6587_v48  ;;  %851 = vmatpush1.bf16.msra.mxu0 %v6612_v2  ;;  %v6656_v48 = vld [vmem:[#allocation12 + $0x54] ss:$8 sps:$4 sm:$0xff]  }
 0x12d   :  { %613 = vmatprep.subr.bf16.mxu1 %v6588_v49  ;;  %852 = vmatprep.subr.bf16.mxu0 %v6617_v3  ;;  %v6654_v49 = vld [vmem:[#allocation12 + $0x50] ss:$8 sps:$4 sm:$0xff]   ;;  %v411_v2 = vld [vmem:[#allocation7] sm:$0x3] }
 0x12e   :  { %v416_v3 = vrot.slane %v411_v2, %v7804_v17 }
 0x130   :  { %614 = vmatpush1.bf16.msra.mxu1 %v6590_v50  ;;  %853 = vmatpush1.bf16.msra.mxu0 %v6615_v4  ;;  %v6659_v50 = vld [vmem:[#allocation12 + $0x64] ss:$8 sps:$4 sm:$0xff]   ;;  %v420_v4 = vrot.slane %v411_v2, %v7810_v19 }
 0x131   :  { %854 = vmatprep.subr.bf16.mxu0 %v6620_v5  ;;  %1085 = vmatprep.subr.bf16.mxu1 %v6641_v39  ;;  %v6705_v39 = vld [vmem:[#allocation13 + $0x60] ss:$8 sps:$4 sm:$0xff]  }
 0x134   :  { %855 = vmatpush1.bf16.msra.mxu0 %v6618_v6 }
 0x135   :  { %856 = vmatprep.subr.bf16.mxu0 %v6623_v7 }
 0x138   :  { %857 = vmatpush1.bf16.msra.mxu0 %v6621_v8 }
 0x139   :  { %858 = vmatprep.subr.bf16.mxu0 %v6626_v9 }
 0x13c   :  { %859 = vmatpush1.bf16.msra.mxu0 %v6624_v10 }
 0x13d   :  { %860 = vmatprep.subr.bf16.mxu0 %v6629_v11 }
 0x140   :  { %861 = vmatpush1.bf16.msra.mxu0 %v6627_v12 }
 0x141   :  { %862 = vmatprep.subr.bf16.mxu0 %v6632_v13 }
 0x144   :  { %863 = vmatpush1.bf16.msra.mxu0 %v6630_v14 }
 0x145   :  { %864 = vmatprep.subr.bf16.mxu0 %v6635_v34  ;;  %v6701_v34 = vld [vmem:[#allocation13 + $0x44] ss:$8 sps:$4 sm:$0xff]  }
 0x148   :  { %865 = vmatpush1.bf16.msra.mxu0 %v6633_v35  ;;  %v6699_v35 = vld [vmem:[#allocation13 + $0x40] ss:$8 sps:$4 sm:$0xff]  }
 0x149   :  { %866 = vmatprep.subr.bf16.mxu0 %v6638_v36  ;;  %v6704_v36 = vld [vmem:[#allocation13 + $0x54] ss:$8 sps:$4 sm:$0xff]  }
 0x14c   :  { %867 = vmatpush1.bf16.msra.mxu0 %v6636_v37  ;;  %v6702_v37 = vld [vmem:[#allocation13 + $0x50] ss:$8 sps:$4 sm:$0xff]  }
 0x1e2   :  { %v364_v22 = vpop.f32.mrb[0].mxu0 }
 0x1e3   :  { %v365_v23 = vadd.f32 %v364_v22, %v243_v20  ;;  %v366_v24 = vpop.f32.mrb[1].mxu0  ;;  %v6683_v20 = vld [vmem:[#allocation12 + $0xe4] ss:$8 sps:$4 sm:$0xff]   ;;  %v6686_v22 = vld [vmem:[#allocation12 + $0xf4] ss:$8 sps:$4 sm:$0xff]  }
 0x1e4   :  { %v367_v25 = vadd.f32 %v366_v24, %v247_v21  ;;  %v368_v26 = vpop.f32.mrb[2].mxu0  ;;  %v6681_v21 = vld [vmem:[#allocation12 + $0xe0] ss:$8 sps:$4 sm:$0xff]  }
 0x1e5   :  { %vm371_vm0 = vcmp.ge.f32.partialorder %v365_v23, 0.0  ;;  %v373_v27 = vmul.f32 0.01, %v365_v23  ;;  %v369_v28 = vpop.f32.mrb[3].mxu0  ;;  %v6687_v24 = vld [vmem:[#allocation13] ss:$8 sps:$4 sm:$0xff]  }
 0x1e6   :  { %v374_v29 = vmul.f32 0.01, %v367_v25  ;;  %vm372_vm1 = vcmp.ge.f32.partialorder %v367_v25, 0.0  ;;  %v6692_v26 = vld [vmem:[#allocation13 + $0x14] ss:$8 sps:$4 sm:$0xff]  }
 0x1e7   :  { %v7814_v30 = vsel %vm371_vm0, %v365_v23, %v373_v27  ;;  %v6684_v23 = vld [vmem:[#allocation12 + $0xf0] ss:$8 sps:$4 sm:$0xff]   ;;  %v6695_v28 = vld [vmem:[#allocation13 + $0x24] ss:$8 sps:$4 sm:$0xff]  }
 0x1e8   :  { %v7816_v31 = vsel %vm372_vm1, %v367_v25, %v374_v29  ;;  %v377_v33 = vpack.c.bf16 %v7814_v30, %v7814_v30  ;;  %v6689_v25 = vld [vmem:[#allocation13 + $0x4] ss:$8 sps:$4 sm:$0xff]   ;;  %v6690_v27 = vld [vmem:[#allocation13 + $0x10] ss:$8 sps:$4 sm:$0xff]   ;;  %v6693_v29 = vld [vmem:[#allocation13 + $0x20] ss:$8 sps:$4 sm:$0xff]  }
 0x1e9   :  { %v378_v32 = vpack.c.bf16 %v7816_v31, %v7816_v31  ;;  %1338 = vmatprep.subr.bf16.mxu0 %v6689_v25  ;;  %v6785_v25 = vld [vmem:[#allocation15 + $0x104] ss:$16 sps:$4 sm:$0xff]  }
 0x1eb   :  { %615 = vmatprep.mubr.bf16.mxu1 %v378_v32  ;;  %v6698_v32 = vld [vmem:[#allocation13 + $0x34] ss:$8 sps:$4 sm:$0xff]  }
 0x1ec   :  { %616 = vmatmul.mubr.bf16.vlgmr.msra.gmra.mrb[0].mxu1 %v377_v33  ;;  %v6696_v33 = vld [vmem:[#allocation13 + $0x30] ss:$8 sps:$4 sm:$0xff]  }
 0x1ed   :  { %1086 = vmatpush1.bf16.msra.mxu1 %v6639_v38  ;;  %v6707_v38 = vld [vmem:[#allocation13 + $0x64] ss:$8 sps:$4 sm:$0xff]  }
 0x1ee   :  { %1087 = vmatprep.subr.bf16.mxu1 %v6644_v40  ;;  %v6710_v40 = vld [vmem:[#allocation13 + $0x74] ss:$8 sps:$4 sm:$0xff]  }
 0x1f1   :  { %1088 = vmatpush1.bf16.msra.mxu1 %v6642_v41  ;;  %v6708_v41 = vld [vmem:[#allocation13 + $0x70] ss:$8 sps:$4 sm:$0xff]  }
 0x1f2   :  { %1089 = vmatprep.subr.bf16.mxu1 %v6647_v42  ;;  %v6713_v42 = vld [vmem:[#allocation13 + $0x84] ss:$8 sps:$4 sm:$0xff]  }
 0x1f5   :  { %1090 = vmatpush1.bf16.msra.mxu1 %v6645_v43  ;;  %v6711_v43 = vld [vmem:[#allocation13 + $0x80] ss:$8 sps:$4 sm:$0xff]  }
 0x1f6   :  { %1091 = vmatprep.subr.bf16.mxu1 %v6650_v44  ;;  %v6716_v44 = vld [vmem:[#allocation13 + $0x94] ss:$8 sps:$4 sm:$0xff]  }
 0x1f9   :  { %1092 = vmatpush1.bf16.msra.mxu1 %v6648_v45  ;;  %v6714_v45 = vld [vmem:[#allocation13 + $0x90] ss:$8 sps:$4 sm:$0xff]  }
 0x1fa   :  { %1093 = vmatprep.subr.bf16.mxu1 %v6653_v46  ;;  %v6719_v46 = vld [vmem:[#allocation13 + $0xa4] ss:$8 sps:$4 sm:$0xff]  }
 0x1fd   :  { %1094 = vmatpush1.bf16.msra.mxu1 %v6651_v47  ;;  %v6717_v47 = vld [vmem:[#allocation13 + $0xa0] ss:$8 sps:$4 sm:$0xff]  }
 0x1fe   :  { %1095 = vmatprep.subr.bf16.mxu1 %v6656_v48  ;;  %v6722_v48 = vld [vmem:[#allocation13 + $0xb4] ss:$8 sps:$4 sm:$0xff]  }
 0x201   :  { %1096 = vmatpush1.bf16.msra.mxu1 %v6654_v49  ;;  %v6720_v49 = vld [vmem:[#allocation13 + $0xb0] ss:$8 sps:$4 sm:$0xff]  }
 0x202   :  { %1097 = vmatprep.subr.bf16.mxu1 %v6659_v50  ;;  %v6725_v50 = vld [vmem:[#allocation13 + $0xc4] ss:$8 sps:$4 sm:$0xff]  }
 0x205   :  { %1098 = vmatpush1.bf16.msra.mxu1 %v6657_v51  ;;  %v6723_v51 = vld [vmem:[#allocation13 + $0xc0] ss:$8 sps:$4 sm:$0xff]  }
 0x206   :  { %1099 = vmatprep.subr.bf16.mxu1 %v6662_v52  ;;  %v6728_v52 = vld [vmem:[#allocation13 + $0xd4] ss:$8 sps:$4 sm:$0xff]  }
 0x209   :  { %1100 = vmatpush1.bf16.msra.mxu1 %v6660_v53  ;;  %v6726_v53 = vld [vmem:[#allocation13 + $0xd0] ss:$8 sps:$4 sm:$0xff]  }
 0x20a   :  { %1101 = vmatprep.subr.bf16.mxu1 %v6665_v54  ;;  %v664_v54 = vld [vmem:[#allocation10] sm:$0x3] }
 0x20d   :  { %1102 = vmatpush1.bf16.msra.mxu1 %v6663_v55  ;;  %v669_v55 = vrot.slane %v664_v54, %v7804_v17 }
 0x20e   :  { %1103 = vmatprep.subr.bf16.mxu1 %v6668_v56  ;;  %v673_v56 = vrot.slane %v664_v54, %v7810_v19 }
 0x211   :  { %1104 = vmatpush1.bf16.msra.mxu1 %v6666_v57 }
 0x212   :  { %1105 = vmatprep.subr.bf16.mxu1 %v6671_v58 }
 0x215   :  { %1106 = vmatpush1.bf16.msra.mxu1 %v6669_v59 }
 0x216   :  { %1107 = vmatprep.subr.bf16.mxu1 %v6674_v60 }
 0x219   :  { %1108 = vmatpush1.bf16.msra.mxu1 %v6672_v61 }
 0x21a   :  { %1109 = vmatprep.subr.bf16.mxu1 %v6677_v62 }
 0x21d   :  { %1110 = vmatpush1.bf16.msra.mxu1 %v6675_v63 }
 0x21e   :  { %1111 = vmatprep.subr.bf16.mxu1 %v6680_v0 }
 0x221   :  { %1112 = vmatpush1.bf16.msra.mxu1 %v6678_v1 }
 0x222   :  { %1113 = vmatprep.subr.bf16.mxu1 %v6683_v20  ;;  %v6765_v20 = vld [vmem:[#allocation15 + $0xa0] ss:$16 sps:$4 sm:$0xff]  }
 0x225   :  { %1114 = vmatpush1.bf16.msra.mxu1 %v6681_v21  ;;  %v6773_v21 = vld [vmem:[#allocation15 + $0xc4] ss:$16 sps:$4 sm:$0xff]  }
 0x226   :  { %1115 = vmatprep.subr.bf16.mxu1 %v6686_v22  ;;  %v6771_v22 = vld [vmem:[#allocation15 + $0xc0] ss:$16 sps:$4 sm:$0xff]  }
 0x229   :  { %1116 = vmatpush1.bf16.msra.mxu1 %v6684_v23  ;;  %v6779_v23 = vld [vmem:[#allocation15 + $0xe4] ss:$16 sps:$4 sm:$0xff]  }
 0x2bf   :  { %v617_v5 = vpop.f32.mrb[0].mxu1 }
 0x2c0   :  { %v618_v6 = vadd.f32 %v617_v5, %v416_v3  ;;  %v619_v7 = vpop.f32.mrb[1].mxu1  ;;  %v6731_v3 = vld [vmem:[#allocation13 + $0xe4] ss:$8 sps:$4 sm:$0xff]   ;;  %v6734_v5 = vld [vmem:[#allocation13 + $0xf4] ss:$8 sps:$4 sm:$0xff]  }
 0x2c1   :  { %v620_v8 = vadd.f32 %v619_v7, %v420_v4  ;;  %v621_v9 = vpop.f32.mrb[2].mxu1  ;;  %v6729_v4 = vld [vmem:[#allocation13 + $0xe0] ss:$8 sps:$4 sm:$0xff]   ;;  %v6737_v7 = vld [vmem:[#allocation15 + $0x4] ss:$16 sps:$4 sm:$0xff]  }
 0x2c2   :  { %vm624_vm2 = vcmp.ge.f32.partialorder %v618_v6, 0.0  ;;  %v626_v10 = vmul.f32 0.01, %v618_v6  ;;  %v622_v11 = vpop.f32.mrb[3].mxu1  ;;  %1789 = vmatprep.subr.bf16.mxu1 %v6737_v7  ;;  %v6741_v9 = vld [vmem:[#allocation15 + $0x20] ss:$16 sps:$4 sm:$0xff]  }
 0x2c3   :  { %vm625_vm3 = vcmp.ge.f32.partialorder %v620_v8, 0.0  ;;  %v627_v12 = vmul.f32 0.01, %v620_v8  ;;  %v6747_v11 = vld [vmem:[#allocation15 + $0x40] ss:$16 sps:$4 sm:$0xff]  }
 0x2c4   :  { %v628_v13 = vsel %vm624_vm2, %v618_v6, %v626_v10  ;;  %v6732_v6 = vld [vmem:[#allocation13 + $0xf0] ss:$8 sps:$4 sm:$0xff]   ;;  %v6749_v10 = vld [vmem:[#allocation15 + $0x44] ss:$16 sps:$4 sm:$0xff]  }
 0x2c5   :  { %v629_v14 = vsel %vm625_vm3, %v620_v8, %v627_v12  ;;  %v630_v18 = vpack.c.bf16 %v628_v13, %v628_v13  ;;  %v6743_v8 = vld [vmem:[#allocation15 + $0x24] ss:$16 sps:$4 sm:$0xff]   ;;  %v6753_v13 = vld [vmem:[#allocation15 + $0x60] ss:$16 sps:$4 sm:$0xff]   ;;  %v6786_v7 = vld [vmem:[#allocation15 + $0x108] ss:$16 sps:$4 sm:$0xff]  }
 0x2c6   :  { %v631_v15 = vpack.c.bf16 %v629_v14, %v629_v14  ;;  %v6755_v12 = vld [vmem:[#allocation15 + $0x64] ss:$16 sps:$4 sm:$0xff]  }
 0x2c7   :  { %v6761_v14 = vld [vmem:[#allocation15 + $0x84] ss:$16 sps:$4 sm:$0xff]  }
 0x2c8   :  { %868 = vmatprep.mubr.bf16.mxu0 %v631_v15  ;;  %v6759_v15 = vld [vmem:[#allocation15 + $0x80] ss:$16 sps:$4 sm:$0xff]  }
 0x2c9   :  { %869 = vmatmul.mubr.bf16.vlgmr.msra.gmra.mrb[4].mxu0 %v630_v18  ;;  %v6767_v18 = vld [vmem:[#allocation15 + $0xa4] ss:$16 sps:$4 sm:$0xff]  }
 0x2ca   :  { %1339 = vmatpush1.bf16.msra.mxu0 %v6687_v24  ;;  %v6777_v24 = vld [vmem:[#allocation15 + $0xe0] ss:$16 sps:$4 sm:$0xff]  }
 0x2cb   :  { %1340 = vmatprep.subr.bf16.mxu0 %v6692_v26  ;;  %v6783_v26 = vld [vmem:[#allocation15 + $0x100] ss:$16 sps:$4 sm:$0xff]  }
 0x2ce   :  { %1341 = vmatpush1.bf16.msra.mxu0 %v6690_v27  ;;  %v6791_v27 = vld [vmem:[#allocation15 + $0x124] ss:$16 sps:$4 sm:$0xff]  }
 0x2cf   :  { %1342 = vmatprep.subr.bf16.mxu0 %v6695_v28  ;;  %v6789_v28 = vld [vmem:[#allocation15 + $0x120] ss:$16 sps:$4 sm:$0xff]  }
 0x2d2   :  { %1343 = vmatpush1.bf16.msra.mxu0 %v6693_v29  ;;  %v6797_v29 = vld [vmem:[#allocation15 + $0x144] ss:$16 sps:$4 sm:$0xff]  }
 0x2d3   :  { %1344 = vmatprep.subr.bf16.mxu0 %v6698_v32  ;;  %v6795_v32 = vld [vmem:[#allocation15 + $0x140] ss:$16 sps:$4 sm:$0xff]  }
 0x2d6   :  { %1345 = vmatpush1.bf16.msra.mxu0 %v6696_v33  ;;  %v6803_v33 = vld [vmem:[#allocation15 + $0x164] ss:$16 sps:$4 sm:$0xff]  }
 0x2d7   :  { %1346 = vmatprep.subr.bf16.mxu0 %v6701_v34  ;;  %v6801_v34 = vld [vmem:[#allocation15 + $0x160] ss:$16 sps:$4 sm:$0xff]  }
 0x2da   :  { %1347 = vmatpush1.bf16.msra.mxu0 %v6699_v35  ;;  %v6809_v35 = vld [vmem:[#allocation15 + $0x184] ss:$16 sps:$4 sm:$0xff]  }
 0x2db   :  { %1348 = vmatprep.subr.bf16.mxu0 %v6704_v36  ;;  %v6807_v36 = vld [vmem:[#allocation15 + $0x180] ss:$16 sps:$4 sm:$0xff]  }
 0x2de   :  { %1349 = vmatpush1.bf16.msra.mxu0 %v6702_v37  ;;  %v6815_v37 = vld [vmem:[#allocation15 + $0x1a4] ss:$16 sps:$4 sm:$0xff]  }
 0x2df   :  { %1350 = vmatprep.subr.bf16.mxu0 %v6707_v38  ;;  %v6813_v38 = vld [vmem:[#allocation15 + $0x1a0] ss:$16 sps:$4 sm:$0xff]  }
 0x2e2   :  { %1351 = vmatpush1.bf16.msra.mxu0 %v6705_v39  ;;  %v913_v39 = vld [vmem:[%s8007_s8] sm:$0x3] }
 0x2e3   :  { %1352 = vmatprep.subr.bf16.mxu0 %v6710_v40  ;;  %v918_v40 = vrot.slane %v913_v39, %v7804_v17 }
 0x2e6   :  { %1353 = vmatpush1.bf16.msra.mxu0 %v6708_v41  ;;  %v922_v41 = vrot.slane %v913_v39, %v7810_v19 }
 0x2e7   :  { %1354 = vmatprep.subr.bf16.mxu0 %v6713_v42 }
 0x2ea   :  { %1355 = vmatpush1.bf16.msra.mxu0 %v6711_v43 }
 0x2eb   :  { %1356 = vmatprep.subr.bf16.mxu0 %v6716_v44 }
 0x2ee   :  { %1357 = vmatpush1.bf16.msra.mxu0 %v6714_v45 }
 0x2ef   :  { %1358 = vmatprep.subr.bf16.mxu0 %v6719_v46 }
 0x2f2   :  { %1359 = vmatpush1.bf16.msra.mxu0 %v6717_v47 }
 0x2f3   :  { %1360 = vmatprep.subr.bf16.mxu0 %v6722_v48 }
 0x2f6   :  { %1361 = vmatpush1.bf16.msra.mxu0 %v6720_v49 }
 0x2f7   :  { %1362 = vmatprep.subr.bf16.mxu0 %v6725_v50 }
 0x2fa   :  { %1363 = vmatpush1.bf16.msra.mxu0 %v6723_v51 }
 0x2fb   :  { %1364 = vmatprep.subr.bf16.mxu0 %v6728_v52 }
 0x2fe   :  { %1365 = vmatpush1.bf16.msra.mxu0 %v6726_v53  ;;  %v6738_v53 = vld [vmem:[#allocation15 + $0x8] ss:$16 sps:$4 sm:$0xff]  }
 0x2ff   :  { %1366 = vmatprep.subr.bf16.mxu0 %v6731_v3  ;;  %v6776_v3 = vld [vmem:[#allocation15 + $0xcc] ss:$16 sps:$4 sm:$0xff]  }
 0x302   :  { %1367 = vmatpush1.bf16.msra.mxu0 %v6729_v4  ;;  %v6774_v4 = vld [vmem:[#allocation15 + $0xc8] ss:$16 sps:$4 sm:$0xff]  }
 0x303   :  { %1368 = vmatprep.subr.bf16.mxu0 %v6734_v5  ;;  %v6782_v5 = vld [vmem:[#allocation15 + $0xec] ss:$16 sps:$4 sm:$0xff]  }
 0x306   :  { %1369 = vmatpush1.bf16.msra.mxu0 %v6732_v6  ;;  %v6780_v6 = vld [vmem:[#allocation15 + $0xe8] ss:$16 sps:$4 sm:$0xff]  }
 0x39c   :  { %v870_v57 = vpop.f32.mrb[4].mxu0 }
 0x39d   :  { %v871_v58 = vadd.f32 %v870_v57, %v669_v55  ;;  %v872_v59 = vpop.f32.mrb[5].mxu0  ;;  %v6746_v55 = vld [vmem:[#allocation15 + $0x2c] ss:$16 sps:$4 sm:$0xff]  }
 0x39e   :  { %v873_v60 = vadd.f32 %v872_v59, %v673_v56  ;;  %v874_v61 = vpop.f32.mrb[6].mxu0  ;;  %v6744_v56 = vld [vmem:[#allocation15 + $0x28] ss:$16 sps:$4 sm:$0xff]   ;;  %v6752_v57 = vld [vmem:[#allocation15 + $0x4c] ss:$16 sps:$4 sm:$0xff]  }
 0x39f   :  { %v7827_v62 = vadd.f32 %v871_v58, %v7814_v30  ;;  %v875_v63 = vpop.f32.mrb[7].mxu0  ;;  %v6735_v30 = vld [vmem:[#allocation15] ss:$16 sps:$4 sm:$0xff]   ;;  %v6750_v58 = vld [vmem:[#allocation15 + $0x48] ss:$16 sps:$4 sm:$0xff]  }
 0x3a0   :  { %v7830_v0 = vadd.f32 %v873_v60, %v7816_v31  ;;  %v6740_v31 = vld [vmem:[#allocation15 + $0xc] ss:$16 sps:$4 sm:$0xff]   ;;  %v6756_v60 = vld [vmem:[#allocation15 + $0x68] ss:$16 sps:$4 sm:$0xff]  }
 0x3a1   :  { %v879_v2 = vpack.c.bf16 %v7827_v62, %v7827_v62  ;;  %1830 = vmatprep.subr.bf16.mxu0 %v6740_v31  ;;  %v6758_v59 = vld [vmem:[#allocation15 + $0x6c] ss:$16 sps:$4 sm:$0xff]   ;;  %v6762_v63 = vld [vmem:[#allocation15 + $0x88] ss:$16 sps:$4 sm:$0xff]  }
 0x3a2   :  { %v880_v1 = vpack.c.bf16 %v7830_v0, %v7830_v0  ;;  %v6764_v61 = vld [vmem:[#allocation15 + $0x8c] ss:$16 sps:$4 sm:$0xff]  }
 0x3a3   :  { %v6794_v31 = vld [vmem:[#allocation15 + $0x12c] ss:$16 sps:$4 sm:$0xff]  }
 0x3a4   :  { %1117 = vmatprep.mubr.bf16.mxu1 %v880_v1  ;;  %v6770_v1 = vld [vmem:[#allocation15 + $0xac] ss:$16 sps:$4 sm:$0xff]  }
 0x3a5   :  { %1118 = vmatmul.mubr.bf16.vlgmr.msra.gmra.mrb[4].mxu1 %v879_v2  ;;  %v6768_v2 = vld [vmem:[#allocation15 + $0xa8] ss:$16 sps:$4 sm:$0xff]  }
 0x3a6   :  { %1790 = vmatpush1.bf16.msra.mxu1 %v6735_v30  ;;  %v6788_v30 = vld [vmem:[#allocation15 + $0x10c] ss:$16 sps:$4 sm:$0xff]  }
 0x3a7   :  { %1791 = vmatprep.subr.bf16.mxu1 %v6743_v8  ;;  %v6792_v8 = vld [vmem:[#allocation15 + $0x128] ss:$16 sps:$4 sm:$0xff]  }
 0x3aa   :  { %1792 = vmatpush1.bf16.msra.mxu1 %v6741_v9  ;;  %v6800_v9 = vld [vmem:[#allocation15 + $0x14c] ss:$16 sps:$4 sm:$0xff]  }
 0x3ab   :  { %1793 = vmatprep.subr.bf16.mxu1 %v6749_v10  ;;  %v6798_v10 = vld [vmem:[#allocation15 + $0x148] ss:$16 sps:$4 sm:$0xff]  }
 0x3ae   :  { %1794 = vmatpush1.bf16.msra.mxu1 %v6747_v11  ;;  %v6806_v11 = vld [vmem:[#allocation15 + $0x16c] ss:$16 sps:$4 sm:$0xff]  }
 0x3af   :  { %1795 = vmatprep.subr.bf16.mxu1 %v6755_v12  ;;  %v6804_v12 = vld [vmem:[#allocation15 + $0x168] ss:$16 sps:$4 sm:$0xff]  }
 0x3b2   :  { %1796 = vmatpush1.bf16.msra.mxu1 %v6753_v13  ;;  %v6812_v13 = vld [vmem:[#allocation15 + $0x18c] ss:$16 sps:$4 sm:$0xff]  }
 0x3b3   :  { %1797 = vmatprep.subr.bf16.mxu1 %v6761_v14  ;;  %v6810_v14 = vld [vmem:[#allocation15 + $0x188] ss:$16 sps:$4 sm:$0xff]  }
 0x3b6   :  { %1798 = vmatpush1.bf16.msra.mxu1 %v6759_v15  ;;  %v6818_v15 = vld [vmem:[#allocation15 + $0x1ac] ss:$16 sps:$4 sm:$0xff]  }
 0x3b7   :  { %1799 = vmatprep.subr.bf16.mxu1 %v6767_v18  ;;  %v6816_v18 = vld [vmem:[#allocation15 + $0x1a8] ss:$16 sps:$4 sm:$0xff]  }
 0x3ba   :  { %1800 = vmatpush1.bf16.msra.mxu1 %v6765_v20  ;;  %v6821_v20 = vld [vmem:[#allocation15 + $0x1c4] ss:$16 sps:$4 sm:$0xff]  }
 0x3bb   :  { %1801 = vmatprep.subr.bf16.mxu1 %v6773_v21  ;;  %v6824_v21 = vld [vmem:[#allocation15 + $0x1cc] ss:$16 sps:$4 sm:$0xff]  }
 0x3be   :  { %1802 = vmatpush1.bf16.msra.mxu1 %v6771_v22  ;;  %v6819_v22 = vld [vmem:[#allocation15 + $0x1c0] ss:$16 sps:$4 sm:$0xff]  }
 0x3bf   :  { %1803 = vmatprep.subr.bf16.mxu1 %v6779_v23  ;;  %v6822_v23 = vld [vmem:[#allocation15 + $0x1c8] ss:$16 sps:$4 sm:$0xff]  }
 0x3c2   :  { %1804 = vmatpush1.bf16.msra.mxu1 %v6777_v24  ;;  %v6827_v24 = vld [vmem:[#allocation15 + $0x1e4] ss:$16 sps:$4 sm:$0xff]  }
 0x3c3   :  { %1805 = vmatprep.subr.bf16.mxu1 %v6785_v25  ;;  %v6830_v25 = vld [vmem:[#allocation15 + $0x1ec] ss:$16 sps:$4 sm:$0xff]  }
 0x3c6   :  { %1806 = vmatpush1.bf16.msra.mxu1 %v6783_v26  ;;  %v6825_v26 = vld [vmem:[#allocation15 + $0x1e0] ss:$16 sps:$4 sm:$0xff]  }
 0x3c7   :  { %1807 = vmatprep.subr.bf16.mxu1 %v6791_v27  ;;  %v6828_v27 = vld [vmem:[#allocation15 + $0x1e8] ss:$16 sps:$4 sm:$0xff]  }
 0x3ca   :  { %1808 = vmatpush1.bf16.msra.mxu1 %v6789_v28  ;;  %v6833_v28 = vld [vmem:[#allocation16 + $0x4] ss:$16 sps:$4 sm:$0xff]  }
 0x3cb   :  { %1809 = vmatprep.subr.bf16.mxu1 %v6797_v29  ;;  %v6836_v29 = vld [vmem:[#allocation16 + $0xc] ss:$16 sps:$4 sm:$0xff]  }
 0x3ce   :  { %1810 = vmatpush1.bf16.msra.mxu1 %v6795_v32  ;;  %v1166_v32 = vld [vmem:[%s8009_s10] sm:$0x3] }
 0x3cf   :  { %1811 = vmatprep.subr.bf16.mxu1 %v6803_v33  ;;  %v1171_v33 = vrot.slane %v1166_v32, %v7804_v17 }
 0x3d2   :  { %1812 = vmatpush1.bf16.msra.mxu1 %v6801_v34  ;;  %v1175_v34 = vrot.slane %v1166_v32, %v7810_v19  ;;  %v6903_v32 = vld [vmem:[#allocation16 + $0x180] ss:$16 sps:$4 sm:$0xff]  }
 0x3d3   :  { %1813 = vmatprep.subr.bf16.mxu1 %v6809_v35 }
 0x3d6   :  { %1814 = vmatpush1.bf16.msra.mxu1 %v6807_v36 }
 0x3d7   :  { %1815 = vmatprep.subr.bf16.mxu1 %v6815_v37 }
 0x3da   :  { %1816 = vmatpush1.bf16.msra.mxu1 %v6813_v38 }
 0x3db   :  { %1817 = vmatprep.subr.bf16.mxu1 %v6821_v20  ;;  %v6893_v20 = vld [vmem:[#allocation16 + $0x144] ss:$16 sps:$4 sm:$0xff]  }
 0x3de   :  { %1818 = vmatpush1.bf16.msra.mxu1 %v6819_v22  ;;  %v6891_v22 = vld [vmem:[#allocation16 + $0x140] ss:$16 sps:$4 sm:$0xff]  }
 0x3df   :  { %1819 = vmatprep.subr.bf16.mxu1 %v6827_v24  ;;  %v6899_v24 = vld [vmem:[#allocation16 + $0x164] ss:$16 sps:$4 sm:$0xff]  }
 0x3e2   :  { %1820 = vmatpush1.bf16.msra.mxu1 %v6825_v26  ;;  %v6897_v26 = vld [vmem:[#allocation16 + $0x160] ss:$16 sps:$4 sm:$0xff]  }
 0x3e3   :  { %2677 = vmatprep.subr.bf16.mxu1 %v6833_v28  ;;  %v6905_v28 = vld [vmem:[#allocation16 + $0x184] ss:$16 sps:$4 sm:$0xff]  }
 0x478   :  { %v1119_v42 = vpop.f32.mrb[4].mxu1 }
 0x479   :  { %v1120_v43 = vadd.f32 %v1119_v42, %v918_v40  ;;  %v1121_v44 = vpop.f32.mrb[5].mxu1 }
 0x47a   :  { %v1122_v45 = vadd.f32 %v1121_v44, %v922_v41  ;;  %v1123_v46 = vpop.f32.mrb[6].mxu1  ;;  %v6831_v44 = vld [vmem:[#allocation16] ss:$16 sps:$4 sm:$0xff]  }
 0x47b   :  { %vm1126_vm4 = vcmp.ge.f32.partialorder %v1120_v43, 0.0  ;;  %v1128_v47 = vmul.f32 0.01, %v1120_v43  ;;  %v1124_v48 = vpop.f32.mrb[7].mxu1 }
 0x47c   :  { %vm1127_vm5 = vcmp.ge.f32.partialorder %v1122_v45, 0.0  ;;  %v1129_v49 = vmul.f32 0.01, %v1122_v45  ;;  %v6842_v48 = vld [vmem:[#allocation16 + $0x2c] ss:$16 sps:$4 sm:$0xff]  }
 0x47d   :  { %v1130_v50 = vsel %vm1126_vm4, %v1120_v43, %v1128_v47  ;;  %v6839_v47 = vld [vmem:[#allocation16 + $0x24] ss:$16 sps:$4 sm:$0xff]  }
 0x47e   :  { %v1131_v51 = vsel %vm1127_vm5, %v1122_v45, %v1129_v49  ;;  %v1132_v54 = vpack.c.bf16 %v1130_v50, %v1130_v50  ;;  %v6834_v45 = vld [vmem:[#allocation16 + $0x8] ss:$16 sps:$4 sm:$0xff]   ;;  %v6837_v49 = vld [vmem:[#allocation16 + $0x20] ss:$16 sps:$4 sm:$0xff]  }
 0x47f   :  { %v1133_v52 = vpack.c.bf16 %v1131_v51, %v1131_v51  ;;  %v6840_v50 = vld [vmem:[#allocation16 + $0x28] ss:$16 sps:$4 sm:$0xff]   ;;  %v6848_v51 = vld [vmem:[#allocation16 + $0x4c] ss:$16 sps:$4 sm:$0xff]  }
 0x481   :  { %1370 = vmatprep.mubr.bf16.mxu0 %v1133_v52  ;;  %v6846_v52 = vld [vmem:[#allocation16 + $0x48] ss:$16 sps:$4 sm:$0xff]  }
 0x482   :  { %1371 = vmatmul.mubr.bf16.vlgmr.msra.gmra.mrb[8].mxu0 %v1132_v54  ;;  %v6854_v54 = vld [vmem:[#allocation16 + $0x6c] ss:$16 sps:$4 sm:$0xff]  }
 0x483   :  { %1831 = vmatpush1.bf16.msra.mxu0 %v6738_v53  ;;  %v6851_v53 = vld [vmem:[#allocation16 + $0x64] ss:$16 sps:$4 sm:$0xff]  }
 0x484   :  { %1832 = vmatprep.subr.bf16.mxu0 %v6746_v55  ;;  %v6849_v55 = vld [vmem:[#allocation16 + $0x60] ss:$16 sps:$4 sm:$0xff]  }
 0x487   :  { %1833 = vmatpush1.bf16.msra.mxu0 %v6744_v56  ;;  %v6852_v56 = vld [vmem:[#allocation16 + $0x68] ss:$16 sps:$4 sm:$0xff]  }
 0x488   :  { %1834 = vmatprep.subr.bf16.mxu0 %v6752_v57  ;;  %v6857_v57 = vld [vmem:[#allocation16 + $0x84] ss:$16 sps:$4 sm:$0xff]  }
 0x48b   :  { %1835 = vmatpush1.bf16.msra.mxu0 %v6750_v58  ;;  %v6860_v58 = vld [vmem:[#allocation16 + $0x8c] ss:$16 sps:$4 sm:$0xff]  }
 0x48c   :  { %1836 = vmatprep.subr.bf16.mxu0 %v6758_v59  ;;  %v6855_v59 = vld [vmem:[#allocation16 + $0x80] ss:$16 sps:$4 sm:$0xff]  }
 0x48f   :  { %1837 = vmatpush1.bf16.msra.mxu0 %v6756_v60  ;;  %v6858_v60 = vld [vmem:[#allocation16 + $0x88] ss:$16 sps:$4 sm:$0xff]  }
 0x490   :  { %1838 = vmatprep.subr.bf16.mxu0 %v6764_v61  ;;  %v6863_v61 = vld [vmem:[#allocation16 + $0xa4] ss:$16 sps:$4 sm:$0xff]  }
 0x493   :  { %1839 = vmatpush1.bf16.msra.mxu0 %v6762_v63  ;;  %v6866_v63 = vld [vmem:[#allocation16 + $0xac] ss:$16 sps:$4 sm:$0xff]  }
 0x494   :  { %1840 = vmatprep.subr.bf16.mxu0 %v6770_v1  ;;  %v6861_v1 = vld [vmem:[#allocation16 + $0xa0] ss:$16 sps:$4 sm:$0xff]  }
 0x497   :  { %1841 = vmatpush1.bf16.msra.mxu0 %v6768_v2  ;;  %v6864_v2 = vld [vmem:[#allocation16 + $0xa8] ss:$16 sps:$4 sm:$0xff]  }
 0x498   :  { %1842 = vmatprep.subr.bf16.mxu0 %v6776_v3  ;;  %v6869_v3 = vld [vmem:[#allocation16 + $0xc4] ss:$16 sps:$4 sm:$0xff]  }
 0x49b   :  { %1843 = vmatpush1.bf16.msra.mxu0 %v6774_v4  ;;  %v6872_v4 = vld [vmem:[#allocation16 + $0xcc] ss:$16 sps:$4 sm:$0xff]  }
 0x49c   :  { %1844 = vmatprep.subr.bf16.mxu0 %v6782_v5  ;;  %v6867_v5 = vld [vmem:[#allocation16 + $0xc0] ss:$16 sps:$4 sm:$0xff]  }
 0x49f   :  { %1845 = vmatpush1.bf16.msra.mxu0 %v6780_v6  ;;  %v6870_v6 = vld [vmem:[#allocation16 + $0xc8] ss:$16 sps:$4 sm:$0xff]  }
 0x4a0   :  { %1846 = vmatprep.subr.bf16.mxu0 %v6788_v30  ;;  %v6875_v30 = vld [vmem:[#allocation16 + $0xe4] ss:$16 sps:$4 sm:$0xff]  }
 0x4a3   :  { %1847 = vmatpush1.bf16.msra.mxu0 %v6786_v7  ;;  %v6878_v7 = vld [vmem:[#allocation16 + $0xec] ss:$16 sps:$4 sm:$0xff]  }
 0x4a4   :  { %1848 = vmatprep.subr.bf16.mxu0 %v6794_v31  ;;  %v6873_v31 = vld [vmem:[#allocation16 + $0xe0] ss:$16 sps:$4 sm:$0xff]  }
 0x4a7   :  { %1849 = vmatpush1.bf16.msra.mxu0 %v6792_v8  ;;  %v6876_v8 = vld [vmem:[#allocation16 + $0xe8] ss:$16 sps:$4 sm:$0xff]  }
 0x4a8   :  { %1850 = vmatprep.subr.bf16.mxu0 %v6800_v9  ;;  %v6881_v9 = vld [vmem:[#allocation16 + $0x104] ss:$16 sps:$4 sm:$0xff]  }
 0x4ab   :  { %1851 = vmatpush1.bf16.msra.mxu0 %v6798_v10  ;;  %v6884_v10 = vld [vmem:[#allocation16 + $0x10c] ss:$16 sps:$4 sm:$0xff]  }
 0x4ac   :  { %1852 = vmatprep.subr.bf16.mxu0 %v6806_v11  ;;  %v6879_v11 = vld [vmem:[#allocation16 + $0x100] ss:$16 sps:$4 sm:$0xff]  }
 0x4af   :  { %1853 = vmatpush1.bf16.msra.mxu0 %v6804_v12  ;;  %v6882_v12 = vld [vmem:[#allocation16 + $0x108] ss:$16 sps:$4 sm:$0xff]  }
 0x4b0   :  { %1854 = vmatprep.subr.bf16.mxu0 %v6812_v13  ;;  %v6887_v13 = vld [vmem:[#allocation16 + $0x124] ss:$16 sps:$4 sm:$0xff]  }
 0x4b3   :  { %1855 = vmatpush1.bf16.msra.mxu0 %v6810_v14  ;;  %v6890_v14 = vld [vmem:[#allocation16 + $0x12c] ss:$16 sps:$4 sm:$0xff]  }
 0x4b4   :  { %1856 = vmatprep.subr.bf16.mxu0 %v6818_v15  ;;  %v6885_v15 = vld [vmem:[#allocation16 + $0x120] ss:$16 sps:$4 sm:$0xff]  }
 0x4b7   :  { %1857 = vmatpush1.bf16.msra.mxu0 %v6816_v18  ;;  %v6888_v18 = vld [vmem:[#allocation16 + $0x128] ss:$16 sps:$4 sm:$0xff]  }
 0x4b8   :  { %1858 = vmatprep.subr.bf16.mxu0 %v6824_v21  ;;  %v6896_v21 = vld [vmem:[#allocation16 + $0x14c] ss:$16 sps:$4 sm:$0xff]  }
 0x4bb   :  { %1859 = vmatpush1.bf16.msra.mxu0 %v6822_v23  ;;  %v6894_v23 = vld [vmem:[#allocation16 + $0x148] ss:$16 sps:$4 sm:$0xff]  }
 0x4bc   :  { %1860 = vmatprep.subr.bf16.mxu0 %v6830_v25  ;;  %v6902_v25 = vld [vmem:[#allocation16 + $0x16c] ss:$16 sps:$4 sm:$0xff]  }
 0x4bf   :  { %1861 = vmatpush1.bf16.msra.mxu0 %v6828_v27  ;;  %v6900_v27 = vld [vmem:[#allocation16 + $0x168] ss:$16 sps:$4 sm:$0xff]  }
 0x4c0   :  { %2759 = vmatprep.subr.bf16.mxu0 %v6836_v29  ;;  %v6908_v29 = vld [vmem:[#allocation16 + $0x18c] ss:$16 sps:$4 sm:$0xff]  }
 0x555   :  { %v1372_v35 = vpop.f32.mrb[8].mxu0 }
 0x556   :  { %v1373_v36 = vadd.f32 %v1372_v35, %v1171_v33  ;;  %v1374_v37 = vpop.f32.mrb[9].mxu0  ;;  %v6906_v33 = vld [vmem:[#allocation16 + $0x188] ss:$16 sps:$4 sm:$0xff]   ;;  %v6914_v35 = vld [vmem:[#allocation16 + $0x1ac] ss:$16 sps:$4 sm:$0xff]  }
 0x557   :  { %v1375_v38 = vadd.f32 %v1374_v37, %v1175_v34  ;;  %v1376_v39 = vpop.f32.mrb[10].mxu0  ;;  %v6911_v34 = vld [vmem:[#allocation16 + $0x1a4] ss:$16 sps:$4 sm:$0xff]   ;;  %v6912_v37 = vld [vmem:[#allocation16 + $0x1a8] ss:$16 sps:$4 sm:$0xff]  }
 0x558   :  { %v1379_v40 = vadd.f32 %v1373_v36, %v7827_v62  ;;  %v1377_v41 = vpop.f32.mrb[11].mxu0  ;;  %v6845_v62 = vld [vmem:[#allocation16 + $0x44] ss:$16 sps:$4 sm:$0xff]   ;;  %v6909_v36 = vld [vmem:[#allocation16 + $0x1a0] ss:$16 sps:$4 sm:$0xff]  }
 0x559   :  { %v1380_v42 = vadd.f32 %v1375_v38, %v7830_v0  ;;  %v6843_v0 = vld [vmem:[#allocation16 + $0x40] ss:$16 sps:$4 sm:$0xff]   ;;  %v6917_v38 = vld [vmem:[#allocation16 + $0x1c4] ss:$16 sps:$4 sm:$0xff]   ;;  %v6920_v39 = vld [vmem:[#allocation16 + $0x1cc] ss:$16 sps:$4 sm:$0xff]  }
 0x55a   :  { %v1381_v46 = vpack.c.bf16 %v1379_v40, %v1379_v40  ;;  %v6915_v40 = vld [vmem:[#allocation16 + $0x1c0] ss:$16 sps:$4 sm:$0xff]   ;;  %v6918_v41 = vld [vmem:[#allocation16 + $0x1c8] ss:$16 sps:$4 sm:$0xff]  }
 0x55b   :  { %v1382_v43 = vpack.c.bf16 %v1380_v42, %v1380_v42  ;;  %v6923_v42 = vld [vmem:[#allocation16 + $0x1e4] ss:$16 sps:$4 sm:$0xff]  }
 0x55d   :  { %1821 = vmatprep.mubr.bf16.mxu1 %v1382_v43  ;;  %1862 = vmatprep.mubr.bf16.mxu0 %v1382_v43  ;;  %v6926_v43 = vld [vmem:[#allocation16 + $0x1ec] ss:$16 sps:$4 sm:$0xff]  }
 0x55e   :  { %1822 = vmatmul.mubr.bf16.vlgmr.msra.gmra.mrb[8].mxu1 %v1381_v46  ;;  %1863 = vmatmul.mubr.bf16.vlgmr.msra.gmra.mrb[12].mxu0 %v1381_v46  ;;  %v6929_v46 = vld [vmem:[#allocation16 + $0x204] ss:$16 sps:$4 sm:$0xff]  }
 0x55f   :  { %2678 = vmatpush1.bf16.msra.mxu1 %v6831_v44  ;;  %2760 = vmatpush1.bf16.msra.mxu0 %v6834_v45  ;;  %v6921_v44 = vld [vmem:[#allocation16 + $0x1e0] ss:$16 sps:$4 sm:$0xff]   ;;  %v6924_v45 = vld [vmem:[#allocation16 + $0x1e8] ss:$16 sps:$4 sm:$0xff]  }
 0x560   :  { %2679 = vmatprep.subr.bf16.mxu1 %v6839_v47  ;;  %2761 = vmatprep.subr.bf16.mxu0 %v6842_v48  ;;  %v6932_v47 = vld [vmem:[#allocation16 + $0x20c] ss:$16 sps:$4 sm:$0xff]   ;;  %v7851_v48 = vld [vmem:[%s8011_s12] sm:$0xf] }
 0x563   :  { %2680 = vmatpush1.bf16.msra.mxu1 %v6837_v49  ;;  %2762 = vmatpush1.bf16.msra.mxu0 %v6840_v50  ;;  %v7854_v49 = vsub.s32 3, %v7801_v16  ;;  %v1452_v50 = vrot.slane %v7851_v48, %v7804_v17 }
 0x564   :  { %2681 = vmatprep.subr.bf16.mxu1 %v6845_v62  ;;  %2763 = vmatprep.subr.bf16.mxu0 %v6848_v51  ;;  %v1456_v62 = vrot.slane %v7851_v48, %v7810_v19 }
 0x565   :  { %v1464_v51 = vrot.slane %v7851_v48, %v7854_v49 }
 0x567   :  { %2682 = vmatpush1.bf16.msra.mxu1 %v6843_v0  ;;  %2764 = vmatpush1.bf16.msra.mxu0 %v6846_v52 }
 0x568   :  { %2683 = vmatprep.subr.bf16.mxu1 %v6851_v53  ;;  %2765 = vmatprep.subr.bf16.mxu0 %v6854_v54 }
 0x56b   :  { %2684 = vmatpush1.bf16.msra.mxu1 %v6849_v55  ;;  %2766 = vmatpush1.bf16.msra.mxu0 %v6852_v56 }
 0x56c   :  { %2685 = vmatprep.subr.bf16.mxu1 %v6857_v57  ;;  %2767 = vmatprep.subr.bf16.mxu0 %v6860_v58 }
 0x56f   :  { %2686 = vmatpush1.bf16.msra.mxu1 %v6855_v59  ;;  %2768 = vmatpush1.bf16.msra.mxu0 %v6858_v60 }
 0x570   :  { %2687 = vmatprep.subr.bf16.mxu1 %v6863_v61  ;;  %2769 = vmatprep.subr.bf16.mxu0 %v6866_v63 }
 0x573   :  { %2688 = vmatpush1.bf16.msra.mxu1 %v6861_v1  ;;  %2770 = vmatpush1.bf16.msra.mxu0 %v6864_v2 }
 0x574   :  { %2689 = vmatprep.subr.bf16.mxu1 %v6869_v3  ;;  %2771 = vmatprep.subr.bf16.mxu0 %v6872_v4 }
 0x577   :  { %2690 = vmatpush1.bf16.msra.mxu1 %v6867_v5  ;;  %2772 = vmatpush1.bf16.msra.mxu0 %v6870_v6  ;;  %v6927_v6 = vld [vmem:[#allocation16 + $0x200] ss:$16 sps:$4 sm:$0xff]  }
 0x578   :  { %2691 = vmatprep.subr.bf16.mxu1 %v6875_v30  ;;  %2773 = vmatprep.subr.bf16.mxu0 %v6878_v7  ;;  %v6930_v30 = vld [vmem:[#allocation16 + $0x208] ss:$16 sps:$4 sm:$0xff]  }
 0x57b   :  { %2692 = vmatpush1.bf16.msra.mxu1 %v6873_v31  ;;  %2774 = vmatpush1.bf16.msra.mxu0 %v6876_v8  ;;  %v6935_v8 = vld [vmem:[#allocation16 + $0x224] ss:$16 sps:$4 sm:$0xff]  }
 0x57c   :  { %2693 = vmatprep.subr.bf16.mxu1 %v6881_v9  ;;  %2775 = vmatprep.subr.bf16.mxu0 %v6884_v10  ;;  %v6938_v9 = vld [vmem:[#allocation16 + $0x22c] ss:$16 sps:$4 sm:$0xff]  }
 0x57f   :  { %2694 = vmatpush1.bf16.msra.mxu1 %v6879_v11  ;;  %2776 = vmatpush1.bf16.msra.mxu0 %v6882_v12  ;;  %v6933_v11 = vld [vmem:[#allocation16 + $0x220] ss:$16 sps:$4 sm:$0xff]   ;;  %v6936_v12 = vld [vmem:[#allocation16 + $0x228] ss:$16 sps:$4 sm:$0xff]  }
 0x580   :  { %2695 = vmatprep.subr.bf16.mxu1 %v6887_v13  ;;  %2777 = vmatprep.subr.bf16.mxu0 %v6890_v14  ;;  %v6941_v13 = vld [vmem:[#allocation16 + $0x244] ss:$16 sps:$4 sm:$0xff]   ;;  %v6944_v14 = vld [vmem:[#allocation16 + $0x24c] ss:$16 sps:$4 sm:$0xff]  }
 0x583   :  { %2696 = vmatpush1.bf16.msra.mxu1 %v6885_v15  ;;  %2778 = vmatpush1.bf16.msra.mxu0 %v6888_v18  ;;  %v6939_v15 = vld [vmem:[#allocation16 + $0x240] ss:$16 sps:$4 sm:$0xff]   ;;  %v6942_v18 = vld [vmem:[#allocation16 + $0x248] ss:$16 sps:$4 sm:$0xff]  }
 0x584   :  { %2697 = vmatprep.subr.bf16.mxu1 %v6893_v20  ;;  %2779 = vmatprep.subr.bf16.mxu0 %v6896_v21  ;;  %v6947_v20 = vld [vmem:[#allocation16 + $0x264] ss:$16 sps:$4 sm:$0xff]   ;;  %v6950_v21 = vld [vmem:[#allocation16 + $0x26c] ss:$16 sps:$4 sm:$0xff]  }
 0x587   :  { %2698 = vmatpush1.bf16.msra.mxu1 %v6891_v22  ;;  %2780 = vmatpush1.bf16.msra.mxu0 %v6894_v23  ;;  %v6945_v22 = vld [vmem:[#allocation16 + $0x260] ss:$16 sps:$4 sm:$0xff]   ;;  %v6948_v23 = vld [vmem:[#allocation16 + $0x268] ss:$16 sps:$4 sm:$0xff]  }
 0x588   :  { %2699 = vmatprep.subr.bf16.mxu1 %v6899_v24  ;;  %2781 = vmatprep.subr.bf16.mxu0 %v6902_v25  ;;  %v6953_v24 = vld [vmem:[#allocation16 + $0x284] ss:$16 sps:$4 sm:$0xff]   ;;  %v6956_v25 = vld [vmem:[#allocation16 + $0x28c] ss:$16 sps:$4 sm:$0xff]  }
 0x58b   :  { %2700 = vmatpush1.bf16.msra.mxu1 %v6897_v26  ;;  %2782 = vmatpush1.bf16.msra.mxu0 %v6900_v27  ;;  %v6951_v26 = vld [vmem:[#allocation16 + $0x280] ss:$16 sps:$4 sm:$0xff]   ;;  %v6954_v27 = vld [vmem:[#allocation16 + $0x288] ss:$16 sps:$4 sm:$0xff]  }
 0x58c   :  { %2701 = vmatprep.subr.bf16.mxu1 %v6905_v28  ;;  %2783 = vmatprep.subr.bf16.mxu0 %v6908_v29  ;;  %v6959_v28 = vld [vmem:[#allocation16 + $0x2a4] ss:$16 sps:$4 sm:$0xff]   ;;  %v6962_v29 = vld [vmem:[#allocation16 + $0x2ac] ss:$16 sps:$4 sm:$0xff]  }
 0x58f   :  { %2702 = vmatpush1.bf16.msra.mxu1 %v6903_v32  ;;  %2784 = vmatpush1.bf16.msra.mxu0 %v6906_v33  ;;  %v6957_v32 = vld [vmem:[#allocation16 + $0x2a0] ss:$16 sps:$4 sm:$0xff]   ;;  %v6960_v33 = vld [vmem:[#allocation16 + $0x2a8] ss:$16 sps:$4 sm:$0xff]  }
 0x590   :  { %2703 = vmatprep.subr.bf16.mxu1 %v6911_v34  ;;  %2785 = vmatprep.subr.bf16.mxu0 %v6914_v35  ;;  %v6965_v34 = vld [vmem:[#allocation16 + $0x2c4] ss:$16 sps:$4 sm:$0xff]   ;;  %v6968_v35 = vld [vmem:[#allocation16 + $0x2cc] ss:$16 sps:$4 sm:$0xff]  }
 0x593   :  { %2704 = vmatpush1.bf16.msra.mxu1 %v6909_v36  ;;  %2786 = vmatpush1.bf16.msra.mxu0 %v6912_v37  ;;  %v6963_v36 = vld [vmem:[#allocation16 + $0x2c0] ss:$16 sps:$4 sm:$0xff]   ;;  %v6966_v37 = vld [vmem:[#allocation16 + $0x2c8] ss:$16 sps:$4 sm:$0xff]  }
 0x594   :  { %2705 = vmatprep.subr.bf16.mxu1 %v6917_v38  ;;  %2787 = vmatprep.subr.bf16.mxu0 %v6920_v39  ;;  %v6971_v38 = vld [vmem:[#allocation16 + $0x2e4] ss:$16 sps:$4 sm:$0xff]   ;;  %v6974_v39 = vld [vmem:[#allocation16 + $0x2ec] ss:$16 sps:$4 sm:$0xff]  }
 0x597   :  { %2706 = vmatpush1.bf16.msra.mxu1 %v6915_v40  ;;  %2788 = vmatpush1.bf16.msra.mxu0 %v6918_v41  ;;  %v6969_v40 = vld [vmem:[#allocation16 + $0x2e0] ss:$16 sps:$4 sm:$0xff]   ;;  %v6972_v41 = vld [vmem:[#allocation16 + $0x2e8] ss:$16 sps:$4 sm:$0xff]  }
 0x598   :  { %2707 = vmatprep.subr.bf16.mxu1 %v6923_v42  ;;  %2789 = vmatprep.subr.bf16.mxu0 %v6926_v43  ;;  %v6977_v42 = vld [vmem:[#allocation16 + $0x304] ss:$16 sps:$4 sm:$0xff]   ;;  %v6980_v43 = vld [vmem:[#allocation16 + $0x30c] ss:$16 sps:$4 sm:$0xff]  }
 0x59b   :  { %2708 = vmatpush1.bf16.msra.mxu1 %v6921_v44  ;;  %2790 = vmatpush1.bf16.msra.mxu0 %v6924_v45  ;;  %v6975_v44 = vld [vmem:[#allocation16 + $0x300] ss:$16 sps:$4 sm:$0xff]   ;;  %v6978_v45 = vld [vmem:[#allocation16 + $0x308] ss:$16 sps:$4 sm:$0xff]  }
 0x59c   :  { %2718 = vmatprep.subr.bf16.mxu1 %v6929_v46  ;;  %2800 = vmatprep.subr.bf16.mxu0 %v6932_v47  ;;  %v6983_v46 = vld [vmem:[#allocation16 + $0x324] ss:$16 sps:$4 sm:$0xff]   ;;  %v6986_v47 = vld [vmem:[#allocation16 + $0x32c] ss:$16 sps:$4 sm:$0xff]  }
 0x631   :  { %v1823_v0 = vpop.f32.mrb[8].mxu1  ;;  %v7862_v52 = vpop.f32.mrb[12].mxu0 }
 0x632   :  { %v1824_v53 = vadd.f32 %v1823_v0, %v1452_v50  ;;  %v1825_v54 = vpop.f32.mrb[9].mxu1  ;;  %v1866_v55 = vpop.f32.mrb[13].mxu0  ;;  %v6981_v50 = vld [vmem:[#allocation16 + $0x320] ss:$16 sps:$4 sm:$0xff]   ;;  %v6992_v0 = vld [vmem:[#allocation16 + $0x34c] ss:$16 sps:$4 sm:$0xff]  }
 0x633   :  { %v1826_v56 = vadd.f32 %v1825_v54, %v1456_v62  ;;  %v1867_v57 = vadd.f32 %v1866_v55, %v1464_v51  ;;  %v1827_v58 = vpop.f32.mrb[10].mxu1  ;;  %v1868_v59 = vpop.f32.mrb[14].mxu0  ;;  %v6984_v62 = vld [vmem:[#allocation16 + $0x328] ss:$16 sps:$4 sm:$0xff]   ;;  %v6989_v51 = vld [vmem:[#allocation16 + $0x344] ss:$16 sps:$4 sm:$0xff]  }
 0x634   :  { %vm1871_vm6 = vcmp.ge.f32.partialorder %v1824_v53, 0.0  ;;  %v1875_v60 = vmul.f32 0.01, %v1824_v53  ;;  %v1828_v2 = vpop.f32.mrb[11].mxu1  ;;  %v1869_v3 = vpop.f32.mrb[15].mxu0 }
 0x635   :  { %vm1872_vm7 = vcmp.ge.f32.partialorder %v1826_v56, 0.0  ;;  %v1876_v61 = vmul.f32 0.01, %v1826_v56  ;;  %vm1874_vm8 = vcmp.ge.f32.partialorder %v1867_v57, 0.0  ;;  %v1878_v63 = vmul.f32 0.01, %v1867_v57 }
 0x636   :  { %v7864_v1 = vsel %vm1871_vm6, %v1824_v53, %v1875_v60  ;;  %v6987_v53 = vld [vmem:[#allocation16 + $0x340] ss:$16 sps:$4 sm:$0xff]   ;;  %v6990_v54 = vld [vmem:[#allocation16 + $0x348] ss:$16 sps:$4 sm:$0xff]   ;;  %v6995_v55 = vld [vmem:[#allocation16 + $0x364] ss:$16 sps:$4 sm:$0xff]  }
 0x637   :  { %v7866_v4 = vsel %vm1872_vm7, %v1826_v56, %v1876_v61  ;;  %v7870_v7 = vsel %vm1874_vm8, %v1867_v57, %v1878_v63  ;;  %v1883_v31 = vpack.c.bf16 %v7864_v1, %v7864_v1  ;;  %v6998_v56 = vld [vmem:[#allocation16 + $0x36c] ss:$16 sps:$4 sm:$0xff]   ;;  %v6993_v57 = vld [vmem:[#allocation16 + $0x360] ss:$16 sps:$4 sm:$0xff]   ;;  %v6996_v58 = vld [vmem:[#allocation16 + $0x368] ss:$16 sps:$4 sm:$0xff]  }
 0x638   :  { %v1884_v5 = vpack.c.bf16 %v7866_v4, %v7866_v4  ;;  %v1886_v10 = vpack.c.bf16 %v7870_v7, %v7870_v7  ;;  %v7001_v59 = vld [vmem:[#allocation16 + $0x384] ss:$16 sps:$4 sm:$0xff]   ;;  %v7004_v60 = vld [vmem:[#allocation16 + $0x38c] ss:$16 sps:$4 sm:$0xff]   ;;  %v7877_v61 = vsub.s32 2, %v7801_v16 }
 0x639   :  { %v6999_v63 = vld [vmem:[#allocation16 + $0x380] ss:$16 sps:$4 sm:$0xff]   ;;  %v7002_v2 = vld [vmem:[#allocation16 + $0x388] ss:$16 sps:$4 sm:$0xff]   ;;  %v7007_v3 = vld [vmem:[#allocation16 + $0x3a4] ss:$16 sps:$4 sm:$0xff]  }
 0x63a   :  { %2709 = vmatprep.mubr.bf16.mxu1 %v1884_v5  ;;  %2791 = vmatprep.mubr.bf16.mxu0 %v1884_v5  ;;  %v7010_v5 = vld [vmem:[#allocation16 + $0x3ac] ss:$16 sps:$4 sm:$0xff]  }
 0x63b   :  { %2710 = vmatmul.mubr.bf16.vlgmr.msra.gmra.mrb[12].mxu1 %v1883_v31  ;;  %2792 = vmatmul.mubr.bf16.vlgmr.msra.gmra.mrb[16].mxu0 %v1883_v31  ;;  %v7008_v31 = vld [vmem:[#allocation16 + $0x3a8] ss:$16 sps:$4 sm:$0xff]  }
 0x63c   :  { %2719 = vmatpush1.bf16.msra.mxu1 %v6927_v6  ;;  %2801 = vmatpush1.bf16.msra.mxu0 %v6930_v30  ;;  %v1460_v6 = vrot.slane %v7851_v48, %v7877_v61  ;;  %v7005_v30 = vld [vmem:[#allocation16 + $0x3a0] ss:$16 sps:$4 sm:$0xff]  }
 0x63d   :  { %2750 = vmatprep.mubr.bf16.mxu1 %v1886_v10  ;;  %2832 = vmatprep.mubr.bf16.mxu0 %v1886_v10  ;;  %v7017_v48 = vld [vmem:[#allocation16 + $0x3e0] ss:$16 sps:$4 sm:$0xff]  }
 0x63e   :  { %2720 = vmatprep.subr.bf16.mxu1 %v6935_v8  ;;  %2802 = vmatprep.subr.bf16.mxu0 %v6938_v9  ;;  %v7013_v8 = vld [vmem:[#allocation16 + $0x3c4] ss:$16 sps:$4 sm:$0xff]   ;;  %v7016_v9 = vld [vmem:[#allocation16 + $0x3cc] ss:$16 sps:$4 sm:$0xff]   ;;  %v1865_v10 = vadd.f32 %v7862_v52, %v1460_v6  ;;  %v7023_v52 = vld [vmem:[#allocation18] ss:$16 sps:$4 sm:$0xff]  }
 0x63f   :  { %v7088_v6 = vld [vmem:[#allocation18 + $0x344] ss:$16 sps:$4 sm:$0xff]  }
 0x640   :  { %2721 = vmatpush1.bf16.msra.mxu1 %v6933_v11  ;;  %2803 = vmatpush1.bf16.msra.mxu0 %v6936_v12  ;;  %v7011_v11 = vld [vmem:[#allocation16 + $0x3c0] ss:$16 sps:$4 sm:$0xff]   ;;  %v7014_v12 = vld [vmem:[#allocation16 + $0x3c8] ss:$16 sps:$4 sm:$0xff]   ;;  %vm1873_vm9 = vcmp.ge.f32.partialorder %v1865_v10, 0.0 }
 0x641   :  { %2722 = vmatprep.subr.bf16.mxu1 %v6941_v13  ;;  %2804 = vmatprep.subr.bf16.mxu0 %v6944_v14  ;;  %v7019_v13 = vld [vmem:[#allocation16 + $0x3e4] ss:$16 sps:$4 sm:$0xff]   ;;  %v7022_v14 = vld [vmem:[#allocation16 + $0x3ec] ss:$16 sps:$4 sm:$0xff]  }
 0x644   :  { %2723 = vmatpush1.bf16.msra.mxu1 %v6939_v15  ;;  %2805 = vmatpush1.bf16.msra.mxu0 %v6942_v18  ;;  %v1877_v15 = vmul.f32 0.01, %v1865_v10  ;;  %v7020_v18 = vld [vmem:[#allocation16 + $0x3e8] ss:$16 sps:$4 sm:$0xff]  }
 0x645   :  { %2724 = vmatprep.subr.bf16.mxu1 %v6947_v20  ;;  %2806 = vmatprep.subr.bf16.mxu0 %v6950_v21  ;;  %v7025_v20 = vld [vmem:[#allocation18 + $0x4] ss:$16 sps:$4 sm:$0xff]  }
 0x646   :  { %v7028_v21 = vld [vmem:[#allocation18 + $0x204] ss:$16 sps:$4 sm:$0xff]  }
 0x648   :  { %2725 = vmatpush1.bf16.msra.mxu1 %v6945_v22  ;;  %2807 = vmatpush1.bf16.msra.mxu0 %v6948_v23  ;;  %v7882_v22 = vsel %vm1873_vm9, %v1865_v10, %v1877_v15  ;;  %v7026_v23 = vld [vmem:[#allocation18 + $0x200] ss:$16 sps:$4 sm:$0xff]  }
 0x649   :  { %2726 = vmatprep.subr.bf16.mxu1 %v6953_v24  ;;  %2808 = vmatprep.subr.bf16.mxu0 %v6956_v25  ;;  %v1885_v24 = vpack.c.bf16 %v7882_v22, %v7882_v22  ;;  %v7031_v25 = vld [vmem:[#allocation18 + $0x24] ss:$16 sps:$4 sm:$0xff]   ;;  %v7089_v10 = vld [vmem:[#allocation18 + $0x160] ss:$16 sps:$4 sm:$0xff]  }
 0x64a   :  { %v7098_v15 = vld [vmem:[#allocation18 + $0x380] ss:$16 sps:$4 sm:$0xff]  }
 0x64c   :  { %2727 = vmatpush1.bf16.msra.mxu1 %v6951_v26  ;;  %2809 = vmatpush1.bf16.msra.mxu0 %v6954_v27  ;;  %v7034_v26 = vld [vmem:[#allocation18 + $0x224] ss:$16 sps:$4 sm:$0xff]   ;;  %v7029_v27 = vld [vmem:[#allocation18 + $0x20] ss:$16 sps:$4 sm:$0xff]  }
 0x64d   :  { %2728 = vmatprep.subr.bf16.mxu1 %v6959_v28  ;;  %2810 = vmatprep.subr.bf16.mxu0 %v6962_v29  ;;  %v7032_v28 = vld [vmem:[#allocation18 + $0x220] ss:$16 sps:$4 sm:$0xff]   ;;  %v7037_v29 = vld [vmem:[#allocation18 + $0x44] ss:$16 sps:$4 sm:$0xff]  }
 0x650   :  { %2729 = vmatpush1.bf16.msra.mxu1 %v6957_v32  ;;  %2811 = vmatpush1.bf16.msra.mxu0 %v6960_v33  ;;  %v7040_v32 = vld [vmem:[#allocation18 + $0x244] ss:$16 sps:$4 sm:$0xff]   ;;  %v7035_v33 = vld [vmem:[#allocation18 + $0x40] ss:$16 sps:$4 sm:$0xff]  }
 0x651   :  { %2730 = vmatprep.subr.bf16.mxu1 %v6965_v34  ;;  %2812 = vmatprep.subr.bf16.mxu0 %v6968_v35  ;;  %v7038_v34 = vld [vmem:[#allocation18 + $0x240] ss:$16 sps:$4 sm:$0xff]   ;;  %v7043_v35 = vld [vmem:[#allocation18 + $0x64] ss:$16 sps:$4 sm:$0xff]  }
 0x654   :  { %2731 = vmatpush1.bf16.msra.mxu1 %v6963_v36  ;;  %2813 = vmatpush1.bf16.msra.mxu0 %v6966_v37  ;;  %v7046_v36 = vld [vmem:[#allocation18 + $0x264] ss:$16 sps:$4 sm:$0xff]   ;;  %v7041_v37 = vld [vmem:[#allocation18 + $0x60] ss:$16 sps:$4 sm:$0xff]  }
 0x655   :  { %2732 = vmatprep.subr.bf16.mxu1 %v6971_v38  ;;  %2814 = vmatprep.subr.bf16.mxu0 %v6974_v39  ;;  %v7044_v38 = vld [vmem:[#allocation18 + $0x260] ss:$16 sps:$4 sm:$0xff]   ;;  %v7049_v39 = vld [vmem:[#allocation18 + $0x84] ss:$16 sps:$4 sm:$0xff]  }
 0x658   :  { %2733 = vmatpush1.bf16.msra.mxu1 %v6969_v40  ;;  %2815 = vmatpush1.bf16.msra.mxu0 %v6972_v41  ;;  %v7052_v40 = vld [vmem:[#allocation18 + $0x284] ss:$16 sps:$4 sm:$0xff]   ;;  %v7047_v41 = vld [vmem:[#allocation18 + $0x80] ss:$16 sps:$4 sm:$0xff]  }
 0x659   :  { %2734 = vmatprep.subr.bf16.mxu1 %v6977_v42  ;;  %2816 = vmatprep.subr.bf16.mxu0 %v6980_v43  ;;  %v7050_v42 = vld [vmem:[#allocation18 + $0x280] ss:$16 sps:$4 sm:$0xff]   ;;  %v7055_v43 = vld [vmem:[#allocation18 + $0xa4] ss:$16 sps:$4 sm:$0xff]  }
 0x65c   :  { %2735 = vmatpush1.bf16.msra.mxu1 %v6975_v44  ;;  %2817 = vmatpush1.bf16.msra.mxu0 %v6978_v45  ;;  %v7058_v44 = vld [vmem:[#allocation18 + $0x2a4] ss:$16 sps:$4 sm:$0xff]   ;;  %v7053_v45 = vld [vmem:[#allocation18 + $0xa0] ss:$16 sps:$4 sm:$0xff]  }
 0x65d   :  { %2736 = vmatprep.subr.bf16.mxu1 %v6983_v46  ;;  %2818 = vmatprep.subr.bf16.mxu0 %v6986_v47  ;;  %v7056_v46 = vld [vmem:[#allocation18 + $0x2a0] ss:$16 sps:$4 sm:$0xff]   ;;  %v7061_v47 = vld [vmem:[#allocation18 + $0xc4] ss:$16 sps:$4 sm:$0xff]  }
 0x660   :  { %2737 = vmatpush1.bf16.msra.mxu1 %v6981_v50  ;;  %2819 = vmatpush1.bf16.msra.mxu0 %v6984_v62  ;;  %v7064_v50 = vld [vmem:[#allocation18 + $0x2c4] ss:$16 sps:$4 sm:$0xff]   ;;  %v7059_v62 = vld [vmem:[#allocation18 + $0xc0] ss:$16 sps:$4 sm:$0xff]  }
 0x661   :  { %2738 = vmatprep.subr.bf16.mxu1 %v6989_v51  ;;  %2820 = vmatprep.subr.bf16.mxu0 %v6992_v0  ;;  %v7062_v51 = vld [vmem:[#allocation18 + $0x2c0] ss:$16 sps:$4 sm:$0xff]   ;;  %v7067_v0 = vld [vmem:[#allocation18 + $0xe4] ss:$16 sps:$4 sm:$0xff]  }
 0x664   :  { %2739 = vmatpush1.bf16.msra.mxu1 %v6987_v53  ;;  %2821 = vmatpush1.bf16.msra.mxu0 %v6990_v54  ;;  %v7070_v53 = vld [vmem:[#allocation18 + $0x2e4] ss:$16 sps:$4 sm:$0xff]   ;;  %v7065_v54 = vld [vmem:[#allocation18 + $0xe0] ss:$16 sps:$4 sm:$0xff]  }
 0x665   :  { %2740 = vmatprep.subr.bf16.mxu1 %v6995_v55  ;;  %2822 = vmatprep.subr.bf16.mxu0 %v6998_v56  ;;  %v7068_v55 = vld [vmem:[#allocation18 + $0x2e0] ss:$16 sps:$4 sm:$0xff]   ;;  %v7073_v56 = vld [vmem:[#allocation18 + $0x104] ss:$16 sps:$4 sm:$0xff]  }
 0x668   :  { %2741 = vmatpush1.bf16.msra.mxu1 %v6993_v57  ;;  %2823 = vmatpush1.bf16.msra.mxu0 %v6996_v58  ;;  %v7076_v57 = vld [vmem:[#allocation18 + $0x304] ss:$16 sps:$4 sm:$0xff]   ;;  %v7071_v58 = vld [vmem:[#allocation18 + $0x100] ss:$16 sps:$4 sm:$0xff]  }
 0x669   :  { %2742 = vmatprep.subr.bf16.mxu1 %v7001_v59  ;;  %2824 = vmatprep.subr.bf16.mxu0 %v7004_v60  ;;  %v7074_v59 = vld [vmem:[#allocation18 + $0x300] ss:$16 sps:$4 sm:$0xff]   ;;  %v7079_v60 = vld [vmem:[#allocation18 + $0x124] ss:$16 sps:$4 sm:$0xff]  }
 0x66c   :  { %2743 = vmatpush1.bf16.msra.mxu1 %v6999_v63  ;;  %2825 = vmatpush1.bf16.msra.mxu0 %v7002_v2  ;;  %v7082_v63 = vld [vmem:[#allocation18 + $0x324] ss:$16 sps:$4 sm:$0xff]   ;;  %v7077_v2 = vld [vmem:[#allocation18 + $0x120] ss:$16 sps:$4 sm:$0xff]  }
 0x66d   :  { %2744 = vmatprep.subr.bf16.mxu1 %v7007_v3  ;;  %2826 = vmatprep.subr.bf16.mxu0 %v7010_v5  ;;  %v7080_v3 = vld [vmem:[#allocation18 + $0x320] ss:$16 sps:$4 sm:$0xff]   ;;  %v7085_v5 = vld [vmem:[#allocation18 + $0x144] ss:$16 sps:$4 sm:$0xff]  }
 0x670   :  { %2745 = vmatpush1.bf16.msra.mxu1 %v7005_v30  ;;  %2827 = vmatpush1.bf16.msra.mxu0 %v7008_v31  ;;  %v7083_v30 = vld [vmem:[#allocation18 + $0x140] ss:$16 sps:$4 sm:$0xff]  }
 0x671   :  { %2746 = vmatprep.subr.bf16.mxu1 %v7013_v8  ;;  %2828 = vmatprep.subr.bf16.mxu0 %v7016_v9  ;;  %v7086_v31 = vld [vmem:[#allocation18 + $0x340] ss:$16 sps:$4 sm:$0xff]   ;;  %v7091_v8 = vld [vmem:[#allocation18 + $0x164] ss:$16 sps:$4 sm:$0xff]  }
 0x672   :  { %v7094_v9 = vld [vmem:[#allocation18 + $0x364] ss:$16 sps:$4 sm:$0xff]  }
 0x674   :  { %2747 = vmatpush1.bf16.msra.mxu1 %v7011_v11  ;;  %2829 = vmatpush1.bf16.msra.mxu0 %v7014_v12  ;;  %v7092_v11 = vld [vmem:[#allocation18 + $0x360] ss:$16 sps:$4 sm:$0xff]   ;;  %v7097_v12 = vld [vmem:[#allocation18 + $0x184] ss:$16 sps:$4 sm:$0xff]  }
 0x675   :  { %2748 = vmatprep.subr.bf16.mxu1 %v7019_v13  ;;  %2830 = vmatprep.subr.bf16.mxu0 %v7022_v14  ;;  %v7100_v13 = vld [vmem:[#allocation18 + $0x384] ss:$16 sps:$4 sm:$0xff]   ;;  %v7095_v14 = vld [vmem:[#allocation18 + $0x180] ss:$16 sps:$4 sm:$0xff]  }
 0x678   :  { %2749 = vmatpush1.bf16.msra.mxu1 %v7017_v48  ;;  %2831 = vmatpush1.bf16.msra.mxu0 %v7020_v18  ;;  %v7103_v48 = vld [vmem:[#allocation18 + $0x1a4] ss:$16 sps:$4 sm:$0xff]  }
 0x679   :  { %3647 = vmatprep.subr.bf16.mxu1 %v7025_v20  ;;  %3688 = vmatprep.subr.bf16.mxu0 %v7028_v21  ;;  %v7106_v18 = vld [vmem:[#allocation18 + $0x3a4] ss:$16 sps:$4 sm:$0xff]   ;;  %v7101_v20 = vld [vmem:[#allocation18 + $0x1a0] ss:$16 sps:$4 sm:$0xff]  }
 0x67a   :  { %v7104_v21 = vld [vmem:[#allocation18 + $0x3a0] ss:$16 sps:$4 sm:$0xff]  }
 0x67b   :  { %2751 = vmatmul.mubr.bf16.vlgmr.msra.gmra.mrb[12].mxu1 %v1885_v24  ;;  %2833 = vmatmul.mubr.bf16.vlgmr.msra.gmra.mrb[16].mxu0 %v1885_v24  ;;  %v7107_v24 = vld [vmem:[#allocation18 + $0x1c0] ss:$16 sps:$4 sm:$0xff]  }
 0x67c   :  { %3648 = vmatpush1.bf16.msra.mxu1 %v7023_v52  ;;  %3689 = vmatpush1.bf16.msra.mxu0 %v7026_v23  ;;  %v7109_v52 = vld [vmem:[#allocation18 + $0x1c4] ss:$16 sps:$4 sm:$0xff]  }
 0x67d   :  { %3649 = vmatprep.subr.bf16.mxu1 %v7031_v25  ;;  %3690 = vmatprep.subr.bf16.mxu0 %v7034_v26  ;;  %v7112_v23 = vld [vmem:[#allocation18 + $0x3c4] ss:$16 sps:$4 sm:$0xff]   ;;  %v7110_v25 = vld [vmem:[#allocation18 + $0x3c0] ss:$16 sps:$4 sm:$0xff]  }
 0x67e   :  { %v7115_v26 = vld [vmem:[#allocation18 + $0x1e4] ss:$16 sps:$4 sm:$0xff]  }
 0x680   :  { %3650 = vmatpush1.bf16.msra.mxu1 %v7029_v27  ;;  %3691 = vmatpush1.bf16.msra.mxu0 %v7032_v28  ;;  %v7118_v27 = vld [vmem:[#allocation18 + $0x3e4] ss:$16 sps:$4 sm:$0xff]   ;;  %v7113_v28 = vld [vmem:[#allocation18 + $0x1e0] ss:$16 sps:$4 sm:$0xff]  }
 0x681   :  { %3651 = vmatprep.subr.bf16.mxu1 %v7037_v29  ;;  %3692 = vmatprep.subr.bf16.mxu0 %v7040_v32  ;;  %v7116_v29 = vld [vmem:[#allocation18 + $0x3e0] ss:$16 sps:$4 sm:$0xff]   ;;  %v7121_v32 = vld [vmem:[#allocation18 + $0xc] ss:$16 sps:$4 sm:$0xff]  }
 0x684   :  { %3652 = vmatpush1.bf16.msra.mxu1 %v7035_v33  ;;  %3693 = vmatpush1.bf16.msra.mxu0 %v7038_v34  ;;  %v7124_v33 = vld [vmem:[#allocation18 + $0x20c] ss:$16 sps:$4 sm:$0xff]   ;;  %v2015_v34 = vld [vmem:[%s8013_s14] sm:$0xf] }
 0x685   :  { %3653 = vmatprep.subr.bf16.mxu1 %v7043_v35  ;;  %3694 = vmatprep.subr.bf16.mxu0 %v7046_v36  ;;  %v2020_v35 = vrot.slane %v2015_v34, %v7804_v17  ;;  %v2028_v36 = vrot.slane %v2015_v34, %v7877_v61 }
 0x688   :  { %3654 = vmatpush1.bf16.msra.mxu1 %v7041_v37  ;;  %3695 = vmatpush1.bf16.msra.mxu0 %v7044_v38  ;;  %v2024_v37 = vrot.slane %v2015_v34, %v7810_v19  ;;  %v2032_v38 = vrot.slane %v2015_v34, %v7854_v49  ;;  %v7163_v34 = vld [vmem:[#allocation18 + $0xec] ss:$16 sps:$4 sm:$0xff]  }
 0x689   :  { %3655 = vmatprep.subr.bf16.mxu1 %v7049_v39  ;;  %3696 = vmatprep.subr.bf16.mxu0 %v7052_v40 }
 0x68c   :  { %3656 = vmatpush1.bf16.msra.mxu1 %v7047_v41  ;;  %3697 = vmatpush1.bf16.msra.mxu0 %v7050_v42 }
 0x68d   :  { %3657 = vmatprep.subr.bf16.mxu1 %v7055_v43  ;;  %3698 = vmatprep.subr.bf16.mxu0 %v7058_v44 }
 0x690   :  { %3658 = vmatpush1.bf16.msra.mxu1 %v7053_v45  ;;  %3699 = vmatpush1.bf16.msra.mxu0 %v7056_v46 }
 0x691   :  { %3659 = vmatprep.subr.bf16.mxu1 %v7061_v47  ;;  %3700 = vmatprep.subr.bf16.mxu0 %v7064_v50 }
 0x694   :  { %3660 = vmatpush1.bf16.msra.mxu1 %v7059_v62  ;;  %3701 = vmatpush1.bf16.msra.mxu0 %v7062_v51 }
 0x695   :  { %3661 = vmatprep.subr.bf16.mxu1 %v7067_v0  ;;  %3702 = vmatprep.subr.bf16.mxu0 %v7070_v53 }
 0x698   :  { %3662 = vmatpush1.bf16.msra.mxu1 %v7065_v54  ;;  %3703 = vmatpush1.bf16.msra.mxu0 %v7068_v55 }
 0x699   :  { %3663 = vmatprep.subr.bf16.mxu1 %v7073_v56  ;;  %3704 = vmatprep.subr.bf16.mxu0 %v7076_v57 }
 0x69c   :  { %3664 = vmatpush1.bf16.msra.mxu1 %v7071_v58  ;;  %3705 = vmatpush1.bf16.msra.mxu0 %v7074_v59 }
 0x69d   :  { %3665 = vmatprep.subr.bf16.mxu1 %v7079_v60  ;;  %3706 = vmatprep.subr.bf16.mxu0 %v7082_v63 }
 0x6a0   :  { %3666 = vmatpush1.bf16.msra.mxu1 %v7077_v2  ;;  %3707 = vmatpush1.bf16.msra.mxu0 %v7080_v3  ;;  %v7119_v2 = vld [vmem:[#allocation18 + $0x8] ss:$16 sps:$4 sm:$0xff]  }
 0x6a1   :  { %3667 = vmatprep.subr.bf16.mxu1 %v7085_v5  ;;  %3708 = vmatprep.subr.bf16.mxu0 %v7088_v6  ;;  %v7122_v3 = vld [vmem:[#allocation18 + $0x208] ss:$16 sps:$4 sm:$0xff]  }
 0x6a4   :  { %3668 = vmatpush1.bf16.msra.mxu1 %v7083_v30  ;;  %3709 = vmatpush1.bf16.msra.mxu0 %v7086_v31  ;;  %v7127_v30 = vld [vmem:[#allocation18 + $0x2c] ss:$16 sps:$4 sm:$0xff]  }
 0x6a5   :  { %3669 = vmatprep.subr.bf16.mxu1 %v7091_v8  ;;  %3710 = vmatprep.subr.bf16.mxu0 %v7094_v9  ;;  %v7130_v31 = vld [vmem:[#allocation18 + $0x22c] ss:$16 sps:$4 sm:$0xff]   ;;  %v7125_v8 = vld [vmem:[#allocation18 + $0x28] ss:$16 sps:$4 sm:$0xff]  }
 0x6a6   :  { %v7128_v9 = vld [vmem:[#allocation18 + $0x228] ss:$16 sps:$4 sm:$0xff]  }
 0x6a8   :  { %3670 = vmatpush1.bf16.msra.mxu1 %v7089_v10  ;;  %3711 = vmatpush1.bf16.msra.mxu0 %v7092_v11  ;;  %v7133_v10 = vld [vmem:[#allocation18 + $0x4c] ss:$16 sps:$4 sm:$0xff]  }
 0x6a9   :  { %3671 = vmatprep.subr.bf16.mxu1 %v7097_v12  ;;  %3712 = vmatprep.subr.bf16.mxu0 %v7100_v13  ;;  %v7136_v11 = vld [vmem:[#allocation18 + $0x24c] ss:$16 sps:$4 sm:$0xff]   ;;  %v7131_v12 = vld [vmem:[#allocation18 + $0x48] ss:$16 sps:$4 sm:$0xff]  }
 0x6aa   :  { %v7134_v13 = vld [vmem:[#allocation18 + $0x248] ss:$16 sps:$4 sm:$0xff]  }
 0x6ac   :  { %3672 = vmatpush1.bf16.msra.mxu1 %v7095_v14  ;;  %3713 = vmatpush1.bf16.msra.mxu0 %v7098_v15  ;;  %v7139_v14 = vld [vmem:[#allocation18 + $0x6c] ss:$16 sps:$4 sm:$0xff]  }
 0x6ad   :  { %3673 = vmatprep.subr.bf16.mxu1 %v7103_v48  ;;  %3714 = vmatprep.subr.bf16.mxu0 %v7106_v18  ;;  %v7142_v15 = vld [vmem:[#allocation18 + $0x26c] ss:$16 sps:$4 sm:$0xff]   ;;  %v7137_v48 = vld [vmem:[#allocation18 + $0x68] ss:$16 sps:$4 sm:$0xff]  }
 0x6ae   :  { %v7140_v18 = vld [vmem:[#allocation18 + $0x268] ss:$16 sps:$4 sm:$0xff]  }
 0x6b0   :  { %3674 = vmatpush1.bf16.msra.mxu1 %v7101_v20  ;;  %3715 = vmatpush1.bf16.msra.mxu0 %v7104_v21  ;;  %v7145_v20 = vld [vmem:[#allocation18 + $0x8c] ss:$16 sps:$4 sm:$0xff]  }
 0x6b1   :  { %3675 = vmatprep.subr.bf16.mxu1 %v7109_v52  ;;  %3716 = vmatprep.subr.bf16.mxu0 %v7112_v23  ;;  %v7148_v21 = vld [vmem:[#allocation18 + $0x28c] ss:$16 sps:$4 sm:$0xff]   ;;  %v7143_v52 = vld [vmem:[#allocation18 + $0x88] ss:$16 sps:$4 sm:$0xff]  }
 0x6b2   :  { %v7146_v23 = vld [vmem:[#allocation18 + $0x288] ss:$16 sps:$4 sm:$0xff]  }
 0x6b4   :  { %3676 = vmatpush1.bf16.msra.mxu1 %v7107_v24  ;;  %3717 = vmatpush1.bf16.msra.mxu0 %v7110_v25  ;;  %v7151_v24 = vld [vmem:[#allocation18 + $0xac] ss:$16 sps:$4 sm:$0xff]  }
 0x6b5   :  { %3677 = vmatprep.subr.bf16.mxu1 %v7115_v26  ;;  %3718 = vmatprep.subr.bf16.mxu0 %v7118_v27  ;;  %v7154_v25 = vld [vmem:[#allocation18 + $0x2ac] ss:$16 sps:$4 sm:$0xff]   ;;  %v7149_v26 = vld [vmem:[#allocation18 + $0xa8] ss:$16 sps:$4 sm:$0xff]  }
 0x6b6   :  { %v7152_v27 = vld [vmem:[#allocation18 + $0x2a8] ss:$16 sps:$4 sm:$0xff]  }
 0x6b8   :  { %3678 = vmatpush1.bf16.msra.mxu1 %v7113_v28  ;;  %3719 = vmatpush1.bf16.msra.mxu0 %v7116_v29  ;;  %v7157_v28 = vld [vmem:[#allocation18 + $0xcc] ss:$16 sps:$4 sm:$0xff]  }
 0x6b9   :  { %3729 = vmatprep.subr.bf16.mxu1 %v7121_v32  ;;  %3770 = vmatprep.subr.bf16.mxu0 %v7124_v33  ;;  %v7160_v29 = vld [vmem:[#allocation18 + $0x2cc] ss:$16 sps:$4 sm:$0xff]   ;;  %v7155_v32 = vld [vmem:[#allocation18 + $0xc8] ss:$16 sps:$4 sm:$0xff]  }
 0x6ba   :  { %v7158_v33 = vld [vmem:[#allocation18 + $0x2c8] ss:$16 sps:$4 sm:$0xff]  }
 0x74e   :  { %v2752_v39 = vpop.f32.mrb[12].mxu1  ;;  %v2834_v40 = vpop.f32.mrb[16].mxu0 }
 0x74f   :  { %v6464_v41 = vadd.f32 %v2752_v39, %v2020_v35  ;;  %v6466_v42 = vadd.f32 %v2834_v40, %v2028_v36  ;;  %v2754_v43 = vpop.f32.mrb[13].mxu1  ;;  %v2836_v44 = vpop.f32.mrb[17].mxu0  ;;  %v7166_v35 = vld [vmem:[#allocation18 + $0x2ec] ss:$16 sps:$4 sm:$0xff]   ;;  %v7161_v36 = vld [vmem:[#allocation18 + $0xe8] ss:$16 sps:$4 sm:$0xff]  }
 0x750   :  { %v6465_v45 = vadd.f32 %v2754_v43, %v2024_v37  ;;  %v6467_v46 = vadd.f32 %v2836_v44, %v2032_v38  ;;  %v2756_v47 = vpop.f32.mrb[14].mxu1  ;;  %v2838_v50 = vpop.f32.mrb[18].mxu0  ;;  %v7164_v37 = vld [vmem:[#allocation18 + $0x2e8] ss:$16 sps:$4 sm:$0xff]   ;;  %v7169_v38 = vld [vmem:[#allocation18 + $0x10c] ss:$16 sps:$4 sm:$0xff]  }
 0x751   :  { %vm2841_vm10 = vcmp.ge.f32.partialorder %v6464_v41, 0.0  ;;  %v2845_v62 = vmul.f32 0.01, %v6464_v41  ;;  %vm2843_vm11 = vcmp.ge.f32.partialorder %v6466_v42, 0.0  ;;  %v2847_v51 = vmul.f32 0.01, %v6466_v42 }
 0x752   :  { %vm2842_vm12 = vcmp.ge.f32.partialorder %v6465_v45, 0.0  ;;  %v2846_v0 = vmul.f32 0.01, %v6465_v45  ;;  %vm2844_vm13 = vcmp.ge.f32.partialorder %v6467_v46, 0.0  ;;  %v2848_v53 = vmul.f32 0.01, %v6467_v46 }
 0x753   :  { %v2849_v54 = vsel %vm2841_vm10, %v6464_v41, %v2845_v62  ;;  %v2851_v55 = vsel %vm2843_vm11, %v6466_v42, %v2847_v51  ;;  %v2757_v56 = vpop.f32.mrb[15].mxu1  ;;  %v2839_v57 = vpop.f32.mrb[19].mxu0  ;;  %v7172_v39 = vld [vmem:[#allocation18 + $0x30c] ss:$16 sps:$4 sm:$0xff]   ;;  %v7167_v40 = vld [vmem:[#allocation18 + $0x108] ss:$16 sps:$4 sm:$0xff]  }
 0x754   :  { %v2850_v58 = vsel %vm2842_vm12, %v6465_v45, %v2846_v0  ;;  %v2852_v59 = vsel %vm2844_vm13, %v6467_v46, %v2848_v53  ;;  %v7893_v5 = vpack.c.bf16 %v2849_v54, %v2849_v54  ;;  %v7895_v6 = vpack.c.bf16 %v2851_v55, %v2851_v55  ;;  %v7170_v41 = vld [vmem:[#allocation18 + $0x308] ss:$16 sps:$4 sm:$0xff]   ;;  %v7175_v42 = vld [vmem:[#allocation18 + $0x12c] ss:$16 sps:$4 sm:$0xff]  }
 0x755   :  { %v2854_v60 = vpack.c.bf16 %v2850_v58, %v2850_v58  ;;  %v2856_v63 = vpack.c.bf16 %v2852_v59, %v2852_v59  ;;  %v7178_v43 = vld [vmem:[#allocation18 + $0x32c] ss:$16 sps:$4 sm:$0xff]   ;;  %v7173_v44 = vld [vmem:[#allocation18 + $0x128] ss:$16 sps:$4 sm:$0xff]  }
 0x756   :  { %v7176_v45 = vld [vmem:[#allocation18 + $0x328] ss:$16 sps:$4 sm:$0xff]   ;;  %v7181_v46 = vld [vmem:[#allocation18 + $0x14c] ss:$16 sps:$4 sm:$0xff]  }
 0x757   :  { %3679 = vmatprep.mubr.bf16.mxu1 %v2854_v60  ;;  %3720 = vmatprep.mubr.bf16.mxu0 %v2856_v63  ;;  %v7184_v47 = vld [vmem:[#allocation18 + $0x34c] ss:$16 sps:$4 sm:$0xff]   ;;  %v7179_v50 = vld [vmem:[#allocation18 + $0x148] ss:$16 sps:$4 sm:$0xff]  }
 0x758   :  { %3680 = vmatmul.mubr.bf16.vlgmr.msra.gmra.mrb[16].mxu1 %v7893_v5  ;;  %3721 = vmatmul.mubr.bf16.vlgmr.msra.gmra.mrb[20].mxu0 %v7895_v6  ;;  %v7182_v62 = vld [vmem:[#allocation18 + $0x348] ss:$16 sps:$4 sm:$0xff]   ;;  %v7187_v51 = vld [vmem:[#allocation18 + $0x16c] ss:$16 sps:$4 sm:$0xff]  }
 0x759   :  { %3730 = vmatpush1.bf16.msra.mxu1 %v7119_v2  ;;  %3771 = vmatpush1.bf16.msra.mxu0 %v7122_v3  ;;  %v7190_v0 = vld [vmem:[#allocation18 + $0x36c] ss:$16 sps:$4 sm:$0xff]   ;;  %v7185_v53 = vld [vmem:[#allocation18 + $0x168] ss:$16 sps:$4 sm:$0xff]  }
 0x75a   :  { %3761 = vmatprep.mubr.bf16.mxu1 %v2854_v60  ;;  %3802 = vmatprep.mubr.bf16.mxu0 %v2856_v63  ;;  %v7188_v54 = vld [vmem:[#allocation18 + $0x368] ss:$16 sps:$4 sm:$0xff]   ;;  %v7193_v55 = vld [vmem:[#allocation18 + $0x18c] ss:$16 sps:$4 sm:$0xff]  }
 0x75b   :  { %3731 = vmatprep.subr.bf16.mxu1 %v7127_v30  ;;  %3772 = vmatprep.subr.bf16.mxu0 %v7130_v31  ;;  %v7196_v56 = vld [vmem:[#allocation18 + $0x38c] ss:$16 sps:$4 sm:$0xff]   ;;  %v7191_v57 = vld [vmem:[#allocation18 + $0x188] ss:$16 sps:$4 sm:$0xff]  }
 0x75c   :  { %v7194_v58 = vld [vmem:[#allocation18 + $0x388] ss:$16 sps:$4 sm:$0xff]   ;;  %v7199_v59 = vld [vmem:[#allocation18 + $0x1ac] ss:$16 sps:$4 sm:$0xff]  }
 0x75d   :  { %3732 = vmatpush1.bf16.msra.mxu1 %v7125_v8  ;;  %3773 = vmatpush1.bf16.msra.mxu0 %v7128_v9  ;;  %v7202_v60 = vld [vmem:[#allocation18 + $0x3ac] ss:$16 sps:$4 sm:$0xff]   ;;  %v7197_v63 = vld [vmem:[#allocation18 + $0x1a8] ss:$16 sps:$4 sm:$0xff]  }
 0x75e   :  { %3733 = vmatprep.subr.bf16.mxu1 %v7133_v10  ;;  %3774 = vmatprep.subr.bf16.mxu0 %v7136_v11  ;;  %v7200_v2 = vld [vmem:[#allocation18 + $0x3a8] ss:$16 sps:$4 sm:$0xff]   ;;  %v7205_v3 = vld [vmem:[#allocation18 + $0x1cc] ss:$16 sps:$4 sm:$0xff]   ;;  %v3819_v11 = vld [vmem:[#allocation19] sm:$0xff] }
 0x75f   :  { %v7208_v30 = vld [vmem:[#allocation18 + $0x3cc] ss:$16 sps:$4 sm:$0xff]   ;;  %v7203_v31 = vld [vmem:[#allocation18 + $0x1c8] ss:$16 sps:$4 sm:$0xff]  }
 0x760   :  { %v7206_v8 = vld [vmem:[#allocation18 + $0x3c8] ss:$16 sps:$4 sm:$0xff]   ;;  %v7211_v9 = vld [vmem:[#allocation18 + $0x1ec] ss:$16 sps:$4 sm:$0xff]  }
 0x761   :  { %3734 = vmatpush1.bf16.msra.mxu1 %v7131_v12  ;;  %3775 = vmatpush1.bf16.msra.mxu0 %v7134_v13  ;;  %v7214_v10 = vld [vmem:[#allocation18 + $0x3ec] ss:$16 sps:$4 sm:$0xff]   ;;  %v3823_v12 = vld [vmem:[#allocation19 + $0x20] sm:$0xff] }
 0x762   :  { %3735 = vmatprep.subr.bf16.mxu1 %v7139_v14  ;;  %3776 = vmatprep.subr.bf16.mxu0 %v7142_v15  ;;  %v3820_v13 = vld [vmem:[#allocation19 + $0x8] sm:$0xff] }
 0x763   :  { %v3824_v14 = vld [vmem:[#allocation19 + $0x28] sm:$0xff] }
 0x764   :  { %v7209_v15 = vld [vmem:[#allocation18 + $0x1e8] ss:$16 sps:$4 sm:$0xff]  }
 0x765   :  { %3736 = vmatpush1.bf16.msra.mxu1 %v7137_v48  ;;  %3777 = vmatpush1.bf16.msra.mxu0 %v7140_v18  ;;  %v7212_v48 = vld [vmem:[#allocation18 + $0x3e8] ss:$16 sps:$4 sm:$0xff]   ;;  %v6209_v18 = vcombine.high %v3819_v11, %v3823_v12 }
 0x766   :  { %3737 = vmatprep.subr.bf16.mxu1 %v7145_v20  ;;  %3778 = vmatprep.subr.bf16.mxu0 %v7148_v21  ;;  %v6211_v20 = vcombine.high %v3820_v13, %v3824_v14  ;;  %v3827_v21 = vld [vmem:[#allocation19 + $0x40] sm:$0xff] }
 0x769   :  { %3738 = vmatpush1.bf16.msra.mxu1 %v7143_v52  ;;  %3779 = vmatpush1.bf16.msra.mxu0 %v7146_v23  ;;  %v3831_v52 = vld [vmem:[#allocation19 + $0x60] sm:$0xff]  ;;  %v3828_v23 = vld [vmem:[#allocation19 + $0x48] sm:$0xff] }
 0x76a   :  { %3739 = vmatprep.subr.bf16.mxu1 %v7151_v24  ;;  %3780 = vmatprep.subr.bf16.mxu0 %v7154_v25  ;;  %v3832_v24 = vld [vmem:[#allocation19 + $0x68] sm:$0xff]  ;;  %v6208_v25 = vcombine.low %v3819_v11, %v3823_v12  ;;  %v3875_v12 = vld [vmem:[#allocation19 + $0x1c0] sm:$0xff] }
 0x76d   :  { %3740 = vmatpush1.bf16.msra.mxu1 %v7149_v26  ;;  %3781 = vmatpush1.bf16.msra.mxu0 %v7152_v27  ;;  %v6210_v26 = vcombine.low %v3820_v13, %v3824_v14  ;;  %v6217_v27 = vcombine.high %v3827_v21, %v3831_v52  ;;  %v3879_v13 = vld [vmem:[#allocation19 + $0x1e0] sm:$0xff]  ;;  %v3876_v14 = vld [vmem:[#allocation19 + $0x1c8] sm:$0xff] }
 0x76e   :  { %3741 = vmatprep.subr.bf16.mxu1 %v7157_v28  ;;  %3782 = vmatprep.subr.bf16.mxu0 %v7160_v29  ;;  %v6219_v28 = vcombine.high %v3828_v23, %v3832_v24  ;;  %v3835_v29 = vld [vmem:[#allocation19 + $0x80] sm:$0xff] }
 0x771   :  { %3742 = vmatpush1.bf16.msra.mxu1 %v7155_v32  ;;  %3783 = vmatpush1.bf16.msra.mxu0 %v7158_v33  ;;  %v3839_v32 = vld [vmem:[#allocation19 + $0xa0] sm:$0xff]  ;;  %v3836_v33 = vld [vmem:[#allocation19 + $0x88] sm:$0xff] }
 0x772   :  { %3743 = vmatprep.subr.bf16.mxu1 %v7163_v34  ;;  %3784 = vmatprep.subr.bf16.mxu0 %v7166_v35  ;;  %v3840_v34 = vld [vmem:[#allocation19 + $0xa8] sm:$0xff]  ;;  %v6216_v35 = vcombine.low %v3827_v21, %v3831_v52  ;;  %v3883_v52 = vld [vmem:[#allocation19 + $0x200] sm:$0xff] }
 0x775   :  { %3744 = vmatpush1.bf16.msra.mxu1 %v7161_v36  ;;  %3785 = vmatpush1.bf16.msra.mxu0 %v7164_v37  ;;  %v6218_v36 = vcombine.low %v3828_v23, %v3832_v24  ;;  %v6225_v37 = vcombine.high %v3835_v29, %v3839_v32  ;;  %v3887_v23 = vld [vmem:[#allocation19 + $0x220] sm:$0xff]  ;;  %v3884_v24 = vld [vmem:[#allocation19 + $0x208] sm:$0xff] }
 0x776   :  { %3745 = vmatprep.subr.bf16.mxu1 %v7169_v38  ;;  %3786 = vmatprep.subr.bf16.mxu0 %v7172_v39  ;;  %v6227_v38 = vcombine.high %v3836_v33, %v3840_v34  ;;  %v3843_v39 = vld [vmem:[#allocation19 + $0xc0] sm:$0xff] }
 0x779   :  { %3746 = vmatpush1.bf16.msra.mxu1 %v7167_v40  ;;  %3787 = vmatpush1.bf16.msra.mxu0 %v7170_v41  ;;  %v3847_v40 = vld [vmem:[#allocation19 + $0xe0] sm:$0xff]  ;;  %v3844_v41 = vld [vmem:[#allocation19 + $0xc8] sm:$0xff] }
 0x77a   :  { %3747 = vmatprep.subr.bf16.mxu1 %v7175_v42  ;;  %3788 = vmatprep.subr.bf16.mxu0 %v7178_v43  ;;  %v3848_v42 = vld [vmem:[#allocation19 + $0xe8] sm:$0xff]  ;;  %v6224_v43 = vcombine.low %v3835_v29, %v3839_v32  ;;  %v3891_v32 = vld [vmem:[#allocation19 + $0x240] sm:$0xff] }
 0x77d   :  { %3748 = vmatpush1.bf16.msra.mxu1 %v7173_v44  ;;  %3789 = vmatpush1.bf16.msra.mxu0 %v7176_v45  ;;  %v6226_v44 = vcombine.low %v3836_v33, %v3840_v34  ;;  %v3851_v45 = vld [vmem:[#allocation19 + $0x100] sm:$0xff]  ;;  %v3892_v34 = vld [vmem:[#allocation19 + $0x248] sm:$0xff] }
 0x77e   :  { %3749 = vmatprep.subr.bf16.mxu1 %v7181_v46  ;;  %3790 = vmatprep.subr.bf16.mxu0 %v7184_v47  ;;  %v3855_v46 = vld [vmem:[#allocation19 + $0x120] sm:$0xff]  ;;  %v3852_v47 = vld [vmem:[#allocation19 + $0x108] sm:$0xff] }
 0x77f   :  { %v3895_v33 = vld [vmem:[#allocation19 + $0x260] sm:$0xff] }
 0x781   :  { %3750 = vmatpush1.bf16.msra.mxu1 %v7179_v50  ;;  %3791 = vmatpush1.bf16.msra.mxu0 %v7182_v62  ;;  %v3856_v50 = vld [vmem:[#allocation19 + $0x128] sm:$0xff]  ;;  %v6232_v62 = vcombine.low %v3843_v39, %v3847_v40 }
 0x782   :  { %3751 = vmatprep.subr.bf16.mxu1 %v7187_v51  ;;  %3792 = vmatprep.subr.bf16.mxu0 %v7190_v0  ;;  %v6234_v51 = vcombine.low %v3844_v41, %v3848_v42  ;;  %v6241_v0 = vcombine.high %v3851_v45, %v3855_v46 }
 0x785   :  { %3752 = vmatpush1.bf16.msra.mxu1 %v7185_v53  ;;  %3793 = vmatpush1.bf16.msra.mxu0 %v7188_v54  ;;  %v6243_v53 = vcombine.high %v3852_v47, %v3856_v50  ;;  %v3859_v54 = vld [vmem:[#allocation19 + $0x140] sm:$0xff] }
 0x786   :  { %3753 = vmatprep.subr.bf16.mxu1 %v7193_v55  ;;  %3794 = vmatprep.subr.bf16.mxu0 %v7196_v56  ;;  %v3863_v55 = vld [vmem:[#allocation19 + $0x160] sm:$0xff]  ;;  %v3860_v56 = vld [vmem:[#allocation19 + $0x148] sm:$0xff] }
 0x789   :  { %3754 = vmatpush1.bf16.msra.mxu1 %v7191_v57  ;;  %3795 = vmatpush1.bf16.msra.mxu0 %v7194_v58  ;;  %v3864_v57 = vld [vmem:[#allocation19 + $0x168] sm:$0xff]  ;;  %v6240_v58 = vcombine.low %v3851_v45, %v3855_v46  ;;  %v3903_v45 = vld [vmem:[#allocation19 + $0x2a0] sm:$0xff] }
 0x78a   :  { %3755 = vmatprep.subr.bf16.mxu1 %v7199_v59  ;;  %3796 = vmatprep.subr.bf16.mxu0 %v7202_v60  ;;  %v6242_v59 = vcombine.low %v3852_v47, %v3856_v50  ;;  %v6249_v60 = vcombine.high %v3859_v54, %v3863_v55  ;;  %v3900_v46 = vld [vmem:[#allocation19 + $0x288] sm:$0xff]  ;;  %v6280_v50 = vcombine.low %v3891_v32, %v3895_v33 }
 0x78b   :  { %v3904_v47 = vld [vmem:[#allocation19 + $0x2a8] sm:$0xff] }
 0x78d   :  { %3756 = vmatpush1.bf16.msra.mxu1 %v7197_v63  ;;  %3797 = vmatpush1.bf16.msra.mxu0 %v7200_v2  ;;  %v6251_v63 = vcombine.high %v3860_v56, %v3864_v57  ;;  %v3867_v2 = vld [vmem:[#allocation19 + $0x180] sm:$0xff] }
 0x78e   :  { %3757 = vmatprep.subr.bf16.mxu1 %v7205_v3  ;;  %3798 = vmatprep.subr.bf16.mxu0 %v7208_v30  ;;  %v3871_v3 = vld [vmem:[#allocation19 + $0x1a0] sm:$0xff]  ;;  %v3868_v30 = vld [vmem:[#allocation19 + $0x188] sm:$0xff] }
 0x791   :  { %3758 = vmatpush1.bf16.msra.mxu1 %v7203_v31  ;;  %3799 = vmatpush1.bf16.msra.mxu0 %v7206_v8  ;;  %v3872_v31 = vld [vmem:[#allocation19 + $0x1a8] sm:$0xff]  ;;  %v6248_v8 = vcombine.low %v3859_v54, %v3863_v55  ;;  %v3911_v54 = vld [vmem:[#allocation19 + $0x2e0] sm:$0xff] }
 0x792   :  { %3759 = vmatprep.subr.bf16.mxu1 %v7211_v9  ;;  %3800 = vmatprep.subr.bf16.mxu0 %v7214_v10  ;;  %v6250_v9 = vcombine.low %v3860_v56, %v3864_v57  ;;  %v6257_v10 = vcombine.high %v3867_v2, %v3871_v3  ;;  %v6259_v11 = vcombine.high %v3868_v30, %v3872_v31  ;;  %v3908_v55 = vld [vmem:[#allocation19 + $0x2c8] sm:$0xff] }
 0x793   :  { %v3912_v56 = vld [vmem:[#allocation19 + $0x2e8] sm:$0xff] }
 0x795   :  { %3760 = vmatpush1.bf16.msra.mxu1 %v7209_v15  ;;  %3801 = vmatpush1.bf16.msra.mxu0 %v7212_v48  ;;  %v3880_v15 = vld [vmem:[#allocation19 + $0x1e8] sm:$0xff]  ;;  %v6256_v48 = vcombine.low %v3867_v2, %v3871_v3  ;;  %v3919_v2 = vld [vmem:[#allocation19 + $0x320] sm:$0xff] }
 0x796   :  { %5397 = vmatprep.subr.bf16.mxu1 %v6209_v18  ;;  %5479 = vmatprep.subr.bf16.mxu0 %v6211_v20  ;;  %v6258_v18 = vcombine.low %v3868_v30, %v3872_v31  ;;  %v6265_v20 = vcombine.high %v3875_v12, %v3879_v13  ;;  %v6267_v21 = vcombine.high %v3876_v14, %v3880_v15  ;;  %v3916_v3 = vld [vmem:[#allocation19 + $0x308] sm:$0xff] }
 0x797   :  { %v3920_v30 = vld [vmem:[#allocation19 + $0x328] sm:$0xff] }
 0x798   :  { %3762 = vmatmul.mubr.bf16.vlgmr.msra.gmra.mrb[20].mxu1 %v7893_v5  ;;  %3803 = vmatmul.mubr.bf16.vlgmr.msra.gmra.mrb[24].mxu0 %v7895_v6  ;;  %v6233_v5 = vcombine.high %v3843_v39, %v3847_v40  ;;  %v6235_v6 = vcombine.high %v3844_v41, %v3848_v42  ;;  %v6272_v39 = vcombine.low %v3883_v52, %v3887_v23  ;;  %v7909_v42 = vld [vmem:[#allocation19 + $0x428] sm:$0xff] }
 0x799   :  { %5398 = vmatpush1.bf16.msra.mxu1 %v6208_v25  ;;  %5480 = vmatpush1.bf16.msra.mxu0 %v6210_v26  ;;  %v3888_v25 = vld [vmem:[#allocation19 + $0x228] sm:$0xff]  ;;  %v6264_v26 = vcombine.low %v3875_v12, %v3879_v13  ;;  %v3927_v12 = vld [vmem:[#allocation19 + $0x360] sm:$0xff] }
 0x79a   :  { %5399 = vmatprep.subr.bf16.mxu1 %v6217_v27  ;;  %5481 = vmatprep.subr.bf16.mxu0 %v6219_v28  ;;  %v6266_v27 = vcombine.low %v3876_v14, %v3880_v15  ;;  %v6273_v28 = vcombine.high %v3883_v52, %v3887_v23  ;;  %v6275_v29 = vcombine.high %v3884_v24, %v3888_v25  ;;  %v3924_v13 = vld [vmem:[#allocation19 + $0x348] sm:$0xff]  ;;  %v3935_v52 = vld [vmem:[#allocation19 + $0x3a0] sm:$0xff] }
 0x79b   :  { %v6274_v40 = vcombine.low %v3884_v24, %v3888_v25  ;;  %v3928_v14 = vld [vmem:[#allocation19 + $0x368] sm:$0xff] }
 0x79c   :  { %v3932_v23 = vld [vmem:[#allocation19 + $0x388] sm:$0xff] }
 0x79d   :  { %5400 = vmatpush1.bf16.msra.mxu1 %v6216_v35  ;;  %5482 = vmatpush1.bf16.msra.mxu0 %v6218_v36  ;;  %v3896_v35 = vld [vmem:[#allocation19 + $0x268] sm:$0xff]  ;;  %v7901_v36 = vld [vmem:[#allocation19 + $0x400] sm:$0xff] }
 0x79e   :  { %5401 = vmatprep.subr.bf16.mxu1 %v6225_v37  ;;  %5483 = vmatprep.subr.bf16.mxu0 %v6227_v38  ;;  %v7903_v37 = vld [vmem:[#allocation19 + $0x420] sm:$0xff]  ;;  %v7905_v38 = vld [vmem:[#allocation19 + $0x408] sm:$0xff] }
 0x79f   :  { %v6336_v41 = vcombine.low %v7901_v36, %v7903_v37  ;;  %v3936_v24 = vld [vmem:[#allocation19 + $0x3a8] sm:$0xff] }
 0x7a1   :  { %5402 = vmatpush1.bf16.msra.mxu1 %v6224_v43  ;;  %5484 = vmatpush1.bf16.msra.mxu0 %v6226_v44  ;;  %v6281_v43 = vcombine.high %v3891_v32, %v3895_v33  ;;  %v6283_v44 = vcombine.high %v3892_v34, %v3896_v35  ;;  %v3943_v32 = vld [vmem:[#allocation19 + $0x3e0] sm:$0xff]  ;;  %v3940_v33 = vld [vmem:[#allocation19 + $0x3c8] sm:$0xff] }
 0x7a2   :  { %5403 = vmatprep.subr.bf16.mxu1 %v6233_v5  ;;  %5485 = vmatprep.subr.bf16.mxu0 %v6235_v6  ;;  %v3899_v5 = vld [vmem:[#allocation19 + $0x280] sm:$0xff]  ;;  %v6338_v6 = vcombine.low %v7905_v38, %v7909_v42 }
 0x7a3   :  { %v6288_v57 = vcombine.low %v3899_v5, %v3903_v45 }
 0x7a5   :  { %5404 = vmatpush1.bf16.msra.mxu1 %v6232_v62  ;;  %5486 = vmatpush1.bf16.msra.mxu0 %v6234_v51  ;;  %v6282_v62 = vcombine.low %v3892_v34, %v3896_v35  ;;  %v6289_v51 = vcombine.high %v3899_v5, %v3903_v45  ;;  %v3944_v34 = vld [vmem:[#allocation19 + $0x3e8] sm:$0xff]  ;;  %v6337_v45 = vcombine.high %v7901_v36, %v7903_v37 }
 0x7a6   :  { %5405 = vmatprep.subr.bf16.mxu1 %v6241_v0  ;;  %5487 = vmatprep.subr.bf16.mxu0 %v6243_v53  ;;  %v6291_v0 = vcombine.high %v3900_v46, %v3904_v47  ;;  %v3907_v53 = vld [vmem:[#allocation19 + $0x2c0] sm:$0xff]  ;;  %v6330_v5 = vcombine.low %v3940_v33, %v3944_v34 }
 0x7a7   :  { %v6296_v31 = vcombine.low %v3907_v53, %v3911_v54 }
 0x7a9   :  { %5406 = vmatpush1.bf16.msra.mxu1 %v6240_v58  ;;  %5488 = vmatpush1.bf16.msra.mxu0 %v6242_v59  ;;  %v6290_v58 = vcombine.low %v3900_v46, %v3904_v47  ;;  %v6297_v59 = vcombine.high %v3907_v53, %v3911_v54  ;;  %v6339_v46 = vcombine.high %v7905_v38, %v7909_v42  ;;  %v7920_v47 = vld [vmem:[%s8015_s16] sm:$0xf]  ;;  %v3979_v38 = vld [vmem:[#allocation19 + $0x500] sm:$0xff]  ;;  %v3980_v42 = vld [vmem:[#allocation19 + $0x508] sm:$0xff] }
 0x7aa   :  { %5407 = vmatprep.subr.bf16.mxu1 %v6249_v60  ;;  %5489 = vmatprep.subr.bf16.mxu0 %v6251_v63  ;;  %v6299_v60 = vcombine.high %v3908_v55, %v3912_v56  ;;  %v3915_v63 = vld [vmem:[#allocation19 + $0x300] sm:$0xff] }
 0x7ab   :  { %v6304_v15 = vcombine.low %v3915_v63, %v3919_v2 }
 0x7ad   :  { %5408 = vmatpush1.bf16.msra.mxu1 %v6248_v8  ;;  %5490 = vmatpush1.bf16.msra.mxu0 %v6250_v9  ;;  %v6298_v8 = vcombine.low %v3908_v55, %v3912_v56  ;;  %v6305_v9 = vcombine.high %v3915_v63, %v3919_v2 }
 0x7ae   :  { %5409 = vmatprep.subr.bf16.mxu1 %v6257_v10  ;;  %5491 = vmatprep.subr.bf16.mxu0 %v6259_v11  ;;  %v6307_v10 = vcombine.high %v3916_v3, %v3920_v30  ;;  %v3923_v11 = vld [vmem:[#allocation19 + $0x340] sm:$0xff] }
 0x7af   :  { %v6312_v25 = vcombine.low %v3923_v11, %v3927_v12 }
 0x7b1   :  { %5410 = vmatpush1.bf16.msra.mxu1 %v6256_v48  ;;  %5492 = vmatpush1.bf16.msra.mxu0 %v6258_v18  ;;  %v6306_v48 = vcombine.low %v3916_v3, %v3920_v30  ;;  %v6313_v18 = vcombine.high %v3923_v11, %v3927_v12  ;;  %v3955_v30 = vld [vmem:[#allocation19 + $0x440] sm:$0xff] }
 0x7b2   :  { %5411 = vmatprep.subr.bf16.mxu1 %v6265_v20  ;;  %5493 = vmatprep.subr.bf16.mxu0 %v6267_v21  ;;  %v6315_v20 = vcombine.high %v3924_v13, %v3928_v14  ;;  %v3931_v21 = vld [vmem:[#allocation19 + $0x380] sm:$0xff] }
 0x7b3   :  { %v6320_v35 = vcombine.low %v3931_v21, %v3935_v52 }
 0x7b5   :  { %5412 = vmatpush1.bf16.msra.mxu1 %v6264_v26  ;;  %5494 = vmatpush1.bf16.msra.mxu0 %v6266_v27  ;;  %v6314_v26 = vcombine.low %v3924_v13, %v3928_v14  ;;  %v6321_v27 = vcombine.high %v3931_v21, %v3935_v52 }
 0x7b6   :  { %5413 = vmatprep.subr.bf16.mxu1 %v6273_v28  ;;  %5495 = vmatprep.subr.bf16.mxu0 %v6275_v29  ;;  %v6323_v28 = vcombine.high %v3932_v23, %v3936_v24  ;;  %v3939_v29 = vld [vmem:[#allocation19 + $0x3c0] sm:$0xff] }
 0x7b9   :  { %5414 = vmatpush1.bf16.msra.mxu1 %v6272_v39  ;;  %5496 = vmatpush1.bf16.msra.mxu0 %v6274_v40  ;;  %v6322_v39 = vcombine.low %v3932_v23, %v3936_v24  ;;  %v6329_v40 = vcombine.high %v3939_v29, %v3943_v32  ;;  %v3971_v23 = vld [vmem:[#allocation19 + $0x4c0] sm:$0xff] }
 0x7ba   :  { %5415 = vmatprep.subr.bf16.mxu1 %v6281_v43  ;;  %5497 = vmatprep.subr.bf16.mxu0 %v6283_v44  ;;  %v6331_v43 = vcombine.high %v3940_v33, %v3944_v34  ;;  %v6328_v44 = vcombine.low %v3939_v29, %v3943_v32  ;;  %v3975_v24 = vld [vmem:[#allocation19 + $0x4e0] sm:$0xff] }
 0x7bb   :  { %v6361_v36 = vcombine.high %v3971_v23, %v3975_v24  ;;  %v6360_v29 = vcombine.low %v3971_v23, %v3975_v24 }
 0x7bd   :  { %5416 = vmatpush1.bf16.msra.mxu1 %v6280_v50  ;;  %5498 = vmatpush1.bf16.msra.mxu0 %v6282_v62  ;;  %v2990_v50 = vrot.slane %v7920_v47, %v7804_v17  ;;  %v2994_v62 = vrot.slane %v7920_v47, %v7810_v19 }
 0x7be   :  { %5417 = vmatprep.subr.bf16.mxu1 %v6289_v51  ;;  %5499 = vmatprep.subr.bf16.mxu0 %v6291_v0 }
 0x7c1   :  { %5418 = vmatpush1.bf16.msra.mxu1 %v6288_v57  ;;  %5500 = vmatpush1.bf16.msra.mxu0 %v6290_v58 }
 0x7c2   :  { %5419 = vmatprep.subr.bf16.mxu1 %v6297_v59  ;;  %5501 = vmatprep.subr.bf16.mxu0 %v6299_v60 }
 0x7c5   :  { %5420 = vmatpush1.bf16.msra.mxu1 %v6296_v31  ;;  %5502 = vmatpush1.bf16.msra.mxu0 %v6298_v8  ;;  %v3959_v8 = vld [vmem:[#allocation19 + $0x460] sm:$0xff] }
 0x7c6   :  { %5421 = vmatprep.subr.bf16.mxu1 %v6305_v9  ;;  %5503 = vmatprep.subr.bf16.mxu0 %v6307_v10  ;;  %v3956_v9 = vld [vmem:[#allocation19 + $0x448] sm:$0xff]  ;;  %v6345_v13 = vcombine.high %v3955_v30, %v3959_v8 }
 0x7c7   :  { %v3960_v10 = vld [vmem:[#allocation19 + $0x468] sm:$0xff] }
 0x7c8   :  { %v6347_v14 = vcombine.high %v3956_v9, %v3960_v10 }
 0x7c9   :  { %5422 = vmatpush1.bf16.msra.mxu1 %v6304_v15  ;;  %5504 = vmatpush1.bf16.msra.mxu0 %v6306_v48  ;;  %v3963_v15 = vld [vmem:[#allocation19 + $0x480] sm:$0xff] }
 0x7ca   :  { %5423 = vmatprep.subr.bf16.mxu1 %v6313_v18  ;;  %5505 = vmatprep.subr.bf16.mxu0 %v6315_v20  ;;  %v3967_v48 = vld [vmem:[#allocation19 + $0x4a0] sm:$0xff]  ;;  %v3964_v18 = vld [vmem:[#allocation19 + $0x488] sm:$0xff]  ;;  %v6346_v20 = vcombine.low %v3956_v9, %v3960_v10 }
 0x7cb   :  { %v6353_v21 = vcombine.high %v3963_v15, %v3967_v48  ;;  %v4012_v9 = vld [vmem:[#allocation19 + $0x608] sm:$0xff] }
 0x7cc   :  { %v4016_v10 = vld [vmem:[#allocation19 + $0x628] sm:$0xff] }
 0x7cd   :  { %5424 = vmatpush1.bf16.msra.mxu1 %v6312_v25  ;;  %5506 = vmatpush1.bf16.msra.mxu0 %v6314_v26  ;;  %v3972_v25 = vld [vmem:[#allocation19 + $0x4c8] sm:$0xff] }
 0x7ce   :  { %5425 = vmatprep.subr.bf16.mxu1 %v6321_v27  ;;  %5507 = vmatprep.subr.bf16.mxu0 %v6323_v28  ;;  %v3976_v26 = vld [vmem:[#allocation19 + $0x4e8] sm:$0xff]  ;;  %v6352_v27 = vcombine.low %v3963_v15, %v3967_v48  ;;  %v6403_v48 = vcombine.high %v4012_v9, %v4016_v10 }
 0x7cf   :  { %v6363_v37 = vcombine.high %v3972_v25, %v3976_v26  ;;  %v6362_v32 = vcombine.low %v3972_v25, %v3976_v26  ;;  %v4027_v25 = vld [vmem:[#allocation19 + $0x680] sm:$0xff] }
 0x7d0   :  { %v4031_v26 = vld [vmem:[#allocation19 + $0x6a0] sm:$0xff] }
 0x7d1   :  { %5426 = vmatpush1.bf16.msra.mxu1 %v6320_v35  ;;  %5508 = vmatpush1.bf16.msra.mxu0 %v6322_v39  ;;  %v3987_v35 = vld [vmem:[#allocation19 + $0x540] sm:$0xff] }
 0x7d2   :  { %5427 = vmatprep.subr.bf16.mxu1 %v6329_v40  ;;  %5509 = vmatprep.subr.bf16.mxu0 %v6331_v43  ;;  %v3991_v39 = vld [vmem:[#allocation19 + $0x560] sm:$0xff]  ;;  %v3988_v40 = vld [vmem:[#allocation19 + $0x548] sm:$0xff] }
 0x7d3   :  { %v3992_v43 = vld [vmem:[#allocation19 + $0x568] sm:$0xff] }
 0x7d5   :  { %5428 = vmatpush1.bf16.msra.mxu1 %v6328_v44  ;;  %5510 = vmatpush1.bf16.msra.mxu0 %v6330_v5 }
 0x7d6   :  { %5438 = vmatprep.subr.bf16.mxu1 %v6337_v45  ;;  %5520 = vmatprep.subr.bf16.mxu0 %v6339_v46  ;;  %v6377_v45 = vcombine.high %v3987_v35, %v3991_v39  ;;  %v6379_v46 = vcombine.high %v3988_v40, %v3992_v43 }
 0x82b   :  { %v3681_v51 = vpop.f32.mrb[16].mxu1  ;;  %v3722_v0 = vpop.f32.mrb[20].mxu0 }
 0x82c   :  { %v3682_v53 = vadd.f32 %v3681_v51, %v2990_v50  ;;  %v3683_v54 = vpop.f32.mrb[17].mxu1  ;;  %v3724_v55 = vpop.f32.mrb[21].mxu0  ;;  %v3995_v50 = vld [vmem:[#allocation19 + $0x580] sm:$0xff]  ;;  %v3996_v51 = vld [vmem:[#allocation19 + $0x588] sm:$0xff] }
 0x82d   :  { %v3684_v56 = vadd.f32 %v3683_v54, %v2994_v62  ;;  %v3685_v57 = vpop.f32.mrb[18].mxu1  ;;  %v3726_v58 = vpop.f32.mrb[22].mxu0  ;;  %v3999_v62 = vld [vmem:[#allocation19 + $0x5a0] sm:$0xff]  ;;  %v6378_v54 = vcombine.low %v3988_v40, %v3992_v43 }
 0x82e   :  { %v3723_v59 = vadd.f32 %v3722_v0, %v3682_v53  ;;  %v3686_v60 = vpop.f32.mrb[19].mxu1  ;;  %v3727_v63 = vpop.f32.mrb[23].mxu0  ;;  %v4000_v0 = vld [vmem:[#allocation19 + $0x5a8] sm:$0xff]  ;;  %v6376_v53 = vcombine.low %v3987_v35, %v3991_v39  ;;  %v4003_v57 = vld [vmem:[#allocation19 + $0x5c0] sm:$0xff] }
 0x82f   :  { %v3725_v2 = vadd.f32 %v3724_v55, %v3684_v56  ;;  %v6385_v55 = vcombine.high %v3995_v50, %v3999_v62  ;;  %v6387_v56 = vcombine.high %v3996_v51, %v4000_v0  ;;  %v4007_v58 = vld [vmem:[#allocation19 + $0x5e0] sm:$0xff]  ;;  %v4008_v60 = vld [vmem:[#allocation19 + $0x5e8] sm:$0xff]  ;;  %v6384_v63 = vcombine.low %v3995_v50, %v3999_v62 }
 0x830   :  { %v3811_v3 = vadd.f32 %v3723_v59, %v7864_v1  ;;  %v3968_v1 = vld [vmem:[#allocation19 + $0x4a8] sm:$0xff]  ;;  %v4043_v40 = vld [vmem:[#allocation19 + $0x700] sm:$0xff] }
 0x831   :  { %v3812_v31 = vadd.f32 %v3725_v2, %v7866_v4  ;;  %v6344_v4 = vcombine.low %v3955_v30, %v3959_v8  ;;  %v6355_v52 = vcombine.high %v3964_v18, %v3968_v1  ;;  %v6354_v28 = vcombine.low %v3964_v18, %v3968_v1  ;;  %v4004_v59 = vld [vmem:[#allocation19 + $0x5c8] sm:$0xff]  ;;  %v4015_v8 = vld [vmem:[#allocation19 + $0x620] sm:$0xff] }
 0x832   :  { %v7930_v12 = vpack.c.bf16 %v3811_v3, %v3811_v3  ;;  %v6386_v2 = vcombine.low %v3996_v51, %v4000_v0  ;;  %v6393_v3 = vcombine.high %v4003_v57, %v4007_v58  ;;  %v6395_v30 = vcombine.high %v4004_v59, %v4008_v60  ;;  %v4019_v18 = vld [vmem:[#allocation19 + $0x640] sm:$0xff] }
 0x833   :  { %v7928_v11 = vpack.c.bf16 %v3812_v31, %v3812_v31  ;;  %v4011_v31 = vld [vmem:[#allocation19 + $0x600] sm:$0xff] }
 0x834   :  { %v6401_v15 = vcombine.high %v4011_v31, %v4015_v8  ;;  %v4023_v1 = vld [vmem:[#allocation19 + $0x660] sm:$0xff] }
 0x835   :  { %5429 = vmatprep.mubr.bf16.mxu1 %v7928_v11  ;;  %5511 = vmatprep.mubr.bf16.mxu0 %v7928_v11  ;;  %v6409_v23 = vcombine.high %v4019_v18, %v4023_v1  ;;  %v4047_v43 = vld [vmem:[#allocation19 + $0x720] sm:$0xff] }
 0x836   :  { %5430 = vmatmul.mubr.bf16.vlgmr.msra.gmra.mrb[24].mxu1 %v7930_v12  ;;  %5512 = vmatmul.mubr.bf16.vlgmr.msra.gmra.mrb[28].mxu0 %v7930_v12  ;;  %v6433_v50 = vcombine.high %v4043_v40, %v4047_v43  ;;  %v4051_v51 = vld [vmem:[#allocation19 + $0x740] sm:$0xff] }
 0x837   :  { %5439 = vmatpush1.bf16.msra.mxu1 %v6336_v41  ;;  %5521 = vmatpush1.bf16.msra.mxu0 %v6338_v6  ;;  %v3983_v41 = vld [vmem:[#allocation19 + $0x520] sm:$0xff]  ;;  %v3984_v6 = vld [vmem:[#allocation19 + $0x528] sm:$0xff] }
 0x838   :  { %5440 = vmatprep.subr.bf16.mxu1 %v6345_v13  ;;  %5522 = vmatprep.subr.bf16.mxu0 %v6347_v14  ;;  %v6369_v33 = vcombine.high %v3979_v38, %v3983_v41  ;;  %v6371_v34 = vcombine.high %v3980_v42, %v3984_v6  ;;  %v6368_v44 = vcombine.low %v3979_v38, %v3983_v41  ;;  %v4055_v0 = vld [vmem:[#allocation19 + $0x760] sm:$0xff] }
 0x839   :  { %v6370_v5 = vcombine.low %v3980_v42, %v3984_v6  ;;  %v6392_v13 = vcombine.low %v4003_v57, %v4007_v58  ;;  %v6394_v14 = vcombine.low %v4004_v59, %v4008_v60  ;;  %v6417_v38 = vcombine.high %v4027_v25, %v4031_v26  ;;  %v4035_v42 = vld [vmem:[#allocation19 + $0x6c0] sm:$0xff] }
 0x83a   :  { %v4039_v6 = vld [vmem:[#allocation19 + $0x6e0] sm:$0xff]  ;;  %v6441_v57 = vcombine.high %v4051_v51, %v4055_v0 }
 0x83b   :  { %5441 = vmatpush1.bf16.msra.mxu1 %v6344_v4  ;;  %5523 = vmatpush1.bf16.msra.mxu0 %v6346_v20  ;;  %v4020_v4 = vld [vmem:[#allocation19 + $0x648] sm:$0xff]  ;;  %v6425_v35 = vcombine.high %v4035_v42, %v4039_v6  ;;  %v4059_v59 = vld [vmem:[#allocation19 + $0x780] sm:$0xff] }
 0x83c   :  { %5442 = vmatprep.subr.bf16.mxu1 %v6353_v21  ;;  %5524 = vmatprep.subr.bf16.mxu0 %v6355_v52  ;;  %v4024_v20 = vld [vmem:[#allocation19 + $0x668] sm:$0xff]  ;;  %v6400_v21 = vcombine.low %v4011_v31, %v4015_v8  ;;  %v6402_v52 = vcombine.low %v4012_v9, %v4016_v10  ;;  %v4063_v60 = vld [vmem:[#allocation19 + $0x7a0] sm:$0xff]  ;;  %v2998_v31 = vrot.slane %v7920_v47, %v7877_v61 }
 0x83d   :  { %v6411_v24 = vcombine.high %v4020_v4, %v4024_v20  ;;  %v6449_v8 = vcombine.high %v4059_v59, %v4063_v60  ;;  %v4067_v10 = vld [vmem:[#allocation19 + $0x7c0] sm:$0xff] }
 0x83f   :  { %5443 = vmatpush1.bf16.msra.mxu1 %v6352_v27  ;;  %5525 = vmatpush1.bf16.msra.mxu0 %v6354_v28  ;;  %v4028_v27 = vld [vmem:[#allocation19 + $0x688] sm:$0xff] }
 0x840   :  { %5444 = vmatprep.subr.bf16.mxu1 %v6361_v36  ;;  %5526 = vmatprep.subr.bf16.mxu0 %v6363_v37  ;;  %v4032_v28 = vld [vmem:[#allocation19 + $0x6a8] sm:$0xff]  ;;  %v6408_v36 = vcombine.low %v4019_v18, %v4023_v1  ;;  %v6410_v37 = vcombine.low %v4020_v4, %v4024_v20  ;;  %v6448_v4 = vcombine.low %v4059_v59, %v4063_v60  ;;  %v3845_v60 = vld [vmem:[#allocation19 + $0xd0] sm:$0xff] }
 0x841   :  { %v6419_v41 = vcombine.high %v4028_v27, %v4032_v28 }
 0x843   :  { %5445 = vmatpush1.bf16.msra.mxu1 %v6360_v29  ;;  %5527 = vmatpush1.bf16.msra.mxu0 %v6362_v32  ;;  %v4036_v29 = vld [vmem:[#allocation19 + $0x6c8] sm:$0xff] }
 0x844   :  { %5446 = vmatprep.subr.bf16.mxu1 %v6369_v33  ;;  %5528 = vmatprep.subr.bf16.mxu0 %v6371_v34  ;;  %v4040_v32 = vld [vmem:[#allocation19 + $0x6e8] sm:$0xff]  ;;  %v6416_v33 = vcombine.low %v4027_v25, %v4031_v26  ;;  %v6418_v34 = vcombine.low %v4028_v27, %v4032_v28  ;;  %v3821_v26 = vld [vmem:[#allocation19 + $0x10] sm:$0xff] }
 0x845   :  { %v6427_v39 = vcombine.high %v4036_v29, %v4040_v32 }
 0x847   :  { %5447 = vmatpush1.bf16.msra.mxu1 %v6368_v44  ;;  %5529 = vmatpush1.bf16.msra.mxu0 %v6370_v5  ;;  %v4044_v44 = vld [vmem:[#allocation19 + $0x708] sm:$0xff] }
 0x848   :  { %5448 = vmatprep.subr.bf16.mxu1 %v6377_v45  ;;  %5530 = vmatprep.subr.bf16.mxu0 %v6379_v46  ;;  %v4048_v5 = vld [vmem:[#allocation19 + $0x728] sm:$0xff]  ;;  %v6424_v45 = vcombine.low %v4035_v42, %v4039_v6  ;;  %v6426_v46 = vcombine.low %v4036_v29, %v4040_v32 }
 0x849   :  { %v6435_v62 = vcombine.high %v4044_v44, %v4048_v5 }
 0x84b   :  { %5449 = vmatpush1.bf16.msra.mxu1 %v6376_v53  ;;  %5531 = vmatpush1.bf16.msra.mxu0 %v6378_v54  ;;  %v4052_v53 = vld [vmem:[#allocation19 + $0x748] sm:$0xff] }
 0x84c   :  { %5450 = vmatprep.subr.bf16.mxu1 %v6385_v55  ;;  %5532 = vmatprep.subr.bf16.mxu0 %v6387_v56  ;;  %v4056_v54 = vld [vmem:[#allocation19 + $0x768] sm:$0xff]  ;;  %v6432_v55 = vcombine.low %v4043_v40, %v4047_v43  ;;  %v6434_v56 = vcombine.low %v4044_v44, %v4048_v5  ;;  %v3829_v43 = vld [vmem:[#allocation19 + $0x50] sm:$0xff]  ;;  %v3830_v5 = vld [vmem:[#allocation19 + $0x58] sm:$0xff] }
 0x84d   :  { %v6443_v58 = vcombine.high %v4052_v53, %v4056_v54  ;;  %v3833_v44 = vld [vmem:[#allocation19 + $0x70] sm:$0xff] }
 0x84f   :  { %5451 = vmatpush1.bf16.msra.mxu1 %v6384_v63  ;;  %5533 = vmatpush1.bf16.msra.mxu0 %v6386_v2  ;;  %v4060_v63 = vld [vmem:[#allocation19 + $0x788] sm:$0xff] }
 0x850   :  { %5452 = vmatprep.subr.bf16.mxu1 %v6393_v3  ;;  %5534 = vmatprep.subr.bf16.mxu0 %v6395_v30  ;;  %v4064_v2 = vld [vmem:[#allocation19 + $0x7a8] sm:$0xff]  ;;  %v6440_v3 = vcombine.low %v4051_v51, %v4055_v0  ;;  %v6442_v30 = vcombine.low %v4052_v53, %v4056_v54  ;;  %v3837_v0 = vld [vmem:[#allocation19 + $0x90] sm:$0xff]  ;;  %v3838_v54 = vld [vmem:[#allocation19 + $0x98] sm:$0xff] }
 0x851   :  { %v6451_v9 = vcombine.high %v4060_v63, %v4064_v2  ;;  %v6450_v20 = vcombine.low %v4060_v63, %v4064_v2  ;;  %v3841_v53 = vld [vmem:[#allocation19 + $0xb0] sm:$0xff]  ;;  %v3846_v2 = vld [vmem:[#allocation19 + $0xd8] sm:$0xff] }
 0x852   :  { %v3849_v63 = vld [vmem:[#allocation19 + $0xf0] sm:$0xff] }
 0x853   :  { %5453 = vmatpush1.bf16.msra.mxu1 %v6392_v13  ;;  %5535 = vmatpush1.bf16.msra.mxu0 %v6394_v14  ;;  %v3002_v13 = vrot.slane %v7920_v47, %v7854_v49  ;;  %v4071_v14 = vld [vmem:[#allocation19 + $0x7e0] sm:$0xff] }
 0x854   :  { %5454 = vmatprep.subr.bf16.mxu1 %v6401_v15  ;;  %5536 = vmatprep.subr.bf16.mxu0 %v6403_v48  ;;  %v4068_v15 = vld [vmem:[#allocation19 + $0x7c8] sm:$0xff]  ;;  %v6456_v32 = vcombine.low %v4067_v10, %v4071_v14 }
 0x855   :  { %v4072_v48 = vld [vmem:[#allocation19 + $0x7e8] sm:$0xff] }
 0x856   :  { %v6459_v25 = vcombine.high %v4068_v15, %v4072_v48 }
 0x857   :  { %5455 = vmatpush1.bf16.msra.mxu1 %v6400_v21  ;;  %5537 = vmatpush1.bf16.msra.mxu0 %v6402_v52 }
 0x858   :  { %5456 = vmatprep.subr.bf16.mxu1 %v6409_v23  ;;  %5538 = vmatprep.subr.bf16.mxu0 %v6411_v24  ;;  %v6457_v24 = vcombine.high %v4067_v10, %v4071_v14  ;;  %v3853_v10 = vld [vmem:[#allocation19 + $0x110] sm:$0xff]  ;;  %v3858_v14 = vld [vmem:[#allocation19 + $0x138] sm:$0xff] }
 0x85b   :  { %5457 = vmatpush1.bf16.msra.mxu1 %v6408_v36  ;;  %5539 = vmatpush1.bf16.msra.mxu0 %v6410_v37  ;;  %v3825_v36 = vld [vmem:[#allocation19 + $0x30] sm:$0xff]  ;;  %v3822_v37 = vld [vmem:[#allocation19 + $0x18] sm:$0xff] }
 0x85c   :  { %5458 = vmatprep.subr.bf16.mxu1 %v6417_v38  ;;  %5540 = vmatprep.subr.bf16.mxu0 %v6419_v41  ;;  %v3826_v38 = vld [vmem:[#allocation19 + $0x38] sm:$0xff] }
 0x85d   :  { %v6214_v51 = vcombine.low %v3822_v37, %v3826_v38 }
 0x85f   :  { %5459 = vmatpush1.bf16.msra.mxu1 %v6416_v33  ;;  %5541 = vmatpush1.bf16.msra.mxu0 %v6418_v34  ;;  %v6458_v33 = vcombine.low %v4068_v15, %v4072_v48  ;;  %v6236_v15 = vcombine.low %v3845_v60, %v3849_v63 }
 0x860   :  { %5460 = vmatprep.subr.bf16.mxu1 %v6425_v35  ;;  %5542 = vmatprep.subr.bf16.mxu0 %v6427_v39  ;;  %v6213_v35 = vcombine.high %v3821_v26, %v3825_v36  ;;  %v6215_v39 = vcombine.high %v3822_v37, %v3826_v38 }
 0x863   :  { %5461 = vmatpush1.bf16.msra.mxu1 %v6424_v45  ;;  %5543 = vmatpush1.bf16.msra.mxu0 %v6426_v46  ;;  %v3834_v45 = vld [vmem:[#allocation19 + $0x78] sm:$0xff] }
 0x864   :  { %5462 = vmatprep.subr.bf16.mxu1 %v6433_v50  ;;  %5544 = vmatprep.subr.bf16.mxu0 %v6435_v62  ;;  %v6212_v50 = vcombine.low %v3821_v26, %v3825_v36  ;;  %v3874_v36 = vld [vmem:[#allocation19 + $0x1b8] sm:$0xff] }
 0x867   :  { %5463 = vmatpush1.bf16.msra.mxu1 %v6432_v55  ;;  %5545 = vmatpush1.bf16.msra.mxu0 %v6434_v56  ;;  %v3842_v55 = vld [vmem:[#allocation19 + $0xb8] sm:$0xff]  ;;  %v6220_v56 = vcombine.low %v3829_v43, %v3833_v44 }
 0x868   :  { %5464 = vmatprep.subr.bf16.mxu1 %v6441_v57  ;;  %5546 = vmatprep.subr.bf16.mxu0 %v6443_v58  ;;  %v6222_v57 = vcombine.low %v3830_v5, %v3834_v45  ;;  %v6229_v58 = vcombine.high %v3837_v0, %v3841_v53  ;;  %v6231_v59 = vcombine.high %v3838_v54, %v3842_v55 }
 0x86b   :  { %v3763_v18 = vpop.f32.mrb[20].mxu1  ;;  %v3804_v1 = vpop.f32.mrb[24].mxu0  ;;  %5465 = vmatpush1.bf16.msra.mxu1 %v6440_v3  ;;  %5547 = vmatpush1.bf16.msra.mxu0 %v6442_v30  ;;  %v3850_v3 = vld [vmem:[#allocation19 + $0xf8] sm:$0xff]  ;;  %v6228_v30 = vcombine.low %v3837_v0, %v3841_v53  ;;  %v3893_v0 = vld [vmem:[#allocation19 + $0x250] sm:$0xff] }
 0x86c   :  { %v3764_v21 = vadd.f32 %v3763_v18, %v2998_v31  ;;  %v3765_v52 = vpop.f32.mrb[21].mxu1  ;;  %v3806_v23 = vpop.f32.mrb[25].mxu0  ;;  %5466 = vmatprep.subr.bf16.mxu1 %v6449_v8  ;;  %5548 = vmatprep.subr.bf16.mxu0 %v6451_v9  ;;  %v6230_v31 = vcombine.low %v3838_v54, %v3842_v55  ;;  %v6237_v8 = vcombine.high %v3845_v60, %v3849_v63  ;;  %v3897_v53 = vld [vmem:[#allocation19 + $0x270] sm:$0xff]  ;;  %v3894_v54 = vld [vmem:[#allocation19 + $0x258] sm:$0xff] }
 0x86d   :  { %v3766_v27 = vadd.f32 %v3765_v52, %v3002_v13  ;;  %v3767_v28 = vpop.f32.mrb[22].mxu1  ;;  %v3808_v47 = vpop.f32.mrb[26].mxu0  ;;  %v6239_v9 = vcombine.high %v3846_v2, %v3850_v3  ;;  %v3857_v13 = vld [vmem:[#allocation19 + $0x130] sm:$0xff]  ;;  %v6238_v48 = vcombine.low %v3846_v2, %v3850_v3  ;;  %v3866_v52 = vld [vmem:[#allocation19 + $0x178] sm:$0xff] }
 0x86e   :  { %v3805_v41 = vadd.f32 %v3804_v1, %v3764_v21  ;;  %v3768_v42 = vpop.f32.mrb[23].mxu1  ;;  %v3809_v6 = vpop.f32.mrb[27].mxu0  ;;  %v6245_v18 = vcombine.high %v3853_v10, %v3857_v13  ;;  %v3862_v21 = vld [vmem:[#allocation19 + $0x158] sm:$0xff]  ;;  %v3873_v28 = vld [vmem:[#allocation19 + $0x1b0] sm:$0xff] }
 0x86f   :  { %v3807_v29 = vadd.f32 %v3806_v23, %v3766_v27  ;;  %5467 = vmatpush1.bf16.msra.mxu1 %v6448_v4  ;;  %5549 = vmatpush1.bf16.msra.mxu0 %v6450_v20  ;;  %v3861_v4 = vld [vmem:[#allocation19 + $0x150] sm:$0xff]  ;;  %v6244_v23 = vcombine.low %v3853_v10, %v3857_v13  ;;  %v6255_v26 = vcombine.high %v3862_v21, %v3866_v52  ;;  %v3870_v47 = vld [vmem:[#allocation19 + $0x198] sm:$0xff] }
 0x870   :  { %v3813_v34 = vadd.f32 %v3805_v41, %v7882_v22  ;;  %5468 = vmatprep.subr.bf16.mxu1 %v6457_v24  ;;  %5550 = vmatprep.subr.bf16.mxu0 %v6459_v25  ;;  %v6221_v22 = vcombine.high %v3829_v43, %v3833_v44  ;;  %v3865_v20 = vld [vmem:[#allocation19 + $0x170] sm:$0xff]  ;;  %v6254_v38 = vcombine.low %v3862_v21, %v3866_v52  ;;  %v3898_v55 = vld [vmem:[#allocation19 + $0x278] sm:$0xff] }
 0x871   :  { %v3814_v40 = vadd.f32 %v3807_v29, %v7870_v7  ;;  %v6223_v7 = vcombine.high %v3830_v5, %v3834_v45  ;;  %v6253_v25 = vcombine.high %v3861_v4, %v3865_v20  ;;  %v3869_v27 = vld [vmem:[#allocation19 + $0x190] sm:$0xff]  ;;  %v6252_v37 = vcombine.low %v3861_v4, %v3865_v20  ;;  %v3886_v5 = vld [vmem:[#allocation19 + $0x218] sm:$0xff] }
 0x872   :  { %v7950_v62 = vpack.c.bf16 %v3813_v34, %v3813_v34  ;;  %v6261_v41 = vcombine.high %v3869_v27, %v3873_v28  ;;  %v6263_v42 = vcombine.high %v3870_v47, %v3874_v36  ;;  %v3877_v6 = vld [vmem:[#allocation19 + $0x1d0] sm:$0xff]  ;;  %v6260_v34 = vcombine.low %v3869_v27, %v3873_v28  ;;  %v3890_v45 = vld [vmem:[#allocation19 + $0x238] sm:$0xff] }
 0x873   :  { %v7948_v46 = vpack.c.bf16 %v3814_v40, %v3814_v40  ;;  %5469 = vmatpush1.bf16.msra.mxu1 %v6456_v32  ;;  %5551 = vmatpush1.bf16.msra.mxu0 %v6458_v33  ;;  %v3881_v29 = vld [vmem:[#allocation19 + $0x1f0] sm:$0xff]  ;;  %v3878_v32 = vld [vmem:[#allocation19 + $0x1d8] sm:$0xff] }
 0x874   :  { %5561 = vmatprep.subr.bf16.mxu1 %v6213_v35  ;;  %5643 = vmatprep.subr.bf16.mxu0 %v6215_v39  ;;  %v3882_v33 = vld [vmem:[#allocation19 + $0x1f8] sm:$0xff]  ;;  %v6262_v35 = vcombine.low %v3870_v47, %v3874_v36  ;;  %v6269_v39 = vcombine.high %v3877_v6, %v3881_v29  ;;  %v3885_v43 = vld [vmem:[#allocation19 + $0x210] sm:$0xff] }
 0x875   :  { %5470 = vmatprep.mubr.bf16.mxu1 %v7948_v46  ;;  %5552 = vmatprep.mubr.bf16.mxu0 %v7948_v46  ;;  %v6271_v40 = vcombine.high %v3878_v32, %v3882_v33  ;;  %v3889_v44 = vld [vmem:[#allocation19 + $0x230] sm:$0xff]  ;;  %v3902_v2 = vld [vmem:[#allocation19 + $0x298] sm:$0xff] }
 0x876   :  { %5471 = vmatmul.mubr.bf16.vlgmr.msra.gmra.mrb[24].mxu1 %v7950_v62  ;;  %5553 = vmatmul.mubr.bf16.vlgmr.msra.gmra.mrb[28].mxu0 %v7950_v62  ;;  %v3901_v60 = vld [vmem:[#allocation19 + $0x290] sm:$0xff]  ;;  %v3906_v3 = vld [vmem:[#allocation19 + $0x2b8] sm:$0xff] }
 0x877   :  { %5562 = vmatpush1.bf16.msra.mxu1 %v6212_v50  ;;  %5593 = vmatprep.mubr.bf16.mxu1 %v7928_v11  ;;  %v6268_v50 = vcombine.low %v3877_v6, %v3881_v29  ;;  %v3905_v63 = vld [vmem:[#allocation19 + $0x2b0] sm:$0xff]  ;;  %v3918_v21 = vld [vmem:[#allocation19 + $0x318] sm:$0xff] }
 0x878   :  { %5644 = vmatpush1.bf16.msra.mxu0 %v6214_v51  ;;  %5675 = vmatprep.mubr.bf16.mxu0 %v7928_v11  ;;  %v3854_v11 = vld [vmem:[#allocation19 + $0x118] sm:$0xff]  ;;  %v6270_v51 = vcombine.low %v3878_v32, %v3882_v33  ;;  %v3909_v10 = vld [vmem:[#allocation19 + $0x2d0] sm:$0xff] }
 0x879   :  { %5563 = vmatprep.subr.bf16.mxu1 %v6221_v22  ;;  %5645 = vmatprep.subr.bf16.mxu0 %v6223_v7  ;;  %v6247_v1 = vcombine.high %v3854_v11, %v3858_v14  ;;  %v6246_v24 = vcombine.low %v3854_v11, %v3858_v14  ;;  %v6277_v22 = vcombine.high %v3885_v43, %v3889_v44  ;;  %v3913_v13 = vld [vmem:[#allocation19 + $0x2f0] sm:$0xff]  ;;  %v3910_v11 = vld [vmem:[#allocation19 + $0x2d8] sm:$0xff] }
 0x87a   :  { %v6279_v7 = vcombine.high %v3886_v5, %v3890_v45  ;;  %v3914_v14 = vld [vmem:[#allocation19 + $0x2f8] sm:$0xff]  ;;  %v3917_v4 = vld [vmem:[#allocation19 + $0x310] sm:$0xff] }
 0x87b   :  { %5564 = vmatpush1.bf16.msra.mxu1 %v6220_v56  ;;  %v6276_v56 = vcombine.low %v3885_v43, %v3889_v44  ;;  %v3921_v20 = vld [vmem:[#allocation19 + $0x330] sm:$0xff]  ;;  %v3922_v52 = vld [vmem:[#allocation19 + $0x338] sm:$0xff] }
 0x87c   :  { %5646 = vmatpush1.bf16.msra.mxu0 %v6222_v57  ;;  %5565 = vmatprep.subr.bf16.mxu1 %v6229_v58  ;;  %v6278_v57 = vcombine.low %v3886_v5, %v3890_v45  ;;  %v6285_v58 = vcombine.high %v3893_v0, %v3897_v53  ;;  %v3925_v27 = vld [vmem:[#allocation19 + $0x350] sm:$0xff]  ;;  %v3926_v47 = vld [vmem:[#allocation19 + $0x358] sm:$0xff] }
 0x87d   :  { %5647 = vmatprep.subr.bf16.mxu0 %v6231_v59  ;;  %v6287_v59 = vcombine.high %v3894_v54, %v3898_v55  ;;  %v3929_v28 = vld [vmem:[#allocation19 + $0x370] sm:$0xff]  ;;  %v3930_v36 = vld [vmem:[#allocation19 + $0x378] sm:$0xff] }
 0x87e   :  { %v3933_v6 = vld [vmem:[#allocation19 + $0x390] sm:$0xff]  ;;  %v3934_v32 = vld [vmem:[#allocation19 + $0x398] sm:$0xff] }
 0x87f   :  { %5566 = vmatpush1.bf16.msra.mxu1 %v6228_v30  ;;  %v6284_v30 = vcombine.low %v3893_v0, %v3897_v53  ;;  %v3937_v29 = vld [vmem:[#allocation19 + $0x3b0] sm:$0xff]  ;;  %v3938_v33 = vld [vmem:[#allocation19 + $0x3b8] sm:$0xff] }
 0x880   :  { %5648 = vmatpush1.bf16.msra.mxu0 %v6230_v31  ;;  %5567 = vmatprep.subr.bf16.mxu1 %v6237_v8  ;;  %v6286_v31 = vcombine.low %v3894_v54, %v3898_v55  ;;  %v6293_v8 = vcombine.high %v3901_v60, %v3905_v63  ;;  %v3941_v43 = vld [vmem:[#allocation19 + $0x3d0] sm:$0xff]  ;;  %v3942_v5 = vld [vmem:[#allocation19 + $0x3d8] sm:$0xff] }
 0x881   :  { %5649 = vmatprep.subr.bf16.mxu0 %v6239_v9  ;;  %v6295_v9 = vcombine.high %v3902_v2, %v3906_v3  ;;  %v3945_v44 = vld [vmem:[#allocation19 + $0x3f0] sm:$0xff]  ;;  %v3946_v45 = vld [vmem:[#allocation19 + $0x3f8] sm:$0xff] }
 0x882   :  { %v3949_v0 = vld [vmem:[#allocation19 + $0x410] sm:$0xff]  ;;  %v3950_v54 = vld [vmem:[#allocation19 + $0x418] sm:$0xff] }
 0x883   :  { %5568 = vmatpush1.bf16.msra.mxu1 %v6236_v15  ;;  %v6292_v15 = vcombine.low %v3901_v60, %v3905_v63  ;;  %v3953_v53 = vld [vmem:[#allocation19 + $0x430] sm:$0xff]  ;;  %v3954_v55 = vld [vmem:[#allocation19 + $0x438] sm:$0xff] }
 0x884   :  { %5650 = vmatpush1.bf16.msra.mxu0 %v6238_v48  ;;  %5569 = vmatprep.subr.bf16.mxu1 %v6245_v18  ;;  %v6294_v48 = vcombine.low %v3902_v2, %v3906_v3  ;;  %v6301_v18 = vcombine.high %v3909_v10, %v3913_v13  ;;  %v3957_v60 = vld [vmem:[#allocation19 + $0x450] sm:$0xff]  ;;  %v6340_v2 = vcombine.low %v3949_v0, %v3953_v53  ;;  %v3958_v3 = vld [vmem:[#allocation19 + $0x458] sm:$0xff] }
 0x885   :  { %5651 = vmatprep.subr.bf16.mxu0 %v6247_v1  ;;  %v6303_v1 = vcombine.high %v3910_v11, %v3914_v14  ;;  %v3961_v63 = vld [vmem:[#allocation19 + $0x470] sm:$0xff] }
 0x887   :  { %5570 = vmatpush1.bf16.msra.mxu1 %v6244_v23  ;;  %v6300_v23 = vcombine.low %v3909_v10, %v3913_v13  ;;  %v3969_v10 = vld [vmem:[#allocation19 + $0x4b0] sm:$0xff] }
 0x888   :  { %5652 = vmatpush1.bf16.msra.mxu0 %v6246_v24  ;;  %5571 = vmatprep.subr.bf16.mxu1 %v6253_v25  ;;  %v6302_v24 = vcombine.low %v3910_v11, %v3914_v14  ;;  %v6309_v25 = vcombine.high %v3917_v4, %v3921_v20  ;;  %v3966_v11 = vld [vmem:[#allocation19 + $0x498] sm:$0xff] }
 0x889   :  { %5653 = vmatprep.subr.bf16.mxu0 %v6255_v26  ;;  %v6311_v26 = vcombine.high %v3918_v21, %v3922_v52  ;;  %v3970_v14 = vld [vmem:[#allocation19 + $0x4b8] sm:$0xff] }
 0x88b   :  { %5572 = vmatpush1.bf16.msra.mxu1 %v6252_v37  ;;  %v6308_v37 = vcombine.low %v3917_v4, %v3921_v20  ;;  %v3973_v4 = vld [vmem:[#allocation19 + $0x4d0] sm:$0xff] }
 0x88c   :  { %5654 = vmatpush1.bf16.msra.mxu0 %v6254_v38  ;;  %5573 = vmatprep.subr.bf16.mxu1 %v6261_v41  ;;  %v6310_v38 = vcombine.low %v3918_v21, %v3922_v52  ;;  %v6317_v41 = vcombine.high %v3925_v27, %v3929_v28  ;;  %v3977_v20 = vld [vmem:[#allocation19 + $0x4f0] sm:$0xff]  ;;  %v3974_v21 = vld [vmem:[#allocation19 + $0x4d8] sm:$0xff] }
 0x88d   :  { %5655 = vmatprep.subr.bf16.mxu0 %v6263_v42  ;;  %v6319_v42 = vcombine.high %v3926_v47, %v3930_v36  ;;  %v3978_v52 = vld [vmem:[#allocation19 + $0x4f8] sm:$0xff] }
 0x88f   :  { %5574 = vmatpush1.bf16.msra.mxu1 %v6260_v34  ;;  %v6316_v34 = vcombine.low %v3925_v27, %v3929_v28  ;;  %v3985_v27 = vld [vmem:[#allocation19 + $0x530] sm:$0xff]  ;;  %v3982_v28 = vld [vmem:[#allocation19 + $0x518] sm:$0xff] }
 0x890   :  { %5656 = vmatpush1.bf16.msra.mxu0 %v6262_v35  ;;  %5575 = vmatprep.subr.bf16.mxu1 %v6269_v39  ;;  %v6318_v35 = vcombine.low %v3926_v47, %v3930_v36  ;;  %v6325_v39 = vcombine.high %v3933_v6, %v3937_v29  ;;  %v3986_v47 = vld [vmem:[#allocation19 + $0x538] sm:$0xff]  ;;  %v6366_v36 = vcombine.low %v3974_v21, %v3978_v52 }
 0x891   :  { %5657 = vmatprep.subr.bf16.mxu0 %v6271_v40  ;;  %v6327_v40 = vcombine.high %v3934_v32, %v3938_v33 }
 0x893   :  { %5576 = vmatpush1.bf16.msra.mxu1 %v6268_v50  ;;  %v6324_v50 = vcombine.low %v3933_v6, %v3937_v29  ;;  %v3990_v6 = vld [vmem:[#allocation19 + $0x558] sm:$0xff] }
 0x894   :  { %5658 = vmatpush1.bf16.msra.mxu0 %v6270_v51  ;;  %5577 = vmatprep.subr.bf16.mxu1 %v6277_v22  ;;  %v6326_v51 = vcombine.low %v3934_v32, %v3938_v33  ;;  %v6333_v22 = vcombine.high %v3941_v43, %v3945_v44  ;;  %v3994_v29 = vld [vmem:[#allocation19 + $0x578] sm:$0xff]  ;;  %v6374_v33 = vcombine.low %v3982_v28, %v3986_v47 }
 0x895   :  { %5659 = vmatprep.subr.bf16.mxu0 %v6279_v7  ;;  %v6335_v7 = vcombine.high %v3942_v5, %v3946_v45 }
 0x897   :  { %5578 = vmatpush1.bf16.msra.mxu1 %v6276_v56  ;;  %v6332_v56 = vcombine.low %v3941_v43, %v3945_v44  ;;  %v3998_v43 = vld [vmem:[#allocation19 + $0x598] sm:$0xff] }
 0x898   :  { %5660 = vmatpush1.bf16.msra.mxu0 %v6278_v57  ;;  %5579 = vmatprep.subr.bf16.mxu1 %v6285_v58  ;;  %v6334_v57 = vcombine.low %v3942_v5, %v3946_v45  ;;  %v6341_v58 = vcombine.high %v3949_v0, %v3953_v53  ;;  %v4002_v44 = vld [vmem:[#allocation19 + $0x5b8] sm:$0xff]  ;;  %v6382_v45 = vcombine.low %v3990_v6, %v3994_v29 }
 0x899   :  { %5661 = vmatprep.subr.bf16.mxu0 %v6287_v59  ;;  %v6343_v59 = vcombine.high %v3950_v54, %v3954_v55  ;;  %v4006_v0 = vld [vmem:[#allocation19 + $0x5d8] sm:$0xff] }
 0x89a   :  { %v4010_v53 = vld [vmem:[#allocation19 + $0x5f8] sm:$0xff] }
 0x89b   :  { %5580 = vmatpush1.bf16.msra.mxu1 %v6284_v30  ;;  %v3962_v30 = vld [vmem:[#allocation19 + $0x478] sm:$0xff] }
 0x89c   :  { %5662 = vmatpush1.bf16.msra.mxu0 %v6286_v31  ;;  %5581 = vmatprep.subr.bf16.mxu1 %v6293_v8  ;;  %v6342_v31 = vcombine.low %v3950_v54, %v3954_v55  ;;  %v6349_v8 = vcombine.high %v3957_v60, %v3961_v63  ;;  %v6351_v13 = vcombine.high %v3958_v3, %v3962_v30 }
 0x89d   :  { %5663 = vmatprep.subr.bf16.mxu0 %v6295_v9  ;;  %v3965_v9 = vld [vmem:[#allocation19 + $0x490] sm:$0xff]  ;;  %v6390_v55 = vcombine.low %v3998_v43, %v4002_v44 }
 0x89f   :  { %5582 = vmatpush1.bf16.msra.mxu1 %v6292_v15  ;;  %v6348_v15 = vcombine.low %v3957_v60, %v3961_v63  ;;  %v4014_v60 = vld [vmem:[#allocation19 + $0x618] sm:$0xff] }
 0x8a0   :  { %5664 = vmatpush1.bf16.msra.mxu0 %v6294_v48  ;;  %5583 = vmatprep.subr.bf16.mxu1 %v6301_v18  ;;  %v6350_v48 = vcombine.low %v3958_v3, %v3962_v30  ;;  %v6357_v18 = vcombine.high %v3965_v9, %v3969_v10  ;;  %v4018_v63 = vld [vmem:[#allocation19 + $0x638] sm:$0xff]  ;;  %v6398_v3 = vcombine.low %v4006_v0, %v4010_v53 }
 0x8a1   :  { %5665 = vmatprep.subr.bf16.mxu0 %v6303_v1  ;;  %v6359_v1 = vcombine.high %v3966_v11, %v3970_v14 }
 0x8a3   :  { %5584 = vmatpush1.bf16.msra.mxu1 %v6300_v23  ;;  %v6356_v23 = vcombine.low %v3965_v9, %v3969_v10  ;;  %v4025_v9 = vld [vmem:[#allocation19 + $0x670] sm:$0xff]  ;;  %v4022_v10 = vld [vmem:[#allocation19 + $0x658] sm:$0xff] }
 0x8a4   :  { %5666 = vmatpush1.bf16.msra.mxu0 %v6302_v24  ;;  %5585 = vmatprep.subr.bf16.mxu1 %v6309_v25  ;;  %v6365_v24 = vcombine.high %v3973_v4, %v3977_v20  ;;  %v6367_v25 = vcombine.high %v3974_v21, %v3978_v52 }
 0x8a5   :  { %5667 = vmatprep.subr.bf16.mxu0 %v6311_v26  ;;  %v3981_v26 = vld [vmem:[#allocation19 + $0x510] sm:$0xff] }
 0x8a6   :  { %v6372_v32 = vcombine.low %v3981_v26, %v3985_v27 }
 0x8a7   :  { %5586 = vmatpush1.bf16.msra.mxu1 %v6308_v37  ;;  %v6373_v37 = vcombine.high %v3981_v26, %v3985_v27  ;;  %v4038_v26 = vld [vmem:[#allocation19 + $0x6d8] sm:$0xff] }
 0x8a8   :  { %5668 = vmatpush1.bf16.msra.mxu0 %v6310_v38  ;;  %5587 = vmatprep.subr.bf16.mxu1 %v6317_v41  ;;  %v6375_v38 = vcombine.high %v3982_v28, %v3986_v47  ;;  %v3989_v41 = vld [vmem:[#allocation19 + $0x550] sm:$0xff]  ;;  %v4042_v27 = vld [vmem:[#allocation19 + $0x6f8] sm:$0xff] }
 0x8a9   :  { %5669 = vmatprep.subr.bf16.mxu0 %v6319_v42  ;;  %v3993_v42 = vld [vmem:[#allocation19 + $0x570] sm:$0xff] }
 0x8aa   :  { %v6380_v5 = vcombine.low %v3989_v41, %v3993_v42 }
 0x8ab   :  { %5588 = vmatpush1.bf16.msra.mxu1 %v6316_v34  ;;  %v6381_v34 = vcombine.high %v3989_v41, %v3993_v42  ;;  %v4046_v41 = vld [vmem:[#allocation19 + $0x718] sm:$0xff] }
 0x8ac   :  { %5670 = vmatpush1.bf16.msra.mxu0 %v6318_v35  ;;  %5589 = vmatprep.subr.bf16.mxu1 %v6325_v39  ;;  %v6383_v35 = vcombine.high %v3990_v6, %v3994_v29  ;;  %v3997_v39 = vld [vmem:[#allocation19 + $0x590] sm:$0xff]  ;;  %v4050_v42 = vld [vmem:[#allocation19 + $0x738] sm:$0xff]  ;;  %v6430_v29 = vcombine.low %v4038_v26, %v4042_v27 }
 0x8ad   :  { %5671 = vmatprep.subr.bf16.mxu0 %v6327_v40  ;;  %v4001_v40 = vld [vmem:[#allocation19 + $0x5b0] sm:$0xff] }
 0x8ae   :  { %v6388_v54 = vcombine.low %v3997_v39, %v4001_v40 }
 0x8af   :  { %5590 = vmatpush1.bf16.msra.mxu1 %v6324_v50  ;;  %v6389_v50 = vcombine.high %v3997_v39, %v4001_v40  ;;  %v4054_v39 = vld [vmem:[#allocation19 + $0x758] sm:$0xff] }
 0x8b0   :  { %5672 = vmatpush1.bf16.msra.mxu0 %v6326_v51  ;;  %5591 = vmatprep.subr.bf16.mxu1 %v6333_v22  ;;  %v6391_v51 = vcombine.high %v3998_v43, %v4002_v44  ;;  %v4005_v22 = vld [vmem:[#allocation19 + $0x5d0] sm:$0xff]  ;;  %v4058_v40 = vld [vmem:[#allocation19 + $0x778] sm:$0xff]  ;;  %v6438_v44 = vcombine.low %v4046_v41, %v4050_v42 }
 0x8b1   :  { %5673 = vmatprep.subr.bf16.mxu0 %v6335_v7  ;;  %v4009_v7 = vld [vmem:[#allocation19 + $0x5f0] sm:$0xff] }
 0x8b3   :  { %5592 = vmatpush1.bf16.msra.mxu1 %v6332_v56  ;;  %v6397_v56 = vcombine.high %v4005_v22, %v4009_v7 }
 0x8b4   :  { %5674 = vmatpush1.bf16.msra.mxu0 %v6334_v57  ;;  %5602 = vmatprep.subr.bf16.mxu1 %v6341_v58  ;;  %v6399_v57 = vcombine.high %v4006_v0, %v4010_v53  ;;  %v4013_v58 = vld [vmem:[#allocation19 + $0x610] sm:$0xff]  ;;  %v6446_v53 = vcombine.low %v4054_v39, %v4058_v40 }
 0x8b5   :  { %5684 = vmatprep.subr.bf16.mxu0 %v6343_v59  ;;  %v4017_v59 = vld [vmem:[#allocation19 + $0x630] sm:$0xff] }
 0x8b6   :  { %5594 = vmatmul.mubr.bf16.vlgmr.msra.gmra.mrb[28].mxu1 %v7930_v12  ;;  %v6405_v30 = vcombine.high %v4013_v58, %v4017_v59 }
 0x8b7   :  { %5676 = vmatmul.mubr.bf16.vlgmr.msra.gmra.mrb[32].mxu0 %v7930_v12  ;;  %5603 = vmatpush1.bf16.msra.mxu1 %v6340_v2  ;;  %v6358_v12 = vcombine.low %v3966_v11, %v3970_v14  ;;  %v6396_v2 = vcombine.low %v4005_v22, %v4009_v7  ;;  %v6404_v11 = vcombine.low %v4013_v58, %v4017_v59  ;;  %v4062_v22 = vld [vmem:[#allocation19 + $0x798] sm:$0xff] }
 0x8b8   :  { %5634 = vmatprep.mubr.bf16.mxu1 %v7948_v46  ;;  %5685 = vmatpush1.bf16.msra.mxu0 %v6342_v31  ;;  %v6407_v31 = vcombine.high %v4014_v60, %v4018_v63  ;;  %v6406_v14 = vcombine.low %v4014_v60, %v4018_v63  ;;  %v4066_v7 = vld [vmem:[#allocation19 + $0x7b8] sm:$0xff] }
 0x8b9   :  { %5716 = vmatprep.mubr.bf16.mxu0 %v7948_v46  ;;  %5604 = vmatprep.subr.bf16.mxu1 %v6349_v8  ;;  %v6364_v46 = vcombine.low %v3973_v4, %v3977_v20  ;;  %v4021_v8 = vld [vmem:[#allocation19 + $0x650] sm:$0xff]  ;;  %v4030_v4 = vld [vmem:[#allocation19 + $0x698] sm:$0xff]  ;;  %v6454_v63 = vcombine.low %v4062_v22, %v4066_v7 }
 0x8ba   :  { %5686 = vmatprep.subr.bf16.mxu0 %v6351_v13  ;;  %v4026_v13 = vld [vmem:[#allocation19 + $0x678] sm:$0xff]  ;;  %v6412_v21 = vcombine.low %v4021_v8, %v4025_v9 }
 0x8bb   :  { %5605 = vmatpush1.bf16.msra.mxu1 %v6348_v15  ;;  %v6413_v15 = vcombine.high %v4021_v8, %v4025_v9  ;;  %v4034_v20 = vld [vmem:[#allocation19 + $0x6b8] sm:$0xff]  ;;  %v6414_v52 = vcombine.low %v4022_v10, %v4026_v13 }
 0x8bc   :  { %5687 = vmatpush1.bf16.msra.mxu0 %v6350_v48  ;;  %5606 = vmatprep.subr.bf16.mxu1 %v6357_v18  ;;  %v6415_v48 = vcombine.high %v4022_v10, %v4026_v13  ;;  %v4029_v18 = vld [vmem:[#allocation19 + $0x690] sm:$0xff]  ;;  %v6422_v47 = vcombine.low %v4030_v4, %v4034_v20  ;;  %v4070_v58 = vld [vmem:[#allocation19 + $0x7d8] sm:$0xff] }
 0x8bd   :  { %5688 = vmatprep.subr.bf16.mxu0 %v6359_v1  ;;  %v4033_v1 = vld [vmem:[#allocation19 + $0x6b0] sm:$0xff]  ;;  %v4074_v59 = vld [vmem:[#allocation19 + $0x7f8] sm:$0xff] }
 0x8be   :  { %v6420_v28 = vcombine.low %v4029_v18, %v4033_v1  ;;  %v4075_v8 = vld [vmem:[%s8033_s24] sm:$0xff] }
 0x8bf   :  { %5607 = vmatpush1.bf16.msra.mxu1 %v6356_v23  ;;  %v6421_v23 = vcombine.high %v4029_v18, %v4033_v1  ;;  %v4080_v9 = vrot.slane %v4075_v8, %v7804_v17  ;;  %v4088_v10 = vrot.slane %v4075_v8, %v7877_v61  ;;  %v4084_v13 = vrot.slane %v4075_v8, %v7810_v19 }
 0x8c0   :  { %5689 = vmatpush1.bf16.msra.mxu0 %v6358_v12  ;;  %5608 = vmatprep.subr.bf16.mxu1 %v6365_v24  ;;  %v6423_v12 = vcombine.high %v4030_v4, %v4034_v20  ;;  %v4037_v24 = vld [vmem:[#allocation19 + $0x6d0] sm:$0xff]  ;;  %v4103_v61 = vsub.s32 6, %v7801_v16 }
 0x8c1   :  { %5690 = vmatprep.subr.bf16.mxu0 %v6367_v25  ;;  %v4041_v25 = vld [vmem:[#allocation19 + $0x6f0] sm:$0xff] }
 0x8c2   :  { %v6428_v6 = vcombine.low %v4037_v24, %v4041_v25 }
 0x8c3   :  { %5609 = vmatpush1.bf16.msra.mxu1 %v6364_v46  ;;  %v6429_v46 = vcombine.high %v4037_v24, %v4041_v25  ;;  %v4104_v25 = vrot.slane %v4075_v8, %v4103_v61 }
 0x8c4   :  { %5691 = vmatpush1.bf16.msra.mxu0 %v6366_v36  ;;  %5610 = vmatprep.subr.bf16.mxu1 %v6373_v37  ;;  %v6431_v36 = vcombine.high %v4038_v26, %v4042_v27  ;;  %v4045_v37 = vld [vmem:[#allocation19 + $0x710] sm:$0xff] }
 0x8c5   :  { %5692 = vmatprep.subr.bf16.mxu0 %v6375_v38  ;;  %v4049_v38 = vld [vmem:[#allocation19 + $0x730] sm:$0xff] }
 0x8c6   :  { %v6436_v43 = vcombine.low %v4045_v37, %v4049_v38 }
 0x8c7   :  { %5611 = vmatpush1.bf16.msra.mxu1 %v6372_v32  ;;  %v6437_v32 = vcombine.high %v4045_v37, %v4049_v38 }
 0x8c8   :  { %5693 = vmatpush1.bf16.msra.mxu0 %v6374_v33  ;;  %5612 = vmatprep.subr.bf16.mxu1 %v6381_v34  ;;  %v6439_v33 = vcombine.high %v4046_v41, %v4050_v42  ;;  %v4053_v34 = vld [vmem:[#allocation19 + $0x750] sm:$0xff] }
 0x8c9   :  { %5694 = vmatprep.subr.bf16.mxu0 %v6383_v35  ;;  %v4057_v35 = vld [vmem:[#allocation19 + $0x770] sm:$0xff] }
 0x8ca   :  { %v6444_v0 = vcombine.low %v4053_v34, %v4057_v35 }
 0x8cb   :  { %5613 = vmatpush1.bf16.msra.mxu1 %v6380_v5  ;;  %v6445_v5 = vcombine.high %v4053_v34, %v4057_v35 }
 0x8cc   :  { %5695 = vmatpush1.bf16.msra.mxu0 %v6382_v45  ;;  %5614 = vmatprep.subr.bf16.mxu1 %v6389_v50  ;;  %v6447_v45 = vcombine.high %v4054_v39, %v4058_v40  ;;  %v4061_v50 = vld [vmem:[#allocation19 + $0x790] sm:$0xff] }
 0x8cd   :  { %5696 = vmatprep.subr.bf16.mxu0 %v6391_v51  ;;  %v4065_v51 = vld [vmem:[#allocation19 + $0x7b0] sm:$0xff] }
 0x8ce   :  { %v6452_v60 = vcombine.low %v4061_v50, %v4065_v51 }
 0x8cf   :  { %5615 = vmatpush1.bf16.msra.mxu1 %v6388_v54  ;;  %v6453_v54 = vcombine.high %v4061_v50, %v4065_v51 }
 0x8d0   :  { %5697 = vmatpush1.bf16.msra.mxu0 %v6390_v55  ;;  %5616 = vmatprep.subr.bf16.mxu1 %v6397_v56  ;;  %v6455_v55 = vcombine.high %v4062_v22, %v4066_v7  ;;  %v4069_v56 = vld [vmem:[#allocation19 + $0x7d0] sm:$0xff] }
 0x8d1   :  { %5698 = vmatprep.subr.bf16.mxu0 %v6399_v57  ;;  %v4073_v57 = vld [vmem:[#allocation19 + $0x7f0] sm:$0xff] }
 0x8d3   :  { %5617 = vmatpush1.bf16.msra.mxu1 %v6396_v2  ;;  %v6461_v2 = vcombine.high %v4069_v56, %v4073_v57 }
 0x8d4   :  { %5699 = vmatpush1.bf16.msra.mxu0 %v6398_v3  ;;  %5618 = vmatprep.subr.bf16.mxu1 %v6405_v30  ;;  %v6463_v3 = vcombine.high %v4070_v58, %v4074_v59  ;;  %v6460_v30 = vcombine.low %v4069_v56, %v4073_v57 }
 0x8d5   :  { %5700 = vmatprep.subr.bf16.mxu0 %v6407_v31  ;;  %v6462_v31 = vcombine.low %v4070_v58, %v4074_v59 }
 0x8d7   :  { %5619 = vmatpush1.bf16.msra.mxu1 %v6404_v11  ;;  %v4092_v11 = vrot.slane %v4075_v8, %v7854_v49  ;;  %v4095_v49 = vsub.s32 4, %v7801_v16 }
 0x8d8   :  { %5701 = vmatpush1.bf16.msra.mxu0 %v6406_v14  ;;  %5620 = vmatprep.subr.bf16.mxu1 %v6413_v15 }
 0x8d9   :  { %5702 = vmatprep.subr.bf16.mxu0 %v6415_v48  ;;  %v4096_v24 = vrot.slane %v4075_v8, %v4095_v49 }
 0x8db   :  { %5621 = vmatpush1.bf16.msra.mxu1 %v6412_v21 }
 0x8dc   :  { %5703 = vmatpush1.bf16.msra.mxu0 %v6414_v52  ;;  %5622 = vmatprep.subr.bf16.mxu1 %v6421_v23  ;;  %v4099_v23 = vsub.s32 5, %v7801_v16 }
 0x8dd   :  { %5704 = vmatprep.subr.bf16.mxu0 %v6423_v12  ;;  %v4107_v12 = vsub.s32 7, %v7801_v16 }
 0x8de   :  { %v4100_v26 = vrot.slane %v4075_v8, %v4099_v23 }
 0x8df   :  { %5623 = vmatpush1.bf16.msra.mxu1 %v6420_v28  ;;  %v4108_v27 = vrot.slane %v4075_v8, %v4107_v12 }
 0x8e0   :  { %5705 = vmatpush1.bf16.msra.mxu0 %v6422_v47  ;;  %5624 = vmatprep.subr.bf16.mxu1 %v6429_v46 }
 0x8e1   :  { %5706 = vmatprep.subr.bf16.mxu0 %v6431_v36 }
 0x8e3   :  { %5625 = vmatpush1.bf16.msra.mxu1 %v6428_v6 }
 0x8e4   :  { %5707 = vmatpush1.bf16.msra.mxu0 %v6430_v29  ;;  %5626 = vmatprep.subr.bf16.mxu1 %v6437_v32 }
 0x8e5   :  { %5708 = vmatprep.subr.bf16.mxu0 %v6439_v33 }
 0x8e7   :  { %5627 = vmatpush1.bf16.msra.mxu1 %v6436_v43 }
 0x8e8   :  { %5709 = vmatpush1.bf16.msra.mxu0 %v6438_v44  ;;  %5628 = vmatprep.subr.bf16.mxu1 %v6445_v5 }
 0x8e9   :  { %5710 = vmatprep.subr.bf16.mxu0 %v6447_v45 }
 0x8eb   :  { %5629 = vmatpush1.bf16.msra.mxu1 %v6444_v0 }
 0x8ec   :  { %5711 = vmatpush1.bf16.msra.mxu0 %v6446_v53  ;;  %5630 = vmatprep.subr.bf16.mxu1 %v6453_v54 }
 0x8ed   :  { %5712 = vmatprep.subr.bf16.mxu0 %v6455_v55 }
 0x8ef   :  { %5631 = vmatpush1.bf16.msra.mxu1 %v6452_v60 }
 0x8f0   :  { %5713 = vmatpush1.bf16.msra.mxu0 %v6454_v63  ;;  %5632 = vmatprep.subr.bf16.mxu1 %v6461_v2 }
 0x8f1   :  { %5714 = vmatprep.subr.bf16.mxu0 %v6463_v3 }
 0x8f3   :  { %5633 = vmatpush1.bf16.msra.mxu1 %v6460_v30 }
 0x8f4   :  { %5715 = vmatpush1.bf16.msra.mxu0 %v6462_v31 }
 0x8f6   :  { %5635 = vmatmul.mubr.bf16.vlgmr.msra.gmra.mrb[28].mxu1 %v7950_v62 }
 0x8f7   :  { %5717 = vmatmul.mubr.bf16.vlgmr.msra.gmra.mrb[32].mxu0 %v7950_v62 }
 0x949   :  { %v5472_v14 = vpop.f32.mrb[24].mxu1  ;;  %v5554_v15 = vpop.f32.mrb[28].mxu0 }
 0x94a   :  { %v6468_v48 = vadd.f32 %v5472_v14, %v4080_v9  ;;  %v6470_v18 = vadd.f32 %v5554_v15, %v4088_v10  ;;  %v5474_v1 = vpop.f32.mrb[25].mxu1  ;;  %v5556_v4 = vpop.f32.mrb[29].mxu0 }
 0x94b   :  { %v6469_v20 = vadd.f32 %v5474_v1, %v4084_v13  ;;  %v6471_v62 = vadd.f32 %v5556_v4, %v4092_v11  ;;  %v5476_v21 = vpop.f32.mrb[26].mxu1  ;;  %v5558_v52 = vpop.f32.mrb[30].mxu0 }
 0x94c   :  { %5725 = vst [vmem:[%s8034_s20] sm:$0xff] %v6468_v48  ;;  %5727 = vst [vmem:[%s8034_s20 + $0x10] sm:$0xff] %v6470_v18  ;;  %v5477_v17 = vpop.f32.mrb[27].mxu1  ;;  %v5559_v19 = vpop.f32.mrb[31].mxu0 }
 0x94d   :  { %5726 = vst [vmem:[%s8034_s20 + $0x8] sm:$0xff] %v6469_v20  ;;  %5728 = vst [vmem:[%s8034_s20 + $0x18] sm:$0xff] %v6471_v62 }
 0x9c9   :  { %v5636_v28 = vpop.f32.mrb[28].mxu1 }
 0x9ca   :  { %v6472_v47 = vadd.f32 %v5636_v28, %v4096_v24  ;;  %v5718_v46 = vpop.f32.mrb[32].mxu0  ;;  %v5638_v36 = vpop.f32.mrb[29].mxu1 }
 0x9cb   :  { %v6474_v37 = vadd.f32 %v5718_v46, %v4104_v25  ;;  %v6473_v38 = vadd.f32 %v5638_v36, %v4100_v26  ;;  %v5720_v41 = vpop.f32.mrb[33].mxu0  ;;  %v5640_v42 = vpop.f32.mrb[30].mxu1 }
 0x9cc   :  { %5729 = vst [vmem:[%s8034_s20 + $0x20] sm:$0xff] %v6472_v47  ;;  %v6475_v6 = vadd.f32 %v5720_v41, %v4108_v27  ;;  %v5722_v29 = vpop.f32.mrb[34].mxu0  ;;  %v5641_v32 = vpop.f32.mrb[31].mxu1 }
 0x9cd   :  { %5731 = vst [vmem:[%s8034_s20 + $0x30] sm:$0xff] %v6474_v37  ;;  %5730 = vst [vmem:[%s8034_s20 + $0x28] sm:$0xff] %v6473_v38  ;;  %v5723_v16 = vpop.f32.mrb[35].mxu0 }
 0x9ce   :  { %5732 = vst [vmem:[%s8034_s20 + $0x38] sm:$0xff] %v6475_v6 }
 0x9cf   :  { %5737 = vsyncpa [#allocation3], 1 }
 0x9d0   :  { %5738 = vsyncpa [#allocation5], 1 }
 0x9d1   :  { %5739 = vsyncpa [#allocation8], 1 }
 0x9d2   :  { %5740 = vsyncpa [#allocation11], 1 }
 0x9d3   :  { %5741 = vsyncpa [#allocation14], 1 }
 0x9d4   :  { %5742 = vsyncpa [#allocation17], 1 }
 0x9d5   :  { %5743 = vsyncpa [#allocation20], 1 }

</bundles_post_ra>
